<compile_context>
chip_gen: v7x
topology: tpu7x:2x2x1
jax: 0.10.0
libtpu: 0.0.40
codegen_flags: <defaults>
</compile_context>

<pallas_src>
import jax
import jax.numpy as jnp
from jax.experimental import pallas as pl
from jax.experimental.pallas import tpu as pltpu


# --------------------------------------------------------------------------
# in-kernel math helpers
# --------------------------------------------------------------------------

def _sigmoid(y):
    # EUP reciprocal (approx) keeps the divide off the VALU critical path.
    return pl.reciprocal(1.0 + jnp.exp(-y), approx=True)


def _swish(y):
    return y * _sigmoid(y)


def _se_scale(d2, w1, b1, w2, b2):
    """Squeeze-and-excite channel gate applied to a (M, C) activation value."""
    m = d2.shape[0]
    pooled = jnp.sum(d2, axis=0, keepdims=True) * (1.0 / m)          # (1, C)
    s1 = _swish(jnp.dot(pooled, w1, preferred_element_type=jnp.float32) + b1)
    s2 = _sigmoid(jnp.dot(s1, w2, preferred_element_type=jnp.float32) + b2)
    return d2 * s2


# --------------------------------------------------------------------------
# stage 1: stem + MBConv block 1 + block-2 expand      (one call, grid = batch)
# --------------------------------------------------------------------------

def _stage1_kernel(patch_ref, sw_ref, sb_ref,
                   dw_w_ref, dw_b_ref, sew1_ref, seb1_ref, sew2_ref, seb2_ref,
                   pw_ref, pb_ref, ew_ref, eb_ref,
                   e2_ref, sp1):
    H = W = 16
    C1 = 32

    # ---- stem: 3x3 stride-2 conv as ONE (256, 32) @ (32, 32) MXU dot ------
    s = jnp.dot(patch_ref[0], sw_ref[...], preferred_element_type=jnp.float32)
    s = _swish(s + sb_ref[...])                                      # (256, 32)

    # ---- block 1 depthwise 3x3 stride-1: padded VMEM scratch + static
    #      shifted-window reads (no HBM im2col, no wrapper padding) ----------
    sp1[...] = jnp.zeros_like(sp1)
    for i in range(H):                     # row-strip stores, no split reshape
        sp1[i + 1, 1:W + 1, :] = s[i * W:(i + 1) * W, :]
    acc = jnp.zeros((H, W, C1), jnp.float32)
    for di in range(3):
        for dj in range(3):
            t = di * 3 + dj
            acc = acc + sp1[di:di + H, dj:dj + W, :] * dw_w_ref[t:t + 1, :]
    d1 = _swish(acc + dw_b_ref[...]).reshape(H * W, C1)

    # ---- block 1 SE + 1x1 project (32 -> 16, BN folded, no residual) -------
    d1 = _se_scale(d1, sew1_ref[...], seb1_ref[...], sew2_ref[...], seb2_ref[...])
    b1 = jnp.dot(d1.astype(jnp.bfloat16), pw_ref[...],
                 preferred_element_type=jnp.float32) + pb_ref[...]   # (256, 16)

    # ---- block 2 expand 1x1 (16 -> 96) + folded BN + swish ------------------
    e2 = _swish(jnp.dot(b1.astype(jnp.bfloat16), ew_ref[...],
                        preferred_element_type=jnp.float32) + eb_ref[...])
    e2_ref[0] = e2.astype(e2_ref.dtype)


def _full_spec(shape):
    nd = len(shape)
    return pl.BlockSpec(shape, lambda b, _nd=nd: (0,) * _nd)


def stage1(patches, P):
    B = patches.shape[0]
    p1, p2 = P["b1"], P["b2"]
    ins = [patches, P["stem_w"], P["stem_b"],
           p1["dw_w"], p1["dw_b"], p1["se_w1"], p1["se_b1"],
           p1["se_w2"], p1["se_b2"], p1["proj_w"], p1["proj_b"],
           p2["exp_w"], p2["exp_b"]]
    in_specs = [pl.BlockSpec((1, 256, 32), lambda b: (b, 0, 0))]
    in_specs += [_full_spec(a.shape) for a in ins[1:]]
    return pl.pallas_call(
        _stage1_kernel,
        out_shape=jax.ShapeDtypeStruct((B, 256, 96), jnp.bfloat16),
        grid=(B,),
        in_specs=in_specs,
        out_specs=pl.BlockSpec((1, 256, 96), lambda b: (b, 0, 0)),
        scratch_shapes=[pltpu.VMEM((18, 18, 32), jnp.float32)],
        compiler_params=pltpu.CompilerParams(dimension_semantics=("parallel",)),
        cost_estimate=pl.CostEstimate(flops=3_500_000, transcendentals=90_000,
                                      bytes_accessed=200_000),
    )(*ins)


# --------------------------------------------------------------------------
# stage 2: block-2 tail + block 3 + head + composed classifier
# --------------------------------------------------------------------------

def _stage2_kernel(e2p_ref,
                   dw2_w_ref, dw2_b_ref, se2w1_ref, se2b1_ref, se2w2_ref, se2b2_ref,
                   p2w_ref, p2b_ref,
                   e3w_ref, e3b_ref, dw3_w_ref, dw3_b_ref,
                   se3w1_ref, se3b1_ref, se3w2_ref, se3b2_ref,
                   p3w_ref, p3b_ref,
                   hw_ref, hb_ref, cw_ref, cb_ref,
                   o_ref, sp3):
    HO = WO = 8
    C2 = 96
    C3 = 144

    # ---- block 2 depthwise 3x3 stride-2: parity planes -> contiguous reads --
    acc = jnp.zeros((HO, WO, C2), jnp.float32)
    for di in range(3):
        for dj in range(3):
            plane = (di % 2) * 2 + (dj % 2)
            oi, oj = di // 2, dj // 2
            tap = e2p_ref[0, plane, oi:oi + HO, oj:oj + WO, :]
            acc = acc + tap * dw2_w_ref[di * 3 + dj:di * 3 + dj + 1, :]
    d2 = _swish(acc + dw2_b_ref[...]).reshape(HO * WO, C2)
    d2 = _se_scale(d2, se2w1_ref[...], se2b1_ref[...], se2w2_ref[...], se2b2_ref[...])
    b2 = jnp.dot(d2.astype(jnp.bfloat16), p2w_ref[...],
                 preferred_element_type=jnp.float32) + p2b_ref[...]     # (64, 24)

    # ---- block 3 expand (24 -> 144) + swish ---------------------------------
    e3 = _swish(jnp.dot(b2.astype(jnp.bfloat16), e3w_ref[...],
                        preferred_element_type=jnp.float32) + e3b_ref[...])

    # ---- block 3 depthwise 3x3 stride-1 via padded VMEM scratch -------------
    sp3[...] = jnp.zeros_like(sp3)
    for i in range(HO):
        sp3[i + 1, 1:WO + 1, :] = e3[i * WO:(i + 1) * WO, :]
    acc3 = jnp.zeros((HO, WO, C3), jnp.float32)
    for di in range(3):
        for dj in range(3):
            t = di * 3 + dj
            acc3 = acc3 + sp3[di:di + HO, dj:dj + WO, :] * dw3_w_ref[t:t + 1, :]
    d3 = _swish(acc3 + dw3_b_ref[...]).reshape(HO * WO, C3)
    d3 = _se_scale(d3, se3w1_ref[...], se3b1_ref[...], se3w2_ref[...], se3b2_ref[...])
    b3 = (jnp.dot(d3.astype(jnp.bfloat16), p3w_ref[...],
                  preferred_element_type=jnp.float32) + p3b_ref[...] + b2)  # fused residual

    # ---- head 1x1 conv + BN + swish + global average pool, 16-row chunks ----
    CH = 16
    pooled = jnp.zeros((1, hw_ref.shape[1]), jnp.float32)
    for c in range(0, HO * WO, CH):
        chunk = b3[c:c + CH, :].astype(jnp.bfloat16)
        h = _swish(jnp.dot(chunk, hw_ref[...],
                           preferred_element_type=jnp.float32) + hb_ref[...])
        pooled = pooled + jnp.sum(h, axis=0, keepdims=True)
    pooled = pooled * (1.0 / (HO * WO))
    # TODO(synk): `pooled` is what the PyTorch _avg_pooling forward hook would
    #             capture; the hook/activation-list side effect is not emitted.

    # ---- composed classifier (Linear(1280,1000) o Linear(1000,nc)), 128-wide -
    logits = jnp.dot(pooled.astype(jnp.bfloat16), cw_ref[...],
                     preferred_element_type=jnp.float32) + cb_ref[...]
    o_ref[0] = logits.astype(o_ref.dtype)


def stage2(e2p, P):
    B = e2p.shape[0]
    nc_pad = P["cls_w"].shape[1]
    p2, p3 = P["b2"], P["b3"]
    ins = [e2p,
           p2["dw_w"], p2["dw_b"], p2["se_w1"], p2["se_b1"], p2["se_w2"], p2["se_b2"],
           p2["proj_w"], p2["proj_b"],
           p3["exp_w"], p3["exp_b"], p3["dw_w"], p3["dw_b"],
           p3["se_w1"], p3["se_b1"], p3["se_w2"], p3["se_b2"],
           p3["proj_w"], p3["proj_b"],
           P["head_w"], P["head_b"], P["cls_w"], P["cls_b"]]
    in_specs = [pl.BlockSpec((1, 4, 9, 9, 96), lambda b: (b, 0, 0, 0, 0))]
    in_specs += [_full_spec(a.shape) for a in ins[1:]]
    return pl.pallas_call(
        _stage2_kernel,
        out_shape=jax.ShapeDtypeStruct((B, 1, nc_pad), jnp.float32),
        grid=(B,),
        in_specs=in_specs,
        out_specs=pl.BlockSpec((1, 1, nc_pad), lambda b: (b, 0, 0)),
        scratch_shapes=[pltpu.VMEM((10, 10, 144), jnp.float32)],
        compiler_params=pltpu.CompilerParams(dimension_semantics=("parallel",)),
        cost_estimate=pl.CostEstimate(flops=11_000_000, transcendentals=220_000,
                                      bytes_accessed=700_000),
    )(*ins)


# --------------------------------------------------------------------------
# wrapper-side glue (the only XLA ops: stem im2col + one parity split)
# --------------------------------------------------------------------------

def _stem_patches(x_nhwc):
    """3x3/stride-2 TF-'same' im2col with taps merged into K (27 -> 32 pad)."""
    B, H, W, C = x_nhwc.shape
    xp = jnp.pad(x_nhwc, ((0, 0), (0, 1), (0, 1), (0, 0)))
    Ho, Wo = H // 2, W // 2
    taps = [xp[:, di::2, dj::2, :][:, :Ho, :Wo, :]
            for di in range(3) for dj in range(3)]
    patches = jnp.concatenate(taps, axis=-1).reshape(B, Ho * Wo, 9 * C)
    patches = jnp.pad(patches, ((0, 0), (0, 0), (0, 32 - 9 * C)))
    return patches.astype(jnp.bfloat16)


def _parity_planes_s2(x_img):
    """TF-'same' (0,1) pad + 2x2 parity split so the stride-2 depthwise conv
    needs only contiguous static in-kernel reads. (B,H,W,C)->(B,4,H/2+1,W/2+1,C)."""
    B, H, W, C = x_img.shape
    assert H % 2 == 0 and W % 2 == 0, (H, W)
    xp = jnp.pad(x_img, ((0, 0), (0, 1), (0, 1), (0, 0))).astype(jnp.float32)
    ho, wo = H // 2 + 1, W // 2 + 1
    planes = []
    for pi in range(2):
        for pj in range(2):
            pp = xp[:, pi::2, pj::2, :]
            assert pp.shape[1] in (ho - 1, ho) and pp.shape[2] in (wo - 1, wo)
            pp = jnp.pad(pp, ((0, 0), (0, ho - pp.shape[1]),
                              (0, wo - pp.shape[2]), (0, 0)))
            planes.append(pp)
    return jnp.stack(planes, axis=1)


# --------------------------------------------------------------------------
# parameters (synthetic; eval-mode BN folded into weights, classifier composed)
# --------------------------------------------------------------------------

def init_params(key, num_classes=10, nc_pad=128):
    ks = iter(jax.random.split(key, 64))

    def w(shape, fan_in):
        return jax.random.normal(next(ks), shape, jnp.float32) / jnp.sqrt(
            jnp.float32(fan_in))

    def bn(c):
        s = 1.0 + 0.1 * jax.random.normal(next(ks), (c,), jnp.float32)
        b = 0.05 * jax.random.normal(next(ks), (c,), jnp.float32)
        return s, b

    def vec(c):
        return 0.05 * jax.random.normal(next(ks), (c,), jnp.float32)

    def mb(cin, cout, expand, se_c):
        cexp = cin * expand
        d = {}
        if expand != 1:
            ew = w((cin, cexp), cin)
            es, eb = bn(cexp)
            d["exp_w"] = (ew * es[None, :]).astype(jnp.bfloat16)   # BN folded
            d["exp_b"] = eb.reshape(1, cexp)
        dw = w((9, cexp), 9)
        dss, dbb = bn(cexp)
        d["dw_w"] = dw * dss[None, :]                              # f32, BN folded
        d["dw_b"] = dbb.reshape(1, cexp)
        d["se_w1"] = w((cexp, se_c), cexp)
        d["se_b1"] = vec(se_c).reshape(1, se_c)
        d["se_w2"] = w((se_c, cexp), se_c)
        d["se_b2"] = vec(cexp).reshape(1, cexp)
        pw = w((cexp, cout), cexp)
        pss, pbb = bn(cout)
        d["proj_w"] = (pw * pss[None, :]).astype(jnp.bfloat16)
        d["proj_b"] = pbb.reshape(1, cout)
        return d

    P = {}
    sw = w((3, 3, 3, 32), 27).reshape(27, 32)          # (kh, kw, cin) -> K
    ss, sb = bn(32)
    sw = sw * ss[None, :]
    P["stem_w"] = jnp.pad(sw, ((0, 5), (0, 0))).astype(jnp.bfloat16)   # K 27 -> 32
    P["stem_b"] = sb.reshape(1, 32)

    P["b1"] = mb(32, 16, 1, 8)
    P["b2"] = mb(16, 24, 6, 4)
    P["b3"] = mb(24, 24, 6, 6)

    hw_ = w((24, 1280), 24)
    hs, hb = bn(1280)
    P["head_w"] = (hw_ * hs[None, :]).astype(jnp.bfloat16)
    P["head_b"] = hb.reshape(1, 1280)

    # classifier composed offline: Linear(1280,1000) then Linear(1000,nc) are
    # both affine with nothing in between -> exact single affine map; padded to
    # 128 output lanes for a dense final HBM store.
    fc_w = w((1280, 1000), 1280)
    fc_b = vec(1000)
    out_w = w((1000, num_classes), 1000)
    out_b = vec(num_classes)
    cw = fc_w @ out_w
    cb = fc_b @ out_w + out_b
    P["cls_w"] = jnp.pad(cw, ((0, 0), (0, nc_pad - num_classes))).astype(jnp.bfloat16)
    P["cls_b"] = jnp.pad(cb, (0, nc_pad - num_classes)).reshape(1, nc_pad)
    return P


# --------------------------------------------------------------------------
# forward (classification mode)
# --------------------------------------------------------------------------

def model_forward(x_nchw, P, num_classes):
    """forward_classification(x): efficient_net(x) -> output_linear."""
    x = jnp.transpose(x_nchw, (0, 2, 3, 1))                      # NCHW -> NHWC
    B = x.shape[0]

    patches = _stem_patches(x)                                   # (B, 256, 32) bf16
    e2 = stage1(patches, P)                                      # (B, 256, 96) bf16
    e2p = _parity_planes_s2(e2.reshape(B, 16, 16, 96))           # (B, 4, 9, 9, 96) f32
    logits = stage2(e2p, P)                                      # (B, 1, 128) f32
    return logits.reshape(B, -1)[:, :num_classes]


# --------------------------------------------------------------------------

if __name__ == "__main__":
    key = jax.random.PRNGKey(0)
    k_params, k_x = jax.random.split(key)

    num_classes = 10
    params = init_params(k_params, num_classes=num_classes)
    x = jax.random.normal(k_x, (2, 3, 32, 32), jnp.float32)      # small NCHW input

    fwd = jax.jit(lambda xx, pp: model_forward(xx, pp, num_classes))
    y = jax.block_until_ready(fwd(x, params))

    assert y.shape == (2, num_classes), y.shape
    assert bool(jnp.all(jnp.isfinite(y)))
    print("KERNEL_OK")
</pallas_src>

<mosaic_0001>
module attributes {stable_mosaic.version = 11 : i64} {
  func.func @_stage1_kernel(%arg0: i32, %arg1: memref<1x256x32xbf16, #tpu.memory_space<vmem>>, %arg2: memref<32x32xbf16, #tpu.memory_space<vmem>>, %arg3: memref<1x32xf32, #tpu.memory_space<vmem>>, %arg4: memref<9x32xf32, #tpu.memory_space<vmem>>, %arg5: memref<1x32xf32, #tpu.memory_space<vmem>>, %arg6: memref<32x8xf32, #tpu.memory_space<vmem>>, %arg7: memref<1x8xf32, #tpu.memory_space<vmem>>, %arg8: memref<8x32xf32, #tpu.memory_space<vmem>>, %arg9: memref<1x32xf32, #tpu.memory_space<vmem>>, %arg10: memref<32x16xbf16, #tpu.memory_space<vmem>>, %arg11: memref<1x16xf32, #tpu.memory_space<vmem>>, %arg12: memref<16x96xbf16, #tpu.memory_space<vmem>>, %arg13: memref<1x96xf32, #tpu.memory_space<vmem>>, %arg14: memref<1x256x96xbf16, #tpu.memory_space<vmem>>, %arg15: memref<18x18x32xf32, #tpu.memory_space<vmem>>) attributes {dimension_semantics = [#tpu.dimension_semantics<parallel>], iteration_bounds = array<i64: 2>, scalar_prefetch = 0 : i64, scratch_operands = 1 : i64, tpu.core_type = #tpu.core_type<tc>, window_params = [{transform_indices = @transform_0, window_bounds = array<i64: 1, 256, 32>}, {pipeline_mode = #tpu.pipeline_mode<synchronous>, transform_indices = @transform_1, window_bounds = array<i64: 32, 32>}, {pipeline_mode = #tpu.pipeline_mode<synchronous>, transform_indices = @transform_2, window_bounds = array<i64: 1, 32>}, {pipeline_mode = #tpu.pipeline_mode<synchronous>, transform_indices = @transform_3, window_bounds = array<i64: 9, 32>}, {pipeline_mode = #tpu.pipeline_mode<synchronous>, transform_indices = @transform_4, window_bounds = array<i64: 1, 32>}, {pipeline_mode = #tpu.pipeline_mode<synchronous>, transform_indices = @transform_5, window_bounds = array<i64: 32, 8>}, {pipeline_mode = #tpu.pipeline_mode<synchronous>, transform_indices = @transform_6, window_bounds = array<i64: 1, 8>}, {pipeline_mode = #tpu.pipeline_mode<synchronous>, transform_indices = @transform_7, window_bounds = array<i64: 8, 32>}, {pipeline_mode = #tpu.pipeline_mode<synchronous>, transform_indices = @transform_8, window_bounds = array<i64: 1, 32>}, {pipeline_mode = #tpu.pipeline_mode<synchronous>, transform_indices = @transform_9, window_bounds = array<i64: 32, 16>}, {pipeline_mode = #tpu.pipeline_mode<synchronous>, transform_indices = @transform_10, window_bounds = array<i64: 1, 16>}, {pipeline_mode = #tpu.pipeline_mode<synchronous>, transform_indices = @transform_11, window_bounds = array<i64: 16, 96>}, {pipeline_mode = #tpu.pipeline_mode<synchronous>, transform_indices = @transform_12, window_bounds = array<i64: 1, 96>}, {transform_indices = @transform_13, window_bounds = array<i64: 1, 256, 96>}]} {
    %c0 = arith.constant 0 : index
    %c0_0 = arith.constant 0 : index
    %c0_1 = arith.constant 0 : index
    %0 = vector.load %arg1[%c0, %c0_0, %c0_1] : memref<1x256x32xbf16, #tpu.memory_space<vmem>>, vector<1x256x32xbf16>
    %1 = vector.shape_cast %0 : vector<1x256x32xbf16> to vector<256x32xbf16>
    %c0_2 = arith.constant 0 : index
    %c0_3 = arith.constant 0 : index
    %2 = vector.load %arg2[%c0_2, %c0_3] : memref<32x32xbf16, #tpu.memory_space<vmem>>, vector<32x32xbf16>
    %cst = arith.constant dense<0.000000e+00> : vector<256x32xf32>
    %3 = tpu.matmul %1, %2, %cst {dimension_numbers = #tpu.dot_dimension_numbers<[1], [0], [0], [1], [0, 0, 1, 1], [], []>} : vector<256x32xbf16>, vector<32x32xbf16>, vector<256x32xf32> -> vector<256x32xf32>
    %c0_4 = arith.constant 0 : index
    %c0_5 = arith.constant 0 : index
    %4 = vector.load %arg3[%c0_4, %c0_5] : memref<1x32xf32, #tpu.memory_space<vmem>>, vector<1x32xf32>
    %5 = vector.broadcast %4 : vector<1x32xf32> to vector<256x32xf32>
    %6 = arith.addf %3, %5 : vector<256x32xf32>
    %cst_6 = arith.constant 0.000000e+00 : f32
    %7 = vector.broadcast %cst_6 : f32 to vector<256x32xf32>
    %8 = arith.subf %7, %6 : vector<256x32xf32>
    %9 = math.exp %8 : vector<256x32xf32>
    %cst_7 = arith.constant 1.000000e+00 : f32
    %10 = vector.broadcast %cst_7 : f32 to vector<256x32xf32>
    %11 = arith.addf %10, %9 : vector<256x32xf32>
    %12 = tpu.reciprocal %11 {approx = true} : vector<256x32xf32> -> vector<256x32xf32>
    %13 = arith.mulf %6, %12 : vector<256x32xf32>
    %cst_8 = arith.constant 0.000000e+00 : f32
    %14 = vector.broadcast %cst_8 : f32 to vector<18x18x32xf32>
    %c0_9 = arith.constant 0 : index
    %c0_10 = arith.constant 0 : index
    %c0_11 = arith.constant 0 : index
    %15 = vector.load %arg15[%c0_9, %c0_10, %c0_11] : memref<18x18x32xf32, #tpu.memory_space<vmem>>, vector<18x18x32xf32>
    tpu.vector_store %arg15[%c0_9, %c0_10, %c0_11], %14 {strides = array<i32>} : memref<18x18x32xf32, #tpu.memory_space<vmem>>, vector<18x18x32xf32>,
    %16 = vector.extract_strided_slice %13 {offsets = [0, 0], sizes = [16, 32], strides = [1, 1]} : vector<256x32xf32> to vector<16x32xf32>
    %c1 = arith.constant 1 : index
    %c1_12 = arith.constant 1 : index
    %c0_13 = arith.constant 0 : index
    %17 = vector.load %arg15[%c1, %c1_12, %c0_13] : memref<18x18x32xf32, #tpu.memory_space<vmem>>, vector<1x16x32xf32>
    %18 = vector.shape_cast %17 : vector<1x16x32xf32> to vector<16x32xf32>
    %19 = vector.shape_cast %16 : vector<16x32xf32> to vector<1x16x32xf32>
    tpu.vector_store %arg15[%c1, %c1_12, %c0_13], %19 {strides = array<i32>} : memref<18x18x32xf32, #tpu.memory_space<vmem>>, vector<1x16x32xf32>,
    %20 = vector.extract_strided_slice %13 {offsets = [16, 0], sizes = [16, 32], strides = [1, 1]} : vector<256x32xf32> to vector<16x32xf32>
    %c2 = arith.constant 2 : index
    %c1_14 = arith.constant 1 : index
    %c0_15 = arith.constant 0 : index
    %21 = vector.load %arg15[%c2, %c1_14, %c0_15] : memref<18x18x32xf32, #tpu.memory_space<vmem>>, vector<1x16x32xf32>
    %22 = vector.shape_cast %21 : vector<1x16x32xf32> to vector<16x32xf32>
    %23 = vector.shape_cast %20 : vector<16x32xf32> to vector<1x16x32xf32>
    tpu.vector_store %arg15[%c2, %c1_14, %c0_15], %23 {strides = array<i32>} : memref<18x18x32xf32, #tpu.memory_space<vmem>>, vector<1x16x32xf32>,
    %24 = vector.extract_strided_slice %13 {offsets = [32, 0], sizes = [16, 32], strides = [1, 1]} : vector<256x32xf32> to vector<16x32xf32>
    %c3 = arith.constant 3 : index
    %c1_16 = arith.constant 1 : index
    %c0_17 = arith.constant 0 : index
    %25 = vector.load %arg15[%c3, %c1_16, %c0_17] : memref<18x18x32xf32, #tpu.memory_space<vmem>>, vector<1x16x32xf32>
    %26 = vector.shape_cast %25 : vector<1x16x32xf32> to vector<16x32xf32>
    %27 = vector.shape_cast %24 : vector<16x32xf32> to vector<1x16x32xf32>
    tpu.vector_store %arg15[%c3, %c1_16, %c0_17], %27 {strides = array<i32>} : memref<18x18x32xf32, #tpu.memory_space<vmem>>, vector<1x16x32xf32>,
    %28 = vector.extract_strided_slice %13 {offsets = [48, 0], sizes = [16, 32], strides = [1, 1]} : vector<256x32xf32> to vector<16x32xf32>
    %c4 = arith.constant 4 : index
    %c1_18 = arith.constant 1 : index
    %c0_19 = arith.constant 0 : index
    %29 = vector.load %arg15[%c4, %c1_18, %c0_19] : memref<18x18x32xf32, #tpu.memory_space<vmem>>, vector<1x16x32xf32>
    %30 = vector.shape_cast %29 : vector<1x16x32xf32> to vector<16x32xf32>
    %31 = vector.shape_cast %28 : vector<16x32xf32> to vector<1x16x32xf32>
    tpu.vector_store %arg15[%c4, %c1_18, %c0_19], %31 {strides = array<i32>} : memref<18x18x32xf32, #tpu.memory_space<vmem>>, vector<1x16x32xf32>,
    %32 = vector.extract_strided_slice %13 {offsets = [64, 0], sizes = [16, 32], strides = [1, 1]} : vector<256x32xf32> to vector<16x32xf32>
    %c5 = arith.constant 5 : index
    %c1_20 = arith.constant 1 : index
    %c0_21 = arith.constant 0 : index
    %33 = vector.load %arg15[%c5, %c1_20, %c0_21] : memref<18x18x32xf32, #tpu.memory_space<vmem>>, vector<1x16x32xf32>
    %34 = vector.shape_cast %33 : vector<1x16x32xf32> to vector<16x32xf32>
    %35 = vector.shape_cast %32 : vector<16x32xf32> to vector<1x16x32xf32>
    tpu.vector_store %arg15[%c5, %c1_20, %c0_21], %35 {strides = array<i32>} : memref<18x18x32xf32, #tpu.memory_space<vmem>>, vector<1x16x32xf32>,
    %36 = vector.extract_strided_slice %13 {offsets = [80, 0], sizes = [16, 32], strides = [1, 1]} : vector<256x32xf32> to vector<16x32xf32>
    %c6 = arith.constant 6 : index
    %c1_22 = arith.constant 1 : index
    %c0_23 = arith.constant 0 : index
    %37 = vector.load %arg15[%c6, %c1_22, %c0_23] : memref<18x18x32xf32, #tpu.memory_space<vmem>>, vector<1x16x32xf32>
    %38 = vector.shape_cast %37 : vector<1x16x32xf32> to vector<16x32xf32>
    %39 = vector.shape_cast %36 : vector<16x32xf32> to vector<1x16x32xf32>
    tpu.vector_store %arg15[%c6, %c1_22, %c0_23], %39 {strides = array<i32>} : memref<18x18x32xf32, #tpu.memory_space<vmem>>, vector<1x16x32xf32>,
    %40 = vector.extract_strided_slice %13 {offsets = [96, 0], sizes = [16, 32], strides = [1, 1]} : vector<256x32xf32> to vector<16x32xf32>
    %c7 = arith.constant 7 : index
    %c1_24 = arith.constant 1 : index
    %c0_25 = arith.constant 0 : index
    %41 = vector.load %arg15[%c7, %c1_24, %c0_25] : memref<18x18x32xf32, #tpu.memory_space<vmem>>, vector<1x16x32xf32>
    %42 = vector.shape_cast %41 : vector<1x16x32xf32> to vector<16x32xf32>
    %43 = vector.shape_cast %40 : vector<16x32xf32> to vector<1x16x32xf32>
    tpu.vector_store %arg15[%c7, %c1_24, %c0_25], %43 {strides = array<i32>} : memref<18x18x32xf32, #tpu.memory_space<vmem>>, vector<1x16x32xf32>,
    %44 = vector.extract_strided_slice %13 {offsets = [112, 0], sizes = [16, 32], strides = [1, 1]} : vector<256x32xf32> to vector<16x32xf32>
    %c8 = arith.constant 8 : index
    %c1_26 = arith.constant 1 : index
    %c0_27 = arith.constant 0 : index
    %45 = vector.load %arg15[%c8, %c1_26, %c0_27] : memref<18x18x32xf32, #tpu.memory_space<vmem>>, vector<1x16x32xf32>
    %46 = vector.shape_cast %45 : vector<1x16x32xf32> to vector<16x32xf32>
    %47 = vector.shape_cast %44 : vector<16x32xf32> to vector<1x16x32xf32>
    tpu.vector_store %arg15[%c8, %c1_26, %c0_27], %47 {strides = array<i32>} : memref<18x18x32xf32, #tpu.memory_space<vmem>>, vector<1x16x32xf32>,
    %48 = vector.extract_strided_slice %13 {offsets = [128, 0], sizes = [16, 32], strides = [1, 1]} : vector<256x32xf32> to vector<16x32xf32>
    %c9 = arith.constant 9 : index
    %c1_28 = arith.constant 1 : index
    %c0_29 = arith.constant 0 : index
    %49 = vector.load %arg15[%c9, %c1_28, %c0_29] : memref<18x18x32xf32, #tpu.memory_space<vmem>>, vector<1x16x32xf32>
    %50 = vector.shape_cast %49 : vector<1x16x32xf32> to vector<16x32xf32>
    %51 = vector.shape_cast %48 : vector<16x32xf32> to vector<1x16x32xf32>
    tpu.vector_store %arg15[%c9, %c1_28, %c0_29], %51 {strides = array<i32>} : memref<18x18x32xf32, #tpu.memory_space<vmem>>, vector<1x16x32xf32>,
    %52 = vector.extract_strided_slice %13 {offsets = [144, 0], sizes = [16, 32], strides = [1, 1]} : vector<256x32xf32> to vector<16x32xf32>
    %c10 = arith.constant 10 : index
    %c1_30 = arith.constant 1 : index
    %c0_31 = arith.constant 0 : index
    %53 = vector.load %arg15[%c10, %c1_30, %c0_31] : memref<18x18x32xf32, #tpu.memory_space<vmem>>, vector<1x16x32xf32>
    %54 = vector.shape_cast %53 : vector<1x16x32xf32> to vector<16x32xf32>
    %55 = vector.shape_cast %52 : vector<16x32xf32> to vector<1x16x32xf32>
    tpu.vector_store %arg15[%c10, %c1_30, %c0_31], %55 {strides = array<i32>} : memref<18x18x32xf32, #tpu.memory_space<vmem>>, vector<1x16x32xf32>,
    %56 = vector.extract_strided_slice %13 {offsets = [160, 0], sizes = [16, 32], strides = [1, 1]} : vector<256x32xf32> to vector<16x32xf32>
    %c11 = arith.constant 11 : index
    %c1_32 = arith.constant 1 : index
    %c0_33 = arith.constant 0 : index
    %57 = vector.load %arg15[%c11, %c1_32, %c0_33] : memref<18x18x32xf32, #tpu.memory_space<vmem>>, vector<1x16x32xf32>
    %58 = vector.shape_cast %57 : vector<1x16x32xf32> to vector<16x32xf32>
    %59 = vector.shape_cast %56 : vector<16x32xf32> to vector<1x16x32xf32>
    tpu.vector_store %arg15[%c11, %c1_32, %c0_33], %59 {strides = array<i32>} : memref<18x18x32xf32, #tpu.memory_space<vmem>>, vector<1x16x32xf32>,
    %60 = vector.extract_strided_slice %13 {offsets = [176, 0], sizes = [16, 32], strides = [1, 1]} : vector<256x32xf32> to vector<16x32xf32>
    %c12 = arith.constant 12 : index
    %c1_34 = arith.constant 1 : index
    %c0_35 = arith.constant 0 : index
    %61 = vector.load %arg15[%c12, %c1_34, %c0_35] : memref<18x18x32xf32, #tpu.memory_space<vmem>>, vector<1x16x32xf32>
    %62 = vector.shape_cast %61 : vector<1x16x32xf32> to vector<16x32xf32>
    %63 = vector.shape_cast %60 : vector<16x32xf32> to vector<1x16x32xf32>
    tpu.vector_store %arg15[%c12, %c1_34, %c0_35], %63 {strides = array<i32>} : memref<18x18x32xf32, #tpu.memory_space<vmem>>, vector<1x16x32xf32>,
    %64 = vector.extract_strided_slice %13 {offsets = [192, 0], sizes = [16, 32], strides = [1, 1]} : vector<256x32xf32> to vector<16x32xf32>
    %c13 = arith.constant 13 : index
    %c1_36 = arith.constant 1 : index
    %c0_37 = arith.constant 0 : index
    %65 = vector.load %arg15[%c13, %c1_36, %c0_37] : memref<18x18x32xf32, #tpu.memory_space<vmem>>, vector<1x16x32xf32>
    %66 = vector.shape_cast %65 : vector<1x16x32xf32> to vector<16x32xf32>
    %67 = vector.shape_cast %64 : vector<16x32xf32> to vector<1x16x32xf32>
    tpu.vector_store %arg15[%c13, %c1_36, %c0_37], %67 {strides = array<i32>} : memref<18x18x32xf32, #tpu.memory_space<vmem>>, vector<1x16x32xf32>,
    %68 = vector.extract_strided_slice %13 {offsets = [208, 0], sizes = [16, 32], strides = [1, 1]} : vector<256x32xf32> to vector<16x32xf32>
    %c14 = arith.constant 14 : index
    %c1_38 = arith.constant 1 : index
    %c0_39 = arith.constant 0 : index
    %69 = vector.load %arg15[%c14, %c1_38, %c0_39] : memref<18x18x32xf32, #tpu.memory_space<vmem>>, vector<1x16x32xf32>
    %70 = vector.shape_cast %69 : vector<1x16x32xf32> to vector<16x32xf32>
    %71 = vector.shape_cast %68 : vector<16x32xf32> to vector<1x16x32xf32>
    tpu.vector_store %arg15[%c14, %c1_38, %c0_39], %71 {strides = array<i32>} : memref<18x18x32xf32, #tpu.memory_space<vmem>>, vector<1x16x32xf32>,
    %72 = vector.extract_strided_slice %13 {offsets = [224, 0], sizes = [16, 32], strides = [1, 1]} : vector<256x32xf32> to vector<16x32xf32>
    %c15 = arith.constant 15 : index
    %c1_40 = arith.constant 1 : index
    %c0_41 = arith.constant 0 : index
    %73 = vector.load %arg15[%c15, %c1_40, %c0_41] : memref<18x18x32xf32, #tpu.memory_space<vmem>>, vector<1x16x32xf32>
    %74 = vector.shape_cast %73 : vector<1x16x32xf32> to vector<16x32xf32>
    %75 = vector.shape_cast %72 : vector<16x32xf32> to vector<1x16x32xf32>
    tpu.vector_store %arg15[%c15, %c1_40, %c0_41], %75 {strides = array<i32>} : memref<18x18x32xf32, #tpu.memory_space<vmem>>, vector<1x16x32xf32>,
    %76 = vector.extract_strided_slice %13 {offsets = [240, 0], sizes = [16, 32], strides = [1, 1]} : vector<256x32xf32> to vector<16x32xf32>
    %c16 = arith.constant 16 : index
    %c1_42 = arith.constant 1 : index
    %c0_43 = arith.constant 0 : index
    %77 = vector.load %arg15[%c16, %c1_42, %c0_43] : memref<18x18x32xf32, #tpu.memory_space<vmem>>, vector<1x16x32xf32>
    %78 = vector.shape_cast %77 : vector<1x16x32xf32> to vector<16x32xf32>
    %79 = vector.shape_cast %76 : vector<16x32xf32> to vector<1x16x32xf32>
    tpu.vector_store %arg15[%c16, %c1_42, %c0_43], %79 {strides = array<i32>} : memref<18x18x32xf32, #tpu.memory_space<vmem>>, vector<1x16x32xf32>,
    %cst_44 = arith.constant 0.000000e+00 : f32
    %80 = vector.broadcast %cst_44 : f32 to vector<16x16x32xf32>
    %c0_45 = arith.constant 0 : index
    %c0_46 = arith.constant 0 : index
    %c0_47 = arith.constant 0 : index
    %81 = vector.load %arg15[%c0_45, %c0_46, %c0_47] : memref<18x18x32xf32, #tpu.memory_space<vmem>>, vector<16x16x32xf32>
    %c0_48 = arith.constant 0 : index
    %c0_49 = arith.constant 0 : index
    %82 = vector.load %arg4[%c0_48, %c0_49] : memref<9x32xf32, #tpu.memory_space<vmem>>, vector<1x32xf32>
    %83 = vector.shape_cast %82 : vector<1x32xf32> to vector<1x1x32xf32>
    %84 = vector.broadcast %83 : vector<1x1x32xf32> to vector<16x16x32xf32>
    %85 = arith.mulf %81, %84 : vector<16x16x32xf32>
    %86 = arith.addf %80, %85 : vector<16x16x32xf32>
    %c0_50 = arith.constant 0 : index
    %c1_51 = arith.constant 1 : index
    %c0_52 = arith.constant 0 : index
    %87 = vector.load %arg15[%c0_50, %c1_51, %c0_52] : memref<18x18x32xf32, #tpu.memory_space<vmem>>, vector<16x16x32xf32>
    %c1_53 = arith.constant 1 : index
    %c0_54 = arith.constant 0 : index
    %88 = vector.load %arg4[%c1_53, %c0_54] : memref<9x32xf32, #tpu.memory_space<vmem>>, vector<1x32xf32>
    %89 = vector.shape_cast %88 : vector<1x32xf32> to vector<1x1x32xf32>
    %90 = vector.broadcast %89 : vector<1x1x32xf32> to vector<16x16x32xf32>
    %91 = arith.mulf %87, %90 : vector<16x16x32xf32>
    %92 = arith.addf %86, %91 : vector<16x16x32xf32>
    %c0_55 = arith.constant 0 : index
    %c2_56 = arith.constant 2 : index
    %c0_57 = arith.constant 0 : index
    %93 = vector.load %arg15[%c0_55, %c2_56, %c0_57] : memref<18x18x32xf32, #tpu.memory_space<vmem>>, vector<16x16x32xf32>
    %c2_58 = arith.constant 2 : index
    %c0_59 = arith.constant 0 : index
    %94 = vector.load %arg4[%c2_58, %c0_59] : memref<9x32xf32, #tpu.memory_space<vmem>>, vector<1x32xf32>
    %95 = vector.shape_cast %94 : vector<1x32xf32> to vector<1x1x32xf32>
    %96 = vector.broadcast %95 : vector<1x1x32xf32> to vector<16x16x32xf32>
    %97 = arith.mulf %93, %96 : vector<16x16x32xf32>
    %98 = arith.addf %92, %97 : vector<16x16x32xf32>
    %c1_60 = arith.constant 1 : index
    %c0_61 = arith.constant 0 : index
    %c0_62 = arith.constant 0 : index
    %99 = vector.load %arg15[%c1_60, %c0_61, %c0_62] : memref<18x18x32xf32, #tpu.memory_space<vmem>>, vector<16x16x32xf32>
    %c3_63 = arith.constant 3 : index
    %c0_64 = arith.constant 0 : index
    %100 = vector.load %arg4[%c3_63, %c0_64] : memref<9x32xf32, #tpu.memory_space<vmem>>, vector<1x32xf32>
    %101 = vector.shape_cast %100 : vector<1x32xf32> to vector<1x1x32xf32>
    %102 = vector.broadcast %101 : vector<1x1x32xf32> to vector<16x16x32xf32>
    %103 = arith.mulf %99, %102 : vector<16x16x32xf32>
    %104 = arith.addf %98, %103 : vector<16x16x32xf32>
    %c1_65 = arith.constant 1 : index
    %c1_66 = arith.constant 1 : index
    %c0_67 = arith.constant 0 : index
    %105 = vector.load %arg15[%c1_65, %c1_66, %c0_67] : memref<18x18x32xf32, #tpu.memory_space<vmem>>, vector<16x16x32xf32>
    %c4_68 = arith.constant 4 : index
    %c0_69 = arith.constant 0 : index
    %106 = vector.load %arg4[%c4_68, %c0_69] : memref<9x32xf32, #tpu.memory_space<vmem>>, vector<1x32xf32>
    %107 = vector.shape_cast %106 : vector<1x32xf32> to vector<1x1x32xf32>
    %108 = vector.broadcast %107 : vector<1x1x32xf32> to vector<16x16x32xf32>
    %109 = arith.mulf %105, %108 : vector<16x16x32xf32>
    %110 = arith.addf %104, %109 : vector<16x16x32xf32>
    %c1_70 = arith.constant 1 : index
    %c2_71 = arith.constant 2 : index
    %c0_72 = arith.constant 0 : index
    %111 = vector.load %arg15[%c1_70, %c2_71, %c0_72] : memref<18x18x32xf32, #tpu.memory_space<vmem>>, vector<16x16x32xf32>
    %c5_73 = arith.constant 5 : index
    %c0_74 = arith.constant 0 : index
    %112 = vector.load %arg4[%c5_73, %c0_74] : memref<9x32xf32, #tpu.memory_space<vmem>>, vector<1x32xf32>
    %113 = vector.shape_cast %112 : vector<1x32xf32> to vector<1x1x32xf32>
    %114 = vector.broadcast %113 : vector<1x1x32xf32> to vector<16x16x32xf32>
    %115 = arith.mulf %111, %114 : vector<16x16x32xf32>
    %116 = arith.addf %110, %115 : vector<16x16x32xf32>
    %c2_75 = arith.constant 2 : index
    %c0_76 = arith.constant 0 : index
    %c0_77 = arith.constant 0 : index
    %117 = vector.load %arg15[%c2_75, %c0_76, %c0_77] : memref<18x18x32xf32, #tpu.memory_space<vmem>>, vector<16x16x32xf32>
    %c6_78 = arith.constant 6 : index
    %c0_79 = arith.constant 0 : index
    %118 = vector.load %arg4[%c6_78, %c0_79] : memref<9x32xf32, #tpu.memory_space<vmem>>, vector<1x32xf32>
    %119 = vector.shape_cast %118 : vector<1x32xf32> to vector<1x1x32xf32>
    %120 = vector.broadcast %119 : vector<1x1x32xf32> to vector<16x16x32xf32>
    %121 = arith.mulf %117, %120 : vector<16x16x32xf32>
    %122 = arith.addf %116, %121 : vector<16x16x32xf32>
    %c2_80 = arith.constant 2 : index
    %c1_81 = arith.constant 1 : index
    %c0_82 = arith.constant 0 : index
    %123 = vector.load %arg15[%c2_80, %c1_81, %c0_82] : memref<18x18x32xf32, #tpu.memory_space<vmem>>, vector<16x16x32xf32>
    %c7_83 = arith.constant 7 : index
    %c0_84 = arith.constant 0 : index
    %124 = vector.load %arg4[%c7_83, %c0_84] : memref<9x32xf32, #tpu.memory_space<vmem>>, vector<1x32xf32>
    %125 = vector.shape_cast %124 : vector<1x32xf32> to vector<1x1x32xf32>
    %126 = vector.broadcast %125 : vector<1x1x32xf32> to vector<16x16x32xf32>
    %127 = arith.mulf %123, %126 : vector<16x16x32xf32>
    %128 = arith.addf %122, %127 : vector<16x16x32xf32>
    %c2_85 = arith.constant 2 : index
    %c2_86 = arith.constant 2 : index
    %c0_87 = arith.constant 0 : index
    %129 = vector.load %arg15[%c2_85, %c2_86, %c0_87] : memref<18x18x32xf32, #tpu.memory_space<vmem>>, vector<16x16x32xf32>
    %c8_88 = arith.constant 8 : index
    %c0_89 = arith.constant 0 : index
    %130 = vector.load %arg4[%c8_88, %c0_89] : memref<9x32xf32, #tpu.memory_space<vmem>>, vector<1x32xf32>
    %131 = vector.shape_cast %130 : vector<1x32xf32> to vector<1x1x32xf32>
    %132 = vector.broadcast %131 : vector<1x1x32xf32> to vector<16x16x32xf32>
    %133 = arith.mulf %129, %132 : vector<16x16x32xf32>
    %134 = arith.addf %128, %133 : vector<16x16x32xf32>
    %c0_90 = arith.constant 0 : index
    %c0_91 = arith.constant 0 : index
    %135 = vector.load %arg5[%c0_90, %c0_91] : memref<1x32xf32, #tpu.memory_space<vmem>>, vector<1x32xf32>
    %136 = vector.shape_cast %135 : vector<1x32xf32> to vector<1x1x32xf32>
    %137 = vector.broadcast %136 : vector<1x1x32xf32> to vector<16x16x32xf32>
    %138 = arith.addf %134, %137 : vector<16x16x32xf32>
    %cst_92 = arith.constant 0.000000e+00 : f32
    %139 = vector.broadcast %cst_92 : f32 to vector<16x16x32xf32>
    %140 = arith.subf %139, %138 : vector<16x16x32xf32>
    %141 = math.exp %140 : vector<16x16x32xf32>
    %cst_93 = arith.constant 1.000000e+00 : f32
    %142 = vector.broadcast %cst_93 : f32 to vector<16x16x32xf32>
    %143 = arith.addf %142, %141 : vector<16x16x32xf32>
    %144 = tpu.reciprocal %143 {approx = true} : vector<16x16x32xf32> -> vector<16x16x32xf32>
    %145 = arith.mulf %138, %144 : vector<16x16x32xf32>
    %146 = vector.shape_cast %145 : vector<16x16x32xf32> to vector<256x32xf32>
    %c0_94 = arith.constant 0 : index
    %c0_95 = arith.constant 0 : index
    %147 = vector.load %arg6[%c0_94, %c0_95] : memref<32x8xf32, #tpu.memory_space<vmem>>, vector<32x8xf32>
    %c0_96 = arith.constant 0 : index
    %c0_97 = arith.constant 0 : index
    %148 = vector.load %arg7[%c0_96, %c0_97] : memref<1x8xf32, #tpu.memory_space<vmem>>, vector<1x8xf32>
    %c0_98 = arith.constant 0 : index
    %c0_99 = arith.constant 0 : index
    %149 = vector.load %arg8[%c0_98, %c0_99] : memref<8x32xf32, #tpu.memory_space<vmem>>, vector<8x32xf32>
    %c0_100 = arith.constant 0 : index
    %c0_101 = arith.constant 0 : index
    %150 = vector.load %arg9[%c0_100, %c0_101] : memref<1x32xf32, #tpu.memory_space<vmem>>, vector<1x32xf32>
    %cst_102 = arith.constant dense<0.000000e+00> : vector<32xf32>
    %151 = vector.multi_reduction <add>, %146, %cst_102 [0] : vector<256x32xf32> to vector<32xf32>
    %152 = vector.shape_cast %151 : vector<32xf32> to vector<1x32xf32>
    %cst_103 = arith.constant 3.906250e-03 : f32
    %153 = vector.broadcast %cst_103 : f32 to vector<1x32xf32>
    %154 = arith.mulf %152, %153 : vector<1x32xf32>
    %cst_104 = arith.constant dense<0.000000e+00> : vector<1x8xf32>
    %155 = tpu.matmul %154, %147, %cst_104 {dimension_numbers = #tpu.dot_dimension_numbers<[1], [0], [0], [1], [0, 0, 1, 1], [], []>} : vector<1x32xf32>, vector<32x8xf32>, vector<1x8xf32> -> vector<1x8xf32>
    %156 = arith.addf %155, %148 : vector<1x8xf32>
    %cst_105 = arith.constant 0.000000e+00 : f32
    %157 = vector.broadcast %cst_105 : f32 to vector<1x8xf32>
    %158 = arith.subf %157, %156 : vector<1x8xf32>
    %159 = math.exp %158 : vector<1x8xf32>
    %cst_106 = arith.constant 1.000000e+00 : f32
    %160 = vector.broadcast %cst_106 : f32 to vector<1x8xf32>
    %161 = arith.addf %160, %159 : vector<1x8xf32>
    %162 = tpu.reciprocal %161 {approx = true} : vector<1x8xf32> -> vector<1x8xf32>
    %163 = arith.mulf %156, %162 : vector<1x8xf32>
    %cst_107 = arith.constant dense<0.000000e+00> : vector<1x32xf32>
    %164 = tpu.matmul %163, %149, %cst_107 {dimension_numbers = #tpu.dot_dimension_numbers<[1], [0], [0], [1], [0, 0, 1, 1], [], []>} : vector<1x8xf32>, vector<8x32xf32>, vector<1x32xf32> -> vector<1x32xf32>
    %165 = arith.addf %164, %150 : vector<1x32xf32>
    %cst_108 = arith.constant 0.000000e+00 : f32
    %166 = vector.broadcast %cst_108 : f32 to vector<1x32xf32>
    %167 = arith.subf %166, %165 : vector<1x32xf32>
    %168 = math.exp %167 : vector<1x32xf32>
    %cst_109 = arith.constant 1.000000e+00 : f32
    %169 = vector.broadcast %cst_109 : f32 to vector<1x32xf32>
    %170 = arith.addf %169, %168 : vector<1x32xf32>
    %171 = tpu.reciprocal %170 {approx = true} : vector<1x32xf32> -> vector<1x32xf32>
    %172 = vector.broadcast %171 : vector<1x32xf32> to vector<256x32xf32>
    %173 = arith.mulf %146, %172 : vector<256x32xf32>
    %174 = arith.truncf %173 : vector<256x32xf32> to vector<256x32xbf16>
    %c0_110 = arith.constant 0 : index
    %c0_111 = arith.constant 0 : index
    %175 = vector.load %arg10[%c0_110, %c0_111] : memref<32x16xbf16, #tpu.memory_space<vmem>>, vector<32x16xbf16>
    %cst_112 = arith.constant dense<0.000000e+00> : vector<256x16xf32>
    %176 = tpu.matmul %174, %175, %cst_112 {dimension_numbers = #tpu.dot_dimension_numbers<[1], [0], [0], [1], [0, 0, 1, 1], [], []>} : vector<256x32xbf16>, vector<32x16xbf16>, vector<256x16xf32> -> vector<256x16xf32>
    %c0_113 = arith.constant 0 : index
    %c0_114 = arith.constant 0 : index
    %177 = vector.load %arg11[%c0_113, %c0_114] : memref<1x16xf32, #tpu.memory_space<vmem>>, vector<1x16xf32>
    %178 = vector.broadcast %177 : vector<1x16xf32> to vector<256x16xf32>
    %179 = arith.addf %176, %178 : vector<256x16xf32>
    %180 = arith.truncf %179 : vector<256x16xf32> to vector<256x16xbf16>
    %c0_115 = arith.constant 0 : index
    %c0_116 = arith.constant 0 : index
    %181 = vector.load %arg12[%c0_115, %c0_116] : memref<16x96xbf16, #tpu.memory_space<vmem>>, vector<16x96xbf16>
    %cst_117 = arith.constant dense<0.000000e+00> : vector<256x96xf32>
    %182 = tpu.matmul %180, %181, %cst_117 {dimension_numbers = #tpu.dot_dimension_numbers<[1], [0], [0], [1], [0, 0, 1, 1], [], []>} : vector<256x16xbf16>, vector<16x96xbf16>, vector<256x96xf32> -> vector<256x96xf32>
    %c0_118 = arith.constant 0 : index
    %c0_119 = arith.constant 0 : index
    %183 = vector.load %arg13[%c0_118, %c0_119] : memref<1x96xf32, #tpu.memory_space<vmem>>, vector<1x96xf32>
    %184 = vector.broadcast %183 : vector<1x96xf32> to vector<256x96xf32>
    %185 = arith.addf %182, %184 : vector<256x96xf32>
    %cst_120 = arith.constant 0.000000e+00 : f32
    %186 = vector.broadcast %cst_120 : f32 to vector<256x96xf32>
    %187 = arith.subf %186, %185 : vector<256x96xf32>
    %188 = math.exp %187 : vector<256x96xf32>
    %cst_121 = arith.constant 1.000000e+00 : f32
    %189 = vector.broadcast %cst_121 : f32 to vector<256x96xf32>
    %190 = arith.addf %189, %188 : vector<256x96xf32>
    %191 = tpu.reciprocal %190 {approx = true} : vector<256x96xf32> -> vector<256x96xf32>
    %192 = arith.mulf %185, %191 : vector<256x96xf32>
    %193 = arith.truncf %192 : vector<256x96xf32> to vector<256x96xbf16>
    %c0_122 = arith.constant 0 : index
    %c0_123 = arith.constant 0 : index
    %c0_124 = arith.constant 0 : index
    %194 = vector.load %arg14[%c0_122, %c0_123, %c0_124] : memref<1x256x96xbf16, #tpu.memory_space<vmem>>, vector<1x256x96xbf16>
    %195 = vector.shape_cast %194 : vector<1x256x96xbf16> to vector<256x96xbf16>
    %196 = vector.shape_cast %193 : vector<256x96xbf16> to vector<1x256x96xbf16>
    tpu.vector_store %arg14[%c0_122, %c0_123, %c0_124], %196 {strides = array<i32>} : memref<1x256x96xbf16, #tpu.memory_space<vmem>>, vector<1x256x96xbf16>,
    return
  }
  func.func @transform_0(%arg0: i32) -> (i32, i32, i32) {
    %c0_i32 = arith.constant 0 : i32
    %c0_i32_0 = arith.constant 0 : i32
    %c0_i32_1 = arith.constant 0 : i32
    return %arg0, %c0_i32, %c0_i32_0 : i32, i32, i32
  }
  func.func @transform_1(%arg0: i32) -> (i32, i32) {
    %c0_i32 = arith.constant 0 : i32
    %c0_i32_0 = arith.constant 0 : i32
    %c0_i32_1 = arith.constant 0 : i32
    return %c0_i32, %c0_i32_0 : i32, i32
  }
  func.func @transform_2(%arg0: i32) -> (i32, i32) {
    %c0_i32 = arith.constant 0 : i32
    %c0_i32_0 = arith.constant 0 : i32
    %c0_i32_1 = arith.constant 0 : i32
    return %c0_i32, %c0_i32_0 : i32, i32
  }
  func.func @transform_3(%arg0: i32) -> (i32, i32) {
    %c0_i32 = arith.constant 0 : i32
    %c0_i32_0 = arith.constant 0 : i32
    %c0_i32_1 = arith.constant 0 : i32
    return %c0_i32, %c0_i32_0 : i32, i32
  }
  func.func @transform_4(%arg0: i32) -> (i32, i32) {
    %c0_i32 = arith.constant 0 : i32
    %c0_i32_0 = arith.constant 0 : i32
    %c0_i32_1 = arith.constant 0 : i32
    return %c0_i32, %c0_i32_0 : i32, i32
  }
  func.func @transform_5(%arg0: i32) -> (i32, i32) {
    %c0_i32 = arith.constant 0 : i32
    %c0_i32_0 = arith.constant 0 : i32
    %c0_i32_1 = arith.constant 0 : i32
    return %c0_i32, %c0_i32_0 : i32, i32
  }
  func.func @transform_6(%arg0: i32) -> (i32, i32) {
    %c0_i32 = arith.constant 0 : i32
    %c0_i32_0 = arith.constant 0 : i32
    %c0_i32_1 = arith.constant 0 : i32
    return %c0_i32, %c0_i32_0 : i32, i32
  }
  func.func @transform_7(%arg0: i32) -> (i32, i32) {
    %c0_i32 = arith.constant 0 : i32
    %c0_i32_0 = arith.constant 0 : i32
    %c0_i32_1 = arith.constant 0 : i32
    return %c0_i32, %c0_i32_0 : i32, i32
  }
  func.func @transform_8(%arg0: i32) -> (i32, i32) {
    %c0_i32 = arith.constant 0 : i32
    %c0_i32_0 = arith.constant 0 : i32
    %c0_i32_1 = arith.constant 0 : i32
    return %c0_i32, %c0_i32_0 : i32, i32
  }
  func.func @transform_9(%arg0: i32) -> (i32, i32) {
    %c0_i32 = arith.constant 0 : i32
    %c0_i32_0 = arith.constant 0 : i32
    %c0_i32_1 = arith.constant 0 : i32
    return %c0_i32, %c0_i32_0 : i32, i32
  }
  func.func @transform_10(%arg0: i32) -> (i32, i32) {
    %c0_i32 = arith.constant 0 : i32
    %c0_i32_0 = arith.constant 0 : i32
    %c0_i32_1 = arith.constant 0 : i32
    return %c0_i32, %c0_i32_0 : i32, i32
  }
  func.func @transform_11(%arg0: i32) -> (i32, i32) {
    %c0_i32 = arith.constant 0 : i32
    %c0_i32_0 = arith.constant 0 : i32
    %c0_i32_1 = arith.constant 0 : i32
    return %c0_i32, %c0_i32_0 : i32, i32
  }
  func.func @transform_12(%arg0: i32) -> (i32, i32) {
    %c0_i32 = arith.constant 0 : i32
    %c0_i32_0 = arith.constant 0 : i32
    %c0_i32_1 = arith.constant 0 : i32
    return %c0_i32, %c0_i32_0 : i32, i32
  }
  func.func @transform_13(%arg0: i32) -> (i32, i32, i32) {
    %c0_i32 = arith.constant 0 : i32
    %c0_i32_0 = arith.constant 0 : i32
    %c0_i32_1 = arith.constant 0 : i32
    return %arg0, %c0_i32, %c0_i32_0 : i32, i32, i32
  }
}

module attributes {stable_mosaic.version = 11 : i64} {
  func.func @_stage2_kernel(%arg0: i32, %arg1: memref<1x4x9x9x96xf32, #tpu.memory_space<vmem>>, %arg2: memref<9x96xf32, #tpu.memory_space<vmem>>, %arg3: memref<1x96xf32, #tpu.memory_space<vmem>>, %arg4: memref<96x4xf32, #tpu.memory_space<vmem>>, %arg5: memref<1x4xf32, #tpu.memory_space<vmem>>, %arg6: memref<4x96xf32, #tpu.memory_space<vmem>>, %arg7: memref<1x96xf32, #tpu.memory_space<vmem>>, %arg8: memref<96x24xbf16, #tpu.memory_space<vmem>>, %arg9: memref<1x24xf32, #tpu.memory_space<vmem>>, %arg10: memref<24x144xbf16, #tpu.memory_space<vmem>>, %arg11: memref<1x144xf32, #tpu.memory_space<vmem>>, %arg12: memref<9x144xf32, #tpu.memory_space<vmem>>, %arg13: memref<1x144xf32, #tpu.memory_space<vmem>>, %arg14: memref<144x6xf32, #tpu.memory_space<vmem>>, %arg15: memref<1x6xf32, #tpu.memory_space<vmem>>, %arg16: memref<6x144xf32, #tpu.memory_space<vmem>>, %arg17: memref<1x144xf32, #tpu.memory_space<vmem>>, %arg18: memref<144x24xbf16, #tpu.memory_space<vmem>>, %arg19: memref<1x24xf32, #tpu.memory_space<vmem>>, %arg20: memref<24x1280xbf16, #tpu.memory_space<vmem>>, %arg21: memref<1x1280xf32, #tpu.memory_space<vmem>>, %arg22: memref<1280x128xbf16, #tpu.memory_space<vmem>>, %arg23: memref<1x128xf32, #tpu.memory_space<vmem>>, %arg24: memref<1x1x128xf32, #tpu.memory_space<vmem>>, %arg25: memref<10x10x144xf32, #tpu.memory_space<vmem>>) attributes {dimension_semantics = [#tpu.dimension_semantics<parallel>], iteration_bounds = array<i64: 2>, scalar_prefetch = 0 : i64, scratch_operands = 1 : i64, tpu.core_type = #tpu.core_type<tc>, window_params = [{transform_indices = @transform_0, window_bounds = array<i64: 1, 4, 9, 9, 96>}, {pipeline_mode = #tpu.pipeline_mode<synchronous>, transform_indices = @transform_1, window_bounds = array<i64: 9, 96>}, {pipeline_mode = #tpu.pipeline_mode<synchronous>, transform_indices = @transform_2, window_bounds = array<i64: 1, 96>}, {pipeline_mode = #tpu.pipeline_mode<synchronous>, transform_indices = @transform_3, window_bounds = array<i64: 96, 4>}, {pipeline_mode = #tpu.pipeline_mode<synchronous>, transform_indices = @transform_4, window_bounds = array<i64: 1, 4>}, {pipeline_mode = #tpu.pipeline_mode<synchronous>, transform_indices = @transform_5, window_bounds = array<i64: 4, 96>}, {pipeline_mode = #tpu.pipeline_mode<synchronous>, transform_indices = @transform_6, window_bounds = array<i64: 1, 96>}, {pipeline_mode = #tpu.pipeline_mode<synchronous>, transform_indices = @transform_7, window_bounds = array<i64: 96, 24>}, {pipeline_mode = #tpu.pipeline_mode<synchronous>, transform_indices = @transform_8, window_bounds = array<i64: 1, 24>}, {pipeline_mode = #tpu.pipeline_mode<synchronous>, transform_indices = @transform_9, window_bounds = array<i64: 24, 144>}, {pipeline_mode = #tpu.pipeline_mode<synchronous>, transform_indices = @transform_10, window_bounds = array<i64: 1, 144>}, {pipeline_mode = #tpu.pipeline_mode<synchronous>, transform_indices = @transform_11, window_bounds = array<i64: 9, 144>}, {pipeline_mode = #tpu.pipeline_mode<synchronous>, transform_indices = @transform_12, window_bounds = array<i64: 1, 144>}, {pipeline_mode = #tpu.pipeline_mode<synchronous>, transform_indices = @transform_13, window_bounds = array<i64: 144, 6>}, {pipeline_mode = #tpu.pipeline_mode<synchronous>, transform_indices = @transform_14, window_bounds = array<i64: 1, 6>}, {pipeline_mode = #tpu.pipeline_mode<synchronous>, transform_indices = @transform_15, window_bounds = array<i64: 6, 144>}, {pipeline_mode = #tpu.pipeline_mode<synchronous>, transform_indices = @transform_16, window_bounds = array<i64: 1, 144>}, {pipeline_mode = #tpu.pipeline_mode<synchronous>, transform_indices = @transform_17, window_bounds = array<i64: 144, 24>}, {pipeline_mode = #tpu.pipeline_mode<synchronous>, transform_indices = @transform_18, window_bounds = array<i64: 1, 24>}, {pipeline_mode = #tpu.pipeline_mode<synchronous>, transform_indices = @transform_19, window_bounds = array<i64: 24, 1280>}, {pipeline_mode = #tpu.pipeline_mode<synchronous>, transform_indices = @transform_20, window_bounds = array<i64: 1, 1280>}, {pipeline_mode = #tpu.pipeline_mode<synchronous>, transform_indices = @transform_21, window_bounds = array<i64: 1280, 128>}, {pipeline_mode = #tpu.pipeline_mode<synchronous>, transform_indices = @transform_22, window_bounds = array<i64: 1, 128>}, {transform_indices = @transform_23, window_bounds = array<i64: 1, 1, 128>}]} {
    %cst = arith.constant 0.000000e+00 : f32
    %0 = vector.broadcast %cst : f32 to vector<8x8x96xf32>
    %c0 = arith.constant 0 : index
    %c0_0 = arith.constant 0 : index
    %c0_1 = arith.constant 0 : index
    %c0_2 = arith.constant 0 : index
    %c0_3 = arith.constant 0 : index
    %1 = vector.load %arg1[%c0, %c0_0, %c0_1, %c0_2, %c0_3] : memref<1x4x9x9x96xf32, #tpu.memory_space<vmem>>, vector<1x1x8x8x96xf32>
    %2 = vector.shape_cast %1 : vector<1x1x8x8x96xf32> to vector<8x8x96xf32>
    %c0_4 = arith.constant 0 : index
    %c0_5 = arith.constant 0 : index
    %3 = vector.load %arg2[%c0_4, %c0_5] : memref<9x96xf32, #tpu.memory_space<vmem>>, vector<1x96xf32>
    %4 = vector.shape_cast %3 : vector<1x96xf32> to vector<1x1x96xf32>
    %5 = vector.broadcast %4 : vector<1x1x96xf32> to vector<8x8x96xf32>
    %6 = arith.mulf %2, %5 : vector<8x8x96xf32>
    %7 = arith.addf %0, %6 : vector<8x8x96xf32>
    %c0_6 = arith.constant 0 : index
    %c1 = arith.constant 1 : index
    %c0_7 = arith.constant 0 : index
    %c0_8 = arith.constant 0 : index
    %c0_9 = arith.constant 0 : index
    %8 = vector.load %arg1[%c0_6, %c1, %c0_7, %c0_8, %c0_9] : memref<1x4x9x9x96xf32, #tpu.memory_space<vmem>>, vector<1x1x8x8x96xf32>
    %9 = vector.shape_cast %8 : vector<1x1x8x8x96xf32> to vector<8x8x96xf32>
    %c1_10 = arith.constant 1 : index
    %c0_11 = arith.constant 0 : index
    %10 = vector.load %arg2[%c1_10, %c0_11] : memref<9x96xf32, #tpu.memory_space<vmem>>, vector<1x96xf32>
    %11 = vector.shape_cast %10 : vector<1x96xf32> to vector<1x1x96xf32>
    %12 = vector.broadcast %11 : vector<1x1x96xf32> to vector<8x8x96xf32>
    %13 = arith.mulf %9, %12 : vector<8x8x96xf32>
    %14 = arith.addf %7, %13 : vector<8x8x96xf32>
    %c0_12 = arith.constant 0 : index
    %c0_13 = arith.constant 0 : index
    %c0_14 = arith.constant 0 : index
    %c1_15 = arith.constant 1 : index
    %c0_16 = arith.constant 0 : index
    %15 = vector.load %arg1[%c0_12, %c0_13, %c0_14, %c1_15, %c0_16] : memref<1x4x9x9x96xf32, #tpu.memory_space<vmem>>, vector<1x1x8x8x96xf32>
    %16 = vector.shape_cast %15 : vector<1x1x8x8x96xf32> to vector<8x8x96xf32>
    %c2 = arith.constant 2 : index
    %c0_17 = arith.constant 0 : index
    %17 = vector.load %arg2[%c2, %c0_17] : memref<9x96xf32, #tpu.memory_space<vmem>>, vector<1x96xf32>
    %18 = vector.shape_cast %17 : vector<1x96xf32> to vector<1x1x96xf32>
    %19 = vector.broadcast %18 : vector<1x1x96xf32> to vector<8x8x96xf32>
    %20 = arith.mulf %16, %19 : vector<8x8x96xf32>
    %21 = arith.addf %14, %20 : vector<8x8x96xf32>
    %c0_18 = arith.constant 0 : index
    %c2_19 = arith.constant 2 : index
    %c0_20 = arith.constant 0 : index
    %c0_21 = arith.constant 0 : index
    %c0_22 = arith.constant 0 : index
    %22 = vector.load %arg1[%c0_18, %c2_19, %c0_20, %c0_21, %c0_22] : memref<1x4x9x9x96xf32, #tpu.memory_space<vmem>>, vector<1x1x8x8x96xf32>
    %23 = vector.shape_cast %22 : vector<1x1x8x8x96xf32> to vector<8x8x96xf32>
    %c3 = arith.constant 3 : index
    %c0_23 = arith.constant 0 : index
    %24 = vector.load %arg2[%c3, %c0_23] : memref<9x96xf32, #tpu.memory_space<vmem>>, vector<1x96xf32>
    %25 = vector.shape_cast %24 : vector<1x96xf32> to vector<1x1x96xf32>
    %26 = vector.broadcast %25 : vector<1x1x96xf32> to vector<8x8x96xf32>
    %27 = arith.mulf %23, %26 : vector<8x8x96xf32>
    %28 = arith.addf %21, %27 : vector<8x8x96xf32>
    %c0_24 = arith.constant 0 : index
    %c3_25 = arith.constant 3 : index
    %c0_26 = arith.constant 0 : index
    %c0_27 = arith.constant 0 : index
    %c0_28 = arith.constant 0 : index
    %29 = vector.load %arg1[%c0_24, %c3_25, %c0_26, %c0_27, %c0_28] : memref<1x4x9x9x96xf32, #tpu.memory_space<vmem>>, vector<1x1x8x8x96xf32>
    %30 = vector.shape_cast %29 : vector<1x1x8x8x96xf32> to vector<8x8x96xf32>
    %c4 = arith.constant 4 : index
    %c0_29 = arith.constant 0 : index
    %31 = vector.load %arg2[%c4, %c0_29] : memref<9x96xf32, #tpu.memory_space<vmem>>, vector<1x96xf32>
    %32 = vector.shape_cast %31 : vector<1x96xf32> to vector<1x1x96xf32>
    %33 = vector.broadcast %32 : vector<1x1x96xf32> to vector<8x8x96xf32>
    %34 = arith.mulf %30, %33 : vector<8x8x96xf32>
    %35 = arith.addf %28, %34 : vector<8x8x96xf32>
    %c0_30 = arith.constant 0 : index
    %c2_31 = arith.constant 2 : index
    %c0_32 = arith.constant 0 : index
    %c1_33 = arith.constant 1 : index
    %c0_34 = arith.constant 0 : index
    %36 = vector.load %arg1[%c0_30, %c2_31, %c0_32, %c1_33, %c0_34] : memref<1x4x9x9x96xf32, #tpu.memory_space<vmem>>, vector<1x1x8x8x96xf32>
    %37 = vector.shape_cast %36 : vector<1x1x8x8x96xf32> to vector<8x8x96xf32>
    %c5 = arith.constant 5 : index
    %c0_35 = arith.constant 0 : index
    %38 = vector.load %arg2[%c5, %c0_35] : memref<9x96xf32, #tpu.memory_space<vmem>>, vector<1x96xf32>
    %39 = vector.shape_cast %38 : vector<1x96xf32> to vector<1x1x96xf32>
    %40 = vector.broadcast %39 : vector<1x1x96xf32> to vector<8x8x96xf32>
    %41 = arith.mulf %37, %40 : vector<8x8x96xf32>
    %42 = arith.addf %35, %41 : vector<8x8x96xf32>
    %c0_36 = arith.constant 0 : index
    %c0_37 = arith.constant 0 : index
    %c1_38 = arith.constant 1 : index
    %c0_39 = arith.constant 0 : index
    %c0_40 = arith.constant 0 : index
    %43 = vector.load %arg1[%c0_36, %c0_37, %c1_38, %c0_39, %c0_40] : memref<1x4x9x9x96xf32, #tpu.memory_space<vmem>>, vector<1x1x8x8x96xf32>
    %44 = vector.shape_cast %43 : vector<1x1x8x8x96xf32> to vector<8x8x96xf32>
    %c6 = arith.constant 6 : index
    %c0_41 = arith.constant 0 : index
    %45 = vector.load %arg2[%c6, %c0_41] : memref<9x96xf32, #tpu.memory_space<vmem>>, vector<1x96xf32>
    %46 = vector.shape_cast %45 : vector<1x96xf32> to vector<1x1x96xf32>
    %47 = vector.broadcast %46 : vector<1x1x96xf32> to vector<8x8x96xf32>
    %48 = arith.mulf %44, %47 : vector<8x8x96xf32>
    %49 = arith.addf %42, %48 : vector<8x8x96xf32>
    %c0_42 = arith.constant 0 : index
    %c1_43 = arith.constant 1 : index
    %c1_44 = arith.constant 1 : index
    %c0_45 = arith.constant 0 : index
    %c0_46 = arith.constant 0 : index
    %50 = vector.load %arg1[%c0_42, %c1_43, %c1_44, %c0_45, %c0_46] : memref<1x4x9x9x96xf32, #tpu.memory_space<vmem>>, vector<1x1x8x8x96xf32>
    %51 = vector.shape_cast %50 : vector<1x1x8x8x96xf32> to vector<8x8x96xf32>
    %c7 = arith.constant 7 : index
    %c0_47 = arith.constant 0 : index
    %52 = vector.load %arg2[%c7, %c0_47] : memref<9x96xf32, #tpu.memory_space<vmem>>, vector<1x96xf32>
    %53 = vector.shape_cast %52 : vector<1x96xf32> to vector<1x1x96xf32>
    %54 = vector.broadcast %53 : vector<1x1x96xf32> to vector<8x8x96xf32>
    %55 = arith.mulf %51, %54 : vector<8x8x96xf32>
    %56 = arith.addf %49, %55 : vector<8x8x96xf32>
    %c0_48 = arith.constant 0 : index
    %c0_49 = arith.constant 0 : index
    %c1_50 = arith.constant 1 : index
    %c1_51 = arith.constant 1 : index
    %c0_52 = arith.constant 0 : index
    %57 = vector.load %arg1[%c0_48, %c0_49, %c1_50, %c1_51, %c0_52] : memref<1x4x9x9x96xf32, #tpu.memory_space<vmem>>, vector<1x1x8x8x96xf32>
    %58 = vector.shape_cast %57 : vector<1x1x8x8x96xf32> to vector<8x8x96xf32>
    %c8 = arith.constant 8 : index
    %c0_53 = arith.constant 0 : index
    %59 = vector.load %arg2[%c8, %c0_53] : memref<9x96xf32, #tpu.memory_space<vmem>>, vector<1x96xf32>
    %60 = vector.shape_cast %59 : vector<1x96xf32> to vector<1x1x96xf32>
    %61 = vector.broadcast %60 : vector<1x1x96xf32> to vector<8x8x96xf32>
    %62 = arith.mulf %58, %61 : vector<8x8x96xf32>
    %63 = arith.addf %56, %62 : vector<8x8x96xf32>
    %c0_54 = arith.constant 0 : index
    %c0_55 = arith.constant 0 : index
    %64 = vector.load %arg3[%c0_54, %c0_55] : memref<1x96xf32, #tpu.memory_space<vmem>>, vector<1x96xf32>
    %65 = vector.shape_cast %64 : vector<1x96xf32> to vector<1x1x96xf32>
    %66 = vector.broadcast %65 : vector<1x1x96xf32> to vector<8x8x96xf32>
    %67 = arith.addf %63, %66 : vector<8x8x96xf32>
    %cst_56 = arith.constant 0.000000e+00 : f32
    %68 = vector.broadcast %cst_56 : f32 to vector<8x8x96xf32>
    %69 = arith.subf %68, %67 : vector<8x8x96xf32>
    %70 = math.exp %69 : vector<8x8x96xf32>
    %cst_57 = arith.constant 1.000000e+00 : f32
    %71 = vector.broadcast %cst_57 : f32 to vector<8x8x96xf32>
    %72 = arith.addf %71, %70 : vector<8x8x96xf32>
    %73 = tpu.reciprocal %72 {approx = true} : vector<8x8x96xf32> -> vector<8x8x96xf32>
    %74 = arith.mulf %67, %73 : vector<8x8x96xf32>
    %75 = vector.shape_cast %74 : vector<8x8x96xf32> to vector<64x96xf32>
    %c0_58 = arith.constant 0 : index
    %c0_59 = arith.constant 0 : index
    %76 = vector.load %arg4[%c0_58, %c0_59] : memref<96x4xf32, #tpu.memory_space<vmem>>, vector<96x4xf32>
    %c0_60 = arith.constant 0 : index
    %c0_61 = arith.constant 0 : index
    %77 = vector.load %arg5[%c0_60, %c0_61] : memref<1x4xf32, #tpu.memory_space<vmem>>, vector<1x4xf32>
    %c0_62 = arith.constant 0 : index
    %c0_63 = arith.constant 0 : index
    %78 = vector.load %arg6[%c0_62, %c0_63] : memref<4x96xf32, #tpu.memory_space<vmem>>, vector<4x96xf32>
    %c0_64 = arith.constant 0 : index
    %c0_65 = arith.constant 0 : index
    %79 = vector.load %arg7[%c0_64, %c0_65] : memref<1x96xf32, #tpu.memory_space<vmem>>, vector<1x96xf32>
    %cst_66 = arith.constant dense<0.000000e+00> : vector<96xf32>
    %80 = vector.multi_reduction <add>, %75, %cst_66 [0] : vector<64x96xf32> to vector<96xf32>
    %81 = vector.shape_cast %80 : vector<96xf32> to vector<1x96xf32>
    %cst_67 = arith.constant 1.562500e-02 : f32
    %82 = vector.broadcast %cst_67 : f32 to vector<1x96xf32>
    %83 = arith.mulf %81, %82 : vector<1x96xf32>
    %cst_68 = arith.constant dense<0.000000e+00> : vector<1x4xf32>
    %84 = tpu.matmul %83, %76, %cst_68 {dimension_numbers = #tpu.dot_dimension_numbers<[1], [0], [0], [1], [0, 0, 1, 1], [], []>} : vector<1x96xf32>, vector<96x4xf32>, vector<1x4xf32> -> vector<1x4xf32>
    %85 = arith.addf %84, %77 : vector<1x4xf32>
    %cst_69 = arith.constant 0.000000e+00 : f32
    %86 = vector.broadcast %cst_69 : f32 to vector<1x4xf32>
    %87 = arith.subf %86, %85 : vector<1x4xf32>
    %88 = math.exp %87 : vector<1x4xf32>
    %cst_70 = arith.constant 1.000000e+00 : f32
    %89 = vector.broadcast %cst_70 : f32 to vector<1x4xf32>
    %90 = arith.addf %89, %88 : vector<1x4xf32>
    %91 = tpu.reciprocal %90 {approx = true} : vector<1x4xf32> -> vector<1x4xf32>
    %92 = arith.mulf %85, %91 : vector<1x4xf32>
    %cst_71 = arith.constant dense<0.000000e+00> : vector<1x96xf32>
    %93 = tpu.matmul %92, %78, %cst_71 {dimension_numbers = #tpu.dot_dimension_numbers<[1], [0], [0], [1], [0, 0, 1, 1], [], []>} : vector<1x4xf32>, vector<4x96xf32>, vector<1x96xf32> -> vector<1x96xf32>
    %94 = arith.addf %93, %79 : vector<1x96xf32>
    %cst_72 = arith.constant 0.000000e+00 : f32
    %95 = vector.broadcast %cst_72 : f32 to vector<1x96xf32>
    %96 = arith.subf %95, %94 : vector<1x96xf32>
    %97 = math.exp %96 : vector<1x96xf32>
    %cst_73 = arith.constant 1.000000e+00 : f32
    %98 = vector.broadcast %cst_73 : f32 to vector<1x96xf32>
    %99 = arith.addf %98, %97 : vector<1x96xf32>
    %100 = tpu.reciprocal %99 {approx = true} : vector<1x96xf32> -> vector<1x96xf32>
    %101 = vector.broadcast %100 : vector<1x96xf32> to vector<64x96xf32>
    %102 = arith.mulf %75, %101 : vector<64x96xf32>
    %103 = arith.truncf %102 : vector<64x96xf32> to vector<64x96xbf16>
    %c0_74 = arith.constant 0 : index
    %c0_75 = arith.constant 0 : index
    %104 = vector.load %arg8[%c0_74, %c0_75] : memref<96x24xbf16, #tpu.memory_space<vmem>>, vector<96x24xbf16>
    %cst_76 = arith.constant dense<0.000000e+00> : vector<64x24xf32>
    %105 = tpu.matmul %103, %104, %cst_76 {dimension_numbers = #tpu.dot_dimension_numbers<[1], [0], [0], [1], [0, 0, 1, 1], [], []>} : vector<64x96xbf16>, vector<96x24xbf16>, vector<64x24xf32> -> vector<64x24xf32>
    %c0_77 = arith.constant 0 : index
    %c0_78 = arith.constant 0 : index
    %106 = vector.load %arg9[%c0_77, %c0_78] : memref<1x24xf32, #tpu.memory_space<vmem>>, vector<1x24xf32>
    %107 = vector.broadcast %106 : vector<1x24xf32> to vector<64x24xf32>
    %108 = arith.addf %105, %107 : vector<64x24xf32>
    %109 = arith.truncf %108 : vector<64x24xf32> to vector<64x24xbf16>
    %c0_79 = arith.constant 0 : index
    %c0_80 = arith.constant 0 : index
    %110 = vector.load %arg10[%c0_79, %c0_80] : memref<24x144xbf16, #tpu.memory_space<vmem>>, vector<24x144xbf16>
    %cst_81 = arith.constant dense<0.000000e+00> : vector<64x144xf32>
    %111 = tpu.matmul %109, %110, %cst_81 {dimension_numbers = #tpu.dot_dimension_numbers<[1], [0], [0], [1], [0, 0, 1, 1], [], []>} : vector<64x24xbf16>, vector<24x144xbf16>, vector<64x144xf32> -> vector<64x144xf32>
    %c0_82 = arith.constant 0 : index
    %c0_83 = arith.constant 0 : index
    %112 = vector.load %arg11[%c0_82, %c0_83] : memref<1x144xf32, #tpu.memory_space<vmem>>, vector<1x144xf32>
    %113 = vector.broadcast %112 : vector<1x144xf32> to vector<64x144xf32>
    %114 = arith.addf %111, %113 : vector<64x144xf32>
    %cst_84 = arith.constant 0.000000e+00 : f32
    %115 = vector.broadcast %cst_84 : f32 to vector<64x144xf32>
    %116 = arith.subf %115, %114 : vector<64x144xf32>
    %117 = math.exp %116 : vector<64x144xf32>
    %cst_85 = arith.constant 1.000000e+00 : f32
    %118 = vector.broadcast %cst_85 : f32 to vector<64x144xf32>
    %119 = arith.addf %118, %117 : vector<64x144xf32>
    %120 = tpu.reciprocal %119 {approx = true} : vector<64x144xf32> -> vector<64x144xf32>
    %121 = arith.mulf %114, %120 : vector<64x144xf32>
    %cst_86 = arith.constant 0.000000e+00 : f32
    %122 = vector.broadcast %cst_86 : f32 to vector<10x10x144xf32>
    %c0_87 = arith.constant 0 : index
    %c0_88 = arith.constant 0 : index
    %c0_89 = arith.constant 0 : index
    %123 = vector.load %arg25[%c0_87, %c0_88, %c0_89] : memref<10x10x144xf32, #tpu.memory_space<vmem>>, vector<10x10x144xf32>
    tpu.vector_store %arg25[%c0_87, %c0_88, %c0_89], %122 {strides = array<i32>} : memref<10x10x144xf32, #tpu.memory_space<vmem>>, vector<10x10x144xf32>,
    %124 = vector.extract_strided_slice %121 {offsets = [0, 0], sizes = [8, 144], strides = [1, 1]} : vector<64x144xf32> to vector<8x144xf32>
    %c1_90 = arith.constant 1 : index
    %c1_91 = arith.constant 1 : index
    %c0_92 = arith.constant 0 : index
    %125 = vector.load %arg25[%c1_90, %c1_91, %c0_92] : memref<10x10x144xf32, #tpu.memory_space<vmem>>, vector<1x8x144xf32>
    %126 = vector.shape_cast %125 : vector<1x8x144xf32> to vector<8x144xf32>
    %127 = vector.shape_cast %124 : vector<8x144xf32> to vector<1x8x144xf32>
    tpu.vector_store %arg25[%c1_90, %c1_91, %c0_92], %127 {strides = array<i32>} : memref<10x10x144xf32, #tpu.memory_space<vmem>>, vector<1x8x144xf32>,
    %128 = vector.extract_strided_slice %121 {offsets = [8, 0], sizes = [8, 144], strides = [1, 1]} : vector<64x144xf32> to vector<8x144xf32>
    %c2_93 = arith.constant 2 : index
    %c1_94 = arith.constant 1 : index
    %c0_95 = arith.constant 0 : index
    %129 = vector.load %arg25[%c2_93, %c1_94, %c0_95] : memref<10x10x144xf32, #tpu.memory_space<vmem>>, vector<1x8x144xf32>
    %130 = vector.shape_cast %129 : vector<1x8x144xf32> to vector<8x144xf32>
    %131 = vector.shape_cast %128 : vector<8x144xf32> to vector<1x8x144xf32>
    tpu.vector_store %arg25[%c2_93, %c1_94, %c0_95], %131 {strides = array<i32>} : memref<10x10x144xf32, #tpu.memory_space<vmem>>, vector<1x8x144xf32>,
    %132 = vector.extract_strided_slice %121 {offsets = [16, 0], sizes = [8, 144], strides = [1, 1]} : vector<64x144xf32> to vector<8x144xf32>
    %c3_96 = arith.constant 3 : index
    %c1_97 = arith.constant 1 : index
    %c0_98 = arith.constant 0 : index
    %133 = vector.load %arg25[%c3_96, %c1_97, %c0_98] : memref<10x10x144xf32, #tpu.memory_space<vmem>>, vector<1x8x144xf32>
    %134 = vector.shape_cast %133 : vector<1x8x144xf32> to vector<8x144xf32>
    %135 = vector.shape_cast %132 : vector<8x144xf32> to vector<1x8x144xf32>
    tpu.vector_store %arg25[%c3_96, %c1_97, %c0_98], %135 {strides = array<i32>} : memref<10x10x144xf32, #tpu.memory_space<vmem>>, vector<1x8x144xf32>,
    %136 = vector.extract_strided_slice %121 {offsets = [24, 0], sizes = [8, 144], strides = [1, 1]} : vector<64x144xf32> to vector<8x144xf32>
    %c4_99 = arith.constant 4 : index
    %c1_100 = arith.constant 1 : index
    %c0_101 = arith.constant 0 : index
    %137 = vector.load %arg25[%c4_99, %c1_100, %c0_101] : memref<10x10x144xf32, #tpu.memory_space<vmem>>, vector<1x8x144xf32>
    %138 = vector.shape_cast %137 : vector<1x8x144xf32> to vector<8x144xf32>
    %139 = vector.shape_cast %136 : vector<8x144xf32> to vector<1x8x144xf32>
    tpu.vector_store %arg25[%c4_99, %c1_100, %c0_101], %139 {strides = array<i32>} : memref<10x10x144xf32, #tpu.memory_space<vmem>>, vector<1x8x144xf32>,
    %140 = vector.extract_strided_slice %121 {offsets = [32, 0], sizes = [8, 144], strides = [1, 1]} : vector<64x144xf32> to vector<8x144xf32>
    %c5_102 = arith.constant 5 : index
    %c1_103 = arith.constant 1 : index
    %c0_104 = arith.constant 0 : index
    %141 = vector.load %arg25[%c5_102, %c1_103, %c0_104] : memref<10x10x144xf32, #tpu.memory_space<vmem>>, vector<1x8x144xf32>
    %142 = vector.shape_cast %141 : vector<1x8x144xf32> to vector<8x144xf32>
    %143 = vector.shape_cast %140 : vector<8x144xf32> to vector<1x8x144xf32>
    tpu.vector_store %arg25[%c5_102, %c1_103, %c0_104], %143 {strides = array<i32>} : memref<10x10x144xf32, #tpu.memory_space<vmem>>, vector<1x8x144xf32>,
    %144 = vector.extract_strided_slice %121 {offsets = [40, 0], sizes = [8, 144], strides = [1, 1]} : vector<64x144xf32> to vector<8x144xf32>
    %c6_105 = arith.constant 6 : index
    %c1_106 = arith.constant 1 : index
    %c0_107 = arith.constant 0 : index
    %145 = vector.load %arg25[%c6_105, %c1_106, %c0_107] : memref<10x10x144xf32, #tpu.memory_space<vmem>>, vector<1x8x144xf32>
    %146 = vector.shape_cast %145 : vector<1x8x144xf32> to vector<8x144xf32>
    %147 = vector.shape_cast %144 : vector<8x144xf32> to vector<1x8x144xf32>
    tpu.vector_store %arg25[%c6_105, %c1_106, %c0_107], %147 {strides = array<i32>} : memref<10x10x144xf32, #tpu.memory_space<vmem>>, vector<1x8x144xf32>,
    %148 = vector.extract_strided_slice %121 {offsets = [48, 0], sizes = [8, 144], strides = [1, 1]} : vector<64x144xf32> to vector<8x144xf32>
    %c7_108 = arith.constant 7 : index
    %c1_109 = arith.constant 1 : index
    %c0_110 = arith.constant 0 : index
    %149 = vector.load %arg25[%c7_108, %c1_109, %c0_110] : memref<10x10x144xf32, #tpu.memory_space<vmem>>, vector<1x8x144xf32>
    %150 = vector.shape_cast %149 : vector<1x8x144xf32> to vector<8x144xf32>
    %151 = vector.shape_cast %148 : vector<8x144xf32> to vector<1x8x144xf32>
    tpu.vector_store %arg25[%c7_108, %c1_109, %c0_110], %151 {strides = array<i32>} : memref<10x10x144xf32, #tpu.memory_space<vmem>>, vector<1x8x144xf32>,
    %152 = vector.extract_strided_slice %121 {offsets = [56, 0], sizes = [8, 144], strides = [1, 1]} : vector<64x144xf32> to vector<8x144xf32>
    %c8_111 = arith.constant 8 : index
    %c1_112 = arith.constant 1 : index
    %c0_113 = arith.constant 0 : index
    %153 = vector.load %arg25[%c8_111, %c1_112, %c0_113] : memref<10x10x144xf32, #tpu.memory_space<vmem>>, vector<1x8x144xf32>
    %154 = vector.shape_cast %153 : vector<1x8x144xf32> to vector<8x144xf32>
    %155 = vector.shape_cast %152 : vector<8x144xf32> to vector<1x8x144xf32>
    tpu.vector_store %arg25[%c8_111, %c1_112, %c0_113], %155 {strides = array<i32>} : memref<10x10x144xf32, #tpu.memory_space<vmem>>, vector<1x8x144xf32>,
    %cst_114 = arith.constant 0.000000e+00 : f32
    %156 = vector.broadcast %cst_114 : f32 to vector<8x8x144xf32>
    %c0_115 = arith.constant 0 : index
    %c0_116 = arith.constant 0 : index
    %c0_117 = arith.constant 0 : index
    %157 = vector.load %arg25[%c0_115, %c0_116, %c0_117] : memref<10x10x144xf32, #tpu.memory_space<vmem>>, vector<8x8x144xf32>
    %c0_118 = arith.constant 0 : index
    %c0_119 = arith.constant 0 : index
    %158 = vector.load %arg12[%c0_118, %c0_119] : memref<9x144xf32, #tpu.memory_space<vmem>>, vector<1x144xf32>
    %159 = vector.shape_cast %158 : vector<1x144xf32> to vector<1x1x144xf32>
    %160 = vector.broadcast %159 : vector<1x1x144xf32> to vector<8x8x144xf32>
    %161 = arith.mulf %157, %160 : vector<8x8x144xf32>
    %162 = arith.addf %156, %161 : vector<8x8x144xf32>
    %c0_120 = arith.constant 0 : index
    %c1_121 = arith.constant 1 : index
    %c0_122 = arith.constant 0 : index
    %163 = vector.load %arg25[%c0_120, %c1_121, %c0_122] : memref<10x10x144xf32, #tpu.memory_space<vmem>>, vector<8x8x144xf32>
    %c1_123 = arith.constant 1 : index
    %c0_124 = arith.constant 0 : index
    %164 = vector.load %arg12[%c1_123, %c0_124] : memref<9x144xf32, #tpu.memory_space<vmem>>, vector<1x144xf32>
    %165 = vector.shape_cast %164 : vector<1x144xf32> to vector<1x1x144xf32>
    %166 = vector.broadcast %165 : vector<1x1x144xf32> to vector<8x8x144xf32>
    %167 = arith.mulf %163, %166 : vector<8x8x144xf32>
    %168 = arith.addf %162, %167 : vector<8x8x144xf32>
    %c0_125 = arith.constant 0 : index
    %c2_126 = arith.constant 2 : index
    %c0_127 = arith.constant 0 : index
    %169 = vector.load %arg25[%c0_125, %c2_126, %c0_127] : memref<10x10x144xf32, #tpu.memory_space<vmem>>, vector<8x8x144xf32>
    %c2_128 = arith.constant 2 : index
    %c0_129 = arith.constant 0 : index
    %170 = vector.load %arg12[%c2_128, %c0_129] : memref<9x144xf32, #tpu.memory_space<vmem>>, vector<1x144xf32>
    %171 = vector.shape_cast %170 : vector<1x144xf32> to vector<1x1x144xf32>
    %172 = vector.broadcast %171 : vector<1x1x144xf32> to vector<8x8x144xf32>
    %173 = arith.mulf %169, %172 : vector<8x8x144xf32>
    %174 = arith.addf %168, %173 : vector<8x8x144xf32>
    %c1_130 = arith.constant 1 : index
    %c0_131 = arith.constant 0 : index
    %c0_132 = arith.constant 0 : index
    %175 = vector.load %arg25[%c1_130, %c0_131, %c0_132] : memref<10x10x144xf32, #tpu.memory_space<vmem>>, vector<8x8x144xf32>
    %c3_133 = arith.constant 3 : index
    %c0_134 = arith.constant 0 : index
    %176 = vector.load %arg12[%c3_133, %c0_134] : memref<9x144xf32, #tpu.memory_space<vmem>>, vector<1x144xf32>
    %177 = vector.shape_cast %176 : vector<1x144xf32> to vector<1x1x144xf32>
    %178 = vector.broadcast %177 : vector<1x1x144xf32> to vector<8x8x144xf32>
    %179 = arith.mulf %175, %178 : vector<8x8x144xf32>
    %180 = arith.addf %174, %179 : vector<8x8x144xf32>
    %c1_135 = arith.constant 1 : index
    %c1_136 = arith.constant 1 : index
    %c0_137 = arith.constant 0 : index
    %181 = vector.load %arg25[%c1_135, %c1_136, %c0_137] : memref<10x10x144xf32, #tpu.memory_space<vmem>>, vector<8x8x144xf32>
    %c4_138 = arith.constant 4 : index
    %c0_139 = arith.constant 0 : index
    %182 = vector.load %arg12[%c4_138, %c0_139] : memref<9x144xf32, #tpu.memory_space<vmem>>, vector<1x144xf32>
    %183 = vector.shape_cast %182 : vector<1x144xf32> to vector<1x1x144xf32>
    %184 = vector.broadcast %183 : vector<1x1x144xf32> to vector<8x8x144xf32>
    %185 = arith.mulf %181, %184 : vector<8x8x144xf32>
    %186 = arith.addf %180, %185 : vector<8x8x144xf32>
    %c1_140 = arith.constant 1 : index
    %c2_141 = arith.constant 2 : index
    %c0_142 = arith.constant 0 : index
    %187 = vector.load %arg25[%c1_140, %c2_141, %c0_142] : memref<10x10x144xf32, #tpu.memory_space<vmem>>, vector<8x8x144xf32>
    %c5_143 = arith.constant 5 : index
    %c0_144 = arith.constant 0 : index
    %188 = vector.load %arg12[%c5_143, %c0_144] : memref<9x144xf32, #tpu.memory_space<vmem>>, vector<1x144xf32>
    %189 = vector.shape_cast %188 : vector<1x144xf32> to vector<1x1x144xf32>
    %190 = vector.broadcast %189 : vector<1x1x144xf32> to vector<8x8x144xf32>
    %191 = arith.mulf %187, %190 : vector<8x8x144xf32>
    %192 = arith.addf %186, %191 : vector<8x8x144xf32>
    %c2_145 = arith.constant 2 : index
    %c0_146 = arith.constant 0 : index
    %c0_147 = arith.constant 0 : index
    %193 = vector.load %arg25[%c2_145, %c0_146, %c0_147] : memref<10x10x144xf32, #tpu.memory_space<vmem>>, vector<8x8x144xf32>
    %c6_148 = arith.constant 6 : index
    %c0_149 = arith.constant 0 : index
    %194 = vector.load %arg12[%c6_148, %c0_149] : memref<9x144xf32, #tpu.memory_space<vmem>>, vector<1x144xf32>
    %195 = vector.shape_cast %194 : vector<1x144xf32> to vector<1x1x144xf32>
    %196 = vector.broadcast %195 : vector<1x1x144xf32> to vector<8x8x144xf32>
    %197 = arith.mulf %193, %196 : vector<8x8x144xf32>
    %198 = arith.addf %192, %197 : vector<8x8x144xf32>
    %c2_150 = arith.constant 2 : index
    %c1_151 = arith.constant 1 : index
    %c0_152 = arith.constant 0 : index
    %199 = vector.load %arg25[%c2_150, %c1_151, %c0_152] : memref<10x10x144xf32, #tpu.memory_space<vmem>>, vector<8x8x144xf32>
    %c7_153 = arith.constant 7 : index
    %c0_154 = arith.constant 0 : index
    %200 = vector.load %arg12[%c7_153, %c0_154] : memref<9x144xf32, #tpu.memory_space<vmem>>, vector<1x144xf32>
    %201 = vector.shape_cast %200 : vector<1x144xf32> to vector<1x1x144xf32>
    %202 = vector.broadcast %201 : vector<1x1x144xf32> to vector<8x8x144xf32>
    %203 = arith.mulf %199, %202 : vector<8x8x144xf32>
    %204 = arith.addf %198, %203 : vector<8x8x144xf32>
    %c2_155 = arith.constant 2 : index
    %c2_156 = arith.constant 2 : index
    %c0_157 = arith.constant 0 : index
    %205 = vector.load %arg25[%c2_155, %c2_156, %c0_157] : memref<10x10x144xf32, #tpu.memory_space<vmem>>, vector<8x8x144xf32>
    %c8_158 = arith.constant 8 : index
    %c0_159 = arith.constant 0 : index
    %206 = vector.load %arg12[%c8_158, %c0_159] : memref<9x144xf32, #tpu.memory_space<vmem>>, vector<1x144xf32>
    %207 = vector.shape_cast %206 : vector<1x144xf32> to vector<1x1x144xf32>
    %208 = vector.broadcast %207 : vector<1x1x144xf32> to vector<8x8x144xf32>
    %209 = arith.mulf %205, %208 : vector<8x8x144xf32>
    %210 = arith.addf %204, %209 : vector<8x8x144xf32>
    %c0_160 = arith.constant 0 : index
    %c0_161 = arith.constant 0 : index
    %211 = vector.load %arg13[%c0_160, %c0_161] : memref<1x144xf32, #tpu.memory_space<vmem>>, vector<1x144xf32>
    %212 = vector.shape_cast %211 : vector<1x144xf32> to vector<1x1x144xf32>
    %213 = vector.broadcast %212 : vector<1x1x144xf32> to vector<8x8x144xf32>
    %214 = arith.addf %210, %213 : vector<8x8x144xf32>
    %cst_162 = arith.constant 0.000000e+00 : f32
    %215 = vector.broadcast %cst_162 : f32 to vector<8x8x144xf32>
    %216 = arith.subf %215, %214 : vector<8x8x144xf32>
    %217 = math.exp %216 : vector<8x8x144xf32>
    %cst_163 = arith.constant 1.000000e+00 : f32
    %218 = vector.broadcast %cst_163 : f32 to vector<8x8x144xf32>
    %219 = arith.addf %218, %217 : vector<8x8x144xf32>
    %220 = tpu.reciprocal %219 {approx = true} : vector<8x8x144xf32> -> vector<8x8x144xf32>
    %221 = arith.mulf %214, %220 : vector<8x8x144xf32>
    %222 = vector.shape_cast %221 : vector<8x8x144xf32> to vector<64x144xf32>
    %c0_164 = arith.constant 0 : index
    %c0_165 = arith.constant 0 : index
    %223 = vector.load %arg14[%c0_164, %c0_165] : memref<144x6xf32, #tpu.memory_space<vmem>>, vector<144x6xf32>
    %c0_166 = arith.constant 0 : index
    %c0_167 = arith.constant 0 : index
    %224 = vector.load %arg15[%c0_166, %c0_167] : memref<1x6xf32, #tpu.memory_space<vmem>>, vector<1x6xf32>
    %c0_168 = arith.constant 0 : index
    %c0_169 = arith.constant 0 : index
    %225 = vector.load %arg16[%c0_168, %c0_169] : memref<6x144xf32, #tpu.memory_space<vmem>>, vector<6x144xf32>
    %c0_170 = arith.constant 0 : index
    %c0_171 = arith.constant 0 : index
    %226 = vector.load %arg17[%c0_170, %c0_171] : memref<1x144xf32, #tpu.memory_space<vmem>>, vector<1x144xf32>
    %cst_172 = arith.constant dense<0.000000e+00> : vector<144xf32>
    %227 = vector.multi_reduction <add>, %222, %cst_172 [0] : vector<64x144xf32> to vector<144xf32>
    %228 = vector.shape_cast %227 : vector<144xf32> to vector<1x144xf32>
    %cst_173 = arith.constant 1.562500e-02 : f32
    %229 = vector.broadcast %cst_173 : f32 to vector<1x144xf32>
    %230 = arith.mulf %228, %229 : vector<1x144xf32>
    %cst_174 = arith.constant dense<0.000000e+00> : vector<1x6xf32>
    %231 = tpu.matmul %230, %223, %cst_174 {dimension_numbers = #tpu.dot_dimension_numbers<[1], [0], [0], [1], [0, 0, 1, 1], [], []>} : vector<1x144xf32>, vector<144x6xf32>, vector<1x6xf32> -> vector<1x6xf32>
    %232 = arith.addf %231, %224 : vector<1x6xf32>
    %cst_175 = arith.constant 0.000000e+00 : f32
    %233 = vector.broadcast %cst_175 : f32 to vector<1x6xf32>
    %234 = arith.subf %233, %232 : vector<1x6xf32>
    %235 = math.exp %234 : vector<1x6xf32>
    %cst_176 = arith.constant 1.000000e+00 : f32
    %236 = vector.broadcast %cst_176 : f32 to vector<1x6xf32>
    %237 = arith.addf %236, %235 : vector<1x6xf32>
    %238 = tpu.reciprocal %237 {approx = true} : vector<1x6xf32> -> vector<1x6xf32>
    %239 = arith.mulf %232, %238 : vector<1x6xf32>
    %cst_177 = arith.constant dense<0.000000e+00> : vector<1x144xf32>
    %240 = tpu.matmul %239, %225, %cst_177 {dimension_numbers = #tpu.dot_dimension_numbers<[1], [0], [0], [1], [0, 0, 1, 1], [], []>} : vector<1x6xf32>, vector<6x144xf32>, vector<1x144xf32> -> vector<1x144xf32>
    %241 = arith.addf %240, %226 : vector<1x144xf32>
    %cst_178 = arith.constant 0.000000e+00 : f32
    %242 = vector.broadcast %cst_178 : f32 to vector<1x144xf32>
    %243 = arith.subf %242, %241 : vector<1x144xf32>
    %244 = math.exp %243 : vector<1x144xf32>
    %cst_179 = arith.constant 1.000000e+00 : f32
    %245 = vector.broadcast %cst_179 : f32 to vector<1x144xf32>
    %246 = arith.addf %245, %244 : vector<1x144xf32>
    %247 = tpu.reciprocal %246 {approx = true} : vector<1x144xf32> -> vector<1x144xf32>
    %248 = vector.broadcast %247 : vector<1x144xf32> to vector<64x144xf32>
    %249 = arith.mulf %222, %248 : vector<64x144xf32>
    %250 = arith.truncf %249 : vector<64x144xf32> to vector<64x144xbf16>
    %c0_180 = arith.constant 0 : index
    %c0_181 = arith.constant 0 : index
    %251 = vector.load %arg18[%c0_180, %c0_181] : memref<144x24xbf16, #tpu.memory_space<vmem>>, vector<144x24xbf16>
    %cst_182 = arith.constant dense<0.000000e+00> : vector<64x24xf32>
    %252 = tpu.matmul %250, %251, %cst_182 {dimension_numbers = #tpu.dot_dimension_numbers<[1], [0], [0], [1], [0, 0, 1, 1], [], []>} : vector<64x144xbf16>, vector<144x24xbf16>, vector<64x24xf32> -> vector<64x24xf32>
    %c0_183 = arith.constant 0 : index
    %c0_184 = arith.constant 0 : index
    %253 = vector.load %arg19[%c0_183, %c0_184] : memref<1x24xf32, #tpu.memory_space<vmem>>, vector<1x24xf32>
    %254 = vector.broadcast %253 : vector<1x24xf32> to vector<64x24xf32>
    %255 = arith.addf %252, %254 : vector<64x24xf32>
    %256 = arith.addf %255, %108 : vector<64x24xf32>
    %cst_185 = arith.constant 0.000000e+00 : f32
    %257 = vector.broadcast %cst_185 : f32 to vector<1x1280xf32>
    %258 = vector.extract_strided_slice %256 {offsets = [0, 0], sizes = [16, 24], strides = [1, 1]} : vector<64x24xf32> to vector<16x24xf32>
    %259 = arith.truncf %258 : vector<16x24xf32> to vector<16x24xbf16>
    %c0_186 = arith.constant 0 : index
    %c0_187 = arith.constant 0 : index
    %260 = vector.load %arg20[%c0_186, %c0_187] : memref<24x1280xbf16, #tpu.memory_space<vmem>>, vector<24x1280xbf16>
    %cst_188 = arith.constant dense<0.000000e+00> : vector<16x1280xf32>
    %261 = tpu.matmul %259, %260, %cst_188 {dimension_numbers = #tpu.dot_dimension_numbers<[1], [0], [0], [1], [0, 0, 1, 1], [], []>} : vector<16x24xbf16>, vector<24x1280xbf16>, vector<16x1280xf32> -> vector<16x1280xf32>
    %c0_189 = arith.constant 0 : index
    %c0_190 = arith.constant 0 : index
    %262 = vector.load %arg21[%c0_189, %c0_190] : memref<1x1280xf32, #tpu.memory_space<vmem>>, vector<1x1280xf32>
    %263 = vector.broadcast %262 : vector<1x1280xf32> to vector<16x1280xf32>
    %264 = arith.addf %261, %263 : vector<16x1280xf32>
    %cst_191 = arith.constant 0.000000e+00 : f32
    %265 = vector.broadcast %cst_191 : f32 to vector<16x1280xf32>
    %266 = arith.subf %265, %264 : vector<16x1280xf32>
    %267 = math.exp %266 : vector<16x1280xf32>
    %cst_192 = arith.constant 1.000000e+00 : f32
    %268 = vector.broadcast %cst_192 : f32 to vector<16x1280xf32>
    %269 = arith.addf %268, %267 : vector<16x1280xf32>
    %270 = tpu.reciprocal %269 {approx = true} : vector<16x1280xf32> -> vector<16x1280xf32>
    %271 = arith.mulf %264, %270 : vector<16x1280xf32>
    %cst_193 = arith.constant dense<0.000000e+00> : vector<1280xf32>
    %272 = vector.multi_reduction <add>, %271, %cst_193 [0] : vector<16x1280xf32> to vector<1280xf32>
    %273 = vector.shape_cast %272 : vector<1280xf32> to vector<1x1280xf32>
    %274 = arith.addf %257, %273 : vector<1x1280xf32>
    %275 = vector.extract_strided_slice %256 {offsets = [16, 0], sizes = [16, 24], strides = [1, 1]} : vector<64x24xf32> to vector<16x24xf32>
    %276 = arith.truncf %275 : vector<16x24xf32> to vector<16x24xbf16>
    %c0_194 = arith.constant 0 : index
    %c0_195 = arith.constant 0 : index
    %277 = vector.load %arg20[%c0_194, %c0_195] : memref<24x1280xbf16, #tpu.memory_space<vmem>>, vector<24x1280xbf16>
    %cst_196 = arith.constant dense<0.000000e+00> : vector<16x1280xf32>
    %278 = tpu.matmul %276, %277, %cst_196 {dimension_numbers = #tpu.dot_dimension_numbers<[1], [0], [0], [1], [0, 0, 1, 1], [], []>} : vector<16x24xbf16>, vector<24x1280xbf16>, vector<16x1280xf32> -> vector<16x1280xf32>
    %c0_197 = arith.constant 0 : index
    %c0_198 = arith.constant 0 : index
    %279 = vector.load %arg21[%c0_197, %c0_198] : memref<1x1280xf32, #tpu.memory_space<vmem>>, vector<1x1280xf32>
    %280 = vector.broadcast %279 : vector<1x1280xf32> to vector<16x1280xf32>
    %281 = arith.addf %278, %280 : vector<16x1280xf32>
    %cst_199 = arith.constant 0.000000e+00 : f32
    %282 = vector.broadcast %cst_199 : f32 to vector<16x1280xf32>
    %283 = arith.subf %282, %281 : vector<16x1280xf32>
    %284 = math.exp %283 : vector<16x1280xf32>
    %cst_200 = arith.constant 1.000000e+00 : f32
    %285 = vector.broadcast %cst_200 : f32 to vector<16x1280xf32>
    %286 = arith.addf %285, %284 : vector<16x1280xf32>
    %287 = tpu.reciprocal %286 {approx = true} : vector<16x1280xf32> -> vector<16x1280xf32>
    %288 = arith.mulf %281, %287 : vector<16x1280xf32>
    %cst_201 = arith.constant dense<0.000000e+00> : vector<1280xf32>
    %289 = vector.multi_reduction <add>, %288, %cst_201 [0] : vector<16x1280xf32> to vector<1280xf32>
    %290 = vector.shape_cast %289 : vector<1280xf32> to vector<1x1280xf32>
    %291 = arith.addf %274, %290 : vector<1x1280xf32>
    %292 = vector.extract_strided_slice %256 {offsets = [32, 0], sizes = [16, 24], strides = [1, 1]} : vector<64x24xf32> to vector<16x24xf32>
    %293 = arith.truncf %292 : vector<16x24xf32> to vector<16x24xbf16>
    %c0_202 = arith.constant 0 : index
    %c0_203 = arith.constant 0 : index
    %294 = vector.load %arg20[%c0_202, %c0_203] : memref<24x1280xbf16, #tpu.memory_space<vmem>>, vector<24x1280xbf16>
    %cst_204 = arith.constant dense<0.000000e+00> : vector<16x1280xf32>
    %295 = tpu.matmul %293, %294, %cst_204 {dimension_numbers = #tpu.dot_dimension_numbers<[1], [0], [0], [1], [0, 0, 1, 1], [], []>} : vector<16x24xbf16>, vector<24x1280xbf16>, vector<16x1280xf32> -> vector<16x1280xf32>
    %c0_205 = arith.constant 0 : index
    %c0_206 = arith.constant 0 : index
    %296 = vector.load %arg21[%c0_205, %c0_206] : memref<1x1280xf32, #tpu.memory_space<vmem>>, vector<1x1280xf32>
    %297 = vector.broadcast %296 : vector<1x1280xf32> to vector<16x1280xf32>
    %298 = arith.addf %295, %297 : vector<16x1280xf32>
    %cst_207 = arith.constant 0.000000e+00 : f32
    %299 = vector.broadcast %cst_207 : f32 to vector<16x1280xf32>
    %300 = arith.subf %299, %298 : vector<16x1280xf32>
    %301 = math.exp %300 : vector<16x1280xf32>
    %cst_208 = arith.constant 1.000000e+00 : f32
    %302 = vector.broadcast %cst_208 : f32 to vector<16x1280xf32>
    %303 = arith.addf %302, %301 : vector<16x1280xf32>
    %304 = tpu.reciprocal %303 {approx = true} : vector<16x1280xf32> -> vector<16x1280xf32>
    %305 = arith.mulf %298, %304 : vector<16x1280xf32>
    %cst_209 = arith.constant dense<0.000000e+00> : vector<1280xf32>
    %306 = vector.multi_reduction <add>, %305, %cst_209 [0] : vector<16x1280xf32> to vector<1280xf32>
    %307 = vector.shape_cast %306 : vector<1280xf32> to vector<1x1280xf32>
    %308 = arith.addf %291, %307 : vector<1x1280xf32>
    %309 = vector.extract_strided_slice %256 {offsets = [48, 0], sizes = [16, 24], strides = [1, 1]} : vector<64x24xf32> to vector<16x24xf32>
    %310 = arith.truncf %309 : vector<16x24xf32> to vector<16x24xbf16>
    %c0_210 = arith.constant 0 : index
    %c0_211 = arith.constant 0 : index
    %311 = vector.load %arg20[%c0_210, %c0_211] : memref<24x1280xbf16, #tpu.memory_space<vmem>>, vector<24x1280xbf16>
    %cst_212 = arith.constant dense<0.000000e+00> : vector<16x1280xf32>
    %312 = tpu.matmul %310, %311, %cst_212 {dimension_numbers = #tpu.dot_dimension_numbers<[1], [0], [0], [1], [0, 0, 1, 1], [], []>} : vector<16x24xbf16>, vector<24x1280xbf16>, vector<16x1280xf32> -> vector<16x1280xf32>
    %c0_213 = arith.constant 0 : index
    %c0_214 = arith.constant 0 : index
    %313 = vector.load %arg21[%c0_213, %c0_214] : memref<1x1280xf32, #tpu.memory_space<vmem>>, vector<1x1280xf32>
    %314 = vector.broadcast %313 : vector<1x1280xf32> to vector<16x1280xf32>
    %315 = arith.addf %312, %314 : vector<16x1280xf32>
    %cst_215 = arith.constant 0.000000e+00 : f32
    %316 = vector.broadcast %cst_215 : f32 to vector<16x1280xf32>
    %317 = arith.subf %316, %315 : vector<16x1280xf32>
    %318 = math.exp %317 : vector<16x1280xf32>
    %cst_216 = arith.constant 1.000000e+00 : f32
    %319 = vector.broadcast %cst_216 : f32 to vector<16x1280xf32>
    %320 = arith.addf %319, %318 : vector<16x1280xf32>
    %321 = tpu.reciprocal %320 {approx = true} : vector<16x1280xf32> -> vector<16x1280xf32>
    %322 = arith.mulf %315, %321 : vector<16x1280xf32>
    %cst_217 = arith.constant dense<0.000000e+00> : vector<1280xf32>
    %323 = vector.multi_reduction <add>, %322, %cst_217 [0] : vector<16x1280xf32> to vector<1280xf32>
    %324 = vector.shape_cast %323 : vector<1280xf32> to vector<1x1280xf32>
    %325 = arith.addf %308, %324 : vector<1x1280xf32>
    %cst_218 = arith.constant 1.562500e-02 : f32
    %326 = vector.broadcast %cst_218 : f32 to vector<1x1280xf32>
    %327 = arith.mulf %325, %326 : vector<1x1280xf32>
    %328 = arith.truncf %327 : vector<1x1280xf32> to vector<1x1280xbf16>
    %c0_219 = arith.constant 0 : index
    %c0_220 = arith.constant 0 : index
    %329 = vector.load %arg22[%c0_219, %c0_220] : memref<1280x128xbf16, #tpu.memory_space<vmem>>, vector<1280x128xbf16>
    %cst_221 = arith.constant dense<0.000000e+00> : vector<1x128xf32>
    %330 = tpu.matmul %328, %329, %cst_221 {dimension_numbers = #tpu.dot_dimension_numbers<[1], [0], [0], [1], [0, 0, 1, 1], [], []>} : vector<1x1280xbf16>, vector<1280x128xbf16>, vector<1x128xf32> -> vector<1x128xf32>
    %c0_222 = arith.constant 0 : index
    %c0_223 = arith.constant 0 : index
    %331 = vector.load %arg23[%c0_222, %c0_223] : memref<1x128xf32, #tpu.memory_space<vmem>>, vector<1x128xf32>
    %332 = arith.addf %330, %331 : vector<1x128xf32>
    %c0_224 = arith.constant 0 : index
    %c0_225 = arith.constant 0 : index
    %c0_226 = arith.constant 0 : index
    %333 = vector.load %arg24[%c0_224, %c0_225, %c0_226] : memref<1x1x128xf32, #tpu.memory_space<vmem>>, vector<1x1x128xf32>
    %334 = vector.shape_cast %333 : vector<1x1x128xf32> to vector<1x128xf32>
    %335 = vector.shape_cast %332 : vector<1x128xf32> to vector<1x1x128xf32>
    tpu.vector_store %arg24[%c0_224, %c0_225, %c0_226], %335 {strides = array<i32>} : memref<1x1x128xf32, #tpu.memory_space<vmem>>, vector<1x1x128xf32>,
    return
  }
  func.func @transform_0(%arg0: i32) -> (i32, i32, i32, i32, i32) {
    %c0_i32 = arith.constant 0 : i32
    %c0_i32_0 = arith.constant 0 : i32
    %c0_i32_1 = arith.constant 0 : i32
    %c0_i32_2 = arith.constant 0 : i32
    %c0_i32_3 = arith.constant 0 : i32
    return %arg0, %c0_i32, %c0_i32_0, %c0_i32_1, %c0_i32_2 : i32, i32, i32, i32, i32
  }
  func.func @transform_1(%arg0: i32) -> (i32, i32) {
    %c0_i32 = arith.constant 0 : i32
    %c0_i32_0 = arith.constant 0 : i32
    %c0_i32_1 = arith.constant 0 : i32
    return %c0_i32, %c0_i32_0 : i32, i32
  }
  func.func @transform_2(%arg0: i32) -> (i32, i32) {
    %c0_i32 = arith.constant 0 : i32
    %c0_i32_0 = arith.constant 0 : i32
    %c0_i32_1 = arith.constant 0 : i32
    return %c0_i32, %c0_i32_0 : i32, i32
  }
  func.func @transform_3(%arg0: i32) -> (i32, i32) {
    %c0_i32 = arith.constant 0 : i32
    %c0_i32_0 = arith.constant 0 : i32
    %c0_i32_1 = arith.constant 0 : i32
    return %c0_i32, %c0_i32_0 : i32, i32
  }
  func.func @transform_4(%arg0: i32) -> (i32, i32) {
    %c0_i32 = arith.constant 0 : i32
    %c0_i32_0 = arith.constant 0 : i32
    %c0_i32_1 = arith.constant 0 : i32
    return %c0_i32, %c0_i32_0 : i32, i32
  }
  func.func @transform_5(%arg0: i32) -> (i32, i32) {
    %c0_i32 = arith.constant 0 : i32
    %c0_i32_0 = arith.constant 0 : i32
    %c0_i32_1 = arith.constant 0 : i32
    return %c0_i32, %c0_i32_0 : i32, i32
  }
  func.func @transform_6(%arg0: i32) -> (i32, i32) {
    %c0_i32 = arith.constant 0 : i32
    %c0_i32_0 = arith.constant 0 : i32
    %c0_i32_1 = arith.constant 0 : i32
    return %c0_i32, %c0_i32_0 : i32, i32
  }
  func.func @transform_7(%arg0: i32) -> (i32, i32) {
    %c0_i32 = arith.constant 0 : i32
    %c0_i32_0 = arith.constant 0 : i32
    %c0_i32_1 = arith.constant 0 : i32
    return %c0_i32, %c0_i32_0 : i32, i32
  }
  func.func @transform_8(%arg0: i32) -> (i32, i32) {
    %c0_i32 = arith.constant 0 : i32
    %c0_i32_0 = arith.constant 0 : i32
    %c0_i32_1 = arith.constant 0 : i32
    return %c0_i32, %c0_i32_0 : i32, i32
  }
  func.func @transform_9(%arg0: i32) -> (i32, i32) {
    %c0_i32 = arith.constant 0 : i32
    %c0_i32_0 = arith.constant 0 : i32
    %c0_i32_1 = arith.constant 0 : i32
    return %c0_i32, %c0_i32_0 : i32, i32
  }
  func.func @transform_10(%arg0: i32) -> (i32, i32) {
    %c0_i32 = arith.constant 0 : i32
    %c0_i32_0 = arith.constant 0 : i32
    %c0_i32_1 = arith.constant 0 : i32
    return %c0_i32, %c0_i32_0 : i32, i32
  }
  func.func @transform_11(%arg0: i32) -> (i32, i32) {
    %c0_i32 = arith.constant 0 : i32
    %c0_i32_0 = arith.constant 0 : i32
    %c0_i32_1 = arith.constant 0 : i32
    return %c0_i32, %c0_i32_0 : i32, i32
  }
  func.func @transform_12(%arg0: i32) -> (i32, i32) {
    %c0_i32 = arith.constant 0 : i32
    %c0_i32_0 = arith.constant 0 : i32
    %c0_i32_1 = arith.constant 0 : i32
    return %c0_i32, %c0_i32_0 : i32, i32
  }
  func.func @transform_13(%arg0: i32) -> (i32, i32) {
    %c0_i32 = arith.constant 0 : i32
    %c0_i32_0 = arith.constant 0 : i32
    %c0_i32_1 = arith.constant 0 : i32
    return %c0_i32, %c0_i32_0 : i32, i32
  }
  func.func @transform_14(%arg0: i32) -> (i32, i32) {
    %c0_i32 = arith.constant 0 : i32
    %c0_i32_0 = arith.constant 0 : i32
    %c0_i32_1 = arith.constant 0 : i32
    return %c0_i32, %c0_i32_0 : i32, i32
  }
  func.func @transform_15(%arg0: i32) -> (i32, i32) {
    %c0_i32 = arith.constant 0 : i32
    %c0_i32_0 = arith.constant 0 : i32
    %c0_i32_1 = arith.constant 0 : i32
    return %c0_i32, %c0_i32_0 : i32, i32
  }
  func.func @transform_16(%arg0: i32) -> (i32, i32) {
    %c0_i32 = arith.constant 0 : i32
    %c0_i32_0 = arith.constant 0 : i32
    %c0_i32_1 = arith.constant 0 : i32
    return %c0_i32, %c0_i32_0 : i32, i32
  }
  func.func @transform_17(%arg0: i32) -> (i32, i32) {
    %c0_i32 = arith.constant 0 : i32
    %c0_i32_0 = arith.constant 0 : i32
    %c0_i32_1 = arith.constant 0 : i32
    return %c0_i32, %c0_i32_0 : i32, i32
  }
  func.func @transform_18(%arg0: i32) -> (i32, i32) {
    %c0_i32 = arith.constant 0 : i32
    %c0_i32_0 = arith.constant 0 : i32
    %c0_i32_1 = arith.constant 0 : i32
    return %c0_i32, %c0_i32_0 : i32, i32
  }
  func.func @transform_19(%arg0: i32) -> (i32, i32) {
    %c0_i32 = arith.constant 0 : i32
    %c0_i32_0 = arith.constant 0 : i32
    %c0_i32_1 = arith.constant 0 : i32
    return %c0_i32, %c0_i32_0 : i32, i32
  }
  func.func @transform_20(%arg0: i32) -> (i32, i32) {
    %c0_i32 = arith.constant 0 : i32
    %c0_i32_0 = arith.constant 0 : i32
    %c0_i32_1 = arith.constant 0 : i32
    return %c0_i32, %c0_i32_0 : i32, i32
  }
  func.func @transform_21(%arg0: i32) -> (i32, i32) {
    %c0_i32 = arith.constant 0 : i32
    %c0_i32_0 = arith.constant 0 : i32
    %c0_i32_1 = arith.constant 0 : i32
    return %c0_i32, %c0_i32_0 : i32, i32
  }
  func.func @transform_22(%arg0: i32) -> (i32, i32) {
    %c0_i32 = arith.constant 0 : i32
    %c0_i32_0 = arith.constant 0 : i32
    %c0_i32_1 = arith.constant 0 : i32
    return %c0_i32, %c0_i32_0 : i32, i32
  }
  func.func @transform_23(%arg0: i32) -> (i32, i32, i32) {
    %c0_i32 = arith.constant 0 : i32
    %c0_i32_0 = arith.constant 0 : i32
    %c0_i32_1 = arith.constant 0 : i32
    return %arg0, %c0_i32, %c0_i32_0 : i32, i32, i32
  }
}

</mosaic_0001>

<bundles_post_ra>
// kernel: _lambda_.2
= control target key start
LH: loop header
LB: loop body
LE: loop exit
PB: predicated region body
PF: predicated region fallthrough
CT: control target
= control target key end

     0   :  { %s4258_s25 = smov 0   ;;  %s6382_s0 = inlined_call_operand.vmem [shape: bf16[2,256,32], index: 0, kind: input, shape index: {}]   ;;  %s6383_s1 = inlined_call_operand.vmem [shape: bf16[32,32], index: 1, kind: input, shape index: {}]   ;;  %s6384_s2 = inlined_call_operand.vmem [shape: f32[1,32], index: 2, kind: input, shape index: {}]   ;;  %s6385_s3 = inlined_call_operand.vmem [shape: f32[9,32], index: 3, kind: input, shape index: {}]   ;;  %s6386_s4 = inlined_call_operand.vmem [shape: f32[1,32], index: 4, kind: input, shape index: {}]   ;;  %s6387_s5 = inlined_call_operand.vmem [shape: f32[32,8], index: 5, kind: input, shape index: {}]   ;;  %s6388_s6 = inlined_call_operand.vmem [shape: f32[1,8], index: 6, kind: input, shape index: {}]   ;;  %s6389_s7 = inlined_call_operand.vmem [shape: f32[8,32], index: 7, kind: input, shape index: {}]   ;;  %s6390_s8 = inlined_call_operand.vmem [shape: f32[1,32], index: 8, kind: input, shape index: {}]   ;;  %s6391_s9 = inlined_call_operand.vmem [shape: bf16[32,16], index: 9, kind: input, shape index: {}]   ;;  %s6392_s10 = inlined_call_operand.vmem [shape: f32[1,16], index: 10, kind: input, shape index: {}]   ;;  %s6393_s11 = inlined_call_operand.vmem [shape: bf16[16,96], index: 11, kind: input, shape index: {}]   ;;  %s6394_s12 = inlined_call_operand.vmem [shape: f32[1,96], index: 12, kind: input, shape index: {}]   ;;  %s6395_s13 = inlined_call_operand.vmem [shape: bf16[2,256,96], index: 13, kind: output, shape index: {}]  }
   0x1 LB: > { %s3390_s26 = sadd.s32 4294967295, %s4183_s25   ;;  %p3394_p0 = scmp.ge.s32.totalorder %s4183_s25, 1  ;;  %s4183_s25 = sphi %s4258_s25, %s23_s25  }
   0x2   : > { %p387_p1 = scmp.lt.s32.totalorder %s4183_s25, 3 }
   0x4   : > { %p388_p2 = pnand %p3394_p0, %p387_p1 }
   0x6   : > { %391 = sbr.rel (%p388_p2) target bundleno = 1571 (0x623), region = 72 }
   0xd   : > { %v3754_v0 = vld [vmem:[%s6383_s1] sm:$0xff]   ;;  %p431_p3 = scmp.lt.s32.totalorder %s3390_s26, 1  ;;  %v3755_v1 = vld [vmem:[%s6383_s1 + $0x8] sm:$0xff]   ;;  %vm577_vm0 = vcmask 261120   ;;  %v6396_v18 = vmov 0.0   ;;  %vm981_vm1 = vcmask 254976  }
   0xe   : > { %3611 = vmatprep.subr.bf16.mxu0 %v3754_v0  ;;  %3739 = vmatprep.subr.bf16.mxu1 %v3754_v0  ;;  %986 = vst.msk [vmem:[#allocation2 + $0x30] sm:$0xff] %vm577_vm0, %v6396_v18  ;;  %987 = vst.msk [vmem:[#allocation2 + $0x38] sm:$0xff] %vm577_vm0, %v6396_v18  ;;  %v4425_v19 = vld [vmem:[%s6384_s2] ss:$0 sm:$0xff]  ;;  %vm4187_vm2 = vmmov 0   ;;  %vm2378_vm3 = vcmask 64512  }
   0xf   : > { %s6648_s26 = smov (!%p431_p3, %s3390_s26), 1  ;;  %3612 = vmatpush3.bf16.msra.mxu0 %v3754_v0  ;;  %3741 = vmatpush3.bf16.msra.mxu1 %v3754_v0  ;;  %979 = vst.msk [vmem:[#allocation2] sm:$0xff] %vm577_vm0, %v6396_v18  ;;  %980 = vst.msk [vmem:[#allocation2 + $0x8] sm:$0xff] %vm577_vm0, %v6396_v18  ;;  %vm2772_vm4 = vcmask 130048   ;;  %vm3302_vm5 = vcmask 781312  }
  0x10   : > { %3613 = vmatprep.subr.bf16.mxu0 %v3755_v1  ;;  %3740 = vmatprep.subr.bf16.mxu1 %v3755_v1  ;;  %s3517_s14 = sshll.u32 %s6648_s26, 7  ;;  %983 = vst.msk [vmem:[#allocation2 + $0x18] sm:$0xff] %vm577_vm0, %v6396_v18  ;;  %984 = vst.msk [vmem:[#allocation2 + $0x20] sm:$0xff] %vm577_vm0, %v6396_v18 }
  0x11   : > { %s4280_s17 = scalar_lea.vmem %s6382_s0, %s3517_s14  ;;  %989 = vst.msk [vmem:[#allocation2 + $0x48] sm:$0xff] %vm577_vm0, %v6396_v18  ;;  %990 = vst.msk [vmem:[#allocation2 + $0x50] sm:$0xff] %vm577_vm0, %v6396_v18  ;;  %s6218_s16 = scalar_lea.vmem %s6395_s13, %s3517_s14 }
  0x12   : > { %v3756_v2 = vld [vmem:[%s4280_s17] sm:$0xff]   ;;  %v3757_v3 = vld [vmem:[%s4280_s17 + $0x50] sm:$0xff]   ;;  %v3758_v4 = vld [vmem:[%s4280_s17 + $0x8] sm:$0xff]   ;;  %992 = vst.msk [vmem:[#allocation2 + $0x60] sm:$0xff] %vm577_vm0, %v6396_v18 }
  0x13   : > { %3614 = vmatpush3.bf16.msra.mxu0 %v3755_v1  ;;  %3742 = vmatpush3.bf16.msra.mxu1 %v3755_v1  ;;  %v3759_v5 = vld [vmem:[%s4280_s17 + $0x58] sm:$0xff]   ;;  %v3760_v6 = vld [vmem:[%s4280_s17 + $0x10] sm:$0xff]   ;;  %v3761_v7 = vld [vmem:[%s4280_s17 + $0x60] sm:$0xff]   ;;  %993 = vst.msk [vmem:[#allocation2 + $0x68] sm:$0xff] %vm577_vm0, %v6396_v18 }
  0x14   : > { %3615 = vmatprep.mubr.msk.bf16.mxu0 %vm577_vm0, %v3756_v2  ;;  %3635 = vmatprep.mubr.msk.bf16.mxu1 %vm577_vm0, %v3757_v3  ;;  %v3762_v8 = vld [vmem:[%s4280_s17 + $0x18] sm:$0xff]   ;;  %v3763_v9 = vld [vmem:[%s4280_s17 + $0x68] sm:$0xff]   ;;  %v3764_v10 = vld [vmem:[%s4280_s17 + $0x20] sm:$0xff]   ;;  %995 = vst.msk [vmem:[#allocation2 + $0x78] sm:$0xff] %vm577_vm0, %v6396_v18 }
  0x15   : > { %v3765_v11 = vld [vmem:[%s4280_s17 + $0x70] sm:$0xff]   ;;  %v3766_v12 = vld [vmem:[%s4280_s17 + $0x28] sm:$0xff]   ;;  %v3767_v13 = vld [vmem:[%s4280_s17 + $0x78] sm:$0xff]   ;;  %996 = vst.msk [vmem:[#allocation2 + $0x80] sm:$0xff] %vm577_vm0, %v6396_v18 }
  0x16   : > { %3616 = vmatmul.mubr.msk.bf16.vlgmr.msra.gmra.mrb[0].mxu0 %vm577_vm0, %v3758_v4  ;;  %3636 = vmatmul.mubr.msk.bf16.vlgmr.msra.gmra.mrb[0].mxu1 %vm577_vm0, %v3759_v5  ;;  %v3768_v14 = vld [vmem:[%s4280_s17 + $0x30] sm:$0xff]   ;;  %v3769_v15 = vld [vmem:[%s4280_s17 + $0x38] sm:$0xff]   ;;  %v3770_v16 = vld [vmem:[%s4280_s17 + $0x40] sm:$0xff]   ;;  %998 = vst.msk [vmem:[#allocation2 + $0x90] sm:$0xff] %vm577_vm0, %v6396_v18 }
  0x17   : > { %3619 = vmatprep.mubr.msk.bf16.mxu0 %vm577_vm0, %v3760_v6  ;;  %3639 = vmatprep.mubr.msk.bf16.mxu1 %vm577_vm0, %v3761_v7  ;;  %v3771_v17 = vld [vmem:[%s4280_s17 + $0x48] sm:$0xff]   ;;  %999 = vst.msk [vmem:[#allocation2 + $0x98] sm:$0xff] %vm577_vm0, %v6396_v18  ;;  %1001 = vst.msk [vmem:[#allocation2 + $0xa8] sm:$0xff] %vm577_vm0, %v6396_v18 }
  0x18   : > { %1002 = vst.msk [vmem:[#allocation2 + $0xb0] sm:$0xff] %vm577_vm0, %v6396_v18  ;;  %1004 = vst.msk [vmem:[#allocation2 + $0xc0] sm:$0xff] %vm577_vm0, %v6396_v18 }
  0x19   : > { %1005 = vst.msk [vmem:[#allocation2 + $0xc8] sm:$0xff] %vm577_vm0, %v6396_v18  ;;  %1007 = vst.msk [vmem:[#allocation2 + $0xd8] sm:$0xff] %vm577_vm0, %v6396_v18 }
  0x1a   : > { %1008 = vst.msk [vmem:[#allocation2 + $0xe0] sm:$0xff] %vm577_vm0, %v6396_v18  ;;  %1010 = vst.msk [vmem:[#allocation2 + $0xf0] sm:$0xff] %vm577_vm0, %v6396_v18 }
  0x1b   : > { %1011 = vst.msk [vmem:[#allocation2 + $0xf8] sm:$0xff] %vm577_vm0, %v6396_v18  ;;  %1013 = vst.msk [vmem:[#allocation2 + $0x108] sm:$0xff] %vm577_vm0, %v6396_v18 }
  0x1c   : > { %1014 = vst.msk [vmem:[#allocation2 + $0x110] sm:$0xff] %vm577_vm0, %v6396_v18  ;;  %1016 = vst.msk [vmem:[#allocation2 + $0x120] sm:$0xff] %vm577_vm0, %v6396_v18 }
  0x1d   : > { %1017 = vst.msk [vmem:[#allocation2 + $0x128] sm:$0xff] %vm577_vm0, %v6396_v18  ;;  %1019 = vst.msk [vmem:[#allocation2 + $0x138] sm:$0xff] %vm577_vm0, %v6396_v18 }
  0x1e   : > { %3620 = vmatmul.mubr.msk.bf16.gmra.mrb[4].mxu0 %vm577_vm0, %v3762_v8  ;;  %3640 = vmatmul.mubr.msk.bf16.gmra.mrb[4].mxu1 %vm577_vm0, %v3763_v9  ;;  %1020 = vst.msk [vmem:[#allocation2 + $0x140] sm:$0xff] %vm577_vm0, %v6396_v18  ;;  %1022 = vst.msk [vmem:[#allocation2 + $0x150] sm:$0xff] %vm577_vm0, %v6396_v18 }
  0x1f   : > { %3623 = vmatprep.mubr.msk.bf16.mxu0 %vm577_vm0, %v3764_v10  ;;  %3643 = vmatprep.mubr.msk.bf16.mxu1 %vm577_vm0, %v3765_v11  ;;  %1023 = vst.msk [vmem:[#allocation2 + $0x158] sm:$0xff] %vm577_vm0, %v6396_v18  ;;  %1025 = vst.msk [vmem:[#allocation2 + $0x168] sm:$0xff] %vm577_vm0, %v6396_v18 }
  0x20   : > { %1026 = vst.msk [vmem:[#allocation2 + $0x170] sm:$0xff] %vm577_vm0, %v6396_v18  ;;  %1028 = vst.msk [vmem:[#allocation2 + $0x180] sm:$0xff] %vm577_vm0, %v6396_v18 }
  0x21   : > { %1029 = vst.msk [vmem:[#allocation2 + $0x188] sm:$0xff] %vm577_vm0, %v6396_v18  ;;  %1031 = vst.msk [vmem:[#allocation2 + $0x198] sm:$0xff] %vm577_vm0, %v6396_v18 }
  0x22   : > { %1032 = vst.msk [vmem:[#allocation2 + $0x1a0] sm:$0xff] %vm577_vm0, %v6396_v18 }
  0x23   : > { %988 = vst.msk [vmem:[#allocation2 + $0x40] sm:$0x3] %vm981_vm1, %v6396_v18  ;;  %982 = vst.msk [vmem:[#allocation2 + $0x10] sm:$0x3] %vm981_vm1, %v6396_v18 }
  0x24   : > { %985 = vst.msk [vmem:[#allocation2 + $0x28] sm:$0x3] %vm981_vm1, %v6396_v18  ;;  %991 = vst.msk [vmem:[#allocation2 + $0x58] sm:$0x3] %vm981_vm1, %v6396_v18 }
  0x25   : > { %994 = vst.msk [vmem:[#allocation2 + $0x70] sm:$0x3] %vm981_vm1, %v6396_v18  ;;  %997 = vst.msk [vmem:[#allocation2 + $0x88] sm:$0x3] %vm981_vm1, %v6396_v18 }
  0x26   : > { %3624 = vmatmul.mubr.msk.bf16.gmra.mrb[8].mxu0 %vm577_vm0, %v3766_v12  ;;  %3644 = vmatmul.mubr.msk.bf16.gmra.mrb[8].mxu1 %vm577_vm0, %v3767_v13  ;;  %1000 = vst.msk [vmem:[#allocation2 + $0xa0] sm:$0x3] %vm981_vm1, %v6396_v18  ;;  %1003 = vst.msk [vmem:[#allocation2 + $0xb8] sm:$0x3] %vm981_vm1, %v6396_v18 }
  0x27   : > { %3627 = vmatprep.mubr.msk.bf16.mxu0 %vm577_vm0, %v3768_v14  ;;  %1006 = vst.msk [vmem:[#allocation2 + $0xd0] sm:$0x3] %vm981_vm1, %v6396_v18  ;;  %1009 = vst.msk [vmem:[#allocation2 + $0xe8] sm:$0x3] %vm981_vm1, %v6396_v18 }
  0x28   : > { %1012 = vst.msk [vmem:[#allocation2 + $0x100] sm:$0x3] %vm981_vm1, %v6396_v18  ;;  %1015 = vst.msk [vmem:[#allocation2 + $0x118] sm:$0x3] %vm981_vm1, %v6396_v18 }
  0x29   : > { %1018 = vst.msk [vmem:[#allocation2 + $0x130] sm:$0x3] %vm981_vm1, %v6396_v18  ;;  %1021 = vst.msk [vmem:[#allocation2 + $0x148] sm:$0x3] %vm981_vm1, %v6396_v18 }
  0x2a   : > { %1024 = vst.msk [vmem:[#allocation2 + $0x160] sm:$0x3] %vm981_vm1, %v6396_v18  ;;  %1027 = vst.msk [vmem:[#allocation2 + $0x178] sm:$0x3] %vm981_vm1, %v6396_v18 }
  0x2b   : > { %1030 = vst.msk [vmem:[#allocation2 + $0x190] sm:$0x3] %vm981_vm1, %v6396_v18  ;;  %1033 = vst.msk [vmem:[#allocation2 + $0x1a8] sm:$0x3] %vm981_vm1, %v6396_v18 }
  0x2e   : > { %3628 = vmatmul.mubr.msk.bf16.gmra.mrb[12].mxu0 %vm577_vm0, %v3769_v15 }
  0x2f   : > { %3631 = vmatprep.mubr.msk.bf16.mxu0 %vm577_vm0, %v3770_v16 }
  0x36   : > { %3632 = vmatmul.mubr.msk.bf16.gmra.mrb[16].mxu0 %vm577_vm0, %v3771_v17 }
  0xe9   : > { %v3617_v20 = vpop.f32.mrb[0].mxu0  ;;  %v3637_v22 = vpop.f32.mrb[0].mxu1 }
  0xea   : > { %v4428_v21 = vadd.f32 %v3617_v20, %v4425_v19  ;;  %v660_v23 = vpop.f32.mrb[1].mxu0  ;;  %v4431_v24 = vadd.f32 %v3637_v22, %v4425_v19  ;;  %v740_v26 = vpop.f32.mrb[1].mxu1 }
  0xeb   : > { %v4434_v25 = vadd.f32 %v4425_v19, %v660_v23  ;;  %v3618_v27 = vpop.f32.mrb[2].mxu0  ;;  %v4438_v29 = vadd.f32 %v4425_v19, %v740_v26  ;;  %v3638_v31 = vpop.f32.mrb[2].mxu1 }
  0xec   : > { %v789_v28 = vsub.f32 0.0, %v4428_v21  ;;  %v4441_v30 = vadd.f32 %v3618_v27, %v4425_v19  ;;  %v663_v32 = vpop.f32.mrb[3].mxu0  ;;  %v809_v33 = vsub.f32 0.0, %v4431_v24  ;;  %v4446_v35 = vadd.f32 %v3638_v31, %v4425_v19  ;;  %v743_v37 = vpop.f32.mrb[3].mxu1 }
  0xed   : > { %v787_v34 = vsub.f32 0.0, %v4434_v25  ;;  %v4449_v36 = vadd.f32 %v4425_v19, %v663_v32  ;;  %v807_v39 = vsub.f32 0.0, %v4438_v29  ;;  %v4454_v41 = vadd.f32 %v4425_v19, %v743_v37 }
  0xee   : > { %v823_v38 = vmul.f32 1.442695, %v789_v28  ;;  %v790_v40 = vsub.f32 0.0, %v4441_v30  ;;  %v863_v42 = vmul.f32 1.442695, %v809_v33  ;;  %v810_v44 = vsub.f32 0.0, %v4446_v35 }
  0xef   : > { %v819_v43 = vmul.f32 1.442695, %v787_v34  ;;  %v788_v45 = vsub.f32 0.0, %v4449_v36  ;;  %v859_v46 = vmul.f32 1.442695, %v807_v39  ;;  %v808_v48 = vsub.f32 0.0, %v4454_v41 }
  0xf0   : > { %3775 = vpow2.f32 %v823_v38  ;;  %v825_v47 = vmul.f32 1.442695, %v790_v40  ;;  %v865_v49 = vmul.f32 1.442695, %v810_v44 }
  0xf1   : > { %3777 = vpow2.f32 %v863_v42  ;;  %v3621_v50 = vpop.f32.mrb[4].mxu0  ;;  %v821_v51 = vmul.f32 1.442695, %v788_v45  ;;  %v3641_v53 = vpop.f32.mrb[4].mxu1  ;;  %v861_v55 = vmul.f32 1.442695, %v808_v48 }
  0xf2   : > { %3779 = vpow2.f32 %v819_v43  ;;  %v4460_v52 = vadd.f32 %v3621_v50, %v4425_v19  ;;  %v676_v54 = vpop.f32.mrb[5].mxu0  ;;  %v4463_v56 = vadd.f32 %v3641_v53, %v4425_v19  ;;  %v756_v57 = vpop.f32.mrb[5].mxu1 }
  0xf3   : > { %3781 = vpow2.f32 %v859_v46  ;;  %v3622_v58 = vpop.f32.mrb[6].mxu0  ;;  %v4466_v60 = vpop.f32.mrb[6].mxu1  ;;  %v4480_v8 = vadd.f32 %v4425_v19, %v676_v54  ;;  %v4487_v13 = vadd.f32 %v4425_v19, %v756_v57  ;;  %v4512_v54 = vld [vmem:[%s6385_s3] ss:$0 sm:$0xff]  ;;  %v4517_v57 = vld [vmem:[%s6385_s3 + $0x1] ss:$0 sm:$0xff] }
  0xf4   : > { %3783 = vpow2.f32 %v825_v47  ;;  %v793_v59 = vsub.f32 0.0, %v4460_v52  ;;  %v4468_v61 = vpop.f32.mrb[7].mxu0  ;;  %v813_v62 = vsub.f32 0.0, %v4463_v56  ;;  %v4471_v63 = vpop.f32.mrb[7].mxu1  ;;  %v4494_v20 = vadd.f32 %v3622_v58, %v4425_v19  ;;  %v1082_v58 = vld [vmem:[#allocation2] sm:$0xff] }
  0xf5   : > { %3785 = vpow2.f32 %v865_v49  ;;  %v791_v31 = vsub.f32 0.0, %v4480_v8  ;;  %v811_v34 = vsub.f32 0.0, %v4487_v13 }
  0xf6   : > { %3787 = vpow2.f32 %v821_v51  ;;  %v831_v0 = vmul.f32 1.442695, %v793_v59  ;;  %v871_v1 = vmul.f32 1.442695, %v813_v62  ;;  %v794_v39 = vsub.f32 0.0, %v4494_v20  ;;  %v1183_v59 = vld [vmem:[#allocation2 + $0x1] sm:$0xff] }
  0xf7   : > { %3789 = vpow2.f32 %v861_v55  ;;  %v827_v47 = vmul.f32 1.442695, %v791_v31  ;;  %v867_v50 = vmul.f32 1.442695, %v811_v34  ;;  %v4540_v31 = vadd.f32 %v4425_v19, %v4468_v61 }
  0xf8   : > { %3791 = vpow2.f32 %v831_v0  ;;  %v833_v53 = vmul.f32 1.442695, %v794_v39 }
  0xf9   : > { %3793 = vpow2.f32 %v871_v1  ;;  %v4473_v2 = vpop.f32.mrb[8].mxu0  ;;  %v4475_v4 = vpop.f32.mrb[8].mxu1 }
  0xfa   : > { %v3776_v3 = vpop.eup %3775  ;;  %v4477_v5 = vpop.f32.mrb[9].mxu0 }
  0xfb   : > { %v3778_v6 = vpop.eup %3777  ;;  %v885_v7 = vadd.f32 1.0, %v3776_v3  ;;  %v4482_v9 = vpop.f32.mrb[9].mxu1 }
  0xfc   : > { %v4484_v10 = vpop.f32.mrb[10].mxu0  ;;  %v3780_v11 = vpop.eup %3779  ;;  %v905_v12 = vadd.f32 1.0, %v3778_v6 }
  0xfd   : > { %v4489_v14 = vpop.f32.mrb[10].mxu1  ;;  %v4491_v15 = vpop.f32.mrb[11].mxu0  ;;  %3795 = vrcp.f32 %v885_v7  ;;  %v883_v17 = vadd.f32 1.0, %v3780_v11  ;;  %v1119_v11 = vmul.f32 %v4512_v54, %v1082_v58 }
  0xfe   : > { %v3782_v16 = vpop.eup %3781  ;;  %v4496_v22 = vpop.f32.mrb[11].mxu1  ;;  %3797 = vrcp.f32 %v905_v12  ;;  %v1220_v12 = vmul.f32 %v4517_v57, %v1183_v59 }
  0xff   : > { %v3784_v23 = vpop.eup %3783  ;;  %v903_v26 = vadd.f32 1.0, %v3782_v16  ;;  %3799 = vrcp.f32 %v883_v17  ;;  %v1284_v17 = vld [vmem:[#allocation2 + $0x2] sm:$0xff] }
 0x100   : > { %v3786_v27 = vpop.eup %3785  ;;  %v886_v28 = vadd.f32 1.0, %v3784_v23 }
 0x101   : > { %v3788_v32 = vpop.eup %3787  ;;  %3801 = vrcp.f32 %v903_v26  ;;  %v906_v33 = vadd.f32 1.0, %v3786_v27  ;;  %v4501_v40 = vpop.f32.mrb[12].mxu0  ;;  %v1083_v26 = vld [vmem:[#allocation2 + $0x8] sm:$0xff] }
 0x102   : > { %v3790_v37 = vpop.eup %3789  ;;  %3803 = vrcp.f32 %v886_v28  ;;  %v884_v38 = vadd.f32 1.0, %v3788_v32  ;;  %v4503_v44 = vpop.f32.mrb[13].mxu0  ;;  %v1184_v27 = vld [vmem:[#allocation2 + $0x9] sm:$0xff]  ;;  %v4536_v28 = vadd.f32 %v4466_v60, %v4425_v19 }
 0x103   : > { %v3792_v42 = vpop.eup %3791  ;;  %3805 = vrcp.f32 %v906_v33  ;;  %v904_v43 = vadd.f32 1.0, %v3790_v37  ;;  %v4505_v48 = vpop.f32.mrb[14].mxu0  ;;  %v4546_v33 = vadd.f32 %v4425_v19, %v4471_v63  ;;  %v1252_v37 = vadd.f32 %v1220_v12, %v1119_v11 }
 0x104   : > { %v3794_v45 = vpop.eup %3793  ;;  %3807 = vrcp.f32 %v884_v38  ;;  %v889_v46 = vadd.f32 1.0, %v3792_v42  ;;  %v4507_v51 = vpop.f32.mrb[15].mxu0  ;;  %v1221_v63 = vmul.f32 %v4517_v57, %v1184_v27 }
 0x105   : > { %3809 = vrcp.f32 %v904_v43  ;;  %v909_v49 = vadd.f32 1.0, %v3794_v45  ;;  %v4561_v43 = vadd.f32 %v4473_v2, %v4425_v19  ;;  %v4572_v2 = vadd.f32 %v4475_v4, %v4425_v19 }
 0x106   : > { %3811 = vrcp.f32 %v889_v46  ;;  %v814_v46 = vsub.f32 0.0, %v4536_v28 }
 0x107   : > { %3813 = vrcp.f32 %v909_v49  ;;  %v3796_v55 = vpop.eup %3795  ;;  %6446 = vst [vmem:[#allocation3_spill] sm:$0xff] %v4572_v2  ;;  %v797_v4 = vsub.f32 0.0, %v4561_v43 }
 0x108   : > { %3815 = vpow2.f32 %v827_v47  ;;  %v3798_v62 = vpop.eup %3797  ;;  %v949_v0 = vmul.f32 %v3796_v55, %v4428_v21  ;;  %v4529_v21 = vld [vmem:[%s6385_s3 + $0x2] ss:$0 sm:$0xff]  ;;  %v792_v47 = vsub.f32 0.0, %v4540_v31 }
 0x109   : > { %3817 = vpow2.f32 %v867_v50  ;;  %v3800_v1 = vpop.eup %3799  ;;  %v969_v3 = vmul.f32 %v3798_v62, %v4431_v24  ;;  %v1321_v60 = vmul.f32 %v4529_v21, %v1284_v17  ;;  %v1285_v50 = vld [vmem:[#allocation2 + $0xa] sm:$0xff]  ;;  %v4582_v62 = vld [vmem:[%s6385_s3 + $0x3] ss:$0 sm:$0xff]  ;;  %v839_v27 = vmul.f32 1.442695, %v797_v4 }
 0x10a   : > { %3819 = vpow2.f32 %v833_v53  ;;  %1038 = vst.msk [vmem:[#allocation2 + $0x31] sm:$0xff] %vm577_vm0, %v949_v0  ;;  %v947_v7 = vmul.f32 %v3800_v1, %v4434_v25  ;;  %v4588_v0 = vadd.f32 %v4425_v19, %v4482_v9  ;;  %v4592_v1 = vadd.f32 %v4484_v10, %v4425_v19 }
 0x10b   : > { %v3802_v6 = vpop.eup %3801  ;;  %1068 = vst.msk [vmem:[#allocation2 + $0x121] sm:$0xff] %vm577_vm0, %v969_v3  ;;  %v1353_v58 = vadd.f32 %v1321_v60, %v1252_v37  ;;  %v1322_v3 = vmul.f32 %v4529_v21, %v1285_v50  ;;  %v829_v11 = vmul.f32 1.442695, %v792_v47  ;;  %v4602_v9 = vadd.f32 %v4489_v14, %v4425_v19 }
 0x10c   : > { %v3804_v16 = vpop.eup %3803  ;;  %v967_v24 = vmul.f32 %v3802_v6, %v4438_v29  ;;  %1035 = vst.msk [vmem:[#allocation2 + $0x19] sm:$0xff] %vm577_vm0, %v947_v7  ;;  %6448 = vst [vmem:[#allocation5_spill] sm:$0xff] %v4588_v0  ;;  %v873_v7 = vmul.f32 1.442695, %v814_v46  ;;  %v4617_v14 = vadd.f32 %v4501_v40, %v4425_v19  ;;  %v4632_v40 = vadd.f32 %v4425_v19, %v4507_v51 }
 0x10d   : > { %v3806_v23 = vpop.eup %3805  ;;  %v950_v25 = vmul.f32 %v3804_v16, %v4441_v30  ;;  %v4548_v30 = vpop.f32.mrb[16].mxu0  ;;  %6449 = vst [vmem:[#allocation6_spill] sm:$0xff] %v4592_v1  ;;  %6451 = vst [vmem:[#allocation8_spill] sm:$0xff] %v4602_v9  ;;  %v818_v60 = vsub.f32 0.0, %v4602_v9 }
 0x10e   : > { %v3808_v32 = vpop.eup %3807  ;;  %1065 = vst.msk [vmem:[#allocation2 + $0x109] sm:$0xff] %vm577_vm0, %v967_v24  ;;  %v970_v29 = vmul.f32 %v3806_v23, %v4446_v35  ;;  %v4553_v38 = vpop.f32.mrb[17].mxu0  ;;  %v1120_v35 = vmul.f32 %v4512_v54, %v1083_v26  ;;  %v817_v24 = vsub.f32 0.0, %v4572_v2  ;;  %v4611_v26 = vadd.f32 %v4425_v19, %v4496_v22  ;;  %6454 = vst [vmem:[#allocation11_spill] sm:$0xff] %v4617_v14 }
 0x10f   : > { %v3810_v34 = vpop.eup %3809  ;;  %1039 = vst.msk [vmem:[#allocation2 + $0x39] sm:$0xff] %vm577_vm0, %v950_v25  ;;  %v948_v61 = vmul.f32 %v3808_v32, %v4449_v36  ;;  %v4607_v25 = vadd.f32 %v4425_v19, %v4491_v15  ;;  %v815_v32 = vsub.f32 0.0, %v4588_v0  ;;  %v4623_v15 = vadd.f32 %v4425_v19, %v4503_v44  ;;  %6457 = vst [vmem:[#allocation14_spill] sm:$0xff] %v4632_v40 }
 0x110   : > { %v3812_v39 = vpop.eup %3811  ;;  %1069 = vst.msk [vmem:[#allocation2 + $0x129] sm:$0xff] %vm577_vm0, %v970_v29  ;;  %v968_v42 = vmul.f32 %v3810_v34, %v4454_v41  ;;  %v812_v41 = vsub.f32 0.0, %v4546_v33  ;;  %6453 = vst [vmem:[#allocation10_spill] sm:$0xff] %v4611_v26  ;;  %v798_v29 = vsub.f32 0.0, %v4592_v1  ;;  %v4627_v22 = vadd.f32 %v4505_v48, %v4425_v19 }
 0x111   : > { %v3814_v45 = vpop.eup %3813  ;;  %1036 = vst.msk [vmem:[#allocation2 + $0x21] sm:$0xff] %vm577_vm0, %v948_v61  ;;  %v953_v36 = vmul.f32 %v3812_v39, %v4460_v52  ;;  %v4577_v52 = vadd.f32 %v4425_v19, %v4477_v5  ;;  %v4594_v5 = vpop.f32.mrb[18].mxu0  ;;  %6452 = vst [vmem:[#allocation9_spill] sm:$0xff] %v4607_v25  ;;  %v879_v37 = vmul.f32 1.442695, %v817_v24  ;;  %v796_v48 = vsub.f32 0.0, %v4607_v25 }
 0x112   : > { %v3816_v49 = vpop.eup %3815  ;;  %1066 = vst.msk [vmem:[#allocation2 + $0x111] sm:$0xff] %vm577_vm0, %v968_v42  ;;  %v973_v53 = vmul.f32 %v3814_v45, %v4463_v56  ;;  %v1253_v56 = vadd.f32 %v1221_v63, %v1120_v35  ;;  %6450 = vst [vmem:[#allocation7_spill] sm:$0xff] %v4594_v5  ;;  %v869_v17 = vmul.f32 1.442695, %v812_v41  ;;  %v4634_v61 = vpop.f32.mrb[19].mxu0  ;;  %v816_v35 = vsub.f32 0.0, %v4611_v26 }
 0x113   : > { %v3818_v55 = vpop.eup %3817  ;;  %1044 = vst.msk [vmem:[#allocation2 + $0x61] sm:$0xff] %vm577_vm0, %v953_v36  ;;  %6447 = vst [vmem:[#allocation4_spill] sm:$0xff] %v4577_v52  ;;  %v887_v6 = vadd.f32 1.0, %v3816_v49  ;;  %v4597_v12 = vld [vmem:[#allocation2 + $0x18] sm:$0xff]  ;;  %v795_v10 = vsub.f32 0.0, %v4577_v52  ;;  %v801_v51 = vsub.f32 0.0, %v4617_v14  ;;  %v4658_v41 = vadd.f32 %v4548_v30, %v4425_v19 }
 0x114   : > { %v3820_v59 = vpop.eup %3819  ;;  %1074 = vst.msk [vmem:[#allocation2 + $0x151] sm:$0xff] %vm577_vm0, %v973_v53  ;;  %v907_v16 = vadd.f32 1.0, %v3818_v55  ;;  %v1422_v34 = vmul.f32 %v4582_v62, %v4597_v12  ;;  %6455 = vst [vmem:[#allocation12_spill] sm:$0xff] %v4623_v15  ;;  %v4639_v39 = vld [vmem:[%s6385_s3 + $0x4] ss:$0 sm:$0xff]  ;;  %v4643_v63 = vld [vmem:[#allocation2 + $0x19] sm:$0xff]  ;;  %v1354_v30 = vadd.f32 %v1322_v3, %v1253_v56  ;;  %v4679_v24 = vadd.f32 %v4425_v19, %v4553_v38 }
 0x115   : > { %v890_v23 = vadd.f32 1.0, %v3820_v59  ;;  %3821 = vrcp.f32 %v887_v6  ;;  %6456 = vst [vmem:[#allocation13_spill] sm:$0xff] %v4627_v22  ;;  %6458 = vst [vmem:[#allocation15_spill] sm:$0xff] %v4634_v61  ;;  %v835_v44 = vmul.f32 1.442695, %v795_v10  ;;  %v799_v46 = vsub.f32 0.0, %v4623_v15 }
 0x116   : > { %3823 = vrcp.f32 %v907_v16  ;;  %v875_v42 = vmul.f32 1.442695, %v815_v32  ;;  %v841_v45 = vmul.f32 1.442695, %v798_v29  ;;  %v1454_v36 = vadd.f32 %v1422_v34, %v1353_v58  ;;  %v4651_v49 = vld [vmem:[%s6385_s3 + $0x5] ss:$0 sm:$0xff] }
 0x117   : > { %3825 = vrcp.f32 %v890_v23  ;;  %v802_v47 = vsub.f32 0.0, %v4627_v22  ;;  %v4653_v50 = vmul.f32 1.442695, %v818_v60  ;;  %v800_v53 = vsub.f32 0.0, %v4632_v40  ;;  %6460 = vst [vmem:[#allocation17_spill] sm:$0xff] %v4658_v41  ;;  %v1086_v6 = vld [vmem:[#allocation2 + $0x30] sm:$0xff] }
 0x118   : > { %3827 = vpow2.f32 %v873_v7  ;;  %v1523_v55 = vmul.f32 %v4639_v39, %v4643_v63  ;;  %v4662_v58 = vld [vmem:[#allocation2 + $0x20] sm:$0xff]  ;;  %v4664_v59 = vmul.f32 1.442695, %v796_v48  ;;  %v4666_v4 = vmul.f32 1.442695, %v816_v35  ;;  %v1187_v7 = vld [vmem:[#allocation2 + $0x31] sm:$0xff] }
 0x119   : > { %3829 = vpow2.f32 %v829_v11  ;;  %6459 = vst [vmem:[#allocation16_spill] sm:$0xff] %v4653_v50  ;;  %v4671_v11 = vld [vmem:[%s6385_s3 + $0x6] ss:$0 sm:$0xff]  ;;  %v4673_v16 = vld [vmem:[#allocation2 + $0x1a] sm:$0xff]  ;;  %6464 = vst [vmem:[#allocation21_spill] sm:$0xff] %v4679_v24  ;;  %v1423_v56 = vmul.f32 %v4582_v62, %v4662_v58  ;;  %v1224_v60 = vmul.f32 %v4517_v57, %v1187_v7  ;;  %v4716_v18 = vmul.f32 %v4639_v39, %v1187_v7 }
 0x11a   : > { %3831 = vpow2.f32 %v869_v17  ;;  %6461 = vst [vmem:[#allocation18_spill] sm:$0xff] %v4664_v59  ;;  %6462 = vst [vmem:[#allocation19_spill] sm:$0xff] %v4666_v4  ;;  %v4675_v17 = vmul.f32 1.442695, %v801_v51  ;;  %v1555_v23 = vadd.f32 %v1523_v55, %v1454_v36  ;;  %v4681_v10 = vld [vmem:[#allocation2 + $0x21] sm:$0xff]  ;;  %v1624_v51 = vmul.f32 %v4651_v49, %v4673_v16  ;;  %v1087_v40 = vld [vmem:[#allocation2 + $0x38] sm:$0xff] }
 0x11b   : > { %3833 = vpow2.f32 %v839_v27  ;;  %v4683_v27 = vmul.f32 1.442695, %v799_v46  ;;  %v4685_v32 = vmul.f32 1.442695, %v802_v47  ;;  %v4690_v29 = vld [vmem:[%s6385_s3 + $0x7] ss:$0 sm:$0xff]  ;;  %v1455_v46 = vadd.f32 %v1423_v56, %v1354_v30 }
 0x11c   : > { %3835 = vpow2.f32 %v879_v37  ;;  %6463 = vst [vmem:[#allocation20_spill] sm:$0xff] %v4675_v17  ;;  %v4694_v3 = vmul.f32 1.442695, %v800_v53  ;;  %v1123_v37 = vmul.f32 %v4512_v54, %v1086_v6  ;;  %v1207_v48 = vld [vmem:[#allocation2 + $0x121] sm:$0xff]  ;;  %v1524_v47 = vmul.f32 %v4639_v39, %v4681_v10  ;;  %v1205_v14 = vld [vmem:[#allocation2 + $0x109] sm:$0xff] }
 0x11d   : > { %3837 = vpow2.f32 %v835_v44  ;;  %6465 = vst [vmem:[#allocation22_spill] sm:$0xff] %v4683_v27  ;;  %6466 = vst [vmem:[#allocation23_spill] sm:$0xff] %v4685_v32  ;;  %v1106_v44 = vld [vmem:[#allocation2 + $0x120] sm:$0xff]  ;;  %v1725_v38 = vmul.f32 %v4671_v11, %v1086_v6  ;;  %v1656_v22 = vadd.f32 %v1624_v51, %v1555_v23  ;;  %v1244_v56 = vmul.f32 %v4517_v57, %v1207_v48 }
 0x11e   : > { %3839 = vpow2.f32 %v875_v42  ;;  %6467 = vst [vmem:[#allocation24_spill] sm:$0xff] %v4694_v3  ;;  %v4701_v35 = vld [vmem:[#allocation2 + $0x22] sm:$0xff]  ;;  %v4708_v42 = vmul.f32 %v4582_v62, %v1086_v6  ;;  %v1143_v30 = vmul.f32 %v4512_v54, %v1106_v44  ;;  %v1556_v53 = vadd.f32 %v1524_v47, %v1455_v46  ;;  %v1188_v23 = vld [vmem:[#allocation2 + $0x39] sm:$0xff] }
 0x11f   : > { %v4697_v34 = vpop.eup %3821  ;;  %3841 = vpow2.f32 %v841_v45  ;;  %v1826_v45 = vmul.f32 %v4690_v29, %v1187_v7  ;;  %v1104_v3 = vld [vmem:[#allocation2 + $0x108] sm:$0xff]  ;;  %v1625_v26 = vmul.f32 %v4651_v49, %v4701_v35  ;;  %v1256_v9 = vadd.f32 %v1224_v60, %v1123_v37  ;;  %v1288_v47 = vld [vmem:[#allocation2 + $0x32] sm:$0xff]  ;;  %v1289_v4 = vld [vmem:[#allocation2 + $0x3a] sm:$0xff] }
 0x120   : > { %v4705_v36 = vpop.eup %3823  ;;  %v1121_v6 = vmul.f32 %v4512_v54, %v4597_v12  ;;  %v1222_v7 = vmul.f32 %v4517_v57, %v4643_v63  ;;  %v1757_v51 = vadd.f32 %v1725_v38, %v1656_v22  ;;  %v4735_v1 = vmul.f32 %v4582_v62, %v1106_v44  ;;  %v4744_v12 = vld [vmem:[%s6385_s3 + $0x8] ss:$0 sm:$0xff] }
 0x121   : > { %v4713_v55 = vpop.eup %3825  ;;  %v4738_v46 = vmul.f32 %v4639_v39, %v1207_v48  ;;  %v1726_v0 = vmul.f32 %v4671_v11, %v1087_v40  ;;  %v1657_v37 = vadd.f32 %v1625_v26, %v1556_v53  ;;  %v4749_v22 = vmul.f32 %v4671_v11, %v1106_v44 }
 0x122   : > { %v4720_v15 = vpop.eup %3827  ;;  %v1141_v38 = vmul.f32 %v4512_v54, %v1104_v3  ;;  %v1242_v60 = vmul.f32 %v4517_v57, %v1205_v14  ;;  %v1858_v52 = vadd.f32 %v1826_v45, %v1757_v51  ;;  %v4755_v27 = vadd.f32 %v1244_v56, %v1143_v30 }
 0x123   : > { %v4726_v25 = vpop.eup %3829  ;;  %6468 = vst [vmem:[#allocation25_spill] sm:$0xff] %v4749_v22  ;;  %v4758_v17 = vmul.f32 %v4690_v29, %v1207_v48  ;;  %v1827_v26 = vmul.f32 %v4690_v29, %v1188_v23  ;;  %v1758_v53 = vadd.f32 %v1726_v0, %v1657_v37  ;;  %v4763_v44 = vadd.f32 %v1222_v7, %v1121_v6 }
 0x124   : > { %v4732_v32 = vpop.eup %3831  ;;  %v1124_v22 = vmul.f32 %v4512_v54, %v1087_v40  ;;  %v1225_v50 = vmul.f32 %v4517_v57, %v1188_v23  ;;  %v1927_v45 = vmul.f32 %v4744_v12, %v1288_v47  ;;  %v4771_v30 = vmul.f32 %v4582_v62, %v1104_v3 }
 0x125   : > { %v4746_v63 = vpop.eup %3833  ;;  %6469 = vst [vmem:[#allocation26_spill] sm:$0xff] %v4758_v17  ;;  %v4774_v48 = vmul.f32 %v4639_v39, %v1205_v14  ;;  %v4777_v0 = vmul.f32 %v4671_v11, %v1104_v3  ;;  %v1859_v56 = vadd.f32 %v1827_v26, %v1758_v53  ;;  %v4781_v7 = vadd.f32 %v1242_v60, %v1141_v38  ;;  %v4798_v38 = vld [vmem:[%s6386_s4] ss:$0 sm:$0xff]  ;;  %v4803_v53 = vld [vmem:[#allocation2 + $0x110] sm:$0xff] }
 0x126   : > { %v4753_v2 = vpop.eup %3835  ;;  %6470 = vst [vmem:[#allocation27_spill] sm:$0xff] %v4771_v30  ;;  %v1325_v37 = vmul.f32 %v4529_v21, %v1288_v47  ;;  %v1928_v17 = vmul.f32 %v4744_v12, %v1289_v4  ;;  %v1959_v61 = vadd.f32 %v1927_v45, %v1858_v52  ;;  %v4786_v5 = vmul.f32 %v4690_v29, %v1205_v14  ;;  %v1107_v52 = vld [vmem:[#allocation2 + $0x128] sm:$0xff]  ;;  %v4805_v45 = vld [vmem:[#allocation2 + $0x111] sm:$0xff] }
 0x127   : > { %v4761_v59 = vpop.eup %3837  ;;  %6471 = vst [vmem:[#allocation28_spill] sm:$0xff] %v4774_v48  ;;  %6472 = vst [vmem:[#allocation29_spill] sm:$0xff] %v4777_v0  ;;  %v1326_v30 = vmul.f32 %v4529_v21, %v1289_v4  ;;  %v4790_v48 = vmul.f32 %v4582_v62, %v1087_v40  ;;  %v4793_v3 = vmul.f32 %v4639_v39, %v1188_v23  ;;  %v1208_v23 = vld [vmem:[#allocation2 + $0x129] sm:$0xff] }
 0x128   : > { %v4768_v51 = vpop.eup %3839  ;;  %6473 = vst [vmem:[#allocation30_spill] sm:$0xff] %v4786_v5  ;;  %6474 = vst [vmem:[#allocation31_spill] sm:$0xff] %v4798_v38  ;;  %v1257_v60 = vadd.f32 %v1225_v50, %v1124_v22  ;;  %v4801_v26 = vmul.f32 %v4651_v49, %v1288_v47  ;;  %v1960_v14 = vadd.f32 %v1928_v17, %v1859_v56  ;;  %v1308_v56 = vld [vmem:[#allocation2 + $0x122] sm:$0xff] }
 0x129   : > { %v4779_v6 = vpop.eup %3841  ;;  %v951_v40 = vmul.f32 %v4697_v34, %v4480_v8  ;;  %v1122_v5 = vmul.f32 %v4512_v54, %v4662_v58  ;;  %v1223_v0 = vmul.f32 %v4517_v57, %v4681_v10  ;;  %v971_v50 = vmul.f32 %v4705_v36, %v4487_v13  ;;  %v1309_v34 = vld [vmem:[#allocation2 + $0x12a] sm:$0xff] }
 0x12a   : > { %v954_v17 = vmul.f32 %v4713_v55, %v4494_v20  ;;  %v4817_v47 = vadd.f32 %v1325_v37, %v1256_v9  ;;  %v4820_v22 = vmul.f32 %v4651_v49, %v1289_v4  ;;  %v4823_v8 = vadd.f32 %v4798_v38, %v1959_v61  ;;  %v1306_v9 = vld [vmem:[#allocation2 + $0x10a] sm:$0xff]  ;;  %v1307_v55 = vld [vmem:[#allocation2 + $0x112] sm:$0xff] }
 0x12b   : > { %1041 = vst.msk [vmem:[#allocation2 + $0x49] sm:$0xff] %vm577_vm0, %v951_v40  ;;  %v910_v58 = vadd.f32 1.0, %v4720_v15  ;;  %v1144_v10 = vmul.f32 %v4512_v54, %v1107_v52  ;;  %v1142_v13 = vmul.f32 %v4512_v54, %v4803_v53  ;;  %v1243_v20 = vmul.f32 %v4517_v57, %v4805_v45  ;;  %1071 = vst.msk [vmem:[#allocation2 + $0x139] sm:$0xff] %vm577_vm0, %v971_v50 }
 0x12c   : > { %6475 = vst [vmem:[#allocation32_spill] sm:$0xff] %v4817_v47  ;;  %6476 = vst [vmem:[#allocation33_spill] sm:$0xff] %v4823_v8  ;;  %v888_v61 = vadd.f32 1.0, %v4726_v25  ;;  %v4835_v4 = vadd.f32 %v1326_v30, %v1257_v60  ;;  %v1245_v15 = vmul.f32 %v4517_v57, %v1208_v23  ;;  %v4839_v36 = vadd.f32 %v4798_v38, %v1960_v14 }
 0x12d   : > { %1045 = vst.msk [vmem:[#allocation2 + $0x69] sm:$0xff] %vm577_vm0, %v954_v17  ;;  %v908_v37 = vadd.f32 1.0, %v4732_v32  ;;  %v1345_v40 = vmul.f32 %v4529_v21, %v1308_v56  ;;  %v1255_v47 = vadd.f32 %v1223_v0, %v1122_v5  ;;  %v1323_v50 = vmul.f32 %v4529_v21, %v4673_v16 }
 0x12e   : > { %6477 = vst [vmem:[#allocation34_spill] sm:$0xff] %v4835_v4  ;;  %v893_v17 = vadd.f32 1.0, %v4746_v63  ;;  %v1346_v25 = vmul.f32 %v4529_v21, %v1309_v34  ;;  %v2030_v30 = vsub.f32 0.0, %v4823_v8  ;;  %v1343_v60 = vmul.f32 %v4529_v21, %v1306_v9 }
 0x12f   : > { %3843 = vrcp.f32 %v910_v58  ;;  %v1324_v14 = vmul.f32 %v4529_v21, %v4701_v35  ;;  %v1275_v38 = vadd.f32 %v1243_v20, %v1142_v13  ;;  %v1344_v32 = vmul.f32 %v4529_v21, %v1307_v55 }
 0x130   : > { %3845 = vrcp.f32 %v888_v61  ;;  %v1277_v5 = vadd.f32 %v1245_v15, %v1144_v10  ;;  %v1445_v0 = vmul.f32 %v4582_v62, %v1107_v52  ;;  %v2031_v16 = vsub.f32 0.0, %v4839_v36 }
 0x131   : > { %3847 = vrcp.f32 %v908_v37  ;;  %v1546_v63 = vmul.f32 %v4639_v39, %v1208_v23  ;;  %v1355_v8 = vadd.f32 %v1323_v50, %v4763_v44  ;;  %v1356_v4 = vadd.f32 %v1324_v14, %v1255_v47 }
 0x132   : > { %3849 = vrcp.f32 %v893_v17  ;;  %v1646_v58 = vmul.f32 %v4651_v49, %v1308_v56  ;;  %v4858_v35 = vmul.f32 %v4651_v49, %v1309_v34  ;;  %v2062_v13 = vmul.f32 1.442695, %v2030_v30  ;;  %v1191_v30 = vld [vmem:[#allocation2 + $0x61] sm:$0xff] }
 0x133   : > { %v1375_v20 = vadd.f32 %v1343_v60, %v4781_v7  ;;  %v4862_v10 = vadd.f32 %v1345_v40, %v4755_v27  ;;  %v4865_v61 = vmul.f32 %v4671_v11, %v1107_v52  ;;  %v4868_v15 = vmul.f32 %v4690_v29, %v1208_v23  ;;  %v1090_v7 = vld [vmem:[#allocation2 + $0x60] sm:$0xff] }
 0x134   : > { %v1376_v44 = vadd.f32 %v1344_v32, %v1275_v38  ;;  %v4870_v47 = vadd.f32 %v1346_v25, %v1277_v5  ;;  %v4873_v37 = vmul.f32 %v4744_v12, %v1308_v56  ;;  %v4876_v50 = vmul.f32 %v4744_v12, %v1309_v34 }
 0x135   : > { %6478 = vst [vmem:[#allocation35_spill] sm:$0xff] %v4865_v61  ;;  %6479 = vst [vmem:[#allocation36_spill] sm:$0xff] %v4868_v15  ;;  %v2064_v17 = vmul.f32 1.442695, %v2031_v16  ;;  %v1456_v27 = vadd.f32 %v4708_v42, %v1355_v8  ;;  %v1457_v52 = vadd.f32 %v4790_v48, %v1356_v4  ;;  %v4882_v23 = vmul.f32 %v4582_v62, %v4803_v53  ;;  %v1110_v42 = vld [vmem:[#allocation2 + $0x150] sm:$0xff] }
 0x136   : > { %6480 = vst [vmem:[#allocation37_spill] sm:$0xff] %v4873_v37  ;;  %6481 = vst [vmem:[#allocation38_spill] sm:$0xff] %v4876_v50  ;;  %v4886_v38 = vmul.f32 %v4639_v39, %v4805_v45  ;;  %3851 = vpow2.f32 %v2062_v13  ;;  %v1476_v56 = vadd.f32 %v4735_v1, %v1375_v20  ;;  %v4890_v34 = vmul.f32 %v4651_v49, %v1306_v9  ;;  %v1211_v8 = vld [vmem:[#allocation2 + $0x151] sm:$0xff] }
 0x137   : > { %6482 = vst [vmem:[#allocation39_spill] sm:$0xff] %v4882_v23  ;;  %v4893_v40 = vmul.f32 %v4651_v49, %v1307_v55  ;;  %v1477_v48 = vadd.f32 %v1445_v0, %v1376_v44  ;;  %v4897_v4 = vmul.f32 %v4671_v11, %v4803_v53  ;;  %v1127_v25 = vmul.f32 %v4512_v54, %v1090_v7  ;;  %v1293_v23 = vld [vmem:[#allocation2 + $0x6a] sm:$0xff] }
 0x138   : > { %6483 = vst [vmem:[#allocation40_spill] sm:$0xff] %v4886_v38  ;;  %6484 = vst [vmem:[#allocation41_spill] sm:$0xff] %v4890_v34  ;;  %v1228_v60 = vmul.f32 %v4517_v57, %v1191_v30  ;;  %3853 = vpow2.f32 %v2064_v17  ;;  %v4903_v1 = vmul.f32 %v4690_v29, %v4805_v45  ;;  %v4906_v32 = vmul.f32 %v4744_v12, %v1306_v9 }
 0x139   : > { %6485 = vst [vmem:[#allocation42_spill] sm:$0xff] %v4893_v40  ;;  %6486 = vst [vmem:[#allocation43_spill] sm:$0xff] %v4897_v4  ;;  %v3844_v14 = vpop.eup %3843  ;;  %v4909_v5 = vmul.f32 %v4744_v12, %v1307_v55  ;;  %v4912_v53 = vmul.f32 %v4582_v62, %v1090_v7  ;;  %v4915_v16 = vmul.f32 %v4639_v39, %v1191_v30 }
 0x13a   : > { %6487 = vst [vmem:[#allocation44_spill] sm:$0xff] %v4903_v1  ;;  %6488 = vst [vmem:[#allocation45_spill] sm:$0xff] %v4906_v32  ;;  %v3846_v0 = vpop.eup %3845  ;;  %v1147_v13 = vmul.f32 %v4512_v54, %v1110_v42  ;;  %v1248_v20 = vmul.f32 %v4517_v57, %v1211_v8  ;;  %v4920_v45 = vmul.f32 %v4671_v11, %v1090_v7  ;;  %v1088_v7 = vld [vmem:[#allocation2 + $0x48] sm:$0xff] }
 0x13b   : > { %6489 = vst [vmem:[#allocation46_spill] sm:$0xff] %v4909_v5  ;;  %v3848_v44 = vpop.eup %3847  ;;  %v1557_v9 = vadd.f32 %v4716_v18, %v1456_v27  ;;  %v1577_v55 = vadd.f32 %v4738_v46, %v1476_v56  ;;  %v1558_v17 = vadd.f32 %v4793_v3, %v1457_v52  ;;  %v4925_v32 = vadd.f32 %v1228_v60, %v1127_v25  ;;  %v1108_v56 = vld [vmem:[#allocation2 + $0x138] sm:$0xff]  ;;  %v1091_v60 = vld [vmem:[#allocation2 + $0x68] sm:$0xff] }
 0x13c   : > { %v3850_v5 = vpop.eup %3849  ;;  %v4928_v1 = vmul.f32 %v4690_v29, %v1191_v30  ;;  %v4931_v50 = vmul.f32 %v4582_v62, %v1110_v42  ;;  %v1578_v4 = vadd.f32 %v1546_v63, %v1477_v48  ;;  %v4934_v37 = vmul.f32 %v4639_v39, %v1211_v8 }
 0x13d   : > { %v974_v18 = vmul.f32 %v3844_v14, %v4536_v28  ;;  %v952_v46 = vmul.f32 %v3846_v0, %v4540_v31  ;;  %v972_v3 = vmul.f32 %v3848_v44, %v4546_v33  ;;  %v4939_v27 = vadd.f32 %v1248_v20, %v1147_v13  ;;  %v4949_v28 = vld [vmem:[#allocation2 + $0x69] sm:$0xff] }
 0x13e   : > { %v4942_v52 = vmul.f32 %v4671_v11, %v1110_v42  ;;  %v4945_v30 = vmul.f32 %v4690_v29, %v1211_v8  ;;  %v957_v63 = vmul.f32 %v3850_v5, %v4561_v43  ;;  %v1658_v48 = vadd.f32 %v4801_v26, %v1557_v9  ;;  %v1189_v42 = vld [vmem:[#allocation2 + $0x49] sm:$0xff]  ;;  %v1209_v5 = vld [vmem:[#allocation2 + $0x139] sm:$0xff] }
 0x13f   : > { %v1678_v25 = vadd.f32 %v1646_v58, %v1577_v55  ;;  %1075 = vst.msk [vmem:[#allocation2 + $0x159] sm:$0xff] %vm577_vm0, %v974_v18  ;;  %1042 = vst.msk [vmem:[#allocation2 + $0x51] sm:$0xff] %vm577_vm0, %v952_v46  ;;  %v4954_v31 = vadd.f32 %v4820_v22, %v1558_v17  ;;  %v913_v33 = vadd.f32 1.0, %v4753_v2  ;;  %v1426_v43 = vmul.f32 %v4582_v62, %v1088_v7  ;;  %v6495_v44 = vld [vmem:[#allocation7_spill] sm:$0xff] }
 0x140   : > { %6490 = vst [vmem:[#allocation47_spill] sm:$0xff] %v4945_v30  ;;  %1072 = vst.msk [vmem:[#allocation2 + $0x141] sm:$0xff] %vm577_vm0, %v972_v3  ;;  %v4960_v26 = vadd.f32 %v4858_v35, %v1578_v4  ;;  %v891_v58 = vadd.f32 1.0, %v4761_v59  ;;  %v911_v8 = vadd.f32 1.0, %v4768_v51  ;;  %v3852_v14 = vpop.eup %3851  ;;  %v1446_v22 = vmul.f32 %v4582_v62, %v1108_v56  ;;  %v1292_v3 = vld [vmem:[#allocation2 + $0x62] sm:$0xff] }
 0x141   : > { %1050 = vst.msk [vmem:[#allocation2 + $0x91] sm:$0xff] %vm577_vm0, %v957_v63  ;;  %v1747_v0 = vmul.f32 %v4671_v11, %v1108_v56  ;;  %v4968_v2 = vadd.f32 1.0, %v4779_v6  ;;  %v6491_v13 = vsub.f32 0.0, %v4658_v41  ;;  %v1128_v35 = vmul.f32 %v4512_v54, %v1091_v60 }
 0x142   : > { %v1229_v59 = vmul.f32 %v4517_v57, %v4949_v28  ;;  %v6493_v51 = vsub.f32 0.0, %v4679_v24  ;;  %v4983_v9 = vadd.f32 %v6495_v44, %v4425_v19  ;;  %v3854_v55 = vpop.eup %3853  ;;  %v1125_v6 = vmul.f32 %v4512_v54, %v1088_v7 }
 0x143   : > { %v4972_v20 = vmul.f32 1.442695, %v6491_v13  ;;  %v1226_v17 = vmul.f32 %v4517_v57, %v1189_v42  ;;  %v1727_v18 = vmul.f32 %v4671_v11, %v1088_v7  ;;  %v1145_v46 = vmul.f32 %v4512_v54, %v1108_v56  ;;  %v6497_v13 = vld [vmem:[#allocation32_spill] sm:$0xff] }
 0x144   : > { %v4979_v4 = vmul.f32 1.442695, %v6493_v51  ;;  %6496 = vst [vmem:[#allocation7_spill] sm:$0xff] %v4983_v9  ;;  %v2126_v63 = vadd.f32 1.0, %v3852_v14  ;;  %v1458_v15 = vadd.f32 %v1426_v43, %v6497_v13  ;;  %v1246_v51 = vmul.f32 %v4517_v57, %v1209_v5 }
 0x145   : > { %6492 = vst [vmem:[#allocation48_spill] sm:$0xff] %v4972_v20  ;;  %v1547_v61 = vmul.f32 %v4639_v39, %v1209_v5  ;;  %v1759_v40 = vadd.f32 %v1727_v18, %v1658_v48  ;;  %v1478_v44 = vadd.f32 %v1446_v22, %v4862_v10  ;;  %v1779_v34 = vadd.f32 %v1747_v0, %v1678_v25 }
 0x146   : > { %6494 = vst [vmem:[#allocation49_spill] sm:$0xff] %v4979_v4  ;;  %v1848_v38 = vmul.f32 %v4690_v29, %v1209_v5  ;;  %v2127_v24 = vadd.f32 1.0, %v3854_v55  ;;  %v1527_v7 = vmul.f32 %v4639_v39, %v1189_v42  ;;  %v1261_v41 = vadd.f32 %v1229_v59, %v1128_v35  ;;  %v6498_v4 = vld [vmem:[#allocation15_spill] sm:$0xff] }
 0x147   : > { %v1329_v56 = vmul.f32 %v4529_v21, %v1292_v3  ;;  %v4996_v14 = vadd.f32 %v1226_v17, %v1125_v6  ;;  %v1828_v43 = vmul.f32 %v4690_v29, %v1189_v42  ;;  %v806_v13 = vsub.f32 0.0, %v4983_v9  ;;  %v5014_v42 = vld [vmem:[#allocation2 + $0x50] sm:$0xff]  ;;  %v1109_v9 = vld [vmem:[#allocation2 + $0x140] sm:$0xff] }
 0x148   : > { %v5002_v48 = vadd.f32 %v4425_v19, %v6498_v4  ;;  %3855 = vrcp.f32 %v2126_v63  ;;  %v1559_v10 = vadd.f32 %v1527_v7, %v1458_v15  ;;  %v5004_v25 = vadd.f32 %v1246_v51, %v1145_v46  ;;  %v5016_v55 = vld [vmem:[#allocation2 + $0x4a] sm:$0xff]  ;;  %v5044_v18 = vld [vmem:[#allocation2 + $0x52] sm:$0xff] }
 0x149   : > { %v1330_v5 = vmul.f32 %v4529_v21, %v1293_v23  ;;  %v1860_v22 = vadd.f32 %v1828_v43, %v1759_v40  ;;  %v5007_v0 = vadd.f32 %v1547_v61, %v1478_v44  ;;  %v5009_v35 = vadd.f32 %v1848_v38, %v1779_v34  ;;  %v5034_v4 = vld [vmem:[#allocation2 + $0x51] sm:$0xff] }
 0x14a   : > { %6499 = vst [vmem:[#allocation32_spill] sm:$0xff] %v5002_v48  ;;  %v5012_v59 = vmul.f32 %v4582_v62, %v1091_v60  ;;  %3857 = vrcp.f32 %v2127_v24  ;;  %v5019_v19 = vadd.f32 %v1329_v56, %v4925_v32  ;;  %v5025_v40 = vmul.f32 %v4639_v39, %v4949_v28  ;;  %v1718_v43 = vld [vmem:[#allocation2 + $0x198] sm:$0xff] }
 0x14b   : > { %v5021_v15 = vadd.f32 %v1330_v5, %v1261_v41  ;;  %v5028_v61 = vmul.f32 %v4651_v49, %v1292_v3  ;;  %v5031_v38 = vmul.f32 %v4651_v49, %v1293_v23  ;;  %v1730_v34 = vmul.f32 %v4671_v11, %v1091_v60 }
 0x14c   : > { %6500 = vst [vmem:[#allocation15_spill] sm:$0xff] %v5019_v19  ;;  %3859 = vrcp.f32 %v913_v33  ;;  %v1831_v24 = vmul.f32 %v4690_v29, %v4949_v28  ;;  %v1427_v41 = vmul.f32 %v4582_v62, %v5014_v42  ;;  %v1628_v32 = vmul.f32 %v4651_v49, %v5016_v55  ;;  %v6504_v33 = vld [vmem:[#allocation34_spill] sm:$0xff] }
 0x14d   : > { %6501 = vst [vmem:[#allocation50_spill] sm:$0xff] %v5021_v15  ;;  %6502 = vst [vmem:[#allocation51_spill] sm:$0xff] %v5028_v61  ;;  %3861 = vrcp.f32 %v891_v58  ;;  %v1931_v6 = vmul.f32 %v4744_v12, %v1292_v3  ;;  %v1932_v17 = vmul.f32 %v4744_v12, %v1293_v23  ;;  %v1728_v60 = vmul.f32 %v4671_v11, %v5014_v42 }
 0x14e   : > { %6503 = vst [vmem:[#allocation52_spill] sm:$0xff] %v5031_v38  ;;  %3863 = vrcp.f32 %v911_v8  ;;  %v1459_v46 = vadd.f32 %v1427_v41, %v6504_v33  ;;  %v1528_v28 = vmul.f32 %v4639_v39, %v5034_v4  ;;  %v1660_v63 = vadd.f32 %v1628_v32, %v1559_v10  ;;  %v1719_v32 = vld [vmem:[#allocation2 + $0x1a0] sm:$0xff] }
 0x14f   : > { %v1929_v51 = vmul.f32 %v4744_v12, %v5016_v55  ;;  %v1760_v58 = vadd.f32 %v1728_v60, %v4954_v31  ;;  %v1829_v23 = vmul.f32 %v4690_v29, %v5034_v4  ;;  %3865 = vrcp.f32 %v4968_v2  ;;  %v6505_v31 = vld [vmem:[#allocation16_spill] sm:$0xff] }
 0x150   : > { %v804_v3 = vsub.f32 0.0, %v5002_v48  ;;  %v1560_v44 = vadd.f32 %v1528_v28, %v1459_v46  ;;  %v1629_v8 = vmul.f32 %v4651_v49, %v5044_v18  ;;  %v1761_v7 = vadd.f32 %v4920_v45, %v1660_v63  ;;  %v6507_v46 = vld [vmem:[#allocation31_spill] sm:$0xff]  ;;  %v6509_v48 = vld [vmem:[#allocation18_spill] sm:$0xff]  ;;  %v1819_v45 = vld [vmem:[#allocation2 + $0x199] sm:$0xff] }
 0x151   : > { %v1961_v56 = vadd.f32 %v1929_v51, %v1860_v22  ;;  %v1861_v10 = vadd.f32 %v1829_v23, %v1760_v58  ;;  %v1930_v5 = vmul.f32 %v4744_v12, %v5044_v18  ;;  %3867 = vpow2.f32 %v6505_v31  ;;  %v6510_v63 = vld [vmem:[#allocation19_spill] sm:$0xff]  ;;  %v1111_v23 = vld [vmem:[#allocation2 + $0x158] sm:$0xff] }
 0x152   : > { %v5064_v41 = vmul.f32 1.442695, %v806_v13  ;;  %v3856_v2 = vpop.eup %3855  ;;  %v1661_v60 = vadd.f32 %v1629_v8, %v1560_v44  ;;  %v1862_v33 = vadd.f32 %v4928_v1, %v1761_v7  ;;  %3869 = vpow2.f32 %v6509_v48  ;;  %v5077_v31 = vld [vmem:[#allocation2 + $0x159] sm:$0xff]  ;;  %v1820_v48 = vld [vmem:[#allocation2 + $0x1a1] sm:$0xff] }
 0x153   : > { %v5068_v28 = vadd.f32 %v6507_v46, %v1961_v56  ;;  %v1962_v22 = vadd.f32 %v1930_v5, %v1861_v10  ;;  %3871 = vpow2.f32 %v6510_v63  ;;  %v5072_v51 = vmul.f32 1.442695, %v804_v3  ;;  %v6514_v10 = vld [vmem:[#allocation33_spill] sm:$0xff]  ;;  %v5086_v3 = vld [vmem:[#allocation2 + $0x152] sm:$0xff] }
 0x154   : > { %6506 = vst [vmem:[#allocation34_spill] sm:$0xff] %v5064_v41  ;;  %v5075_v58 = vmul.f32 %v4671_v11, %v1718_v43  ;;  %v3858_v13 = vpop.eup %3857  ;;  %v1762_v44 = vadd.f32 %v1730_v34, %v1661_v60  ;;  %v1963_v1 = vadd.f32 %v1931_v6, %v1862_v33  ;;  %v5081_v7 = vmul.f32 %v4671_v11, %v1719_v32  ;;  %v6517_v63 = vld [vmem:[#allocation20_spill] sm:$0xff] }
 0x155   : > { %6508 = vst [vmem:[#allocation16_spill] sm:$0xff] %v5068_v28  ;;  %6511 = vst [vmem:[#allocation18_spill] sm:$0xff] %v5072_v51  ;;  %v2032_v8 = vsub.f32 0.0, %v5068_v28  ;;  %v5084_v5 = vmul.f32 %v3856_v2, %v6514_v10  ;;  %v5089_v43 = vadd.f32 %v6507_v46, %v1962_v22  ;;  %3873 = vpow2.f32 %v6517_v63  ;;  %v1920_v6 = vld [vmem:[#allocation2 + $0x19a] sm:$0xff] }
 0x156   : > { %6512 = vst [vmem:[#allocation19_spill] sm:$0xff] %v5075_v58  ;;  %6513 = vst [vmem:[#allocation53_spill] sm:$0xff] %v5081_v7  ;;  %v3860_v56 = vpop.eup %3859  ;;  %v5093_v34 = vmul.f32 %v4690_v29, %v1819_v45  ;;  %v1863_v33 = vadd.f32 %v1831_v24, %v1762_v44  ;;  %v5096_v32 = vadd.f32 %v6507_v46, %v1963_v1  ;;  %v6520_v58 = vld [vmem:[#allocation22_spill] sm:$0xff] }
 0x157   : > { %6515 = vst [vmem:[#allocation33_spill] sm:$0xff] %v5084_v5  ;;  %6516 = vst [vmem:[#allocation54_spill] sm:$0xff] %v5089_v43  ;;  %v3862_v60 = vpop.eup %3861  ;;  %v2066_v7 = vmul.f32 1.442695, %v2032_v8  ;;  %3875 = vpow2.f32 %v6520_v58  ;;  %v1148_v10 = vmul.f32 %v4512_v54, %v1111_v23  ;;  %v1249_v22 = vmul.f32 %v4517_v57, %v5077_v31 }
 0x158   : > { %6518 = vst [vmem:[#allocation20_spill] sm:$0xff] %v5093_v34  ;;  %6519 = vst [vmem:[#allocation55_spill] sm:$0xff] %v5096_v32  ;;  %v3864_v2 = vpop.eup %3863  ;;  %v2033_v63 = vsub.f32 0.0, %v5089_v43  ;;  %v5104_v45 = vmul.f32 %v4690_v29, %v1820_v48  ;;  %v5106_v34 = vld [vmem:[#allocation2 + $0x15a] sm:$0xff]  ;;  %v1349_v24 = vmul.f32 %v4529_v21, %v5086_v3  ;;  %v1964_v44 = vadd.f32 %v1932_v17, %v1863_v33 }
 0x159   : > { %v2034_v58 = vsub.f32 0.0, %v5096_v32  ;;  %v5112_v1 = vmul.f32 %v4744_v12, %v1920_v6  ;;  %v3866_v8 = vpop.eup %3865  ;;  %v5115_v51 = vmul.f32 %v3858_v13, %v4839_v36  ;;  %v5118_v41 = vmul.f32 %v4582_v62, %v1111_v23  ;;  %v1210_v6 = vld [vmem:[#allocation2 + $0x141] sm:$0xff] }
 0x15a   : > { %6521 = vst [vmem:[#allocation22_spill] sm:$0xff] %v5104_v45  ;;  %v1126_v48 = vmul.f32 %v4512_v54, %v5014_v42  ;;  %3877 = vpow2.f32 %v2066_v7  ;;  %v1227_v45 = vmul.f32 %v4517_v57, %v5034_v4  ;;  %v5125_v17 = vadd.f32 %v6507_v46, %v1964_v44  ;;  %v5142_v7 = vld [vmem:[#allocation2 + $0x13a] sm:$0xff] }
 0x15b   : > { %6522 = vst [vmem:[#allocation56_spill] sm:$0xff] %v5112_v1  ;;  %6523 = vst [vmem:[#allocation57_spill] sm:$0xff] %v5115_v51  ;;  %v2068_v33 = vmul.f32 1.442695, %v2033_v63  ;;  %v1447_v1 = vmul.f32 %v4582_v62, %v1109_v9  ;;  %v3868_v20 = vpop.eup %3867  ;;  %v5128_v36 = vadd.f32 %v1249_v22, %v1148_v10  ;;  %v5132_v13 = vmul.f32 %v4529_v21, %v5106_v34 }
 0x15c   : > { %6524 = vst [vmem:[#allocation58_spill] sm:$0xff] %v5125_v17  ;;  %v5136_v42 = vmul.f32 %v4639_v39, %v5077_v31  ;;  %v5140_v4 = vmul.f32 %v4651_v49, %v5086_v3  ;;  %v3870_v63 = vpop.eup %3869  ;;  %v5145_v44 = vadd.f32 %v1349_v24, %v4939_v27  ;;  %v5149_v10 = vmul.f32 %v4651_v49, %v5106_v34  ;;  %v5159_v27 = vld [vmem:[#allocation2 + $0x142] sm:$0xff] }
 0x15d   : > { %v2035_v22 = vsub.f32 0.0, %v5125_v17  ;;  %v2070_v15 = vmul.f32 1.442695, %v2034_v58  ;;  %v3872_v32 = vpop.eup %3871  ;;  %v5153_v43 = vmul.f32 %v4671_v11, %v1111_v23  ;;  %v1327_v28 = vmul.f32 %v4529_v21, %v5016_v55  ;;  %v6530_v55 = vld [vmem:[#allocation4_spill] sm:$0xff] }
 0x15e   : > { %6525 = vst [vmem:[#allocation59_spill] sm:$0xff] %v5136_v42  ;;  %6526 = vst [vmem:[#allocation60_spill] sm:$0xff] %v5140_v4  ;;  %v1146_v19 = vmul.f32 %v4512_v54, %v1109_v9  ;;  %v1247_v46 = vmul.f32 %v4517_v57, %v1210_v6  ;;  %v1259_v24 = vadd.f32 %v1227_v45, %v1126_v48  ;;  %3879 = vpow2.f32 %v2068_v33  ;;  %v6529_v4 = vld [vmem:[#allocation3_spill] sm:$0xff]  ;;  %v6531_v45 = vld [vmem:[#allocation5_spill] sm:$0xff] }
 0x15f   : > { %6527 = vst [vmem:[#allocation61_spill] sm:$0xff] %v5145_v44  ;;  %6528 = vst [vmem:[#allocation62_spill] sm:$0xff] %v5149_v10  ;;  %v1347_v44 = vmul.f32 %v4529_v21, %v5142_v7  ;;  %v1479_v58 = vadd.f32 %v1447_v1, %v4870_v47  ;;  %v3874_v17 = vpop.eup %3873  ;;  %v2072_v10 = vmul.f32 1.442695, %v2035_v22  ;;  %v1548_v23 = vmul.f32 %v4639_v39, %v1210_v6  ;;  %v6532_v33 = vld [vmem:[#allocation6_spill] sm:$0xff] }
 0x160   : > { %v977_v38 = vmul.f32 %v3860_v56, %v6529_v4  ;;  %v955_v61 = vmul.f32 %v3862_v60, %v6530_v55  ;;  %3881 = vpow2.f32 %v2070_v15  ;;  %v1348_v57 = vmul.f32 %v4529_v21, %v5159_v27 }
 0x161   : > { %v5167_v54 = vpop.eup %3875  ;;  %v975_v48 = vmul.f32 %v3864_v2, %v6531_v45  ;;  %v958_v30 = vmul.f32 %v3866_v8, %v6532_v33  ;;  %v1279_v42 = vadd.f32 %v1247_v46, %v1146_v19  ;;  %v1648_v47 = vmul.f32 %v4651_v49, %v5142_v7 }
 0x162   : > { %1080 = vst.msk [vmem:[#allocation2 + $0x181] sm:$0xff] %vm577_vm0, %v977_v38  ;;  %1047 = vst.msk [vmem:[#allocation2 + $0x79] sm:$0xff] %vm577_vm0, %v955_v61  ;;  %v914_v56 = vadd.f32 1.0, %v3868_v20  ;;  %v892_v60 = vadd.f32 1.0, %v3870_v63  ;;  %v1328_v15 = vmul.f32 %v4529_v21, %v5044_v18  ;;  %v1359_v1 = vadd.f32 %v1327_v28, %v4996_v14 }
 0x163   : > { %v1748_v4 = vmul.f32 %v4671_v11, %v1109_v9  ;;  %1077 = vst.msk [vmem:[#allocation2 + $0x169] sm:$0xff] %vm577_vm0, %v975_v48  ;;  %1051 = vst.msk [vmem:[#allocation2 + $0x99] sm:$0xff] %vm577_vm0, %v958_v30  ;;  %v912_v19 = vadd.f32 1.0, %v3872_v32  ;;  %3883 = vpow2.f32 %v2072_v10  ;;  %v1580_v2 = vadd.f32 %v1548_v23, %v1479_v58 }
 0x164   : > { %v3878_v46 = vpop.eup %3877  ;;  %v1649_v61 = vmul.f32 %v4651_v49, %v5159_v27  ;;  %v897_v20 = vadd.f32 1.0, %v3874_v17  ;;  %v1851_v38 = vmul.f32 %v4690_v29, %v5077_v31  ;;  %v1360_v21 = vadd.f32 %v1328_v15, %v1259_v24 }
 0x165   : > { %v1379_v14 = vadd.f32 %v1347_v44, %v5004_v25  ;;  %3885 = vrcp.f32 %v914_v56  ;;  %v2230_v9 = vsel %vm577_vm0, %v5115_v51, 0.0  ;;  %v1380_v18 = vadd.f32 %v1348_v57, %v1279_v42  ;;  %v1195_v44 = vld [vmem:[#allocation2 + $0x91] sm:$0xff]  ;;  %v6564_v51 = vld [vmem:[#allocation49_spill] sm:$0xff] }
 0x166   : > { %v1680_v30 = vadd.f32 %v1648_v47, %v5007_v0  ;;  %3887 = vrcp.f32 %v892_v60  ;;  %v2128_v28 = vadd.f32 1.0, %v3878_v46  ;;  %v1780_v32 = vadd.f32 %v1748_v4, %v4960_v26  ;;  %v6535_v56 = vld [vmem:[#allocation23_spill] sm:$0xff]  ;;  %v1921_v4 = vld [vmem:[#allocation2 + $0x1a2] sm:$0xff] }
 0x167   : > { %v1849_v49 = vmul.f32 %v4690_v29, %v1210_v6  ;;  %3889 = vrcp.f32 %v912_v19  ;;  %v5195_v31 = vmul.f32 %v4744_v12, %v5086_v3  ;;  %v1460_v25 = vadd.f32 %v4912_v53, %v1359_v1  ;;  %v1094_v6 = vld [vmem:[#allocation2 + $0x90] sm:$0xff] }
 0x168   : > { %v1681_v8 = vadd.f32 %v1649_v61, %v1580_v2  ;;  %3891 = vrcp.f32 %v897_v20  ;;  %v3880_v17 = vpop.eup %3879  ;;  %v1461_v42 = vadd.f32 %v5012_v59, %v1360_v21  ;;  %v2229_v0 = vsel %vm577_vm0, %v5084_v5, 0.0  ;;  %v6536_v15 = vld [vmem:[#allocation59_spill] sm:$0xff] }
 0x169   : > { %v1480_v63 = vadd.f32 %v4931_v50, %v1379_v14  ;;  %v1949_v26 = vmul.f32 %v4744_v12, %v5142_v7  ;;  %v5206_v3 = vadd.f32 %v5132_v13, %v5128_v36  ;;  %v1952_v53 = vmul.f32 %v4744_v12, %v5106_v34  ;;  %v5219_v36 = vld [vmem:[%s6385_s3] ss:$0 sm:$0xff]  ;;  %v6537_v1 = vld [vmem:[#allocation47_spill] sm:$0xff]  ;;  %v6539_v14 = vld [vmem:[#allocation52_spill] sm:$0xff] }
 0x16a   : > { %v5210_v10 = vadd.f32 %v2230_v9, %v2229_v0  ;;  %v1481_v59 = vadd.f32 %v5118_v41, %v1380_v18  ;;  %v3882_v22 = vpop.eup %3881  ;;  %3893 = vrcp.f32 %v2128_v28  ;;  %v1781_v50 = vadd.f32 %v4942_v52, %v1680_v30  ;;  %6533 = vst [vmem:[#allocation3_spill] sm:$0xff] %v5219_v36  ;;  %v5225_v41 = vld [vmem:[%s6385_s3 + $0x1] ss:$0 sm:$0xff]  ;;  %v1193_v61 = vld [vmem:[#allocation2 + $0x79] sm:$0xff]  ;;  %v6538_v20 = vld [vmem:[#allocation51_spill] sm:$0xff] }
 0x16b   : > { %v1881_v24 = vadd.f32 %v1849_v49, %v1780_v32  ;;  %v1950_v7 = vmul.f32 %v4744_v12, %v5159_v27  ;;  %v2129_v58 = vadd.f32 1.0, %v3880_v17  ;;  %v1131_v34 = vmul.f32 %v5219_v36, %v1094_v6  ;;  %6534 = vst [vmem:[#allocation4_spill] sm:$0xff] %v5225_v41  ;;  %v6540_v30 = vld [vmem:[#allocation60_spill] sm:$0xff]  ;;  %v5263_v49 = vld [vmem:[%s6385_s3 + $0x3] ss:$0 sm:$0xff] }
 0x16c   : > { %v1232_v13 = vmul.f32 %v5225_v41, %v1195_v44  ;;  %v1782_v52 = vadd.f32 %v5153_v43, %v1681_v8  ;;  %v1981_v23 = vadd.f32 %v1949_v26, %v5009_v35  ;;  %v1561_v27 = vadd.f32 %v4915_v16, %v1460_v25  ;;  %v1092_v16 = vld [vmem:[#allocation2 + $0x78] sm:$0xff]  ;;  %v6542_v8 = vld [vmem:[#allocation31_spill] sm:$0xff]  ;;  %v6545_v26 = vld [vmem:[#allocation62_spill] sm:$0xff] }
 0x16d   : > { %v1562_v55 = vadd.f32 %v5025_v40, %v1461_v42  ;;  %v1581_v57 = vadd.f32 %v4934_v37, %v1480_v63  ;;  %v3884_v45 = vpop.eup %3883  ;;  %v2130_v48 = vadd.f32 1.0, %v3882_v22  ;;  %v5234_v33 = vmul.f32 %v4582_v62, %v1094_v6  ;;  %v1213_v42 = vld [vmem:[#allocation2 + $0x169] sm:$0xff]  ;;  %v6544_v0 = vld [vmem:[#allocation8_spill] sm:$0xff]  ;;  %v5282_v22 = vld [vmem:[#allocation2 + $0x180] sm:$0xff] }
 0x16e   : > { %v5237_v47 = vmul.f32 %v4639_v39, %v1195_v44  ;;  %3895 = vpow2.f32 %v6535_v56  ;;  %v1982_v43 = vadd.f32 %v1950_v7, %v1881_v24  ;;  %v5241_v35 = vmul.f32 %v4671_v11, %v1094_v6  ;;  %v6548_v7 = vld [vmem:[#allocation9_spill] sm:$0xff]  ;;  %v2223_v56 = vld [vmem:[%s6387_s5 + $0x8] sm:$0xff] }
 0x16f   : > { %v3886_v60 = vpop.eup %3885  ;;  %v1582_v40 = vadd.f32 %v6536_v15, %v1481_v59  ;;  %v1882_v37 = vadd.f32 %v6537_v1, %v1781_v50  ;;  %3897 = vrcp.f32 %v2129_v58  ;;  %v5245_v62 = vadd.f32 %v1232_v13, %v1131_v34  ;;  %v2225_v15 = vld [vmem:[%s6387_s5 + $0x18] sm:$0xff] }
 0x170   : > { %v3888_v19 = vpop.eup %3887  ;;  %v5248_v39 = vmul.f32 %v4690_v29, %v1195_v44  ;;  %v1883_v46 = vadd.f32 %v1851_v38, %v1782_v52  ;;  %v1662_v21 = vadd.f32 %v6538_v20, %v1561_v27  ;;  %v5252_v9 = vadd.f32 %v6539_v14, %v1562_v55  ;;  %v6550_v55 = vld [vmem:[#allocation11_spill] sm:$0xff]  ;;  %v5322_v14 = vld [vmem:[%s6385_s3 + $0x4] ss:$0 sm:$0xff] }
 0x171   : > { %v3890_v2 = vpop.eup %3889  ;;  %v5255_v18 = vadd.f32 1.0, %v5167_v54  ;;  %v5258_v28 = vadd.f32 %v6540_v30, %v1581_v57  ;;  %3899 = vrcp.f32 %v2130_v48  ;;  %v1430_v38 = vmul.f32 %v5263_v49, %v1092_v16  ;;  %v1112_v54 = vld [vmem:[#allocation2 + $0x168] sm:$0xff]  ;;  %v2222_v48 = vld [vmem:[%s6387_s5] sm:$0xff] }
 0x172   : > { %v3892_v32 = vpop.eup %3891  ;;  %v5267_v25 = vmul.f32 %v4744_v12, %v1921_v4  ;;  %v5270_v17 = vadd.f32 %v6542_v8, %v1981_v23  ;;  %v978_v63 = vmul.f32 %v3886_v60, %v6544_v0  ;;  %v5274_v6 = vadd.f32 %v6545_v26, %v1582_v40  ;;  %v5331_v0 = vld [vmem:[#allocation2 + $0x98] sm:$0xff] }
 0x173   : > { %v5277_v44 = vadd.f32 %v5195_v31, %v1882_v37  ;;  %v5280_v59 = vadd.f32 %v6542_v8, %v1982_v43  ;;  %v1129_v50 = vmul.f32 %v5219_v36, %v1092_v16  ;;  %v1230_v24 = vmul.f32 %v5225_v41, %v1193_v61  ;;  %v6549_v31 = vld [vmem:[#allocation10_spill] sm:$0xff]  ;;  %v5335_v26 = vld [vmem:[#allocation2 + $0x92] sm:$0xff] }
 0x174   : > { %6541 = vst [vmem:[#allocation5_spill] sm:$0xff] %v5267_v25  ;;  %6543 = vst [vmem:[#allocation6_spill] sm:$0xff] %v5270_v17  ;;  %v956_v58 = vmul.f32 %v3888_v19, %v6548_v7  ;;  %v5287_v34 = vadd.f32 %v1952_v53, %v1883_v46  ;;  %v3894_v13 = vpop.eup %3893  ;;  %v2131_v52 = vadd.f32 1.0, %v3884_v45  ;;  %v1731_v23 = vmul.f32 %v4671_v11, %v1092_v16  ;;  %v6551_v53 = vld [vmem:[#allocation15_spill] sm:$0xff]  ;;  %v6565_v25 = vld [vmem:[#allocation34_spill] sm:$0xff] }
 0x175   : > { %6546 = vst [vmem:[#allocation23_spill] sm:$0xff] %v5274_v6  ;;  %6547 = vst [vmem:[#allocation59_spill] sm:$0xff] %v5280_v59  ;;  %v976_v27 = vmul.f32 %v3890_v2, %v6549_v31  ;;  %v961_v57 = vmul.f32 %v3892_v32, %v6550_v55  ;;  %v1462_v60 = vadd.f32 %v1430_v38, %v6551_v53  ;;  %v2224_v16 = vld [vmem:[%s6387_s5 + $0x10] sm:$0xff]  ;;  %v4186_v4 = vmov 0.0|0.0   ;;  %v6553_v2 = vld [vmem:[#allocation16_spill] sm:$0xff] }
 0x176   : > { %1081 = vst.msk [vmem:[#allocation2 + $0x189] sm:$0xff] %vm577_vm0, %v978_v63  ;;  %v1149_v45 = vmul.f32 %v5219_v36, %v1112_v54  ;;  %v1250_v43 = vmul.f32 %v5225_v41, %v1213_v42  ;;  %1048 = vst.msk [vmem:[#allocation2 + $0x81] sm:$0xff] %vm577_vm0, %v956_v58  ;;  %v5311_v40 = vmul.f32 %v5263_v49, %v5282_v22  ;;  %3733 = vmatprep.subr.bf16.mxu1 %v4186_v4  ;;  %v5333_v63 = vld [vmem:[#allocation2 + $0x99] sm:$0xff]  ;;  %v6555_v58 = vmov 0.0  }
 0x177   : > { %v1763_v1 = vadd.f32 %v1731_v23, %v1662_v21  ;;  %v1450_v37 = vmul.f32 %v5263_v49, %v1112_v54  ;;  %1078 = vst.msk [vmem:[#allocation2 + $0x171] sm:$0xff] %vm577_vm0, %v976_v27  ;;  %1056 = vst.msk [vmem:[#allocation2 + $0xc1] sm:$0xff] %vm577_vm0, %v961_v57  ;;  %v3734_v19 = vpack.c.bf16 %v2223_v56, %v2222_v48  ;;  %3655 = vmatprep.mubr.msk.f32.mxu1 %vm4187_vm2, %v6555_v58  ;;  %v5345_v31 = vld [vmem:[#allocation2 + $0x9a] sm:$0xff] }
 0x178   : > { %6552 = vst [vmem:[#allocation47_spill] sm:$0xff] %v5311_v40  ;;  %v3896_v46 = vpop.eup %3895  ;;  %v5317_v20 = vmul.f32 %v3894_v13, %v6553_v2  ;;  %v1531_v21 = vmul.f32 %v5322_v14, %v1193_v61  ;;  %v1832_v30 = vmul.f32 %v4690_v29, %v1193_v61  ;;  %v5326_v32 = vadd.f32 %v1230_v24, %v1129_v50  ;;  %v6556_v55 = vld [vmem:[#allocation61_spill] sm:$0xff] }
 0x179   : > { %v5329_v38 = vmul.f32 %v5322_v14, %v1213_v42  ;;  %3735 = vmatpush3.bf16.msra.mxu1 %v3734_v19  ;;  %v3737_v7 = vpack.c.bf16 %v2225_v15, %v2224_v16  ;;  %v3898_v61 = vpop.eup %3897  ;;  %3901 = vrcp.f32 %v2131_v52  ;;  %v5340_v24 = vadd.f32 %v1250_v43, %v1149_v45  ;;  %v5385_v19 = vld [vmem:[%s6385_s3 + $0x5] ss:$0 sm:$0xff] }
 0x17a   : > { %6554 = vst [vmem:[#allocation51_spill] sm:$0xff] %v5317_v20  ;;  %v1563_v50 = vadd.f32 %v1531_v21, %v1462_v60  ;;  %v5343_v23 = vmul.f32 %v4671_v11, %v1112_v54  ;;  %3736 = vmatprep.subr.bf16.mxu1 %v4186_v4  ;;  %v1864_v27 = vadd.f32 %v1832_v30, %v1763_v1  ;;  %v898_v56 = vadd.f32 1.0, %v3896_v46  ;;  %v5362_v54 = vld [vmem:[%s6385_s3 + $0x2] ss:$0 sm:$0xff]  ;;  %v6559_v21 = vld [vmem:[#allocation24_spill] sm:$0xff] }
 0x17b   : > { %v5348_v57 = vadd.f32 %v1450_v37, %v6556_v55  ;;  %v5351_v48 = vmul.f32 %v4690_v29, %v1213_v42  ;;  %v3900_v53 = vpop.eup %3899  ;;  %v2232_v52 = vsel %vm577_vm0, %v5317_v20, 0.0  ;;  %v1132_v60 = vmul.f32 %v5219_v36, %v5331_v0  ;;  %v6557_v42 = vld [vmem:[#allocation54_spill] sm:$0xff] }
 0x17c   : > { %v1233_v11 = vmul.f32 %v5225_v41, %v5333_v63  ;;  %v1333_v29 = vmul.f32 %v5362_v54, %v5335_v26  ;;  %v5367_v45 = vmul.f32 %v3898_v61, %v6557_v42  ;;  %v1334_v43 = vmul.f32 %v5362_v54, %v5345_v31  ;;  %v6562_v42 = vld [vmem:[#allocation50_spill] sm:$0xff] }
 0x17d   : > { %v5373_v16 = vmul.f32 %v5263_v49, %v5331_v0  ;;  %v1093_v15 = vld [vmem:[#allocation2 + $0x80] sm:$0xff]  ;;  %3903 = vrcp.f32 %v5255_v18  ;;  %3738 = vmatpush3.bf16.msra.mxu1 %v3737_v7  ;;  %v5380_v4 = vmul.f32 %v5322_v14, %v5333_v63  ;;  %v5389_v46 = vmul.f32 %v5385_v19, %v5335_v26  ;;  %v6560_v18 = vld [vmem:[#allocation55_spill] sm:$0xff] }
 0x17e   : > { %6558 = vst [vmem:[#allocation52_spill] sm:$0xff] %v5367_v45  ;;  %v1194_v1 = vld [vmem:[#allocation2 + $0x81] sm:$0xff]  ;;  %v1431_v2 = vmul.f32 %v5263_v49, %v1093_v15  ;;  %3905 = vpow2.f32 %v6559_v21  ;;  %3658 = vmatprep.subr.mxu1 %v6555_v58  ;;  %v5395_v30 = vmul.f32 %v3900_v53, %v6560_v18  ;;  %v2233_v7 = vadd.f32 %v2232_v52, %v5210_v10  ;;  %v6563_v18 = vld [vmem:[#allocation48_spill] sm:$0xff] }
 0x17f   : > { %v5375_v37 = vld [vmem:[#allocation2 + $0x7a] sm:$0xff]  ;;  %v5398_v61 = vld [vmem:[#allocation2 + $0x82] sm:$0xff]  ;;  %3907 = vrcp.f32 %v898_v56  ;;  %v1532_v20 = vmul.f32 %v5322_v14, %v1194_v1  ;;  %v2234_v10 = vsel %vm577_vm0, %v5367_v45, 0.0  ;;  %v1265_v45 = vadd.f32 %v1233_v11, %v1132_v60 }
 0x180   : > { %6561 = vst [vmem:[#allocation60_spill] sm:$0xff] %v5395_v30  ;;  %v1632_v55 = vmul.f32 %v5385_v19, %v5375_v37  ;;  %v1463_v13 = vadd.f32 %v1431_v2, %v6562_v42  ;;  %v5407_v21 = vld [vmem:[%s6385_s3 + $0x6] ss:$0 sm:$0xff]  ;;  %3909 = vpow2.f32 %v6563_v18  ;;  %v1933_v56 = vmul.f32 %v4744_v12, %v5375_v37  ;;  %v5422_v58 = vld [vmem:[%s6385_s3 + $0x7] ss:$0 sm:$0xff] }
 0x181   : > { %v1732_v53 = vmul.f32 %v5407_v21, %v1093_v15  ;;  %3911 = vpow2.f32 %v6564_v51  ;;  %v1633_v42 = vmul.f32 %v5385_v19, %v5398_v61  ;;  %v1833_v18 = vmul.f32 %v5422_v58, %v1194_v1 }
 0x182   : > { %v1664_v52 = vadd.f32 %v1632_v55, %v1563_v50  ;;  %v1564_v2 = vadd.f32 %v1532_v20, %v1463_v13  ;;  %v1965_v55 = vadd.f32 %v1933_v56, %v1864_v27  ;;  %3913 = vpow2.f32 %v6565_v25  ;;  %v1516_v27 = vld [vmem:[#allocation2 + $0x181] sm:$0xff] }
 0x183   : > { %v1764_v5 = vadd.f32 %v1732_v53, %v5252_v9  ;;  %v3902_v51 = vpop.eup %3901  ;;  %v1734_v20 = vmul.f32 %v5407_v21, %v5331_v0  ;;  %v1934_v9 = vmul.f32 %v4744_v12, %v5398_v61  ;;  %v2235_v53 = vadd.f32 %v2234_v10, %v2233_v7 }
 0x184   : > { %v1765_v50 = vadd.f32 %v5241_v35, %v1664_v52  ;;  %v1665_v13 = vadd.f32 %v1633_v42, %v1564_v2  ;;  %v1835_v40 = vmul.f32 %v5422_v58, %v5333_v63  ;;  %v1935_v60 = vmul.f32 %v4744_v12, %v5335_v26 }
 0x185   : > { %v1865_v6 = vadd.f32 %v1833_v18, %v1764_v5  ;;  %v2236_v25 = vsel %vm577_vm0, %v5395_v30, 0.0  ;;  %v5439_v5 = vadd.f32 %v6542_v8, %v1965_v55  ;;  %v5443_v7 = vmul.f32 %v5385_v19, %v5345_v31 }
 0x186   : > { %v1866_v35 = vadd.f32 %v5248_v39, %v1765_v50  ;;  %v1766_v11 = vadd.f32 %v1734_v20, %v1665_v13  ;;  %v1130_v63 = vmul.f32 %v5219_v36, %v1093_v15  ;;  %v1231_v12 = vmul.f32 %v5225_v41, %v1194_v1  ;;  %v6566_v15 = vld [vmem:[#allocation58_spill] sm:$0xff]  ;;  %v6570_v13 = vld [vmem:[#allocation12_spill] sm:$0xff] }
 0x187   : > { %v1966_v0 = vadd.f32 %v1934_v9, %v1865_v6  ;;  %v3904_v52 = vpop.eup %3903  ;;  %v5448_v10 = vadd.f32 %v1333_v29, %v5245_v62  ;;  %v5450_v56 = vadd.f32 %v1334_v43, %v1265_v45  ;;  %v5455_v6 = vld [vmem:[%s6385_s3 + $0x8] ss:$0 sm:$0xff]  ;;  %v5460_v50 = vmul.f32 %v3902_v51, %v6566_v15  ;;  %v5512_v15 = vld [vmem:[#allocation2 + $0x171] sm:$0xff] }
 0x188   : > { %v1967_v26 = vadd.f32 %v1935_v60, %v1866_v35  ;;  %v3906_v39 = vpop.eup %3905  ;;  %v1936_v2 = vmul.f32 %v5455_v6, %v5345_v31  ;;  %v1867_v42 = vadd.f32 %v1835_v40, %v1766_v11  ;;  %v2237_v1 = vadd.f32 %v2236_v25, %v2235_v53  ;;  %v6572_v35 = vld [vmem:[#allocation13_spill] sm:$0xff] }
 0x189   : > { %v3908_v18 = vpop.eup %3907  ;;  %6567 = vst [vmem:[#allocation31_spill] sm:$0xff] %v5460_v50  ;;  %v5463_v55 = vadd.f32 %v6542_v8, %v1966_v0  ;;  %v5466_v62 = vmul.f32 %v5322_v14, %v1516_v27  ;;  %v1331_v45 = vmul.f32 %v5362_v54, %v5375_v37  ;;  %v2036_v40 = vsub.f32 0.0, %v5439_v5  ;;  %v1817_v0 = vld [vmem:[#allocation2 + $0x181] sm:$0xff] }
 0x18a   : > { %v3910_v29 = vpop.eup %3909  ;;  %v1968_v43 = vadd.f32 %v1936_v2, %v1867_v42  ;;  %v5471_v20 = vadd.f32 %v6542_v8, %v1967_v26  ;;  %v1263_v51 = vadd.f32 %v1231_v12, %v1130_v63  ;;  %v959_v9 = vmul.f32 %v3904_v52, %v6570_v13  ;;  %v5505_v2 = vld [vmem:[%s6386_s4] ss:$0 sm:$0xff] }
 0x18b   : > { %6568 = vst [vmem:[#allocation8_spill] sm:$0xff] %v5463_v55  ;;  %v3912_v31 = vpop.eup %3911  ;;  %v5477_v53 = vadd.f32 %v5329_v38, %v5348_v57  ;;  %v5481_v60 = vmul.f32 %v5407_v21, %v5282_v22  ;;  %v962_v25 = vmul.f32 %v3908_v18, %v6572_v35  ;;  %v896_v27 = vadd.f32 1.0, %v3906_v39  ;;  %6574 = vst [vmem:[#allocation10_spill] sm:$0xff] %v5505_v2  ;;  %v1113_v18 = vld [vmem:[#allocation2 + $0x170] sm:$0xff] }
 0x18c   : > { %6569 = vst [vmem:[#allocation62_spill] sm:$0xff] %v5471_v20  ;;  %v5484_v37 = vadd.f32 %v6542_v8, %v1968_v43  ;;  %v1783_v11 = vadd.f32 %v5343_v23, %v5258_v28  ;;  %v3914_v63 = vpop.eup %3913  ;;  %v1332_v52 = vmul.f32 %v5362_v54, %v5398_v61  ;;  %v2037_v38 = vsub.f32 0.0, %v5463_v55  ;;  %1053 = vst.msk [vmem:[#allocation2 + $0xa9] sm:$0xff] %vm577_vm0, %v959_v9  ;;  %v6573_v28 = vld [vmem:[#allocation18_spill] sm:$0xff]  ;;  %v6586_v55 = vld [vmem:[#allocation21_spill] sm:$0xff] }
 0x18d   : > { %v2238_v22 = vsel %vm577_vm0, %v5460_v50, 0.0  ;;  %v901_v8 = vadd.f32 1.0, %v3910_v29  ;;  %v1363_v57 = vadd.f32 %v1331_v45, %v5326_v32  ;;  %v2038_v12 = vsub.f32 0.0, %v5471_v20  ;;  %1057 = vst.msk [vmem:[#allocation2 + $0xc9] sm:$0xff] %vm577_vm0, %v962_v25  ;;  %v1517_v35 = vld [vmem:[#allocation2 + $0x189] sm:$0xff] }
 0x18e   : > { %6571 = vst [vmem:[#allocation9_spill] sm:$0xff] %v5484_v37  ;;  %v2074_v26 = vmul.f32 1.442695, %v2036_v40  ;;  %3915 = vpow2.f32 %v6573_v28  ;;  %v1364_v23 = vadd.f32 %v1332_v52, %v1263_v51  ;;  %v899_v39 = vadd.f32 1.0, %v3912_v31  ;;  %v5520_v31 = vld [vmem:[#allocation2 + $0x16a] sm:$0xff]  ;;  %v5533_v52 = vld [vmem:[#allocation2 + $0x172] sm:$0xff] }
 0x18f   : > { %v5500_v61 = vmul.f32 %v5422_v58, %v1817_v0  ;;  %v5509_v32 = vadd.f32 %v5505_v2, %v5277_v44  ;;  %v2039_v42 = vsub.f32 0.0, %v5484_v37  ;;  %3917 = vrcp.f32 %v896_v27  ;;  %v1416_v51 = vld [vmem:[#allocation2 + $0x188] sm:$0xff]  ;;  %v1098_v0 = vld [vmem:[#allocation2 + $0xc0] sm:$0xff] }
 0x190   : > { %v902_v29 = vadd.f32 1.0, %v3914_v63  ;;  %v5516_v45 = vadd.f32 %v5505_v2, %v5287_v34  ;;  %v2076_v43 = vmul.f32 1.442695, %v2037_v38  ;;  %v5518_v40 = vadd.f32 %v2238_v22, %v2237_v1  ;;  %v1199_v63 = vld [vmem:[#allocation2 + $0xc1] sm:$0xff] }
 0x191   : > { %6575 = vst [vmem:[#allocation11_spill] sm:$0xff] %v5509_v32  ;;  %3919 = vrcp.f32 %v901_v8  ;;  %v5523_v44 = vadd.f32 %v5351_v48, %v1783_v11  ;;  %v1464_v13 = vadd.f32 %v5234_v33, %v1363_v57  ;;  %v2078_v9 = vmul.f32 1.442695, %v2038_v12  ;;  %v5531_v48 = vld [vmem:[#allocation2 + $0x182] sm:$0xff] }
 0x192   : > { %6576 = vst [vmem:[#allocation15_spill] sm:$0xff] %v5516_v45  ;;  %6577 = vst [vmem:[#allocation16_spill] sm:$0xff] %v5518_v40  ;;  %3921 = vpow2.f32 %v2074_v26  ;;  %v1465_v34 = vadd.f32 %v5373_v16, %v1364_v23  ;;  %v1150_v27 = vmul.f32 %v5219_v36, %v1113_v18  ;;  %v1251_v1 = vmul.f32 %v5225_v41, %v5512_v15  ;;  %v1717_v20 = vld [vmem:[#allocation2 + $0x188] sm:$0xff] }
 0x193   : > { %6578 = vst [vmem:[#allocation61_spill] sm:$0xff] %v5523_v44  ;;  %3923 = vrcp.f32 %v899_v39  ;;  %v2080_v11 = vmul.f32 1.442695, %v2039_v42  ;;  %v1351_v33 = vmul.f32 %v5362_v54, %v5520_v31  ;;  %v6579_v38 = vsub.f32 0.0, %v5270_v17  ;;  %v1197_v59 = vld [vmem:[#allocation2 + $0xa9] sm:$0xff] }
 0x194   : > { %3925 = vrcp.f32 %v902_v29  ;;  %v1451_v22 = vmul.f32 %v5263_v49, %v1113_v18  ;;  %v1453_v8 = vmul.f32 %v5263_v49, %v1416_v51  ;;  %v5544_v57 = vmul.f32 %v5322_v14, %v1517_v35  ;;  %v5581_v30 = vld [vmem:[#allocation2 + $0xc8] sm:$0xff] }
 0x195   : > { %v5539_v16 = vmul.f32 1.442695, %v6579_v38  ;;  %3927 = vpow2.f32 %v2076_v43  ;;  %v1135_v12 = vmul.f32 %v5219_v36, %v1098_v0  ;;  %v1236_v26 = vmul.f32 %v5225_v41, %v1199_v63  ;;  %v5583_v17 = vld [vmem:[#allocation2 + $0xc9] sm:$0xff] }
 0x196   : > { %3929 = vpow2.f32 %v2078_v9  ;;  %v5550_v28 = vmul.f32 %v5385_v19, %v5531_v48  ;;  %v1352_v23 = vmul.f32 %v5362_v54, %v5533_v52  ;;  %v1565_v39 = vadd.f32 %v5237_v47, %v1464_v13  ;;  %v1300_v45 = vld [vmem:[#allocation2 + $0xc2] sm:$0xff] }
 0x197   : > { %6580 = vst [vmem:[#allocation54_spill] sm:$0xff] %v5539_v16  ;;  %v1566_v42 = vadd.f32 %v5380_v4, %v1465_v34  ;;  %v1283_v29 = vadd.f32 %v1251_v1, %v1150_v27  ;;  %3931 = vpow2.f32 %v2080_v11  ;;  %v1552_v51 = vmul.f32 %v5322_v14, %v5512_v15  ;;  %v1096_v4 = vld [vmem:[#allocation2 + $0xa8] sm:$0xff]  ;;  %v6583_v16 = vld [vmem:[#allocation47_spill] sm:$0xff] }
 0x198   : > { %v3916_v43 = vpop.eup %3915  ;;  %v1383_v9 = vadd.f32 %v1351_v33, %v5340_v24  ;;  %v5560_v38 = vmul.f32 %v5422_v58, %v1517_v35  ;;  %v1652_v25 = vmul.f32 %v5385_v19, %v5520_v31  ;;  %v1752_v50 = vmul.f32 %v5407_v21, %v1113_v18  ;;  %v5569_v34 = vld [vmem:[#allocation2 + $0x18a] sm:$0xff] }
 0x199   : > { %v5566_v47 = vmul.f32 %v5263_v49, %v1098_v0  ;;  %v1483_v13 = vadd.f32 %v1451_v22, %v5206_v3  ;;  %v3918_v27 = vpop.eup %3917  ;;  %v1268_v1 = vadd.f32 %v1236_v26, %v1135_v12  ;;  %v5572_v24 = vmul.f32 %v5322_v14, %v1199_v63 }
 0x19a   : > { %v5575_v35 = vmul.f32 %v5407_v21, %v1098_v0  ;;  %v5578_v11 = vmul.f32 %v5422_v58, %v1199_v63  ;;  %v1666_v33 = vadd.f32 %v5389_v46, %v1565_v39  ;;  %v5586_v3 = vadd.f32 %v5443_v7, %v1566_v42  ;;  %v6584_v7 = vld [vmem:[#allocation14_spill] sm:$0xff] }
 0x19b   : > { %6581 = vst [vmem:[#allocation24_spill] sm:$0xff] %v5566_v47  ;;  %6582 = vst [vmem:[#allocation55_spill] sm:$0xff] %v5572_v24  ;;  %v3920_v18 = vpop.eup %3919  ;;  %v5588_v22 = vadd.f32 1.0, %v3916_v43  ;;  %v1384_v12 = vadd.f32 %v1352_v23, %v1283_v29  ;;  %v1434_v0 = vmul.f32 %v5263_v49, %v1096_v4  ;;  %v1484_v63 = vadd.f32 %v6583_v16, %v1383_v9  ;;  %v6585_v43 = vld [vmem:[#allocation17_spill] sm:$0xff] }
 0x19c   : > { %v3922_v26 = vpop.eup %3921  ;;  %v1653_v37 = vmul.f32 %v5385_v19, %v5533_v52  ;;  %v5596_v46 = vmul.f32 %v5385_v19, %v5569_v34  ;;  %v960_v42 = vmul.f32 %v3918_v27, %v6584_v7  ;;  %v965_v24 = vmul.f32 %v3920_v18, %v6585_v43  ;;  %v1301_v43 = vld [vmem:[#allocation2 + $0xca] sm:$0xff] }
 0x19d   : > { %v3924_v39 = vpop.eup %3923  ;;  %v1584_v23 = vadd.f32 %v1552_v51, %v1483_v13  ;;  %v1684_v29 = vadd.f32 %v1652_v25, %v5477_v53  ;;  %v1133_v16 = vmul.f32 %v5219_v36, %v1096_v4  ;;  %v1136_v9 = vmul.f32 %v5219_v36, %v5581_v30  ;;  %v6587_v53 = vld [vmem:[#allocation7_spill] sm:$0xff] }
 0x19e   : > { %v3926_v40 = vpop.eup %3925  ;;  %v1237_v47 = vmul.f32 %v5225_v41, %v5583_v17  ;;  %v963_v32 = vmul.f32 %v3924_v39, %v6586_v55  ;;  %v2132_v2 = vadd.f32 1.0, %v3922_v26  ;;  %v1234_v27 = vmul.f32 %v5225_v41, %v1197_v59  ;;  %1054 = vst.msk [vmem:[#allocation2 + $0xb1] sm:$0xff] %vm577_vm0, %v960_v42  ;;  %1062 = vst.msk [vmem:[#allocation2 + $0xf1] sm:$0xff] %vm577_vm0, %v965_v24  ;;  %v6588_v24 = vld [vmem:[#allocation23_spill] sm:$0xff] }
 0x19f   : > { %v3928_v44 = vpop.eup %3927  ;;  %v1735_v51 = vmul.f32 %v5407_v21, %v1096_v4  ;;  %v966_v25 = vmul.f32 %v3926_v40, %v6587_v53  ;;  %v1466_v18 = vadd.f32 %v1434_v0, %v5448_v10  ;;  %v1337_v7 = vmul.f32 %v5362_v54, %v1300_v45 }
 0x1a0   : > { %v3930_v13 = vpop.eup %3929  ;;  %1059 = vst.msk [vmem:[#allocation2 + $0xd9] sm:$0xff] %vm577_vm0, %v963_v32  ;;  %v1485_v55 = vadd.f32 %v1453_v8, %v1384_v12  ;;  %v1754_v26 = vmul.f32 %v5407_v21, %v1717_v20  ;;  %v1585_v4 = vadd.f32 %v5466_v62, %v1484_v63  ;;  %v1685_v42 = vadd.f32 %v1653_v37, %v1584_v23 }
 0x1a1   : > { %v1767_v39 = vadd.f32 %v1735_v51, %v1666_v33  ;;  %1063 = vst.msk [vmem:[#allocation2 + $0xf9] sm:$0xff] %vm577_vm0, %v966_v25  ;;  %v1784_v41 = vadd.f32 %v1752_v50, %v6588_v24  ;;  %v3932_v40 = vpop.eup %3931  ;;  %v2133_v53 = vadd.f32 1.0, %v3928_v44  ;;  %v1535_v10 = vmul.f32 %v5322_v14, %v1197_v59 }
 0x1a2   : > { %v1269_v0 = vadd.f32 %v1237_v47, %v1136_v9  ;;  %v1785_v36 = vadd.f32 %v5481_v60, %v1684_v29  ;;  %v2134_v32 = vadd.f32 1.0, %v3930_v13  ;;  %3933 = vrcp.f32 %v2132_v2 }
 0x1a3   : > { %v5621_v8 = vadd.f32 %v1234_v27, %v1133_v16  ;;  %v1836_v20 = vmul.f32 %v5422_v58, %v1197_v59  ;;  %v1567_v33 = vadd.f32 %v1535_v10, %v1466_v18  ;;  %v1338_v12 = vmul.f32 %v5362_v54, %v1301_v43 }
 0x1a4   : > { %v5625_v62 = vadd.f32 %v1337_v7, %v1268_v1  ;;  %v5629_v50 = vmul.f32 %v5263_v49, %v5581_v30  ;;  %v2135_v37 = vadd.f32 1.0, %v3932_v40  ;;  %v5633_v60 = vmul.f32 %v5322_v14, %v5583_v17 }
 0x1a5   : > { %v1868_v44 = vadd.f32 %v1836_v20, %v1767_v39  ;;  %v5636_v2 = vmul.f32 %v5385_v19, %v1300_v45  ;;  %3935 = vrcp.f32 %v2133_v53  ;;  %v5638_v59 = vadd.f32 %v1338_v12, %v1269_v0  ;;  %v1097_v1 = vld [vmem:[#allocation2 + $0xb0] sm:$0xff] }
 0x1a6   : > { %v5641_v47 = vmul.f32 %v5385_v19, %v1301_v43  ;;  %v1586_v63 = vadd.f32 %v5544_v57, %v1485_v55  ;;  %3937 = vrcp.f32 %v2134_v32  ;;  %v1738_v23 = vmul.f32 %v5407_v21, %v5581_v30  ;;  %v1198_v29 = vld [vmem:[#allocation2 + $0xb1] sm:$0xff] }
 0x1a7   : > { %v1298_v16 = vld [vmem:[#allocation2 + $0xaa] sm:$0xff]  ;;  %v1686_v9 = vadd.f32 %v5550_v28, %v1585_v4  ;;  %v1786_v27 = vadd.f32 %v1754_v26, %v1685_v42  ;;  %v1839_v51 = vmul.f32 %v5422_v58, %v5583_v17  ;;  %v1939_v25 = vmul.f32 %v5455_v6, %v1300_v45  ;;  %v5653_v18 = vld [vmem:[#allocation2 + $0xb2] sm:$0xff] }
 0x1a8   : > { %v1435_v13 = vmul.f32 %v5263_v49, %v1097_v1  ;;  %3939 = vrcp.f32 %v5588_v22  ;;  %v1940_v57 = vmul.f32 %v5455_v6, %v1301_v43  ;;  %v1853_v30 = vmul.f32 %v5422_v58, %v5512_v15  ;;  %v6589_v26 = vld [vmem:[#allocation19_spill] sm:$0xff] }
 0x1a9   : > { %3941 = vrcp.f32 %v2135_v37  ;;  %v1886_v28 = vadd.f32 %v5500_v61, %v1785_v36  ;;  %v1536_v17 = vmul.f32 %v5322_v14, %v1198_v29  ;;  %v1636_v45 = vmul.f32 %v5385_v19, %v1298_v16 }
 0x1aa   : > { %v1467_v7 = vadd.f32 %v1435_v13, %v5450_v56  ;;  %v1687_v55 = vadd.f32 %v5596_v46, %v1586_v63  ;;  %v1736_v22 = vmul.f32 %v5407_v21, %v1097_v1  ;;  %v1787_v39 = vadd.f32 %v6589_v26, %v1686_v9  ;;  %v6592_v13 = vld [vmem:[#allocation53_spill] sm:$0xff] }
 0x1ab   : > { %v1887_v43 = vadd.f32 %v5560_v38, %v1786_v27  ;;  %v1953_v4 = vmul.f32 %v5455_v6, %v5520_v31  ;;  %v1637_v36 = vmul.f32 %v5385_v19, %v5653_v18  ;;  %v1668_v56 = vadd.f32 %v1636_v45, %v1567_v33 }
 0x1ac   : > { %v1568_v15 = vadd.f32 %v1536_v17, %v1467_v7  ;;  %v1937_v61 = vmul.f32 %v5455_v6, %v1298_v16  ;;  %v3934_v42 = vpop.eup %3933  ;;  %v1335_v24 = vmul.f32 %v5362_v54, %v1298_v16  ;;  %v1768_v46 = vadd.f32 %v1736_v22, %v5586_v3  ;;  %v5691_v16 = vld [vmem:[#allocation2 + $0xf1] sm:$0xff] }
 0x1ad   : > { %v1837_v40 = vmul.f32 %v5422_v58, %v1198_v29  ;;  %v1885_v53 = vadd.f32 %v1853_v30, %v1784_v41  ;;  %v1769_v38 = vadd.f32 %v5575_v35, %v1668_v56  ;;  %v1954_v31 = vmul.f32 %v5455_v6, %v5533_v52  ;;  %v5689_v52 = vld [vmem:[#allocation2 + $0xf0] sm:$0xff]  ;;  %v6593_v30 = vld [vmem:[#allocation61_spill] sm:$0xff]  ;;  %v6596_v56 = vld [vmem:[#allocation20_spill] sm:$0xff] }
 0x1ae   : > { %v1669_v10 = vadd.f32 %v1637_v36, %v1568_v15  ;;  %v1969_v0 = vadd.f32 %v1937_v61, %v1868_v44  ;;  %v1938_v20 = vmul.f32 %v5455_v6, %v5653_v18  ;;  %v1955_v33 = vmul.f32 %v5455_v6, %v5531_v48  ;;  %v6591_v44 = vld [vmem:[#allocation10_spill] sm:$0xff]  ;;  %v6597_v61 = vld [vmem:[#allocation11_spill] sm:$0xff] }
 0x1af   : > { %v1869_v32 = vadd.f32 %v1837_v40, %v1768_v46  ;;  %v1956_v3 = vmul.f32 %v5455_v6, %v5569_v34  ;;  %v3936_v12 = vpop.eup %3935  ;;  %v5683_v41 = vmul.f32 %v3934_v42, %v5439_v5  ;;  %v1870_v35 = vadd.f32 %v5578_v11, %v1769_v38  ;;  %v6595_v11 = vld [vmem:[#allocation4_spill] sm:$0xff] }
 0x1b0   : > { %v1770_v37 = vadd.f32 %v1738_v23, %v1669_v10  ;;  %v5687_v63 = vadd.f32 %v6591_v44, %v1969_v0  ;;  %v3938_v9 = vpop.eup %3937  ;;  %v1367_v48 = vadd.f32 %v1335_v24, %v5621_v8  ;;  %v5695_v34 = vadd.f32 %v6592_v13, %v1687_v55  ;;  %v6594_v23 = vld [vmem:[#allocation3_spill] sm:$0xff]  ;;  %v5714_v24 = vld [vmem:[#allocation2 + $0xf8] sm:$0xff] }
 0x1b1   : > { %6590 = vst [vmem:[#allocation50_spill] sm:$0xff] %v5683_v41  ;;  %v1970_v27 = vadd.f32 %v1938_v20, %v1869_v32  ;;  %v1985_v5 = vadd.f32 %v1953_v4, %v6593_v30  ;;  %v1134_v17 = vmul.f32 %v6594_v23, %v1097_v1  ;;  %v1235_v45 = vmul.f32 %v6595_v11, %v1198_v29  ;;  %v6598_v46 = vld [vmem:[#allocation8_spill] sm:$0xff] }
 0x1b2   : > { %v3940_v7 = vpop.eup %3939  ;;  %v1871_v22 = vadd.f32 %v1839_v51, %v1770_v37  ;;  %v2040_v26 = vsub.f32 0.0, %v5687_v63  ;;  %v1139_v36 = vmul.f32 %v6594_v23, %v5689_v52  ;;  %v1240_v8 = vmul.f32 %v6595_v11, %v5691_v16  ;;  %v6600_v10 = vld [vmem:[#allocation24_spill] sm:$0xff] }
 0x1b3   : > { %v3942_v15 = vpop.eup %3941  ;;  %v5706_v55 = vadd.f32 %v6596_v56, %v1787_v39  ;;  %v2240_v1 = vsel %vm577_vm0, %v5683_v41, 0.0  ;;  %v1971_v42 = vadd.f32 %v1939_v25, %v1870_v35  ;;  %v5712_v29 = vadd.f32 %v6591_v44, %v1970_v27  ;;  %v5720_v0 = vld [vmem:[#allocation2 + $0xf9] sm:$0xff] }
 0x1b4   : > { %v2082_v51 = vmul.f32 1.442695, %v2040_v26  ;;  %v5717_v40 = vmul.f32 %v3936_v12, %v6598_v46  ;;  %v1468_v38 = vadd.f32 %v6600_v10, %v1367_v48  ;;  %v1986_v39 = vadd.f32 %v1954_v31, %v1885_v53  ;;  %v5724_v13 = vld [vmem:[#allocation2 + $0xf2] sm:$0xff]  ;;  %v5734_v26 = vld [vmem:[#allocation2 + $0xfa] sm:$0xff] }
 0x1b5   : > { %v5722_v32 = vadd.f32 %v1955_v33, %v1886_v28  ;;  %v1267_v20 = vadd.f32 %v1235_v45, %v1134_v17  ;;  %v1972_v37 = vadd.f32 %v1940_v57, %v1871_v22  ;;  %v5726_v25 = vadd.f32 %v1956_v3, %v1887_v43  ;;  %v6601_v27 = vld [vmem:[#allocation16_spill] sm:$0xff]  ;;  %v6602_v33 = vld [vmem:[#allocation62_spill] sm:$0xff]  ;;  %v6604_v17 = vld [vmem:[#allocation55_spill] sm:$0xff] }
 0x1b6   : > { %6599 = vst [vmem:[#allocation48_spill] sm:$0xff] %v5717_v40  ;;  %v5729_v35 = vadd.f32 %v6591_v44, %v1985_v5  ;;  %v2241_v30 = vadd.f32 %v2240_v1, %v6601_v27  ;;  %3943 = vpow2.f32 %v2082_v51  ;;  %v1272_v12 = vadd.f32 %v1240_v8, %v1139_v36  ;;  %v1100_v53 = vld [vmem:[#allocation2 + $0xd8] sm:$0xff]  ;;  %v6606_v51 = vld [vmem:[#allocation15_spill] sm:$0xff] }
 0x1b7   : > { %v1140_v48 = vmul.f32 %v6594_v23, %v5714_v24  ;;  %v1336_v28 = vmul.f32 %v5362_v54, %v5653_v18  ;;  %v5739_v57 = vadd.f32 %v6591_v44, %v1971_v42  ;;  %v2041_v43 = vsub.f32 0.0, %v5712_v29  ;;  %v1201_v27 = vld [vmem:[#allocation2 + $0xd9] sm:$0xff] }
 0x1b8   : > { %v1241_v31 = vmul.f32 %v6595_v11, %v5720_v0  ;;  %v5745_v3 = vmul.f32 %v3938_v9, %v6602_v33  ;;  %v2242_v5 = vsel %vm577_vm0, %v5717_v40, 0.0  ;;  %v1569_v45 = vadd.f32 %v6604_v17, %v1468_v38  ;;  %v6608_v33 = vld [vmem:[#allocation32_spill] sm:$0xff] }
 0x1b9   : > { %v1341_v18 = vmul.f32 %v5362_v54, %v5724_v13  ;;  %v1368_v22 = vadd.f32 %v1336_v28, %v1267_v20  ;;  %v5753_v36 = vadd.f32 %v6591_v44, %v1972_v37  ;;  %v1342_v56 = vmul.f32 %v5362_v54, %v5734_v26  ;;  %v6610_v4 = vld [vmem:[#allocation28_spill] sm:$0xff] }
 0x1ba   : > { %6603 = vst [vmem:[#allocation49_spill] sm:$0xff] %v5745_v3  ;;  %v1273_v8 = vadd.f32 %v1241_v31, %v1140_v48  ;;  %v1438_v1 = vmul.f32 %v5263_v49, %v1100_v53  ;;  %v5759_v42 = vadd.f32 %v6591_v44, %v1986_v39  ;;  %v5762_v10 = vadd.f32 %v2242_v5, %v2241_v30  ;;  %v6607_v31 = vld [vmem:[#allocation27_spill] sm:$0xff] }
 0x1bb   : > { %6605 = vst [vmem:[#allocation34_spill] sm:$0xff] %v5753_v36  ;;  %v1373_v9 = vadd.f32 %v1341_v18, %v1272_v12  ;;  %v2042_v38 = vsub.f32 0.0, %v5739_v57  ;;  %v2084_v20 = vmul.f32 1.442695, %v2041_v43  ;;  %v5767_v48 = vsel %vm577_vm0, %v5745_v3, 0.0  ;;  %v6609_v18 = vld [vmem:[#allocation39_spill] sm:$0xff] }
 0x1bc   : > { %v1374_v37 = vadd.f32 %v1342_v56, %v1273_v8  ;;  %v1670_v28 = vadd.f32 %v5636_v2, %v1569_v45  ;;  %v964_v39 = vmul.f32 %v3940_v7, %v6608_v33  ;;  %v1469_v17 = vadd.f32 %v5629_v50, %v1368_v22  ;;  %v6611_v45 = vld [vmem:[#allocation9_spill] sm:$0xff]  ;;  %v6612_v22 = vld [vmem:[#allocation40_spill] sm:$0xff] }
 0x1bd   : > { %v1474_v12 = vadd.f32 %v6607_v31, %v1373_v9  ;;  %v2043_v30 = vsub.f32 0.0, %v5753_v36  ;;  %v1137_v5 = vmul.f32 %v6594_v23, %v1100_v53  ;;  %v1238_v8 = vmul.f32 %v6595_v11, %v1201_v27 }
 0x1be   : > { %v1475_v43 = vadd.f32 %v6609_v18, %v1374_v37  ;;  %v1470_v56 = vadd.f32 %v1438_v1, %v5625_v62  ;;  %v1739_v46 = vmul.f32 %v5407_v21, %v1100_v53  ;;  %1060 = vst.msk [vmem:[#allocation2 + $0xe1] sm:$0xff] %vm577_vm0, %v964_v39  ;;  %v5782_v7 = vmul.f32 %v3942_v15, %v6611_v45  ;;  %v6613_v1 = vld [vmem:[#allocation41_spill] sm:$0xff] }
 0x1bf   : > { %v1575_v2 = vadd.f32 %v6610_v4, %v1474_v12  ;;  %3945 = vpow2.f32 %v2084_v20  ;;  %v2086_v50 = vmul.f32 1.442695, %v2042_v38  ;;  %v1440_v37 = vmul.f32 %v5263_v49, %v5689_v52 }
 0x1c0   : > { %v1576_v9 = vadd.f32 %v6612_v22, %v1475_v43  ;;  %v3944_v31 = vpop.eup %3943  ;;  %v1539_v33 = vmul.f32 %v5322_v14, %v1201_v27  ;;  %v1771_v62 = vadd.f32 %v1739_v46, %v1670_v28  ;;  %v2088_v18 = vmul.f32 1.442695, %v2043_v30  ;;  %v6614_v30 = vld [vmem:[#allocation42_spill] sm:$0xff] }
 0x1c1   : > { %v1676_v53 = vadd.f32 %v6613_v1, %v1575_v2  ;;  %v1541_v4 = vmul.f32 %v5322_v14, %v5691_v16  ;;  %v1741_v15 = vmul.f32 %v5407_v21, %v5689_v52  ;;  %v1842_v38 = vmul.f32 %v5422_v58, %v5691_v16 }
 0x1c2   : > { %v1270_v20 = vadd.f32 %v1238_v8, %v1137_v5  ;;  %v1571_v12 = vadd.f32 %v1539_v33, %v1470_v56  ;;  %v1840_v39 = vmul.f32 %v5422_v58, %v1201_v27  ;;  %v1570_v43 = vadd.f32 %v5633_v60, %v1469_v17  ;;  %v6615_v5 = vld [vmem:[#allocation25_spill] sm:$0xff] }
 0x1c3   : > { %3947 = vpow2.f32 %v2086_v50  ;;  %v2136_v46 = vadd.f32 1.0, %v3944_v31  ;;  %v1441_v28 = vmul.f32 %v5263_v49, %v5714_v24  ;;  %v1677_v2 = vadd.f32 %v6614_v30, %v1576_v9 }
 0x1c4   : > { %v1872_v45 = vadd.f32 %v1840_v39, %v1771_v62  ;;  %v1542_v52 = vmul.f32 %v5322_v14, %v5720_v0  ;;  %v1642_v16 = vmul.f32 %v5385_v19, %v5724_v13  ;;  %v1777_v8 = vadd.f32 %v6615_v5, %v1676_v53  ;;  %v6616_v53 = vld [vmem:[#allocation35_spill] sm:$0xff] }
 0x1c5   : > { %3949 = vpow2.f32 %v2088_v18  ;;  %v1643_v60 = vmul.f32 %v5385_v19, %v5734_v26  ;;  %v1742_v27 = vmul.f32 %v5407_v21, %v5714_v24  ;;  %v1843_v17 = vmul.f32 %v5422_v58, %v5720_v0  ;;  %v1101_v56 = vld [vmem:[#allocation2 + $0xe0] sm:$0xff] }
 0x1c6   : > { %v1202_v50 = vld [vmem:[#allocation2 + $0xe1] sm:$0xff]  ;;  %v1943_v9 = vmul.f32 %v5455_v6, %v5724_v13  ;;  %v1138_v31 = vmul.f32 %v6594_v23, %v1101_v56  ;;  %v1671_v1 = vadd.f32 %v5641_v47, %v1570_v43  ;;  %3951 = vrcp.f32 %v2136_v46 }
 0x1c7   : > { %v1302_v22 = vld [vmem:[#allocation2 + $0xda] sm:$0xff]  ;;  %v1239_v33 = vmul.f32 %v6595_v11, %v1202_v50  ;;  %v1303_v62 = vld [vmem:[#allocation2 + $0xe2] sm:$0xff]  ;;  %v1778_v18 = vadd.f32 %v6616_v53, %v1677_v2  ;;  %v1439_v0 = vmul.f32 %v5263_v49, %v1101_v56  ;;  %v1540_v47 = vmul.f32 %v5322_v14, %v1202_v50 }
 0x1c8   : > { %v1339_v24 = vmul.f32 %v5362_v54, %v1302_v22  ;;  %v1340_v30 = vmul.f32 %v5362_v54, %v1303_v62  ;;  %v1640_v5 = vmul.f32 %v5385_v19, %v1302_v22  ;;  %v6617_v13 = vld [vmem:[#allocation26_spill] sm:$0xff]  ;;  %v1740_v43 = vmul.f32 %v5407_v21, %v1101_v56 }
 0x1c9   : > { %v1271_v39 = vadd.f32 %v1239_v33, %v1138_v31  ;;  %v1878_v3 = vadd.f32 %v6617_v13, %v1777_v8  ;;  %v3946_v23 = vpop.eup %3945  ;;  %v1471_v11 = vadd.f32 %v1439_v0, %v5638_v59  ;;  %v1641_v2 = vmul.f32 %v5385_v19, %v1303_v62 }
 0x1ca   : > { %v1371_v40 = vadd.f32 %v1339_v24, %v1270_v20  ;;  %v1672_v53 = vadd.f32 %v1640_v5, %v1571_v12  ;;  %v1941_v49 = vmul.f32 %v5455_v6, %v1302_v22  ;;  %v1772_v33 = vadd.f32 %v1740_v43, %v1671_v1 }
 0x1cb   : > { %v1372_v46 = vadd.f32 %v1340_v30, %v1271_v39  ;;  %v1572_v54 = vadd.f32 %v1540_v47, %v1471_v11  ;;  %v1841_v41 = vmul.f32 %v5422_v58, %v1202_v50  ;;  %v2137_v8 = vadd.f32 1.0, %v3946_v23  ;;  %v6620_v39 = vld [vmem:[#allocation29_spill] sm:$0xff] }
 0x1cc   : > { %v1472_v31 = vadd.f32 %v1440_v37, %v1371_v40  ;;  %v1773_v20 = vadd.f32 %v1741_v15, %v1672_v53  ;;  %v1973_v24 = vadd.f32 %v1941_v49, %v1872_v45  ;;  %v1942_v21 = vmul.f32 %v5455_v6, %v1303_v62  ;;  %v6618_v40 = vld [vmem:[#allocation36_spill] sm:$0xff]  ;;  %v6626_v53 = vld [vmem:[#allocation45_spill] sm:$0xff] }
 0x1cd   : > { %v1473_v13 = vadd.f32 %v1441_v28, %v1372_v46  ;;  %v3948_v59 = vpop.eup %3947  ;;  %v1673_v14 = vadd.f32 %v1641_v2, %v1572_v54  ;;  %v1873_v36 = vadd.f32 %v1841_v41, %v1772_v33  ;;  %v1879_v37 = vadd.f32 %v6618_v40, %v1778_v18  ;;  %v6619_v28 = vld [vmem:[#allocation37_spill] sm:$0xff] }
 0x1ce   : > { %v1573_v0 = vadd.f32 %v1541_v4, %v1472_v31  ;;  %v1874_v19 = vadd.f32 %v1842_v38, %v1773_v20  ;;  %v5830_v12 = vadd.f32 %v6591_v44, %v1973_v24  ;;  %v1979_v15 = vadd.f32 %v6619_v28, %v1878_v3 }
 0x1cf   : > { %v1574_v56 = vadd.f32 %v1542_v52, %v1473_v13  ;;  %v3950_v22 = vpop.eup %3949  ;;  %v1774_v58 = vadd.f32 %v1742_v27, %v1673_v14  ;;  %v1974_v50 = vadd.f32 %v1942_v21, %v1873_v36  ;;  %v2245_v4 = vadd.f32 %v5767_v48, %v5762_v10  ;;  %v6621_v36 = vld [vmem:[#allocation43_spill] sm:$0xff]  ;;  %v6622_v48 = vld [vmem:[#allocation30_spill] sm:$0xff] }
 0x1d0   : > { %v1674_v1 = vadd.f32 %v1642_v16, %v1573_v0  ;;  %v1944_v41 = vmul.f32 %v5455_v6, %v5734_v26  ;;  %v1975_v52 = vadd.f32 %v1943_v9, %v1874_v19  ;;  %v3952_v38 = vpop.eup %3951  ;;  %v2138_v62 = vadd.f32 1.0, %v3948_v59  ;;  %v6623_v26 = vld [vmem:[#allocation38_spill] sm:$0xff]  ;;  %v6628_v59 = vld [vmem:[#allocation59_spill] sm:$0xff] }
 0x1d1   : > { %v1675_v45 = vadd.f32 %v1643_v60, %v1574_v56  ;;  %v1875_v5 = vadd.f32 %v1843_v17, %v1774_v58  ;;  %v5840_v18 = vadd.f32 %v6591_v44, %v1974_v50  ;;  %3953 = vrcp.f32 %v2137_v8  ;;  %v6624_v9 = vld [vmem:[#allocation54_spill] sm:$0xff]  ;;  %v6625_v17 = vld [vmem:[#allocation44_spill] sm:$0xff] }
 0x1d2   : > { %v1775_v30 = vadd.f32 %v6620_v39, %v1674_v1  ;;  %v5844_v3 = vadd.f32 %v6591_v44, %v1975_v52  ;;  %v2044_v10 = vsub.f32 0.0, %v5830_v12  ;;  %v1980_v60 = vadd.f32 %v6623_v26, %v1879_v37  ;;  %v6627_v8 = vld [vmem:[#allocation46_spill] sm:$0xff] }
 0x1d3   : > { %v1776_v16 = vadd.f32 %v6621_v36, %v1675_v45  ;;  %v5850_v27 = vadd.f32 %v6591_v44, %v1979_v15  ;;  %3955 = vpow2.f32 %v6624_v9  ;;  %v1976_v11 = vadd.f32 %v1944_v41, %v1875_v5  ;;  %v6630_v5 = vld [vmem:[#allocation22_spill] sm:$0xff] }
 0x1d4   : > { %v1876_v6 = vadd.f32 %v6622_v48, %v1775_v30  ;;  %v2045_v47 = vsub.f32 0.0, %v5840_v18  ;;  %v2046_v43 = vsub.f32 0.0, %v5844_v3  ;;  %v2139_v46 = vadd.f32 1.0, %v3950_v22 }
 0x1d5   : > { %v1877_v23 = vadd.f32 %v6625_v17, %v1776_v16  ;;  %3957 = vrcp.f32 %v2138_v62  ;;  %v2090_v2 = vmul.f32 1.442695, %v2044_v10  ;;  %v5858_v31 = vadd.f32 %v6591_v44, %v1976_v11  ;;  %v6631_v16 = vld [vmem:[#allocation56_spill] sm:$0xff] }
 0x1d6   : > { %v1977_v49 = vadd.f32 %v6626_v53, %v1876_v6  ;;  %v2092_v54 = vmul.f32 1.442695, %v2045_v47  ;;  %v2094_v33 = vmul.f32 1.442695, %v2046_v43  ;;  %v5865_v24 = vadd.f32 %v6591_v44, %v1980_v60 }
 0x1d7   : > { %v1978_v13 = vadd.f32 %v6627_v8, %v1877_v23  ;;  %3959 = vpow2.f32 %v2090_v2  ;;  %v6629_v0 = vsub.f32 0.0, %v6628_v59  ;;  %v2047_v21 = vsub.f32 0.0, %v5858_v31 }
 0x1d8   : > { %v5862_v20 = vadd.f32 %v6591_v44, %v1977_v49  ;;  %3961 = vpow2.f32 %v2092_v54  ;;  %v2050_v19 = vsub.f32 0.0, %v5850_v27  ;;  %v2246_v40 = vsel %vm577_vm0, %v5782_v7, 0.0 }
 0x1d9   : > { %v2108_v14 = vmul.f32 1.442695, %v6629_v0  ;;  %v5871_v56 = vadd.f32 %v6591_v44, %v1978_v13  ;;  %3963 = vpow2.f32 %v2094_v33  ;;  %v2051_v22 = vsub.f32 0.0, %v5865_v24 }
 0x1da   : > { %v2048_v37 = vsub.f32 0.0, %v5862_v20  ;;  %3965 = vrcp.f32 %v2139_v46  ;;  %v2096_v1 = vmul.f32 1.442695, %v2047_v21  ;;  %v2056_v50 = vsub.f32 0.0, %v5729_v35 }
 0x1db   : > { %v2049_v58 = vsub.f32 0.0, %v5871_v56  ;;  %v5881_v28 = vmul.f32 %v3952_v38, %v5687_v63  ;;  %v2102_v41 = vmul.f32 1.442695, %v2050_v19  ;;  %3967 = vpow2.f32 %v2108_v14  ;;  %v3954_v45 = vpop.eup %3953 }
 0x1dc   : > { %v2098_v15 = vmul.f32 1.442695, %v2048_v37  ;;  %3969 = vpow2.f32 %v2096_v1  ;;  %v5885_v52 = vadd.f32 %v6591_v44, %v5722_v32  ;;  %v2104_v39 = vmul.f32 1.442695, %v2051_v22  ;;  %v6635_v1 = vld [vmem:[#allocation34_spill] sm:$0xff] }
 0x1dd   : > { %v2100_v62 = vmul.f32 1.442695, %v2049_v58  ;;  %v5887_v30 = vpop.eup %3955  ;;  %v1889_v36 = vadd.f32 %v6630_v5, %v5695_v34  ;;  %v1989_v63 = vadd.f32 %v6631_v16, %v5706_v55  ;;  %v6632_v38 = vsub.f32 0.0, %v6597_v61 }
 0x1de   : > { %3971 = vpow2.f32 %v2098_v15  ;;  %v2247_v48 = vadd.f32 %v2246_v40, %v2245_v4  ;;  %v2057_v6 = vsub.f32 0.0, %v5759_v42  ;;  %v6633_v32 = vsub.f32 0.0, %v6606_v51  ;;  %v6634_v4 = vld [vmem:[#allocation5_spill] sm:$0xff] }
 0x1df   : > { %v2110_v10 = vmul.f32 1.442695, %v6632_v38  ;;  %3973 = vpow2.f32 %v2100_v62  ;;  %v3958_v60 = vpop.eup %3957  ;;  %v5899_v9 = vmul.f32 %v3954_v45, %v5712_v29  ;;  %v2248_v34 = vsel %vm577_vm0, %v5881_v28, 0.0 }
 0x1e0   : > { %v2112_v26 = vmul.f32 1.442695, %v6633_v32  ;;  %3975 = vpow2.f32 %v2102_v41  ;;  %v2114_v55 = vmul.f32 1.442695, %v2056_v50  ;;  %v2058_v17 = vsub.f32 0.0, %v5885_v52 }
 0x1e1   : > { %3977 = vpow2.f32 %v2104_v39  ;;  %v3960_v23 = vpop.eup %3959  ;;  %v1990_v11 = vadd.f32 %v6634_v4, %v1889_v36  ;;  %v5907_v47 = vadd.f32 %v6591_v44, %v5726_v25  ;;  %v5910_v43 = vadd.f32 %v6591_v44, %v1989_v63 }
 0x1e2   : > { %3979 = vpow2.f32 %v2110_v10  ;;  %v3962_v29 = vpop.eup %3961  ;;  %v2249_v46 = vadd.f32 %v2248_v34, %v2247_v48  ;;  %v2140_v2 = vadd.f32 1.0, %v3960_v23  ;;  %v2116_v53 = vmul.f32 1.442695, %v2057_v6 }
 0x1e3   : > { %3981 = vpow2.f32 %v2112_v26  ;;  %v3964_v49 = vpop.eup %3963  ;;  %v5913_v54 = vmul.f32 %v3958_v60, %v5739_v57  ;;  %v2250_v33 = vsel %vm577_vm0, %v5899_v9, 0.0  ;;  %v2141_v8 = vadd.f32 1.0, %v3962_v29 }
 0x1e4   : > { %3983 = vpow2.f32 %v2114_v55  ;;  %v3966_v25 = vpop.eup %3965  ;;  %v2142_v13 = vadd.f32 1.0, %v3964_v49  ;;  %v2118_v0 = vmul.f32 1.442695, %v2058_v17  ;;  %v5918_v21 = vadd.f32 %v6591_v44, %v1990_v11 }
 0x1e5   : > { %3985 = vrcp.f32 %v2140_v2  ;;  %v3968_v14 = vpop.eup %3967  ;;  %v2059_v19 = vsub.f32 0.0, %v5907_v47  ;;  %v2251_v37 = vadd.f32 %v2250_v33, %v2249_v46  ;;  %v2060_v57 = vsub.f32 0.0, %v5910_v43 }
 0x1e6   : > { %3987 = vrcp.f32 %v2141_v8  ;;  %v3970_v40 = vpop.eup %3969  ;;  %v5923_v58 = vmul.f32 %v3966_v25, %v6635_v1  ;;  %v2252_v50 = vsel %vm577_vm0, %v5913_v54, 0.0  ;;  %v2061_v62 = vsub.f32 0.0, %v5918_v21 }
 0x1e7   : > { %3989 = vrcp.f32 %v2142_v13  ;;  %v2143_v15 = vadd.f32 1.0, %v3970_v40  ;;  %v2120_v39 = vmul.f32 1.442695, %v2059_v19  ;;  %v2253_v16 = vadd.f32 %v2252_v50, %v2251_v37 }
 0x1e8   : > { %v3972_v22 = vpop.eup %3971  ;;  %3991 = vpow2.f32 %v2116_v53  ;;  %v2254_v10 = vsel %vm577_vm0, %v5923_v58, 0.0  ;;  %v2122_v48 = vmul.f32 1.442695, %v2060_v57  ;;  %v2148_v26 = vadd.f32 1.0, %v5887_v30 }
 0x1e9   : > { %v3974_v41 = vpop.eup %3973  ;;  %3993 = vpow2.f32 %v2118_v0  ;;  %v2144_v44 = vadd.f32 1.0, %v3972_v22  ;;  %v2124_v34 = vmul.f32 1.442695, %v2061_v62  ;;  %v2255_v17 = vadd.f32 %v2254_v10, %v2253_v16 }
 0x1ea   : > { %v3976_v45 = vpop.eup %3975  ;;  %3995 = vrcp.f32 %v2143_v15  ;;  %v2145_v5 = vadd.f32 1.0, %v3974_v41  ;;  %v2149_v23 = vadd.f32 1.0, %v3968_v14 }
 0x1eb   : > { %v3978_v36 = vpop.eup %3977  ;;  %v2146_v63 = vadd.f32 1.0, %v3976_v45  ;;  %3997 = vrcp.f32 %v2144_v44 }
 0x1ec   : > { %v3980_v38 = vpop.eup %3979  ;;  %v2147_v6 = vadd.f32 1.0, %v3978_v36  ;;  %3999 = vrcp.f32 %v2145_v5 }
 0x1ed   : > { %v3982_v32 = vpop.eup %3981  ;;  %4001 = vrcp.f32 %v2146_v63  ;;  %v2150_v2 = vadd.f32 1.0, %v3980_v38 }
 0x1ee   : > { %v3984_v60 = vpop.eup %3983  ;;  %4003 = vpow2.f32 %v2120_v39  ;;  %v2151_v25 = vadd.f32 1.0, %v3982_v32  ;;  %v6636_v32 = vld [vmem:[#allocation6_spill] sm:$0xff] }
 0x1ef   : > { %v3986_v55 = vpop.eup %3985  ;;  %4005 = vrcp.f32 %v2147_v6  ;;  %v2152_v19 = vadd.f32 1.0, %v3984_v60 }
 0x1f0   : > { %v3988_v4 = vpop.eup %3987  ;;  %v5932_v11 = vmul.f32 %v3986_v55, %v5830_v12  ;;  %4007 = vpow2.f32 %v2122_v48 }
 0x1f1   : > { %v3990_v29 = vpop.eup %3989  ;;  %v5935_v46 = vmul.f32 %v3988_v4, %v5840_v18  ;;  %4009 = vrcp.f32 %v2148_v26 }
 0x1f2   : > { %v3992_v30 = vpop.eup %3991  ;;  %v5938_v53 = vmul.f32 %v3990_v29, %v5844_v3  ;;  %v2256_v49 = vsel %vm577_vm0, %v5932_v11, 0.0  ;;  %4011 = vpow2.f32 %v2124_v34 }
 0x1f3   : > { %v3994_v33 = vpop.eup %3993  ;;  %v2257_v8 = vadd.f32 %v2256_v49, %v2255_v17  ;;  %v2258_v12 = vsel %vm577_vm0, %v5935_v46, 0.0  ;;  %4013 = vrcp.f32 %v2149_v23  ;;  %v2153_v37 = vadd.f32 1.0, %v3992_v30 }
 0x1f4   : > { %v3996_v13 = vpop.eup %3995  ;;  %v2260_v18 = vsel %vm577_vm0, %v5938_v53, 0.0  ;;  %4015 = vrcp.f32 %v2150_v2  ;;  %v2154_v45 = vadd.f32 1.0, %v3994_v33 }
 0x1f5   : > { %v3998_v0 = vpop.eup %3997  ;;  %v2259_v14 = vadd.f32 %v2258_v12, %v2257_v8  ;;  %v5947_v3 = vmul.f32 %v3996_v13, %v5858_v31  ;;  %4017 = vrcp.f32 %v2151_v25 }
 0x1f6   : > { %v4000_v40 = vpop.eup %3999  ;;  %v5950_v57 = vmul.f32 %v3998_v0, %v5862_v20  ;;  %4019 = vrcp.f32 %v2152_v19 }
 0x1f7   : > { %v4002_v22 = vpop.eup %4001  ;;  %v5953_v1 = vmul.f32 %v4000_v40, %v5871_v56  ;;  %v2261_v50 = vadd.f32 %v2260_v18, %v2259_v14  ;;  %v2262_v15 = vsel %vm577_vm0, %v5947_v3, 0.0  ;;  %4021 = vrcp.f32 %v2153_v37 }
 0x1f8   : > { %v4004_v41 = vpop.eup %4003  ;;  %v2264_v44 = vsel %vm577_vm0, %v5950_v57, 0.0  ;;  %v5960_v20 = vmul.f32 %v4002_v22, %v5850_v27  ;;  %4023 = vrcp.f32 %v2154_v45 }
 0x1f9   : > { %v4006_v31 = vpop.eup %4005  ;;  %v2263_v62 = vadd.f32 %v2262_v15, %v2261_v50  ;;  %v2266_v56 = vsel %vm577_vm0, %v5953_v1, 0.0  ;;  %v2155_v36 = vadd.f32 1.0, %v4004_v41 }
 0x1fa   : > { %v4008_v39 = vpop.eup %4007  ;;  %v5965_v38 = vmul.f32 %v4006_v31, %v5865_v24  ;;  %v2268_v27 = vsel %vm577_vm0, %v5960_v20, 0.0 }
 0x1fb   : > { %v4010_v5 = vpop.eup %4009  ;;  %v2265_v16 = vadd.f32 %v2264_v44, %v2263_v62  ;;  %v2156_v48 = vadd.f32 1.0, %v4008_v39  ;;  %4025 = vrcp.f32 %v2155_v36 }
 0x1fc   : > { %v4012_v63 = vpop.eup %4011  ;;  %v5968_v26 = vmul.f32 %v4010_v5, %v6636_v32  ;;  %v2270_v24 = vsel %vm577_vm0, %v5965_v38, 0.0  ;;  %v6637_v32 = vmov 0.0  }
 0x1fd   : > { %v4014_v10 = vpop.eup %4013  ;;  %v2267_v6 = vadd.f32 %v2266_v56, %v2265_v16  ;;  %v2157_v34 = vadd.f32 1.0, %v4012_v63  ;;  %4027 = vrcp.f32 %v2156_v48 }
 0x1fe   : > { %v4016_v60 = vpop.eup %4015  ;;  %v5973_v17 = vmul.f32 %v4014_v10, %v6628_v59  ;;  %v2272_v2 = vsel %vm577_vm0, %v5968_v26, 0.0 }
 0x1ff   : > { %v2269_v55 = vadd.f32 %v2268_v27, %v2267_v6  ;;  %v4018_v23 = vpop.eup %4017  ;;  %v5978_v29 = vmul.f32 %v4016_v60, %v6597_v61  ;;  %4029 = vrcp.f32 %v2157_v34  ;;  %v2227_v27 = vld [vmem:[%s6389_s7] sm:$0xff] }
 0x200   : > { %v4020_v30 = vpop.eup %4019  ;;  %v5983_v33 = vmul.f32 %v4018_v23, %v6606_v51  ;;  %v2274_v59 = vsel %vm577_vm0, %v5973_v17, 0.0  ;;  %v2226_v60 = vld [vmem:[%s6388_s6] sm:$0x1] }
 0x201   : > { %v2271_v4 = vadd.f32 %v2270_v24, %v2269_v55  ;;  %v4022_v8 = vpop.eup %4021  ;;  %v5988_v25 = vmul.f32 %v4020_v30, %v5729_v35  ;;  %v2276_v61 = vsel %vm577_vm0, %v5978_v29, 0.0 }
 0x202   : > { %v4024_v13 = vpop.eup %4023  ;;  %v5993_v0 = vmul.f32 %v4022_v8, %v5759_v42  ;;  %v2278_v51 = vsel %vm577_vm0, %v5983_v33, 0.0  ;;  %v3772_v8 = vld [vmem:[%s6391_s9] sm:$0xff]  }
 0x203   : > { %v2273_v49 = vadd.f32 %v2272_v2, %v2271_v4  ;;  %v5998_v40 = vmul.f32 %v4024_v13, %v5885_v52  ;;  %v2280_v35 = vsel %vm577_vm0, %v5988_v25, 0.0  ;;  %v2228_v13 = vld [vmem:[%s6390_s8] sm:$0x1] }
 0x204   : > { %v2282_v42 = vsel %vm577_vm0, %v5993_v0, 0.0 }
 0x205   : > { %v2275_v12 = vadd.f32 %v2274_v59, %v2273_v49  ;;  %v4026_v14 = vpop.eup %4025  ;;  %v2284_v52 = vsel %vm577_vm0, %v5998_v40, 0.0 }
 0x206   : > { %v6003_v50 = vmul.f32 %v4026_v14, %v5907_v47 }
 0x207   : > { %v2277_v18 = vadd.f32 %v2276_v61, %v2275_v12  ;;  %v4028_v37 = vpop.eup %4027  ;;  %v3773_v12 = vld [vmem:[%s6391_s9 + $0x8] sm:$0xff]   ;;  %v3774_v61 = vld [vmem:[%s6393_s11] sm:$0xff]  }
 0x208   : > { %v6008_v44 = vmul.f32 %v4028_v37, %v5910_v43  ;;  %v2286_v62 = vsel %vm577_vm0, %v6003_v50, 0.0  ;;  %3699 = vmatprep.subr.bf16.mxu0 %v3774_v61 }
 0x209   : > { %v2279_v19 = vadd.f32 %v2278_v51, %v2277_v18  ;;  %v4030_v15 = vpop.eup %4029  ;;  %3700 = vmatpush3.bf16.msra.mxu0 %v3774_v61 }
 0x20a   : > { %v6013_v45 = vmul.f32 %v4030_v15, %v5918_v21  ;;  %v2288_v39 = vsel %vm577_vm0, %v6008_v44, 0.0 }
 0x20b   : > { %v2281_v22 = vadd.f32 %v2280_v35, %v2279_v19 }
 0x20c   : > { %v2290_v5 = vsel %vm577_vm0, %v6013_v45, 0.0 }
 0x20d   : > { %v2283_v41 = vadd.f32 %v2282_v42, %v2281_v22  ;;  %v2457_v42 = vlaneseq }
 0x20f   : > { %v2285_v31 = vadd.f32 %v2284_v52, %v2283_v41  ;;  %v2458_v15 = vshrl.u32 %v2457_v42, 7 }
 0x211   : > { %v2287_v47 = vadd.f32 %v2286_v62, %v2285_v31  ;;  %v2459_v41 = vsub.s32 0, %v2458_v15  ;;  %v6638_v62 = vld [vmem:[#allocation33_spill] sm:$0xff] }
 0x213   : > { %v2289_v56 = vadd.f32 %v2288_v39, %v2287_v47  ;;  %v6639_v39 = vld [vmem:[#allocation57_spill] sm:$0xff] }
 0x215   : > { %v2291_v43 = vadd.f32 %v2290_v5, %v2289_v56  ;;  %v6640_v5 = vld [vmem:[#allocation51_spill] sm:$0xff] }
 0x217   : > { %v2292_v36 = vrot.slane %v2291_v43, 4 }
 0x219   : > { %v2293_v16 = vadd.f32 %v2292_v36, %v2291_v43  ;;  %v6641_v36 = vld [vmem:[#allocation52_spill] sm:$0xff] }
 0x21b   : > { %v2294_v63 = vrot.slane %v2293_v16, 2 }
 0x21d   : > { %v2295_v10 = vadd.f32 %v2294_v63, %v2293_v16  ;;  %v6642_v63 = vld [vmem:[#allocation60_spill] sm:$0xff] }
 0x21f   : > { %v2296_v48 = vrot.slane %v2295_v10, 1 }
 0x221   : > { %v2297_v6 = vadd.f32 %v2296_v48, %v2295_v10  ;;  %v6643_v48 = vld [vmem:[#allocation31_spill] sm:$0xff] }
 0x223   : > { %v2298_v21 = vmul.f32 0.00390625, %v2297_v6 }
 0x225   : > { %3656 = vmatmul.mubr.msk.f32.vlgmr.msra.gmra.mrb[12].mxu1 %vm577_vm0, %v2298_v21 }
 0x226   : > { %3660 = vmatprep.mubr.msk.f32.mxu1 %vm4187_vm2, %v6637_v32  ;;  %3659 = vmatpush3.msra.mxu1 %v2227_v27 }
 0x227   : > { %3663 = vmatprep.subr.bf16.mxu1 %v3772_v8 }
 0x2f8   : > { %v2368_v34 = vpop.f32.mrb[12].mxu1 }
 0x2f9   : > { %v2369_v55 = vadd.f32 %v2368_v34, %v2226_v60  ;;  %v3657_v24 = vpop.f32.mrb[13].mxu1  ;;  %v6644_v60 = vld [vmem:[#allocation50_spill] sm:$0xff] }
 0x2fb   : > { %v2372_v23 = vsub.f32 0.0, %v2369_v55 }
 0x2fd   : > { %v2373_v4 = vmul.f32 1.442695, %v2372_v23  ;;  %v6646_v23 = vld [vmem:[#allocation49_spill] sm:$0xff] }
 0x2ff   : > { %4031 = vpow2.f32 %v2373_v4 }
 0x309   : > { %v4032_v2 = vpop.eup %4031 }
 0x30a   : > { %v2375_v30 = vadd.f32 1.0, %v4032_v2 }
 0x30c   : > { %4033 = vrcp.f32 %v2375_v30 }
 0x316   : > { %v4034_v49 = vpop.eup %4033 }
 0x317   : > { %v2377_v59 = vmul.f32 %v4034_v49, %v2369_v55  ;;  %v6645_v55 = vld [vmem:[#allocation48_spill] sm:$0xff] }
 0x319   : > { %3661 = vmatmul.mubr.msk.f32.vlgmr.msra.gmra.mrb[14].mxu1 %vm2378_vm3, %v2377_v59 }
 0x31a   : > { %3664 = vmatpush3.bf16.msra.mxu1 %v3772_v8 }
 0x31b   : > { %3665 = vmatprep.subr.bf16.mxu1 %v3773_v12 }
 0x31e   : > { %3666 = vmatpush3.bf16.msra.mxu1 %v3773_v12 }
 0x3ec   : > { %v2448_v18 = vpop.f32.mrb[14].mxu1 }
 0x3ed   : > { %v2449_v51 = vadd.f32 %v2448_v18, %v2228_v13  ;;  %v3662_v14 = vpop.f32.mrb[15].mxu1 }
 0x3ef   : > { %v2452_v19 = vsub.f32 0.0, %v2449_v51 }
 0x3f1   : > { %v2453_v35 = vmul.f32 1.442695, %v2452_v19 }
 0x3f3   : > { %4035 = vpow2.f32 %v2453_v35 }
 0x3fd   : > { %v4036_v37 = vpop.eup %4035 }
 0x3fe   : > { %v2455_v22 = vadd.f32 1.0, %v4036_v37 }
 0x400   : > { %4037 = vrcp.f32 %v2455_v22 }
 0x40a   : > { %v4038_v52 = vpop.eup %4037 }
 0x40b   : > { %v2460_v31 = vrot.slane %v4038_v52, %v2459_v41 }
 0x40d   : > { %v2461_v47 = vmul.f32 %v2460_v31, %v6638_v62  ;;  %v2462_v56 = vmul.f32 %v2460_v31, %v6639_v39  ;;  %v2463_v43 = vmul.f32 %v2460_v31, %v6640_v5  ;;  %v2464_v16 = vmul.f32 %v2460_v31, %v6641_v36 }
 0x40e   : > { %v2465_v10 = vmul.f32 %v2460_v31, %v6642_v63  ;;  %v2466_v6 = vmul.f32 %v2460_v31, %v6643_v48  ;;  %v2467_v34 = vmul.f32 %v2460_v31, %v6644_v60  ;;  %v2468_v24 = vmul.f32 %v2460_v31, %v6645_v55 }
 0x40f   : > { %v2493_v21 = vpack.c.bf16 %v2462_v56, %v2461_v47  ;;  %v2494_v32 = vpack.c.bf16 %v2464_v16, %v2463_v43  ;;  %v2469_v4 = vmul.f32 %v2460_v31, %v6646_v23  ;;  %v2470_v2 = vmul.f32 %v2460_v31, %v5782_v7 }
 0x410   : > { %v2495_v27 = vpack.c.bf16 %v2466_v6, %v2465_v10  ;;  %v2496_v30 = vpack.c.bf16 %v2468_v24, %v2467_v34  ;;  %v2471_v59 = vmul.f32 %v2460_v31, %v5881_v28  ;;  %v2472_v8 = vmul.f32 %v2460_v31, %v5899_v9 }
 0x411   : > { %3667 = vmatprep.mubr.msk.bf16.mxu1 %vm577_vm0, %v2493_v21  ;;  %v2497_v49 = vpack.c.bf16 %v2470_v2, %v2469_v4  ;;  %v2473_v12 = vmul.f32 %v2460_v31, %v5913_v54  ;;  %v2474_v61 = vmul.f32 %v2460_v31, %v5923_v58  ;;  %v2475_v7 = vmul.f32 %v2460_v31, %v5932_v11 }
 0x412   : > { %3668 = vmatmul.mubr.msk.bf16.vlgmr.msra.gmra.mrb[16].mxu1 %vm577_vm0, %v2494_v32  ;;  %v2498_v13 = vpack.c.bf16 %v2472_v8, %v2471_v59  ;;  %v2476_v51 = vmul.f32 %v2460_v31, %v5935_v46  ;;  %v2477_v14 = vmul.f32 %v2460_v31, %v5938_v53  ;;  %v2478_v28 = vmul.f32 %v2460_v31, %v5947_v3 }
 0x413   : > { %3671 = vmatprep.mubr.msk.bf16.mxu1 %vm577_vm0, %v2495_v27  ;;  %v2499_v18 = vpack.c.bf16 %v2474_v61, %v2473_v12  ;;  %v2479_v54 = vmul.f32 %v2460_v31, %v5950_v57  ;;  %v2480_v58 = vmul.f32 %v2460_v31, %v5953_v1  ;;  %v2481_v35 = vmul.f32 %v2460_v31, %v5960_v20 }
 0x414   : > { %v2500_v19 = vpack.c.bf16 %v2476_v51, %v2475_v7  ;;  %v2501_v9 = vpack.c.bf16 %v2478_v28, %v2477_v14  ;;  %v2482_v11 = vmul.f32 %v2460_v31, %v5965_v38  ;;  %v2483_v53 = vmul.f32 %v2460_v31, %v5968_v26 }
 0x415   : > { %v2502_v37 = vpack.c.bf16 %v2480_v58, %v2479_v54  ;;  %v2484_v3 = vmul.f32 %v2460_v31, %v5973_v17  ;;  %v2485_v22 = vmul.f32 %v2460_v31, %v5978_v29  ;;  %v2486_v57 = vmul.f32 %v2460_v31, %v5983_v33 }
 0x416   : > { %v2503_v46 = vpack.c.bf16 %v2482_v11, %v2481_v35  ;;  %v2487_v20 = vmul.f32 %v2460_v31, %v5988_v25  ;;  %v2488_v38 = vmul.f32 %v2460_v31, %v5993_v0  ;;  %v2489_v15 = vmul.f32 %v2460_v31, %v5998_v40  ;;  %v6093_v0 = vld [vmem:[%s6392_s10] ss:$0 sm:$0xff] }
 0x417   : > { %v2504_v42 = vpack.c.bf16 %v2484_v3, %v2483_v53  ;;  %v2505_v1 = vpack.c.bf16 %v2486_v57, %v2485_v22  ;;  %v2490_v26 = vmul.f32 %v2460_v31, %v6003_v50  ;;  %v2491_v29 = vmul.f32 %v2460_v31, %v6008_v44 }
 0x418   : > { %v2506_v41 = vpack.c.bf16 %v2488_v38, %v2487_v20  ;;  %v2492_v33 = vmul.f32 %v2460_v31, %v6013_v45 }
 0x419   : > { %v2507_v17 = vpack.c.bf16 %v2490_v26, %v2489_v15 }
 0x41a   : > { %3672 = vmatmul.mubr.msk.bf16.gmra.mrb[20].mxu1 %vm577_vm0, %v2496_v30  ;;  %v2508_v52 = vpack.c.bf16 %v2492_v33, %v2491_v29 }
 0x41b   : > { %3675 = vmatprep.mubr.msk.bf16.mxu1 %vm577_vm0, %v2497_v49 }
 0x422   : > { %3676 = vmatmul.mubr.msk.bf16.gmra.mrb[24].mxu1 %vm577_vm0, %v2498_v13 }
 0x423   : > { %3679 = vmatprep.mubr.msk.bf16.mxu1 %vm577_vm0, %v2499_v18 }
 0x42a   : > { %3680 = vmatmul.mubr.msk.bf16.gmra.mrb[28].mxu1 %vm577_vm0, %v2500_v19 }
 0x42b   : > { %3683 = vmatprep.mubr.msk.bf16.mxu1 %vm577_vm0, %v2501_v9 }
 0x432   : > { %3684 = vmatmul.mubr.msk.bf16.gmra.mrb[32].mxu1 %vm577_vm0, %v2502_v37 }
 0x433   : > { %3687 = vmatprep.mubr.msk.bf16.mxu1 %vm577_vm0, %v2503_v46 }
 0x43a   : > { %3688 = vmatmul.mubr.msk.bf16.gmra.mrb[36].mxu1 %vm577_vm0, %v2504_v42 }
 0x43b   : > { %3691 = vmatprep.mubr.msk.bf16.mxu1 %vm577_vm0, %v2505_v1 }
 0x442   : > { %3692 = vmatmul.mubr.msk.bf16.gmra.mrb[40].mxu1 %vm577_vm0, %v2506_v41 }
 0x443   : > { %3695 = vmatprep.mubr.msk.bf16.mxu1 %vm577_vm0, %v2507_v17 }
 0x44a   : > { %3696 = vmatmul.mubr.msk.bf16.gmra.mrb[44].mxu1 %vm577_vm0, %v2508_v52 }
 0x4e5   : > { %v3669_v25 = vpop.f32.mrb[16].mxu1 }
 0x4e6   : > { %v2614_v40 = vpop.f32.mrb[17].mxu1  ;;  %v2623_v62 = vadd.f32 %v3669_v25, %v6093_v0 }
 0x4e7   : > { %v3670_v50 = vpop.f32.mrb[18].mxu1  ;;  %v2615_v44 = vadd.f32 %v6093_v0, %v2614_v40 }
 0x4e8   : > { %v2626_v47 = vadd.f32 %v3670_v50, %v6093_v0  ;;  %v2617_v39 = vpop.f32.mrb[19].mxu1 }
 0x4e9   : > { %v2618_v45 = vadd.f32 %v6093_v0, %v2617_v39 }
 0x4ea   : > { %v2742_v31 = vpack.c.bf16 %v2626_v47, %v2623_v62 }
 0x4eb   : > { %v2741_v56 = vpack.c.bf16 %v2618_v45, %v2615_v44 }
 0x4ed   : > { %v3673_v5 = vpop.f32.mrb[20].mxu1  ;;  %3701 = vmatprep.mubr.msk.bf16.mxu0 %vm2772_vm4, %v2741_v56 }
 0x4ee   : > { %v2630_v43 = vpop.f32.mrb[21].mxu1  ;;  %3702 = vmatmul.mubr.msk.bf16.vlgmr.msra.gmra.mrb[20].mxu0 %vm2772_vm4, %v2742_v31  ;;  %v2639_v16 = vadd.f32 %v3673_v5, %v6093_v0 }
 0x4ef   : > { %v3674_v36 = vpop.f32.mrb[22].mxu1  ;;  %v2631_v48 = vadd.f32 %v6093_v0, %v2630_v43 }
 0x4f0   : > { %v2642_v63 = vadd.f32 %v3674_v36, %v6093_v0  ;;  %v2633_v10 = vpop.f32.mrb[23].mxu1 }
 0x4f1   : > { %v2634_v6 = vadd.f32 %v6093_v0, %v2633_v10 }
 0x4f2   : > { %v2744_v21 = vpack.c.bf16 %v2642_v63, %v2639_v16 }
 0x4f3   : > { %v2743_v32 = vpack.c.bf16 %v2634_v6, %v2631_v48  ;;  %v6146_v6 = vld [vmem:[%s6394_s12] ss:$0 sm:$0xff] }
 0x4f5   : > { %v3677_v27 = vpop.f32.mrb[24].mxu1  ;;  %3705 = vmatprep.mubr.msk.bf16.mxu0 %vm2772_vm4, %v2743_v32 }
 0x4f6   : > { %v2646_v60 = vpop.f32.mrb[25].mxu1  ;;  %3706 = vmatmul.mubr.msk.bf16.gmra.mrb[24].mxu0 %vm2772_vm4, %v2744_v21  ;;  %v2655_v55 = vadd.f32 %v3677_v27, %v6093_v0 }
 0x4f7   : > { %v3678_v34 = vpop.f32.mrb[26].mxu1  ;;  %v2647_v4 = vadd.f32 %v6093_v0, %v2646_v60 }
 0x4f8   : > { %v2658_v24 = vadd.f32 %v3678_v34, %v6093_v0  ;;  %v2649_v23 = vpop.f32.mrb[27].mxu1 }
 0x4f9   : > { %v2650_v2 = vadd.f32 %v6093_v0, %v2649_v23 }
 0x4fa   : > { %v2746_v30 = vpack.c.bf16 %v2658_v24, %v2655_v55 }
 0x4fb   : > { %v2745_v49 = vpack.c.bf16 %v2650_v2, %v2647_v4 }
 0x4fd   : > { %v3681_v59 = vpop.f32.mrb[28].mxu1  ;;  %3709 = vmatprep.mubr.msk.bf16.mxu0 %vm2772_vm4, %v2745_v49 }
 0x4fe   : > { %v2662_v8 = vpop.f32.mrb[29].mxu1  ;;  %3710 = vmatmul.mubr.msk.bf16.gmra.mrb[28].mxu0 %vm2772_vm4, %v2746_v30  ;;  %v2671_v61 = vadd.f32 %v3681_v59, %v6093_v0 }
 0x4ff   : > { %v3682_v12 = vpop.f32.mrb[30].mxu1  ;;  %v2663_v7 = vadd.f32 %v6093_v0, %v2662_v8 }
 0x500   : > { %v2674_v13 = vadd.f32 %v3682_v12, %v6093_v0  ;;  %v2665_v18 = vpop.f32.mrb[31].mxu1 }
 0x501   : > { %v2666_v51 = vadd.f32 %v6093_v0, %v2665_v18 }
 0x502   : > { %v2748_v14 = vpack.c.bf16 %v2674_v13, %v2671_v61 }
 0x503   : > { %v2747_v28 = vpack.c.bf16 %v2666_v51, %v2663_v7 }
 0x505   : > { %v3685_v19 = vpop.f32.mrb[32].mxu1  ;;  %3713 = vmatprep.mubr.msk.bf16.mxu0 %vm2772_vm4, %v2747_v28 }
 0x506   : > { %v2678_v9 = vpop.f32.mrb[33].mxu1  ;;  %3714 = vmatmul.mubr.msk.bf16.gmra.mrb[32].mxu0 %vm2772_vm4, %v2748_v14  ;;  %v2687_v58 = vadd.f32 %v3685_v19, %v6093_v0 }
 0x507   : > { %v3686_v54 = vpop.f32.mrb[34].mxu1  ;;  %v2679_v37 = vadd.f32 %v6093_v0, %v2678_v9 }
 0x508   : > { %v2690_v35 = vadd.f32 %v3686_v54, %v6093_v0  ;;  %v2681_v11 = vpop.f32.mrb[35].mxu1 }
 0x509   : > { %v2682_v46 = vadd.f32 %v6093_v0, %v2681_v11 }
 0x50a   : > { %v2750_v53 = vpack.c.bf16 %v2690_v35, %v2687_v58 }
 0x50b   : > { %v2749_v3 = vpack.c.bf16 %v2682_v46, %v2679_v37 }
 0x50d   : > { %v3689_v22 = vpop.f32.mrb[36].mxu1  ;;  %3717 = vmatprep.mubr.msk.bf16.mxu0 %vm2772_vm4, %v2749_v3 }
 0x50e   : > { %v2694_v57 = vpop.f32.mrb[37].mxu1  ;;  %3718 = vmatmul.mubr.msk.bf16.gmra.mrb[36].mxu0 %vm2772_vm4, %v2750_v53  ;;  %v2703_v1 = vadd.f32 %v3689_v22, %v6093_v0 }
 0x50f   : > { %v3690_v42 = vpop.f32.mrb[38].mxu1  ;;  %v2695_v15 = vadd.f32 %v6093_v0, %v2694_v57 }
 0x510   : > { %v2706_v20 = vadd.f32 %v3690_v42, %v6093_v0  ;;  %v2697_v38 = vpop.f32.mrb[39].mxu1 }
 0x511   : > { %v2698_v26 = vadd.f32 %v6093_v0, %v2697_v38 }
 0x512   : > { %v2752_v41 = vpack.c.bf16 %v2706_v20, %v2703_v1 }
 0x513   : > { %v2751_v17 = vpack.c.bf16 %v2698_v26, %v2695_v15 }
 0x515   : > { %v3693_v29 = vpop.f32.mrb[40].mxu1  ;;  %3721 = vmatprep.mubr.msk.bf16.mxu0 %vm2772_vm4, %v2751_v17 }
 0x516   : > { %v2710_v33 = vpop.f32.mrb[41].mxu1  ;;  %3722 = vmatmul.mubr.msk.bf16.gmra.mrb[40].mxu0 %vm2772_vm4, %v2752_v41  ;;  %v2719_v25 = vadd.f32 %v3693_v29, %v6093_v0 }
 0x517   : > { %v3694_v52 = vpop.f32.mrb[42].mxu1  ;;  %v2711_v62 = vadd.f32 %v6093_v0, %v2710_v33 }
 0x518   : > { %v2722_v40 = vadd.f32 %v3694_v52, %v6093_v0  ;;  %v2713_v50 = vpop.f32.mrb[43].mxu1 }
 0x519   : > { %v2714_v47 = vadd.f32 %v6093_v0, %v2713_v50 }
 0x51a   : > { %v2754_v39 = vpack.c.bf16 %v2722_v40, %v2719_v25 }
 0x51b   : > { %v2753_v44 = vpack.c.bf16 %v2714_v47, %v2711_v62 }
 0x51d   : > { %v3697_v45 = vpop.f32.mrb[44].mxu1  ;;  %3725 = vmatprep.mubr.msk.bf16.mxu0 %vm2772_vm4, %v2753_v44 }
 0x51e   : > { %v2726_v31 = vpop.f32.mrb[45].mxu1  ;;  %3726 = vmatmul.mubr.msk.bf16.gmra.mrb[44].mxu0 %vm2772_vm4, %v2754_v39  ;;  %v2735_v5 = vadd.f32 %v3697_v45, %v6093_v0 }
 0x51f   : > { %v3698_v56 = vpop.f32.mrb[46].mxu1  ;;  %v2727_v16 = vadd.f32 %v6093_v0, %v2726_v31 }
 0x520   : > { %v2738_v43 = vadd.f32 %v3698_v56, %v6093_v0  ;;  %v2729_v36 = vpop.f32.mrb[47].mxu1 }
 0x521   : > { %v2730_v63 = vadd.f32 %v6093_v0, %v2729_v36 }
 0x522   : > { %v2756_v10 = vpack.c.bf16 %v2738_v43, %v2735_v5 }
 0x523   : > { %v2755_v48 = vpack.c.bf16 %v2730_v63, %v2727_v16 }
 0x525   : > { %3729 = vmatprep.mubr.msk.bf16.mxu0 %vm2772_vm4, %v2755_v48 }
 0x526   : > { %3730 = vmatmul.mubr.msk.bf16.gmra.mrb[48].mxu0 %vm2772_vm4, %v2756_v10 }
 0x5c1   : > { %v3703_v21 = vpop.f32.mrb[20].mxu0 }
 0x5c2   : > { %v6149_v32 = vadd.f32 %v3703_v21, %v6146_v6  ;;  %v2855_v27 = vpop.f32.mrb[21].mxu0 }
 0x5c3   : > { %v6152_v60 = vadd.f32 %v6146_v6, %v2855_v27  ;;  %v3704_v0 = vpop.f32.mrb[22].mxu0 }
 0x5c4   : > { %v2984_v34 = vsub.f32 0.0, %v6149_v32  ;;  %v6156_v55 = vadd.f32 %v3704_v0, %v6146_v6  ;;  %v2858_v24 = vpop.f32.mrb[23].mxu0 }
 0x5c5   : > { %v2982_v23 = vsub.f32 0.0, %v6152_v60  ;;  %v6160_v4 = vadd.f32 %v6146_v6, %v2858_v24 }
 0x5c6   : > { %v3018_v2 = vmul.f32 1.442695, %v2984_v34  ;;  %v2985_v30 = vsub.f32 0.0, %v6156_v55 }
 0x5c7   : > { %v3014_v49 = vmul.f32 1.442695, %v2982_v23  ;;  %v2983_v59 = vsub.f32 0.0, %v6160_v4 }
 0x5c8   : > { %4039 = vpow2.f32 %v3018_v2  ;;  %v3020_v8 = vmul.f32 1.442695, %v2985_v30 }
 0x5c9   : > { %4041 = vpow2.f32 %v3014_v49  ;;  %v3016_v12 = vmul.f32 1.442695, %v2983_v59  ;;  %v3707_v61 = vpop.f32.mrb[24].mxu0 }
 0x5ca   : > { %4043 = vpow2.f32 %v3020_v8  ;;  %v6165_v13 = vadd.f32 %v3707_v61, %v6146_v6  ;;  %v2871_v18 = vpop.f32.mrb[25].mxu0 }
 0x5cb   : > { %4045 = vpow2.f32 %v3016_v12  ;;  %v6168_v7 = vadd.f32 %v6146_v6, %v2871_v18  ;;  %v3708_v51 = vpop.f32.mrb[26].mxu0 }
 0x5cc   : > { %v2988_v14 = vsub.f32 0.0, %v6165_v13  ;;  %v6172_v28 = vadd.f32 %v3708_v51, %v6146_v6  ;;  %v2874_v19 = vpop.f32.mrb[27].mxu0 }
 0x5cd   : > { %v2986_v9 = vsub.f32 0.0, %v6168_v7  ;;  %v6176_v54 = vadd.f32 %v6146_v6, %v2874_v19 }
 0x5ce   : > { %v3026_v58 = vmul.f32 1.442695, %v2988_v14  ;;  %v2989_v35 = vsub.f32 0.0, %v6172_v28 }
 0x5cf   : > { %v3022_v11 = vmul.f32 1.442695, %v2986_v9  ;;  %v2987_v37 = vsub.f32 0.0, %v6176_v54 }
 0x5d0   : > { %4047 = vpow2.f32 %v3026_v58  ;;  %v3028_v46 = vmul.f32 1.442695, %v2989_v35 }
 0x5d1   : > { %4049 = vpow2.f32 %v3022_v11  ;;  %v3024_v53 = vmul.f32 1.442695, %v2987_v37  ;;  %v3711_v3 = vpop.f32.mrb[28].mxu0 }
 0x5d2   : > { %v4040_v22 = vpop.eup %4039  ;;  %4051 = vpow2.f32 %v3028_v46  ;;  %v6181_v57 = vadd.f32 %v3711_v3, %v6146_v6  ;;  %v2887_v42 = vpop.f32.mrb[29].mxu0 }
 0x5d3   : > { %v4042_v1 = vpop.eup %4041  ;;  %v3080_v20 = vadd.f32 1.0, %v4040_v22  ;;  %4053 = vpow2.f32 %v3024_v53  ;;  %v6184_v38 = vadd.f32 %v6146_v6, %v2887_v42  ;;  %v3712_v15 = vpop.f32.mrb[30].mxu0 }
 0x5d4   : > { %v4044_v26 = vpop.eup %4043  ;;  %v3078_v41 = vadd.f32 1.0, %v4042_v1  ;;  %v2992_v17 = vsub.f32 0.0, %v6181_v57  ;;  %v6188_v29 = vadd.f32 %v3712_v15, %v6146_v6  ;;  %v2890_v33 = vpop.f32.mrb[31].mxu0 }
 0x5d5   : > { %v4046_v52 = vpop.eup %4045  ;;  %4055 = vrcp.f32 %v3080_v20  ;;  %v3081_v25 = vadd.f32 1.0, %v4044_v26  ;;  %v2990_v40 = vsub.f32 0.0, %v6184_v38  ;;  %v6192_v50 = vadd.f32 %v6146_v6, %v2890_v33 }
 0x5d6   : > { %4057 = vrcp.f32 %v3078_v41  ;;  %v3079_v62 = vadd.f32 1.0, %v4046_v52  ;;  %v3034_v47 = vmul.f32 1.442695, %v2992_v17  ;;  %v2993_v39 = vsub.f32 0.0, %v6188_v29 }
 0x5d7   : > { %4059 = vrcp.f32 %v3081_v25  ;;  %v3030_v44 = vmul.f32 1.442695, %v2990_v40  ;;  %v2991_v45 = vsub.f32 0.0, %v6192_v50 }
 0x5d8   : > { %4061 = vrcp.f32 %v3079_v62  ;;  %v3036_v31 = vmul.f32 1.442695, %v2993_v39 }
 0x5d9   : > { %4063 = vpow2.f32 %v3034_v47  ;;  %v3032_v56 = vmul.f32 1.442695, %v2991_v45  ;;  %v3715_v5 = vpop.f32.mrb[32].mxu0 }
 0x5da   : > { %v4048_v43 = vpop.eup %4047  ;;  %4065 = vpow2.f32 %v3030_v44  ;;  %v6197_v36 = vadd.f32 %v3715_v5, %v6146_v6  ;;  %v2903_v16 = vpop.f32.mrb[33].mxu0 }
 0x5db   : > { %v4050_v63 = vpop.eup %4049  ;;  %v3084_v10 = vadd.f32 1.0, %v4048_v43  ;;  %4067 = vpow2.f32 %v3036_v31  ;;  %v6200_v48 = vadd.f32 %v6146_v6, %v2903_v16  ;;  %v3716_v21 = vpop.f32.mrb[34].mxu0 }
 0x5dc   : > { %v4052_v27 = vpop.eup %4051  ;;  %v3082_v0 = vadd.f32 1.0, %v4050_v63  ;;  %4069 = vpow2.f32 %v3032_v56  ;;  %v2996_v34 = vsub.f32 0.0, %v6197_v36  ;;  %v6204_v24 = vadd.f32 %v3716_v21, %v6146_v6  ;;  %v2906_v23 = vpop.f32.mrb[35].mxu0 }
 0x5dd   : > { %v4054_v2 = vpop.eup %4053  ;;  %4071 = vrcp.f32 %v3084_v10  ;;  %v3085_v30 = vadd.f32 1.0, %v4052_v27  ;;  %v2994_v49 = vsub.f32 0.0, %v6200_v48  ;;  %v6208_v59 = vadd.f32 %v6146_v6, %v2906_v23 }
 0x5de   : > { %4073 = vrcp.f32 %v3082_v0  ;;  %v3083_v8 = vadd.f32 1.0, %v4054_v2  ;;  %v3042_v12 = vmul.f32 1.442695, %v2996_v34  ;;  %v2997_v61 = vsub.f32 0.0, %v6204_v24 }
 0x5df   : > { %v4056_v18 = vpop.eup %4055  ;;  %4075 = vrcp.f32 %v3085_v30  ;;  %v3038_v51 = vmul.f32 1.442695, %v2994_v49  ;;  %v2995_v14 = vsub.f32 0.0, %v6208_v59 }
 0x5e0   : > { %v4058_v19 = vpop.eup %4057  ;;  %v3144_v9 = vmul.f32 %v4056_v18, %v6149_v32  ;;  %4077 = vrcp.f32 %v3083_v8  ;;  %v3044_v58 = vmul.f32 1.442695, %v2997_v61 }
 0x5e1   : > { %v4060_v35 = vpop.eup %4059  ;;  %v3142_v11 = vmul.f32 %v4058_v19, %v6152_v60  ;;  %4079 = vpow2.f32 %v3042_v12  ;;  %v3040_v37 = vmul.f32 1.442695, %v2995_v14  ;;  %v3719_v46 = vpop.f32.mrb[36].mxu0 }
 0x5e2   : > { %v4062_v53 = vpop.eup %4061  ;;  %v3521_v3 = vpack.c.bf16 %v3144_v9, %v3144_v9  ;;  %v3145_v32 = vmul.f32 %v4060_v35, %v6156_v55  ;;  %4081 = vpow2.f32 %v3038_v51  ;;  %v6223_v22 = vadd.f32 %v3719_v46, %v6146_v6  ;;  %v2919_v42 = vpop.f32.mrb[37].mxu0 }
 0x5e3   : > { %v4064_v1 = vpop.eup %4063  ;;  %v3519_v20 = vpack.c.bf16 %v3142_v11, %v3142_v11  ;;  %v3143_v15 = vmul.f32 %v4062_v53, %v6160_v4  ;;  %4083 = vpow2.f32 %v3044_v58  ;;  %v6227_v60 = vadd.f32 %v6146_v6, %v2919_v42  ;;  %v3720_v26 = vpop.f32.mrb[38].mxu0 }
 0x5e4   : > { %v4066_v41 = vpop.eup %4065  ;;  %3305 = vst.msk [vmem:[%s6218_s16 + $0x8] sm:$0xf] %vm3302_vm5, %v3521_v3  ;;  %v3522_v55 = vpack.c.bf16 %v3145_v32, %v3145_v32  ;;  %v3088_v17 = vadd.f32 1.0, %v4064_v1  ;;  %4085 = vpow2.f32 %v3040_v37  ;;  %v3000_v33 = vsub.f32 0.0, %v6223_v22  ;;  %v2922_v52 = vpop.f32.mrb[39].mxu0 }
 0x5e5   : > { %v4068_v25 = vpop.eup %4067  ;;  %3303 = vst.msk [vmem:[%s6218_s16] sm:$0xf] %vm3302_vm5, %v3519_v20  ;;  %v3520_v4 = vpack.c.bf16 %v3143_v15, %v3143_v15  ;;  %v3086_v40 = vadd.f32 1.0, %v4066_v41  ;;  %v2998_v62 = vsub.f32 0.0, %v6227_v60  ;;  %v6236_v47 = vadd.f32 %v3720_v26, %v6146_v6 }
 0x5e6   : > { %v4070_v39 = vpop.eup %4069  ;;  %3306 = vst.msk [vmem:[%s6218_s16 + $0xc] sm:$0xf] %vm3302_vm5, %v3522_v55  ;;  %4087 = vrcp.f32 %v3088_v17  ;;  %v3089_v44 = vadd.f32 1.0, %v4068_v25  ;;  %v3050_v45 = vmul.f32 1.442695, %v3000_v33  ;;  %v6241_v31 = vadd.f32 %v6146_v6, %v2922_v52 }
 0x5e7   : > { %v4072_v56 = vpop.eup %4071  ;;  %3304 = vst.msk [vmem:[%s6218_s16 + $0x4] sm:$0xf] %vm3302_vm5, %v3520_v4  ;;  %4089 = vrcp.f32 %v3086_v40  ;;  %v3087_v5 = vadd.f32 1.0, %v4070_v39  ;;  %v3046_v43 = vmul.f32 1.442695, %v2998_v62  ;;  %v3001_v16 = vsub.f32 0.0, %v6236_v47 }
 0x5e8   : > { %v4074_v63 = vpop.eup %4073  ;;  %v3148_v10 = vmul.f32 %v4072_v56, %v6165_v13  ;;  %4091 = vrcp.f32 %v3089_v44  ;;  %v2999_v21 = vsub.f32 0.0, %v6241_v31 }
 0x5e9   : > { %v4076_v27 = vpop.eup %4075  ;;  %v3146_v0 = vmul.f32 %v4074_v63, %v6168_v7  ;;  %4093 = vrcp.f32 %v3087_v5  ;;  %v3052_v34 = vmul.f32 1.442695, %v3001_v16  ;;  %v3723_v23 = vpop.f32.mrb[40].mxu0 }
 0x5ea   : > { %v4078_v2 = vpop.eup %4077  ;;  %v3525_v30 = vpack.c.bf16 %v3148_v10, %v3148_v10  ;;  %v3149_v49 = vmul.f32 %v4076_v27, %v6172_v28  ;;  %4095 = vpow2.f32 %v3050_v45  ;;  %v3048_v8 = vmul.f32 1.442695, %v2999_v21  ;;  %v2935_v12 = vpop.f32.mrb[41].mxu0 }
 0x5eb   : > { %v4080_v61 = vpop.eup %4079  ;;  %v3523_v13 = vpack.c.bf16 %v3146_v0, %v3146_v0  ;;  %v3147_v18 = vmul.f32 %v4078_v2, %v6176_v54  ;;  %4097 = vpow2.f32 %v3046_v43  ;;  %v6252_v51 = vadd.f32 %v3723_v23, %v6146_v6  ;;  %v3724_v7 = vpop.f32.mrb[42].mxu0 }
 0x5ec   : > { %v4082_v14 = vpop.eup %4081  ;;  %3309 = vst.msk [vmem:[%s6218_s16 + $0x18] sm:$0xf] %vm3302_vm5, %v3525_v30  ;;  %v3526_v19 = vpack.c.bf16 %v3149_v49, %v3149_v49  ;;  %v3092_v9 = vadd.f32 1.0, %v4080_v61  ;;  %4099 = vpow2.f32 %v3052_v34  ;;  %v6257_v28 = vadd.f32 %v6146_v6, %v2935_v12  ;;  %v2938_v58 = vpop.f32.mrb[43].mxu0 }
 0x5ed   : > { %v4084_v35 = vpop.eup %4083  ;;  %3307 = vst.msk [vmem:[%s6218_s16 + $0x10] sm:$0xf] %vm3302_vm5, %v3523_v13  ;;  %v3524_v54 = vpack.c.bf16 %v3147_v18, %v3147_v18  ;;  %v3090_v11 = vadd.f32 1.0, %v4082_v14  ;;  %4101 = vpow2.f32 %v3048_v8  ;;  %v3004_v37 = vsub.f32 0.0, %v6252_v51 }
 0x5ee   : > { %v4086_v46 = vpop.eup %4085  ;;  %3310 = vst.msk [vmem:[%s6218_s16 + $0x1c] sm:$0xf] %vm3302_vm5, %v3526_v19  ;;  %4103 = vrcp.f32 %v3092_v9  ;;  %v3093_v53 = vadd.f32 1.0, %v4084_v35  ;;  %v3002_v3 = vsub.f32 0.0, %v6257_v28  ;;  %v6266_v32 = vadd.f32 %v3724_v7, %v6146_v6 }
 0x5ef   : > { %3308 = vst.msk [vmem:[%s6218_s16 + $0x14] sm:$0xf] %vm3302_vm5, %v3524_v54  ;;  %4105 = vrcp.f32 %v3090_v11  ;;  %v3091_v42 = vadd.f32 1.0, %v4086_v46  ;;  %v3058_v1 = vmul.f32 1.442695, %v3004_v37  ;;  %v6271_v20 = vadd.f32 %v6146_v6, %v2938_v58 }
 0x5f0   : > { %v4088_v15 = vpop.eup %4087  ;;  %4107 = vrcp.f32 %v3093_v53  ;;  %v3054_v26 = vmul.f32 1.442695, %v3002_v3  ;;  %v3005_v41 = vsub.f32 0.0, %v6266_v32 }
 0x5f1   : > { %v4090_v55 = vpop.eup %4089  ;;  %v3152_v17 = vmul.f32 %v4088_v15, %v6181_v57  ;;  %4109 = vrcp.f32 %v3091_v42  ;;  %v3003_v33 = vsub.f32 0.0, %v6271_v20  ;;  %v3727_v52 = vpop.f32.mrb[44].mxu0 }
 0x5f2   : > { %v4092_v25 = vpop.eup %4091  ;;  %v3150_v4 = vmul.f32 %v4090_v55, %v6184_v38  ;;  %4111 = vpow2.f32 %v3058_v1  ;;  %v3060_v40 = vmul.f32 1.442695, %v3005_v41  ;;  %v6278_v62 = vadd.f32 %v3727_v52, %v6146_v6  ;;  %v2951_v39 = vpop.f32.mrb[45].mxu0 }
 0x5f3   : > { %v4094_v44 = vpop.eup %4093  ;;  %v3529_v45 = vpack.c.bf16 %v3152_v17, %v3152_v17  ;;  %v3153_v56 = vmul.f32 %v4092_v25, %v6188_v29  ;;  %4113 = vpow2.f32 %v3054_v26  ;;  %v3056_v57 = vmul.f32 1.442695, %v3003_v33  ;;  %v3728_v5 = vpop.f32.mrb[46].mxu0 }
 0x5f4   : > { %v4096_v43 = vpop.eup %4095  ;;  %v3527_v16 = vpack.c.bf16 %v3150_v4, %v3150_v4  ;;  %v3151_v63 = vmul.f32 %v4094_v44, %v6192_v50  ;;  %4115 = vpow2.f32 %v3060_v40  ;;  %v3008_v38 = vsub.f32 0.0, %v6278_v62  ;;  %v2954_v10 = vpop.f32.mrb[47].mxu0 }
 0x5f5   : > { %v4098_v21 = vpop.eup %4097  ;;  %3313 = vst.msk [vmem:[%s6218_s16 + $0x28] sm:$0xf] %vm3302_vm5, %v3529_v45  ;;  %v3530_v27 = vpack.c.bf16 %v3153_v56, %v3153_v56  ;;  %v3096_v0 = vadd.f32 1.0, %v4096_v43  ;;  %4117 = vpow2.f32 %v3056_v57  ;;  %v6286_v29 = vadd.f32 %v6146_v6, %v2951_v39 }
 0x5f6   : > { %v4100_v34 = vpop.eup %4099  ;;  %3311 = vst.msk [vmem:[%s6218_s16 + $0x20] sm:$0xf] %vm3302_vm5, %v3527_v16  ;;  %v3528_v23 = vpack.c.bf16 %v3151_v63, %v3151_v63  ;;  %v3094_v50 = vadd.f32 1.0, %v4098_v21  ;;  %v3066_v2 = vmul.f32 1.442695, %v3008_v38  ;;  %v6291_v30 = vadd.f32 %v3728_v5, %v6146_v6 }
 0x5f7   : > { %v4102_v49 = vpop.eup %4101  ;;  %3314 = vst.msk [vmem:[%s6218_s16 + $0x2c] sm:$0xf] %vm3302_vm5, %v3530_v27  ;;  %4119 = vrcp.f32 %v3096_v0  ;;  %v3097_v8 = vadd.f32 1.0, %v4100_v34  ;;  %v3006_v12 = vsub.f32 0.0, %v6286_v29  ;;  %v6297_v61 = vadd.f32 %v6146_v6, %v2954_v10 }
 0x5f8   : > { %v4104_v13 = vpop.eup %4103  ;;  %3312 = vst.msk [vmem:[%s6218_s16 + $0x24] sm:$0xf] %vm3302_vm5, %v3528_v23  ;;  %4121 = vrcp.f32 %v3094_v50  ;;  %v3095_v18 = vadd.f32 1.0, %v4102_v49  ;;  %v3009_v7 = vsub.f32 0.0, %v6291_v30 }
 0x5f9   : > { %v4106_v14 = vpop.eup %4105  ;;  %v3156_v19 = vmul.f32 %v4104_v13, %v6197_v36  ;;  %4123 = vrcp.f32 %v3097_v8  ;;  %v3062_v9 = vmul.f32 1.442695, %v3006_v12  ;;  %v3007_v58 = vsub.f32 0.0, %v6297_v61  ;;  %v3731_v35 = vpop.f32.mrb[48].mxu0 }
 0x5fa   : > { %v4108_v54 = vpop.eup %4107  ;;  %v3154_v11 = vmul.f32 %v4106_v14, %v6200_v48  ;;  %4125 = vrcp.f32 %v3095_v18  ;;  %v3068_v37 = vmul.f32 1.442695, %v3009_v7  ;;  %v6306_v46 = vadd.f32 %v3731_v35, %v6146_v6  ;;  %v2967_v53 = vpop.f32.mrb[49].mxu0 }
 0x5fb   : > { %v4110_v3 = vpop.eup %4109  ;;  %v3533_v42 = vpack.c.bf16 %v3156_v19, %v3156_v19  ;;  %v3157_v1 = vmul.f32 %v4108_v54, %v6204_v24  ;;  %4127 = vpow2.f32 %v3066_v2  ;;  %v3064_v36 = vmul.f32 1.442695, %v3007_v58  ;;  %v3732_v15 = vpop.f32.mrb[50].mxu0 }
 0x5fc   : > { %v4112_v26 = vpop.eup %4111  ;;  %v3531_v41 = vpack.c.bf16 %v3154_v11, %v3154_v11  ;;  %v3155_v55 = vmul.f32 %v4110_v3, %v6208_v59  ;;  %4129 = vpow2.f32 %v3062_v9  ;;  %v3012_v48 = vsub.f32 0.0, %v6306_v46  ;;  %v2970_v17 = vpop.f32.mrb[51].mxu0 }
 0x5fd   : > { %v4114_v33 = vpop.eup %4113  ;;  %3317 = vst.msk [vmem:[%s6218_s16 + $0x38] sm:$0xf] %vm3302_vm5, %v3533_v42  ;;  %v3534_v52 = vpack.c.bf16 %v3157_v1, %v3157_v1  ;;  %v3100_v25 = vadd.f32 1.0, %v4112_v26  ;;  %4131 = vpow2.f32 %v3068_v37  ;;  %v6314_v24 = vadd.f32 %v6146_v6, %v2967_v53 }
 0x5fe   : > { %v4116_v4 = vpop.eup %4115  ;;  %3315 = vst.msk [vmem:[%s6218_s16 + $0x30] sm:$0xf] %vm3302_vm5, %v3531_v41  ;;  %v3532_v40 = vpack.c.bf16 %v3155_v55, %v3155_v55  ;;  %v3098_v59 = vadd.f32 1.0, %v4114_v33  ;;  %4133 = vpow2.f32 %v3064_v36  ;;  %v3074_v39 = vmul.f32 1.442695, %v3012_v48 }
 0x5ff   : > { %v4118_v44 = vpop.eup %4117  ;;  %3318 = vst.msk [vmem:[%s6218_s16 + $0x3c] sm:$0xf] %vm3302_vm5, %v3534_v52  ;;  %4135 = vrcp.f32 %v3100_v25  ;;  %v3101_v45 = vadd.f32 1.0, %v4116_v4  ;;  %v3010_v56 = vsub.f32 0.0, %v6314_v24  ;;  %v6322_v57 = vadd.f32 %v3732_v15, %v6146_v6 }
 0x600   : > { %3316 = vst.msk [vmem:[%s6218_s16 + $0x34] sm:$0xf] %vm3302_vm5, %v3532_v40  ;;  %4137 = vrcp.f32 %v3098_v59  ;;  %v3099_v5 = vadd.f32 1.0, %v4118_v44  ;;  %v6327_v43 = vadd.f32 %v6146_v6, %v2970_v17 }
 0x601   : > { %v4120_v16 = vpop.eup %4119  ;;  %4139 = vrcp.f32 %v3101_v45  ;;  %v3070_v63 = vmul.f32 1.442695, %v3010_v56  ;;  %v3013_v38 = vsub.f32 0.0, %v6322_v57 }
 0x602   : > { %v4122_v10 = vpop.eup %4121  ;;  %v3160_v21 = vmul.f32 %v4120_v16, %v6223_v22  ;;  %4141 = vrcp.f32 %v3099_v5  ;;  %v3011_v27 = vsub.f32 0.0, %v6327_v43 }
 0x603   : > { %v4124_v0 = vpop.eup %4123  ;;  %v3158_v34 = vmul.f32 %v4122_v10, %v6227_v60  ;;  %4143 = vpow2.f32 %v3074_v39  ;;  %v3076_v23 = vmul.f32 1.442695, %v3013_v38 }
 0x604   : > { %v4126_v6 = vpop.eup %4125  ;;  %v3537_v50 = vpack.c.bf16 %v3160_v21, %v3160_v21  ;;  %v3161_v2 = vmul.f32 %v4124_v0, %v6236_v47  ;;  %4145 = vpow2.f32 %v3070_v63  ;;  %v3072_v49 = vmul.f32 1.442695, %v3011_v27 }
 0x605   : > { %v4128_v8 = vpop.eup %4127  ;;  %v3535_v12 = vpack.c.bf16 %v3158_v34, %v3158_v34  ;;  %v3159_v22 = vmul.f32 %v4126_v6, %v6241_v31  ;;  %4147 = vpow2.f32 %v3076_v23 }
 0x606   : > { %v4130_v13 = vpop.eup %4129  ;;  %3321 = vst.msk [vmem:[%s6218_s16 + $0x48] sm:$0xf] %vm3302_vm5, %v3537_v50  ;;  %v3538_v60 = vpack.c.bf16 %v3161_v2, %v3161_v2  ;;  %v3104_v18 = vadd.f32 1.0, %v4128_v8  ;;  %4149 = vpow2.f32 %v3072_v49 }
 0x607   : > { %v4132_v7 = vpop.eup %4131  ;;  %3319 = vst.msk [vmem:[%s6218_s16 + $0x40] sm:$0xf] %vm3302_vm5, %v3535_v12  ;;  %v3536_v14 = vpack.c.bf16 %v3159_v22, %v3159_v22  ;;  %v3102_v47 = vadd.f32 1.0, %v4130_v13 }
 0x608   : > { %v4134_v19 = vpop.eup %4133  ;;  %3322 = vst.msk [vmem:[%s6218_s16 + $0x4c] sm:$0xf] %vm3302_vm5, %v3538_v60  ;;  %4151 = vrcp.f32 %v3104_v18  ;;  %v3105_v9 = vadd.f32 1.0, %v4132_v7 }
 0x609   : > { %v4136_v58 = vpop.eup %4135  ;;  %3320 = vst.msk [vmem:[%s6218_s16 + $0x44] sm:$0xf] %vm3302_vm5, %v3536_v14  ;;  %4153 = vrcp.f32 %v3102_v47  ;;  %v3103_v31 = vadd.f32 1.0, %v4134_v19 }
 0x60a   : > { %v4138_v35 = vpop.eup %4137  ;;  %v3164_v54 = vmul.f32 %v4136_v58, %v6252_v51  ;;  %4155 = vrcp.f32 %v3105_v9 }
 0x60b   : > { %v4140_v11 = vpop.eup %4139  ;;  %v3162_v37 = vmul.f32 %v4138_v35, %v6257_v28  ;;  %4157 = vrcp.f32 %v3103_v31 }
 0x60c   : > { %v4142_v53 = vpop.eup %4141  ;;  %v3541_v3 = vpack.c.bf16 %v3164_v54, %v3164_v54  ;;  %v3165_v42 = vmul.f32 %v4140_v11, %v6266_v32 }
 0x60d   : > { %v4144_v1 = vpop.eup %4143  ;;  %v3539_v36 = vpack.c.bf16 %v3162_v37, %v3162_v37  ;;  %v3163_v15 = vmul.f32 %v4142_v53, %v6271_v20 }
 0x60e   : > { %v4146_v26 = vpop.eup %4145  ;;  %3325 = vst.msk [vmem:[%s6218_s16 + $0x58] sm:$0xf] %vm3302_vm5, %v3541_v3  ;;  %v3542_v51 = vpack.c.bf16 %v3165_v42, %v3165_v42  ;;  %v3108_v41 = vadd.f32 1.0, %v4144_v1 }
 0x60f   : > { %v4148_v55 = vpop.eup %4147  ;;  %3323 = vst.msk [vmem:[%s6218_s16 + $0x50] sm:$0xf] %vm3302_vm5, %v3539_v36  ;;  %v3540_v28 = vpack.c.bf16 %v3163_v15, %v3163_v15  ;;  %v3106_v48 = vadd.f32 1.0, %v4146_v26 }
 0x610   : > { %v4150_v17 = vpop.eup %4149  ;;  %3326 = vst.msk [vmem:[%s6218_s16 + $0x5c] sm:$0xf] %vm3302_vm5, %v3542_v51  ;;  %4159 = vrcp.f32 %v3108_v41  ;;  %v3109_v32 = vadd.f32 1.0, %v4148_v55 }
 0x611   : > { %3324 = vst.msk [vmem:[%s6218_s16 + $0x54] sm:$0xf] %vm3302_vm5, %v3540_v28  ;;  %4161 = vrcp.f32 %v3106_v48  ;;  %v3107_v20 = vadd.f32 1.0, %v4150_v17 }
 0x612   : > { %v4152_v33 = vpop.eup %4151  ;;  %4163 = vrcp.f32 %v3109_v32 }
 0x613   : > { %v4154_v52 = vpop.eup %4153  ;;  %v3168_v25 = vmul.f32 %v4152_v33, %v6278_v62  ;;  %4165 = vrcp.f32 %v3107_v20 }
 0x614   : > { %v4156_v4 = vpop.eup %4155  ;;  %v3166_v40 = vmul.f32 %v4154_v52, %v6286_v29 }
 0x615   : > { %v4158_v59 = vpop.eup %4157  ;;  %v3545_v39 = vpack.c.bf16 %v3168_v25, %v3168_v25  ;;  %v3169_v44 = vmul.f32 %v4156_v4, %v6291_v30 }
 0x616   : > { %v3543_v45 = vpack.c.bf16 %v3166_v40, %v3166_v40  ;;  %v3167_v56 = vmul.f32 %v4158_v59, %v6297_v61 }
 0x617   : > { %3329 = vst.msk [vmem:[%s6218_s16 + $0x68] sm:$0xf] %vm3302_vm5, %v3545_v39  ;;  %v3546_v5 = vpack.c.bf16 %v3169_v44, %v3169_v44 }
 0x618   : > { %3327 = vst.msk [vmem:[%s6218_s16 + $0x60] sm:$0xf] %vm3302_vm5, %v3543_v45  ;;  %v3544_v16 = vpack.c.bf16 %v3167_v56, %v3167_v56 }
 0x619   : > { %3330 = vst.msk [vmem:[%s6218_s16 + $0x6c] sm:$0xf] %vm3302_vm5, %v3546_v5 }
 0x61a   : > { %v4160_v62 = vpop.eup %4159  ;;  %3328 = vst.msk [vmem:[%s6218_s16 + $0x64] sm:$0xf] %vm3302_vm5, %v3544_v16 }
 0x61b   : > { %v4162_v29 = vpop.eup %4161  ;;  %v3172_v30 = vmul.f32 %v4160_v62, %v6306_v46 }
 0x61c   : > { %v4164_v63 = vpop.eup %4163  ;;  %v3170_v61 = vmul.f32 %v4162_v29, %v6314_v24 }
 0x61d   : > { %v4166_v38 = vpop.eup %4165  ;;  %v3549_v10 = vpack.c.bf16 %v3172_v30, %v3172_v30  ;;  %v3173_v21 = vmul.f32 %v4164_v63, %v6322_v57 }
 0x61e   : > { %v3547_v27 = vpack.c.bf16 %v3170_v61, %v3170_v61  ;;  %v3171_v0 = vmul.f32 %v4166_v38, %v6327_v43 }
 0x61f   : > { %3333 = vst.msk [vmem:[%s6218_s16 + $0x78] sm:$0xf] %vm3302_vm5, %v3549_v10  ;;  %v3550_v34 = vpack.c.bf16 %v3173_v21, %v3173_v21 }
 0x620   : > { %3331 = vst.msk [vmem:[%s6218_s16 + $0x70] sm:$0xf] %vm3302_vm5, %v3547_v27  ;;  %v3548_v23 = vpack.c.bf16 %v3171_v0, %v3171_v0 }
 0x621   : > { %3334 = vst.msk [vmem:[%s6218_s16 + $0x7c] sm:$0xf] %vm3302_vm5, %v3550_v34 }
 0x622   : > { %3332 = vst.msk [vmem:[%s6218_s16 + $0x74] sm:$0xf] %vm3302_vm5, %v3548_v23 }
 0x623 PF: > { %s23_s25 = sadd.s32 1, %s4183_s25  }
 0x624   : > { %p20_p4 = scmp.ge.s32.totalorder %s23_s25, 4  }
 0x626   :  { %22 = sbr.rel (!%p20_p4) target bundleno = 1 (0x1), region = 118 }

// kernel: _lambda_.3
= control target key start
LH: loop header
LB: loop body
LE: loop exit
PB: predicated region body
PF: predicated region fallthrough
CT: control target
= control target key end

     0   :  { %s11086_s0 = inlined_call_operand.vmem [shape: f32[2,4,9,9,96], index: 0, kind: input, shape index: {}]   ;;  %s11087_s1 = inlined_call_operand.vmem [shape: f32[9,96], index: 1, kind: input, shape index: {}]   ;;  %s11088_s2 = inlined_call_operand.vmem [shape: f32[1,96], index: 2, kind: input, shape index: {}]   ;;  %s11089_s3 = inlined_call_operand.vmem [shape: f32[96,4], index: 3, kind: input, shape index: {}]   ;;  %s11090_s4 = inlined_call_operand.vmem [shape: f32[1,4], index: 4, kind: input, shape index: {}]   ;;  %s11091_s5 = inlined_call_operand.vmem [shape: f32[4,96], index: 5, kind: input, shape index: {}]   ;;  %s11092_s6 = inlined_call_operand.vmem [shape: f32[1,96], index: 6, kind: input, shape index: {}]   ;;  %s11093_s7 = inlined_call_operand.vmem [shape: bf16[96,24], index: 7, kind: input, shape index: {}]   ;;  %s11094_s8 = inlined_call_operand.vmem [shape: f32[1,24], index: 8, kind: input, shape index: {}]   ;;  %s11095_s9 = inlined_call_operand.vmem [shape: bf16[24,144], index: 9, kind: input, shape index: {}]   ;;  %s11096_s10 = inlined_call_operand.vmem [shape: f32[1,144], index: 10, kind: input, shape index: {}]   ;;  %s11097_s11 = inlined_call_operand.vmem [shape: f32[9,144], index: 11, kind: input, shape index: {}]   ;;  %s11098_s12 = inlined_call_operand.vmem [shape: f32[1,144], index: 12, kind: input, shape index: {}]   ;;  %s11099_s13 = inlined_call_operand.vmem [shape: f32[144,6], index: 13, kind: input, shape index: {}]   ;;  %s11100_s14 = inlined_call_operand.vmem [shape: f32[1,6], index: 14, kind: input, shape index: {}]   ;;  %s11101_s15 = inlined_call_operand.vmem [shape: f32[6,144], index: 15, kind: input, shape index: {}]   ;;  %s11102_s16 = inlined_call_operand.vmem [shape: f32[1,144], index: 16, kind: input, shape index: {}]   ;;  %s11103_s17 = inlined_call_operand.vmem [shape: bf16[144,24], index: 17, kind: input, shape index: {}]   ;;  %s11104_s18 = inlined_call_operand.vmem [shape: f32[1,24], index: 18, kind: input, shape index: {}]   ;;  %s11105_s19 = inlined_call_operand.vmem [shape: bf16[24,1280], index: 19, kind: input, shape index: {}]   ;;  %s11106_s20 = inlined_call_operand.vmem [shape: f32[1,1280], index: 20, kind: input, shape index: {}]   ;;  %s11107_s21 = inlined_call_operand.vmem [shape: bf16[1280,128], index: 21, kind: input, shape index: {}]   ;;  %s11108_s22 = inlined_call_operand.vmem [shape: f32[1,128], index: 22, kind: input, shape index: {}]   ;;  %s11109_s23 = inlined_call_operand.hbm [shape: f32[2,1,128], index: 23, kind: output, shape index: {}]  }
   0x1   :  { %11229 = sst [smem:[#allocation87_spill]] %s11086_s0 }
   0x2   :  { %11230 = sst [smem:[#allocation88_spill]] %s11087_s1 }
   0x3   :  { %11231 = sst [smem:[#allocation89_spill]] %s11088_s2 }
   0x4   :  { %11232 = sst [smem:[#allocation90_spill]] %s11089_s3 }
   0x5   :  { %11233 = sst [smem:[#allocation91_spill]] %s11090_s4 }
   0x6   :  { %11234 = sst [smem:[#allocation92_spill]] %s11091_s5 }
   0x7   :  { %11235 = sst [smem:[#allocation93_spill]] %s11092_s6 }
   0x8   :  { %11236 = sst [smem:[#allocation94_spill]] %s11093_s7 }
   0x9   :  { %11237 = sst [smem:[#allocation95_spill]] %s11094_s8 }
   0xa   :  { %11238 = sst [smem:[#allocation96_spill]] %s11109_s23 }
   0xb   :  { %28 = vsyncpa [#allocation4], 0 }
   0xc   :  { %30 = vsyncpa [#allocation4 + $0x1], 0  ;;  %s7752_s4 = smov 0   ;;  %s7754_s30 = smov 0  }
   0xd   :  { %s7756_s24 = smov 0   ;;  %s7758_s25 = smov 0  }
   0xe LB: > { %11239 = sst [smem:[#allocation6_spill]] %s7613_s4  ;;  %s7773_s5 = sadd.s32 4294967295, %s7625_s25   ;;  %s7625_s25 = sphi %s7758_s25, %s11622_s25   ;;  %s7621_s24 = sphi %s7756_s24, %s11624_s24   ;;  %s7617_s30 = sphi %s7754_s30, %s11626_s30   ;;  %s7613_s4 = sphi %s7752_s4, %s11625_s4  }
   0xf   : > { %11240 = sst [smem:[#allocation7_spill]] %s7621_s24  ;;  %s6397_s1 = sadd.s32 4294967294, %s7625_s25  }
  0x10   : > { %11241 = sst [smem:[#allocation8_spill]] %s7625_s25  ;;  %s7777_s26 = sadd.s32 1, %s7625_s25  }
  0x11   : > { %11242 = sst [smem:[#allocation9_spill]] %s7773_s5  ;;  %s531_s2 = sadd.s32 1, %s7621_s24 }
  0x12   : > { %11243 = sst [smem:[#allocation10_spill]] %s7777_s26  ;;  %s528_s6 = ssub.s32 %s7625_s25, %s7777_s26 }
  0x13   : > { %p541_p0 = scmp.ne.s32.totalorder %s7621_s24, %s7617_s30  ;;  %p529_p1 = scmp.eq.s32.totalorder %s528_s6, 0 }
  0x14   : > { %p542_p2 = scmp.eq.s32.totalorder %s7773_s5, 1  ;;  %p547_p3 = scmp.ne.s32.totalorder %s7617_s30, %s7613_s4 }
  0x15   : > { %p548_p4 = scmp.eq.s32.totalorder %s6397_s1, 1  ;;  %p6400_p7 = scmp.ge.s32.totalorder %s7625_s25, 1 }
  0x16   : > { %s7788_s27 = scalar_select %p529_p1, %s7621_s24, %s531_s2  }
  0x17   : > { %p7790_p5 = por %p542_p2, %p541_p0  ;;  %p7794_p6 = por %p548_p4, %p547_p3 }
  0x18   : > { %11244 = sst [smem:[#allocation11_spill]] %s7788_s27  ;;  %p640_p8 = scmp.lt.s32.totalorder %s7625_s25, 3 }
  0x19   : > { %s11245_s7 = scalar_select %p7790_p5, 1, 0 }
  0x1a   : > { %s11247_s28 = scalar_select %p7794_p6, 1, 0 }
  0x1b   : > { %11246 = sst [smem:[#allocation12_spill]] %s11245_s7  ;;  %p641_p9 = pnand %p6400_p7, %p640_p8 }
  0x1c   : > { %11248 = sst [smem:[#allocation13_spill]] %s11247_s28 }
  0x1d   : > { %644 = sbr.rel (%p641_p9) target bundleno = 2809 (0xaf9), region = 112 }
  0x24   : > { %s11249_s0 = sld [smem:[#allocation90_spill]]  ;;  %v11123_v3 = vmov 0.0|0.0   ;;  %vm7628_vm0 = vmmov 0   ;;  %v7629_v6 = vmov 0.0   ;;  %p703_p10 = scmp.lt.s32.totalorder %s7773_s5, 1  ;;  %vm1053_vm1 = vcmask 785408  }
  0x25   : > { %6847 = vmatprep.subr.bf16.mxu0 %v11123_v3  ;;  %6819 = vmatprep.mubr.msk.f32.mxu0 %vm7628_vm0, %v7629_v6  ;;  %1608 = vst [vmem:[#allocation2] sm:$0xff] %v7629_v6  ;;  %1611 = vst [vmem:[#allocation2 + $0x10] sm:$0x3] %v7629_v6  ;;  %s11250_s24 = sld [smem:[#allocation88_spill]]  ;;  %s11252_s29 = sld [smem:[#allocation87_spill]]  ;;  %vm1159_vm2 = vcmask 1043456  }
  0x26   : > { %1614 = vst [vmem:[#allocation2 + $0x20] sm:$0xff] %v7629_v6  ;;  %1616 = vst [vmem:[#allocation2 + $0x30] sm:$0x3] %v7629_v6  ;;  %6822 = vmatprep.subr.mxu1 %v7629_v6  ;;  %6824 = vmatprep.mubr.msk.f32.mxu1 %vm7628_vm0, %v7629_v6  ;;  %s704_s1 = scalar_select %p703_p10, %s7773_s5, 1  ;;  %vm1155_vm3 = vcmask 31744   ;;  %vm1420_vm4 = vcmask 195584  }
  0x27   : > { %1618 = vst [vmem:[#allocation2 + $0x40] sm:$0xff] %v7629_v6  ;;  %1620 = vst [vmem:[#allocation2 + $0x50] sm:$0x3] %v7629_v6  ;;  %s11260_s2 = sld [smem:[#allocation92_spill]]  ;;  %s11261_s26 = sld [smem:[#allocation91_spill]]  ;;  %vm1609_vm5 = vcmask 130048  }
  0x28   : > { %1622 = vst [vmem:[#allocation2 + $0x60] sm:$0xff] %v7629_v6  ;;  %1624 = vst [vmem:[#allocation2 + $0x70] sm:$0x3] %v7629_v6  ;;  %s6892_s28 = smul.u32 576, %s704_s1  ;;  %s11256_s1 = sld [smem:[#allocation89_spill]]  ;;  %vm1612_vm6 = vcmask 123904  }
  0x29   : > { %1626 = vst [vmem:[#allocation2 + $0x80] sm:$0xff] %v7629_v6  ;;  %1628 = vst [vmem:[#allocation2 + $0x90] sm:$0x3] %v7629_v6  ;;  %s11262_s25 = sld [smem:[#allocation94_spill]]  ;;  %s11264_s5 = sld [smem:[#allocation93_spill]]  ;;  %vm1909_vm7 = vcmask 1046528  }
  0x2a   : > { %v1038_v0 = vld [vmem:[%s11249_s0] sm:$0xff]  ;;  %v1039_v1 = vld [vmem:[%s11249_s0 + $0x8] sm:$0xff]  ;;  %v1040_v2 = vld [vmem:[%s11249_s0 + $0x10] sm:$0xff]  ;;  %1630 = vst [vmem:[#allocation2 + $0xa0] sm:$0xff] %v7629_v6  ;;  %s11268_s8 = sld [smem:[#allocation95_spill]]  ;;  %vm2099_vm8 = vcmask 1045504  }
  0x2b   : > { %v6848_v4 = vpack.c.bf16 %v1039_v1, %v1038_v0  ;;  %v1041_v5 = vld [vmem:[%s11249_s0 + $0x18] sm:$0xff]  ;;  %1632 = vst [vmem:[#allocation2 + $0xb0] sm:$0x3] %v7629_v6  ;;  %1634 = vst [vmem:[#allocation2 + $0xc0] sm:$0xff] %v7629_v6  ;;  %v1042_v8 = vld [vmem:[%s11249_s0 + $0x20] sm:$0xff]  ;;  %s11251_s23 = smov %s11250_s24  ;;  %s7865_s3 = scalar_lea.vmem %s11252_s29, %s6892_s28  ;;  %vm1658_vm9 = vcmask 130049  }
  0x2c   : > { %1636 = vst [vmem:[#allocation2 + $0xd0] sm:$0x3] %v7629_v6  ;;  %1638 = vst [vmem:[#allocation2 + $0xe0] sm:$0xff] %v7629_v6  ;;  %v6851_v7 = vpack.c.bf16 %v1041_v5, %v1040_v2  ;;  %v1043_v9 = vld [vmem:[%s11249_s0 + $0x28] sm:$0xff]  ;;  %v7825_v10 = vld [vmem:[%s11249_s0 + $0x30] sm:$0xff]  ;;  %vm1661_vm10 = vcmask 122880  }
  0x2d   : > { %1640 = vst [vmem:[#allocation2 + $0xf0] sm:$0x3] %v7629_v6  ;;  %1642 = vst [vmem:[#allocation2 + $0x100] sm:$0xff] %v7629_v6  ;;  %6849 = vmatpush3.bf16.msra.mxu0 %v6848_v4  ;;  %v7832_v11 = vld [vmem:[%s11249_s0 + $0x38] sm:$0xff]  ;;  %v7837_v12 = vld [vmem:[%s11249_s0 + $0x40] sm:$0xff]  ;;  %v6854_v18 = vpack.c.bf16 %v1043_v9, %v1042_v8  ;;  %vm3330_vm11 = vcmask 48128  }
  0x2e   : > { %1644 = vst [vmem:[#allocation2 + $0x110] sm:$0x3] %v7629_v6  ;;  %1646 = vst [vmem:[#allocation2 + $0x120] sm:$0xff] %v7629_v6  ;;  %6850 = vmatprep.subr.bf16.mxu0 %v11123_v3  ;;  %v7842_v13 = vld [vmem:[%s11249_s0 + $0x48] sm:$0xff]  ;;  %v7847_v14 = vld [vmem:[%s11249_s0 + $0x50] sm:$0xff]  ;;  %v6857_v20 = vpack.c.bf16 %v7832_v11, %v7825_v10  ;;  %s701_s28 = sand.u32 1, %s7617_s30  }
  0x2f   : > { %1648 = vst [vmem:[#allocation2 + $0x130] sm:$0x3] %v7629_v6  ;;  %v7852_v15 = vld [vmem:[%s11249_s0 + $0x58] sm:$0xff]  ;;  %v6402_v16 = vld [vmem:[%s11250_s24] ss:$0 sm:$0xff]  ;;  %v6860_v21 = vpack.c.bf16 %v7842_v13, %v7837_v12  ;;  %v710_v24 = vld [vmem:[%s7865_s3 + $0x10] sm:$0xff]  ;;  %s11263_s6 = smov %s11262_s25 }
  0x30   : > { %v7860_v17 = vld [vmem:[%s11251_s23 + $0x6] ss:$0 sm:$0xff]  ;;  %v6411_v19 = vld [vmem:[%s11251_s23 + $0x1] ss:$0 sm:$0xff]  ;;  %v6863_v22 = vpack.c.bf16 %v7852_v15, %v7847_v14  ;;  %v712_v26 = vld [vmem:[%s7865_s3 + $0x30] sm:$0xff]  ;;  %v723_v30 = vmul.f32 %v6402_v16, %v710_v24  ;;  %s702_s24 = scalar_lea.vmem [#allocation3], %s701_s28 }
  0x31   : > { %6852 = vmatpush3.bf16.msra.mxu0 %v6851_v7  ;;  %v709_v23 = vld [vmem:[%s7865_s3] sm:$0xff]  ;;  %v7883_v28 = vld [vmem:[%s7865_s3 + $0x50] sm:$0xff]  ;;  %v7886_v32 = vmul.f32 %v7860_v17, %v710_v24  ;;  %v725_v35 = vmul.f32 %v6402_v16, %v712_v26  ;;  %v7914_v47 = vmul.f32 %v7860_v17, %v712_v26 }
  0x32   : > { %6853 = vmatprep.subr.bf16.mxu0 %v11123_v3  ;;  %v711_v25 = vld [vmem:[%s7865_s3 + $0x20] sm:$0xff]  ;;  %v722_v29 = vmul.f32 %v6402_v16, %v709_v23  ;;  %v7892_v34 = vld [vmem:[%s7865_s3 + $0x70] sm:$0xff]  ;;  %v727_v37 = vmul.f32 %v6402_v16, %v7883_v28 }
  0x33   : > { %v713_v27 = vld [vmem:[%s7865_s3 + $0x40] sm:$0xff]  ;;  %v724_v31 = vmul.f32 %v6402_v16, %v711_v25  ;;  %v6403_v38 = vld [vmem:[%s7865_s3 + $0x90] sm:$0xff]  ;;  %v7900_v40 = vmul.f32 %v7860_v17, %v711_v25  ;;  %v729_v42 = vmul.f32 %v6402_v16, %v7892_v34 }
  0x34   : > { %v7889_v33 = vld [vmem:[%s7865_s3 + $0x60] sm:$0xff]  ;;  %v726_v36 = vmul.f32 %v6402_v16, %v713_v27  ;;  %v7908_v44 = vld [vmem:[%s7865_s3 + $0xb0] sm:$0xff]  ;;  %v752_v46 = vmul.f32 %v6411_v19, %v6403_v38  ;;  %v7930_v54 = vmul.f32 %v7860_v17, %v713_v27 }
  0x35   : > { %v6412_v39 = vld [vmem:[%s11251_s23 + $0x2] ss:$0 sm:$0xff]  ;;  %6855 = vmatpush3.bf16.msra.mxu0 %v6854_v18  ;;  %v728_v41 = vmul.f32 %v6402_v16, %v7889_v33  ;;  %v7918_v48 = vld [vmem:[%s7865_s3 + $0xd0] sm:$0xff]  ;;  %v754_v52 = vmul.f32 %v6411_v19, %v7908_v44  ;;  %v6421_v26 = vld [vmem:[%s11251_s23 + $0x3] ss:$0 sm:$0xff] }
  0x36   : > { %v7905_v43 = vld [vmem:[%s7865_s3 + $0xa0] sm:$0xff]  ;;  %6856 = vmatprep.subr.bf16.mxu0 %v11123_v3  ;;  %v7924_v50 = vld [vmem:[%s7865_s3 + $0xf0] sm:$0xff]  ;;  %v756_v56 = vmul.f32 %v6411_v19, %v7918_v48  ;;  %v760_v59 = vadd.f32 %v752_v46, %v722_v29 }
  0x37   : > { %v7911_v45 = vld [vmem:[%s7865_s3 + $0xc0] sm:$0xff]  ;;  %v753_v51 = vmul.f32 %v6411_v19, %v7905_v43  ;;  %v758_v58 = vmul.f32 %v6411_v19, %v7924_v50  ;;  %v7940_v61 = vld [vmem:[%s7865_s3 + $0x11] sm:$0xff]  ;;  %v762_v0 = vadd.f32 %v754_v52, %v724_v31 }
  0x38   : > { %v7921_v49 = vld [vmem:[%s7865_s3 + $0xe0] sm:$0xff]  ;;  %v755_v53 = vmul.f32 %v6411_v19, %v7911_v45  ;;  %v7947_v4 = vld [vmem:[%s7865_s3 + $0x31] sm:$0xff]  ;;  %v764_v6 = vadd.f32 %v756_v56, %v726_v36 }
  0x39   : > { %v7933_v55 = vld [vmem:[%s7865_s3 + $0x100] sm:$0xff]  ;;  %v757_v57 = vmul.f32 %v6411_v19, %v7921_v49  ;;  %v761_v63 = vadd.f32 %v753_v51, %v723_v30  ;;  %6858 = vmatpush3.bf16.msra.mxu0 %v6857_v20  ;;  %v766_v8 = vadd.f32 %v758_v58, %v728_v41  ;;  %v7953_v9 = vld [vmem:[%s7865_s3 + $0x51] sm:$0xff]  ;;  %v784_v23 = vmul.f32 %v6412_v39, %v7947_v4 }
  0x3a   : > { %v768_v60 = vld [vmem:[%s7865_s3 + $0x1] sm:$0xff]  ;;  %v759_v62 = vmul.f32 %v6411_v19, %v7933_v55  ;;  %v763_v1 = vadd.f32 %v755_v53, %v725_v35  ;;  %11253 = vst [vmem:[#allocation14_spill] sm:$0xff] %v7953_v9  ;;  %v7959_v11 = vld [vmem:[%s7865_s3 + $0x71] sm:$0xff]  ;;  %6859 = vmatprep.subr.bf16.mxu0 %v11123_v3  ;;  %v782_v19 = vmul.f32 %v6412_v39, %v7940_v61 }
  0x3b   : > { %v7944_v2 = vld [vmem:[%s7865_s3 + $0x21] sm:$0xff]  ;;  %v765_v7 = vadd.f32 %v757_v57, %v727_v37  ;;  %11255 = vst [vmem:[#allocation16_spill] sm:$0xff] %v7959_v11  ;;  %v781_v16 = vmul.f32 %v6412_v39, %v768_v60  ;;  %v6414_v25 = vld [vmem:[%s7865_s3 + $0x130] sm:$0xff]  ;;  %v786_v29 = vmul.f32 %v6412_v39, %v7953_v9  ;;  %v788_v31 = vmul.f32 %v6412_v39, %v7959_v11 }
  0x3c   : > { %v7950_v5 = vld [vmem:[%s7865_s3 + $0x41] sm:$0xff]  ;;  %v767_v18 = vadd.f32 %v759_v62, %v729_v42  ;;  %v783_v20 = vmul.f32 %v6412_v39, %v7944_v2  ;;  %v6416_v36 = vld [vmem:[%s7865_s3 + $0x150] sm:$0xff]  ;;  %v790_v41 = vadd.f32 %v782_v19, %v761_v63  ;;  %v792_v46 = vadd.f32 %v784_v23, %v763_v1 }
  0x3d   : > { %v7956_v10 = vld [vmem:[%s7865_s3 + $0x61] sm:$0xff]  ;;  %v785_v27 = vmul.f32 %v6412_v39, %v7950_v5  ;;  %v789_v38 = vadd.f32 %v781_v16, %v760_v59  ;;  %v6418_v51 = vld [vmem:[%s7865_s3 + $0x170] sm:$0xff]  ;;  %6861 = vmatpush3.bf16.msra.mxu0 %v6860_v21  ;;  %v794_v57 = vadd.f32 %v786_v29, %v765_v7  ;;  %v812_v60 = vmul.f32 %v6421_v26, %v6414_v25 }
  0x3e   : > { %11254 = vst [vmem:[#allocation15_spill] sm:$0xff] %v7956_v10  ;;  %v6413_v24 = vld [vmem:[%s7865_s3 + $0x120] sm:$0xff]  ;;  %v787_v30 = vmul.f32 %v6412_v39, %v7956_v10  ;;  %v791_v42 = vadd.f32 %v783_v20, %v762_v0  ;;  %v6420_v53 = vld [vmem:[%s7865_s3 + $0x190] sm:$0xff]  ;;  %v796_v58 = vadd.f32 %v788_v31, %v767_v18  ;;  %6862 = vmatprep.subr.bf16.mxu0 %v11123_v3 }
  0x3f   : > { %v6415_v35 = vld [vmem:[%s7865_s3 + $0x140] sm:$0xff]  ;;  %v793_v56 = vadd.f32 %v785_v27, %v764_v6  ;;  %v811_v59 = vmul.f32 %v6421_v26, %v6413_v24  ;;  %v814_v63 = vmul.f32 %v6421_v26, %v6416_v36  ;;  %v6422_v0 = vld [vmem:[%s7865_s3 + $0x1b0] sm:$0xff]  ;;  %v816_v21 = vmul.f32 %v6421_v26, %v6418_v51 }
  0x40   : > { %v6417_v37 = vld [vmem:[%s7865_s3 + $0x160] sm:$0xff]  ;;  %v795_v39 = vadd.f32 %v787_v30, %v766_v8  ;;  %v813_v62 = vmul.f32 %v6421_v26, %v6415_v35  ;;  %v818_v7 = vmul.f32 %v6421_v26, %v6420_v53  ;;  %v6424_v8 = vld [vmem:[%s7865_s3 + $0x1d0] sm:$0xff]  ;;  %v820_v20 = vadd.f32 %v812_v60, %v790_v41 }
  0x41   : > { %v6419_v52 = vld [vmem:[%s7865_s3 + $0x180] sm:$0xff]  ;;  %v815_v13 = vmul.f32 %v6421_v26, %v6417_v37  ;;  %v6426_v18 = vld [vmem:[%s7865_s3 + $0x1f0] sm:$0xff]  ;;  %v819_v19 = vadd.f32 %v811_v59, %v789_v38  ;;  %v822_v24 = vadd.f32 %v814_v63, %v792_v46  ;;  %6864 = vmatpush3.bf16.msra.mxu0 %v6863_v22  ;;  %v824_v30 = vadd.f32 %v816_v21, %v794_v57 }
  0x42   : > { %v6423_v1 = vld [vmem:[%s7865_s3 + $0x1c0] sm:$0xff]  ;;  %v817_v6 = vmul.f32 %v6421_v26, %v6419_v52  ;;  %v821_v23 = vadd.f32 %v813_v62, %v791_v42  ;;  %v6428_v27 = vld [vmem:[%s7865_s3 + $0x210] sm:$0xff]  ;;  %v826_v35 = vadd.f32 %v818_v7, %v796_v58 }
  0x43   : > { %v6430_v12 = vld [vmem:[%s11251_s23 + $0x4] ss:$0 sm:$0xff]  ;;  %v823_v26 = vadd.f32 %v815_v13, %v793_v56  ;;  %v6432_v37 = vld [vmem:[%s7865_s3 + $0x131] sm:$0xff]  ;;  %v6439_v42 = vld [vmem:[%s11251_s23 + $0x5] ss:$0 sm:$0xff] }
  0x44   : > { %v6425_v16 = vld [vmem:[%s7865_s3 + $0x1e0] sm:$0xff]  ;;  %v825_v31 = vadd.f32 %v817_v6, %v795_v39  ;;  %v6434_v41 = vld [vmem:[%s7865_s3 + $0x151] sm:$0xff]  ;;  %v841_v46 = vmul.f32 %v6430_v12, %v6422_v0  ;;  %v842_v51 = vmul.f32 %v6430_v12, %v6423_v1  ;;  %v843_v52 = vmul.f32 %v6430_v12, %v6424_v8 }
  0x45   : > { %v6427_v25 = vld [vmem:[%s7865_s3 + $0x200] sm:$0xff]  ;;  %v844_v14 = vmul.f32 %v6430_v12, %v6425_v16  ;;  %v6436_v22 = vld [vmem:[%s7865_s3 + $0x171] sm:$0xff]  ;;  %v845_v57 = vmul.f32 %v6430_v12, %v6426_v18  ;;  %v847_v58 = vmul.f32 %v6430_v12, %v6428_v27  ;;  %v871_v16 = vmul.f32 %v6439_v42, %v6432_v37 }
  0x46   : > { %v6429_v29 = vld [vmem:[%s7865_s3 + $0x220] sm:$0xff]  ;;  %v6438_v56 = vld [vmem:[%s7865_s3 + $0x191] sm:$0xff]  ;;  %v846_v39 = vmul.f32 %v6430_v12, %v6427_v25  ;;  %v849_v60 = vadd.f32 %v841_v46, %v819_v19  ;;  %v850_v62 = vadd.f32 %v842_v51, %v820_v20  ;;  %v851_v63 = vadd.f32 %v843_v52, %v821_v23 }
  0x47   : > { %v6431_v36 = vld [vmem:[%s7865_s3 + $0x121] sm:$0xff]  ;;  %v848_v59 = vmul.f32 %v6430_v12, %v6429_v29  ;;  %v852_v13 = vadd.f32 %v844_v14, %v822_v24  ;;  %v853_v21 = vadd.f32 %v845_v57, %v823_v26  ;;  %v855_v7 = vadd.f32 %v847_v58, %v825_v31  ;;  %v6456_v31 = vld [vmem:[%s7865_s3 + $0x110] sm:$0xff] }
  0x48   : > { %v6433_v38 = vld [vmem:[%s7865_s3 + $0x141] sm:$0xff]  ;;  %v854_v6 = vadd.f32 %v846_v39, %v824_v30  ;;  %v870_v8 = vmul.f32 %v6439_v42, %v6431_v36  ;;  %v873_v11 = vmul.f32 %v6439_v42, %v6434_v41  ;;  %v875_v9 = vmul.f32 %v6439_v42, %v6436_v22 }
  0x49   : > { %v6435_v15 = vld [vmem:[%s7865_s3 + $0x161] sm:$0xff]  ;;  %v856_v0 = vadd.f32 %v848_v59, %v826_v35  ;;  %v872_v3 = vmul.f32 %v6439_v42, %v6433_v38  ;;  %v877_v25 = vmul.f32 %v6439_v42, %v6438_v56  ;;  %v879_v12 = vadd.f32 %v871_v16, %v850_v62 }
  0x4a   : > { %v6437_v53 = vld [vmem:[%s7865_s3 + $0x181] sm:$0xff]  ;;  %v874_v10 = vmul.f32 %v6439_v42, %v6435_v15  ;;  %v878_v27 = vadd.f32 %v870_v8, %v849_v60  ;;  %v881_v20 = vadd.f32 %v873_v11, %v852_v13  ;;  %v883_v29 = vadd.f32 %v875_v9, %v854_v6  ;;  %v11258_v60 = vld [vmem:[#allocation15_spill] sm:$0xff] }
  0x4b   : > { %v6447_v1 = vld [vmem:[%s7865_s3 + $0x80] sm:$0xff]  ;;  %v876_v18 = vmul.f32 %v6439_v42, %v6437_v53  ;;  %v880_v19 = vadd.f32 %v872_v3, %v851_v63  ;;  %v885_v30 = vadd.f32 %v877_v25, %v856_v0  ;;  %v904_v35 = vmul.f32 %v7860_v17, %v7883_v28  ;;  %v11259_v63 = vld [vmem:[#allocation16_spill] sm:$0xff] }
  0x4c   : > { %v6457_v23 = vld [vmem:[%s11251_s23 + $0x7] ss:$0 sm:$0xff]  ;;  %v882_v24 = vadd.f32 %v874_v10, %v853_v21  ;;  %v905_v36 = vmul.f32 %v7860_v17, %v7889_v33  ;;  %v906_v3 = vmul.f32 %v7860_v17, %v7892_v34  ;;  %v907_v11 = vmul.f32 %v7860_v17, %v6447_v1  ;;  %v6466_v33 = vld [vmem:[%s11251_s23 + $0x8] ss:$0 sm:$0xff] }
  0x4d   : > { %v884_v26 = vadd.f32 %v876_v18, %v855_v7  ;;  %v908_v37 = vadd.f32 %v7886_v32, %v878_v27  ;;  %v909_v10 = vadd.f32 %v7900_v40, %v879_v12  ;;  %v910_v9 = vadd.f32 %v7914_v47, %v880_v19  ;;  %v6465_v51 = vld [vmem:[%s7865_s3 + $0x81] sm:$0xff]  ;;  %s11615_s3 = sld [smem:[#allocation9_spill]] }
  0x4e   : > { %v911_v38 = vadd.f32 %v7930_v54, %v881_v20  ;;  %v912_v41 = vadd.f32 %v904_v35, %v882_v24  ;;  %v913_v42 = vadd.f32 %v905_v36, %v883_v29  ;;  %v915_v46 = vadd.f32 %v907_v11, %v885_v30  ;;  %v11257_v58 = vld [vmem:[#allocation14_spill] sm:$0xff] }
  0x4f   : > { %v914_v28 = vadd.f32 %v906_v3, %v884_v26  ;;  %v930_v34 = vmul.f32 %v6457_v23, %v7905_v43  ;;  %v931_v17 = vmul.f32 %v6457_v23, %v7908_v44  ;;  %v932_v32 = vmul.f32 %v6457_v23, %v7911_v45  ;;  %v6467_v45 = vld [vmem:[%s11256_s1] ss:$0 sm:$0xff]  ;;  %s6330_s1 = scalar_lea.sflag [#allocation4], %s701_s28 }
  0x50   : > { %v933_v40 = vmul.f32 %v6457_v23, %v7918_v48  ;;  %v934_v47 = vmul.f32 %v6457_v23, %v7921_v49  ;;  %v935_v54 = vmul.f32 %v6457_v23, %v7924_v50  ;;  %v936_v52 = vmul.f32 %v6457_v23, %v7933_v55 }
  0x51   : > { %v937_v14 = vmul.f32 %v6457_v23, %v6456_v31  ;;  %v938_v15 = vadd.f32 %v930_v34, %v908_v37  ;;  %v939_v22 = vadd.f32 %v931_v17, %v909_v10  ;;  %v940_v53 = vadd.f32 %v932_v32, %v910_v9 }
  0x52   : > { %v941_v56 = vadd.f32 %v933_v40, %v911_v38  ;;  %v942_v57 = vadd.f32 %v934_v47, %v912_v41  ;;  %v943_v43 = vadd.f32 %v935_v54, %v913_v42  ;;  %v944_v39 = vadd.f32 %v936_v52, %v914_v28 }
  0x53   : > { %v945_v44 = vadd.f32 %v937_v14, %v915_v46  ;;  %v959_v48 = vmul.f32 %v6466_v33, %v7940_v61  ;;  %v960_v49 = vmul.f32 %v6466_v33, %v7944_v2  ;;  %v961_v50 = vmul.f32 %v6466_v33, %v7947_v4  ;;  %s6657_s4 = sshll.u32 %s11615_s3, 4  ;;  %s7631_s3 = smov [#allocation3]  }
  0x54   : > { %v962_v55 = vmul.f32 %v6466_v33, %v7950_v5  ;;  %v963_v59 = vmul.f32 %v6466_v33, %v11257_v58  ;;  %v964_v62 = vmul.f32 %v6466_v33, %v11258_v60  ;;  %v965_v13 = vmul.f32 %v6466_v33, %v11259_v63 }
  0x55   : > { %v966_v21 = vmul.f32 %v6466_v33, %v6465_v51  ;;  %v967_v6 = vadd.f32 %v959_v48, %v938_v15  ;;  %v968_v7 = vadd.f32 %v960_v49, %v939_v22  ;;  %v969_v0 = vadd.f32 %v961_v50, %v940_v53 }
  0x56   : > { %v970_v1 = vadd.f32 %v962_v55, %v941_v56  ;;  %v971_v8 = vadd.f32 %v963_v59, %v942_v57  ;;  %v972_v16 = vadd.f32 %v964_v62, %v943_v43  ;;  %v973_v61 = vadd.f32 %v965_v13, %v944_v39 }
  0x57   : > { %v974_v18 = vadd.f32 %v966_v21, %v945_v44  ;;  %v982_v2 = vadd.f32 %v6467_v45, %v967_v6  ;;  %v983_v25 = vadd.f32 %v6467_v45, %v968_v7  ;;  %v984_v4 = vadd.f32 %v6467_v45, %v969_v0 }
  0x58   : > { %v8046_v27 = vadd.f32 %v6467_v45, %v970_v1  ;;  %v8048_v5 = vadd.f32 %v6467_v45, %v971_v8  ;;  %v8050_v12 = vadd.f32 %v6467_v45, %v972_v16  ;;  %v8052_v19 = vadd.f32 %v6467_v45, %v973_v61 }
  0x59   : > { %v8054_v20 = vadd.f32 %v6467_v45, %v974_v18  ;;  %v990_v23 = vsub.f32 0.0, %v982_v2  ;;  %v991_v24 = vsub.f32 0.0, %v983_v25  ;;  %v992_v29 = vsub.f32 0.0, %v984_v4 }
  0x5a   : > { %v993_v26 = vsub.f32 0.0, %v8046_v27  ;;  %v994_v30 = vsub.f32 0.0, %v8048_v5  ;;  %v995_v31 = vsub.f32 0.0, %v8050_v12  ;;  %v996_v35 = vsub.f32 0.0, %v8052_v19 }
  0x5b   : > { %v997_v36 = vsub.f32 0.0, %v8054_v20  ;;  %v998_v3 = vmul.f32 1.442695, %v990_v23  ;;  %v1000_v11 = vmul.f32 1.442695, %v991_v24 }
  0x5c   : > { %v1002_v37 = vmul.f32 1.442695, %v992_v29  ;;  %v1004_v10 = vmul.f32 1.442695, %v993_v26  ;;  %v1006_v9 = vmul.f32 1.442695, %v994_v30 }
  0x5d   : > { %v1008_v38 = vmul.f32 1.442695, %v995_v31  ;;  %7061 = vpow2.f32 %v998_v3  ;;  %v1010_v41 = vmul.f32 1.442695, %v996_v35  ;;  %v1012_v42 = vmul.f32 1.442695, %v997_v36 }
  0x5e   : > { %7063 = vpow2.f32 %v1000_v11  ;;  %v1051_v35 = vld [vmem:[%s11260_s2] sm:$0xf] }
  0x5f   : > { %7065 = vpow2.f32 %v1002_v37  ;;  %6823 = vmatpush3.msk.msra.mxu1 %vm1159_vm2, %v1051_v35  ;;  %v1050_v36 = vld [vmem:[%s11261_s26] sm:$0x1]  ;;  %s6342_s26 = sshll.u32 %s702_s24, 4  ;;  %s11046_s26 = int_to_ptr.vmem [resolvable:$true] %s6342_s26 }
  0x60   : > { %7067 = vpow2.f32 %v1004_v10  ;;  %s7563_s0 = scalar_lea.vmem %s11046_s26, 16 }
  0x61   : > { %7069 = vpow2.f32 %v1006_v9  ;;  %p7564_p11 = scmp.ne.s32.totalorder %s11046_s26, %s7563_s0 }
  0x62   : > { %7071 = vpow2.f32 %v1008_v38 }
  0x63   : > { %7073 = vpow2.f32 %v1010_v41  ;;  %p7565_p12 = pnand %p7564_p11, %p7790_p5 }
  0x64   : > { %7075 = vpow2.f32 %v1012_v42 }
  0x65   : > { %p7566_p13 = pneg %p7565_p12 }
  0x67   : > { %v7062_v28 = vpop.eup %7061 }
  0x68   : > { %v7064_v46 = vpop.eup %7063  ;;  %v1014_v33 = vadd.f32 1.0, %v7062_v28 }
  0x69   : > { %v7066_v34 = vpop.eup %7065  ;;  %v1015_v17 = vadd.f32 1.0, %v7064_v46  ;;  %v6936_v46 = vld [vmem:[%s11262_s25] sm:$0xff]   ;;  %s11617_s25 = sld [smem:[#allocation96_spill]] }
  0x6a   : > { %v7068_v32 = vpop.eup %7067  ;;  %v1016_v40 = vadd.f32 1.0, %v7066_v34  ;;  %7077 = vrcp.f32 %v1014_v33  ;;  %6827 = vmatprep.subr.bf16.mxu1 %v6936_v46  ;;  %v6937_v33 = vld [vmem:[%s11263_s6 + $0x8] sm:$0xff]   ;;  %v6938_v34 = vld [vmem:[%s11263_s6 + $0x10] sm:$0xff]  }
  0x6b   : > { %v7070_v51 = vpop.eup %7069  ;;  %v1017_v47 = vadd.f32 1.0, %v7068_v32  ;;  %7079 = vrcp.f32 %v1015_v17  ;;  %v6939_v17 = vld [vmem:[%s11263_s6 + $0x18] sm:$0xff]   ;;  %v6940_v32 = vld [vmem:[%s11263_s6 + $0x20] sm:$0xff]  }
  0x6c   : > { %v7072_v54 = vpop.eup %7071  ;;  %v1018_v52 = vadd.f32 1.0, %v7070_v51  ;;  %7081 = vrcp.f32 %v1016_v40  ;;  %v6941_v40 = vld [vmem:[%s11263_s6 + $0x28] sm:$0xff]   ;;  %v1052_v51 = vld [vmem:[%s11264_s5] sm:$0x1]  ;;  %s7567_s6 = sshll.u32 %s7631_s3, 4  ;;  %s7568_s6 = int_to_ptr.vmem [resolvable:$false] %s7567_s6 }
  0x6d   : > { %v7074_v14 = vpop.eup %7073  ;;  %v1019_v15 = vadd.f32 1.0, %v7072_v54  ;;  %7083 = vrcp.f32 %v1017_v47  ;;  %p7570_p0 = scmp.lt.s32.totalorder %s11046_s26, %s7568_s6 }
  0x6e   : > { %v7076_v22 = vpop.eup %7075  ;;  %v1020_v53 = vadd.f32 1.0, %v7074_v14  ;;  %7085 = vrcp.f32 %v1018_v52 }
  0x6f   : > { %v1021_v56 = vadd.f32 1.0, %v7076_v22  ;;  %7087 = vrcp.f32 %v1019_v15  ;;  %s11618_s5 = smov %s11617_s25  ;;  %s11044_s7 = scalar_lea.hbm %s11617_s25, %s6657_s4 }
  0x70   : > { %7089 = vrcp.f32 %v1020_v53 }
  0x71   : > { %7091 = vrcp.f32 %v1021_v56  ;;  %v1238_v56 = vlaneseq }
  0x74   : > { %v7078_v57 = vpop.eup %7077 }
  0x75   : > { %v7080_v43 = vpop.eup %7079  ;;  %v8061_v39 = vmul.f32 %v7078_v57, %v982_v2  ;;  %v8127_v57 = vshrl.u32 %v1238_v56, 7 }
  0x76   : > { %v7082_v44 = vpop.eup %7081  ;;  %v8063_v45 = vmul.f32 %v7080_v43, %v983_v25 }
  0x77   : > { %v7084_v48 = vpop.eup %7083  ;;  %v8065_v49 = vmul.f32 %v7082_v44, %v984_v4  ;;  %v1054_v50 = vsel %vm1053_vm1, %v8061_v39, 0.0  ;;  %11265 = vst [vmem:[#allocation14_spill] sm:$0xff] %v8127_v57  ;;  %v8130_v43 = vsub.s32 0, %v8127_v57 }
  0x78   : > { %v7086_v55 = vpop.eup %7085  ;;  %v8070_v58 = vmul.f32 %v7084_v48, %v8046_v27  ;;  %v1055_v59 = vsel %vm1053_vm1, %v8063_v45, 0.0 }
  0x79   : > { %v7088_v60 = vpop.eup %7087  ;;  %v8075_v62 = vmul.f32 %v7086_v55, %v8048_v5  ;;  %v1056_v63 = vadd.f32 %v1055_v59, %v1054_v50  ;;  %v1057_v13 = vsel %vm1053_vm1, %v8065_v49, 0.0  ;;  %11266 = vst [vmem:[#allocation15_spill] sm:$0xff] %v8130_v43 }
  0x7a   : > { %v7090_v21 = vpop.eup %7089  ;;  %v8080_v6 = vmul.f32 %v7088_v60, %v8050_v12  ;;  %v1059_v7 = vsel %vm1053_vm1, %v8070_v58, 0.0 }
  0x7b   : > { %v7092_v0 = vpop.eup %7091  ;;  %v8085_v1 = vmul.f32 %v7090_v21, %v8052_v19  ;;  %v1058_v8 = vadd.f32 %v1057_v13, %v1056_v63  ;;  %v1061_v61 = vsel %vm1053_vm1, %v8075_v62, 0.0 }
  0x7c   : > { %v8088_v16 = vmul.f32 %v7092_v0, %v8054_v20  ;;  %v1063_v2 = vsel %vm1053_vm1, %v8080_v6, 0.0 }
  0x7d   : > { %v1060_v18 = vadd.f32 %v1059_v7, %v1058_v8  ;;  %v1065_v25 = vsel %vm1053_vm1, %v8085_v1, 0.0 }
  0x7e   : > { %v1067_v4 = vsel %vm1053_vm1, %v8088_v16, 0.0 }
  0x7f   : > { %v1062_v27 = vadd.f32 %v1061_v61, %v1060_v18  ;;  %v11128_v61 = vmov 0   ;;  %v11267_v18 = vmov 0.0|0.0  }
  0x81   : > { %v1064_v5 = vadd.f32 %v1063_v2, %v1062_v27 }
  0x83   : > { %v1066_v12 = vadd.f32 %v1065_v25, %v1064_v5  ;;  %v6471_v25 = vld [vmem:[%s11268_s8] ss:$0 sm:$0xff]  ;;  %s7569_s8 = scalar_lea.vmem %s7568_s6, 32 }
  0x84   : > { %p7571_p1 = scmp.lt.s32.totalorder %s7569_s8, %s7563_s0 }
  0x85   : > { %v1068_v19 = vadd.f32 %v1067_v4, %v1066_v12 }
  0x86   : > { %p7572_p2 = por %p7571_p1, %p7570_p0 }
  0x87   : > { %v1069_v23 = vrot.slane %v1068_v19, 4 }
  0x88   : > { %p7573_p3 = pnand %p7572_p2, %p7566_p13 }
  0x89   : > { %v1070_v20 = vadd.f32 %v1069_v23, %v1068_v19 }
  0x8b   : > { %v1071_v24 = vrot.slane %v1070_v20, 2 }
  0x8d   : > { %v1072_v29 = vadd.f32 %v1071_v24, %v1070_v20 }
  0x8f   : > { %v1073_v26 = vrot.slane %v1072_v29, 1 }
  0x91   : > { %v1074_v30 = vadd.f32 %v1073_v26, %v1072_v29 }
  0x93   : > { %v1075_v31 = vmul.f32 0.015625, %v1074_v30 }
  0x95   : > { %6820 = vmatmul.mubr.msk.f32.vlgmr.msra.gmra.mrb[0].mxu0 %vm1053_vm1, %v1075_v31 }
  0x96   : > { %1471 = vmatprep.mubr.bf16.mxu0 %v11128_v61 }
 0x168   : > { %v1145_v3 = vpop.f32.mrb[0].mxu0 }
 0x169   : > { %v1146_v11 = vadd.f32 %v1145_v3, %v1050_v36  ;;  %v6821_v37 = vpop.f32.mrb[1].mxu0 }
 0x16b   : > { %v1149_v10 = vsub.f32 0.0, %v1146_v11 }
 0x16d   : > { %v1150_v9 = vmul.f32 1.442695, %v1149_v10 }
 0x16f   : > { %7093 = vpow2.f32 %v1150_v9 }
 0x179   : > { %v7094_v38 = vpop.eup %7093 }
 0x17a   : > { %v1152_v41 = vadd.f32 1.0, %v7094_v38  ;;  %v7561_v38 = vld [vmem:[#allocation2] sm:$0xff] }
 0x17b   : > { %1610 = vst.msk [vmem:[#allocation2 + $0x8] sm:$0xff] %vm1609_vm5, %v7561_v38  ;;  %1615 = vst.msk [vmem:[#allocation2 + $0x28] sm:$0xff] %vm1609_vm5, %v7561_v38 }
 0x17c   : > { %7095 = vrcp.f32 %v1152_v41  ;;  %1613 = vst.msk [vmem:[#allocation2 + $0x18] sm:$0x3] %vm1612_vm6, %v7561_v38  ;;  %1617 = vst.msk [vmem:[#allocation2 + $0x38] sm:$0x3] %vm1612_vm6, %v7561_v38 }
 0x17d   : > { %1649 = vst.msk [vmem:[#allocation2 + $0x138] sm:$0x3] %vm1612_vm6, %v7561_v38  ;;  %1621 = vst.msk [vmem:[#allocation2 + $0x58] sm:$0x3] %vm1612_vm6, %v7561_v38 }
 0x17e   : > { %1619 = vst.msk [vmem:[#allocation2 + $0x48] sm:$0xff] %vm1609_vm5, %v7561_v38  ;;  %1623 = vst.msk [vmem:[#allocation2 + $0x68] sm:$0xff] %vm1609_vm5, %v7561_v38  ;;  %v6491_v41 = vld [vmem:[%s11097_s11 + $0x1] ss:$8 sm:$0x3] }
 0x17f   : > { %1625 = vst.msk [vmem:[#allocation2 + $0x78] sm:$0x3] %vm1612_vm6, %v7561_v38  ;;  %1629 = vst.msk [vmem:[#allocation2 + $0x98] sm:$0x3] %vm1612_vm6, %v7561_v38 }
 0x180   : > { %1627 = vst.msk [vmem:[#allocation2 + $0x88] sm:$0xff] %vm1609_vm5, %v7561_v38  ;;  %1631 = vst.msk [vmem:[#allocation2 + $0xa8] sm:$0xff] %vm1609_vm5, %v7561_v38 }
 0x181   : > { %1633 = vst.msk [vmem:[#allocation2 + $0xb8] sm:$0x3] %vm1612_vm6, %v7561_v38  ;;  %1637 = vst.msk [vmem:[#allocation2 + $0xd8] sm:$0x3] %vm1612_vm6, %v7561_v38 }
 0x182   : > { %1635 = vst.msk [vmem:[#allocation2 + $0xc8] sm:$0xff] %vm1609_vm5, %v7561_v38  ;;  %1639 = vst.msk [vmem:[#allocation2 + $0xe8] sm:$0xff] %vm1609_vm5, %v7561_v38 }
 0x183   : > { %1641 = vst.msk [vmem:[#allocation2 + $0xf8] sm:$0x3] %vm1612_vm6, %v7561_v38  ;;  %1645 = vst.msk [vmem:[#allocation2 + $0x118] sm:$0x3] %vm1612_vm6, %v7561_v38 }
 0x184   : > { %1643 = vst.msk [vmem:[#allocation2 + $0x108] sm:$0xff] %vm1609_vm5, %v7561_v38  ;;  %1647 = vst.msk [vmem:[#allocation2 + $0x128] sm:$0xff] %vm1609_vm5, %v7561_v38 }
 0x186   : > { %v7096_v42 = vpop.eup %7095 }
 0x187   : > { %v1154_v28 = vmul.f32 %v7096_v42, %v1146_v11  ;;  %v1393_v42 = vld [vmem:[%s11096_s10] sm:$0x3] }
 0x189   : > { %6825 = vmatmul.mubr.msk.f32.vlgmr.msra.gmra.mrb[0].mxu1 %vm1155_vm3, %v1154_v28  ;;  %v8220_v28 = vsub.s32 1, %v8127_v57 }
 0x18a   : > { %6828 = vmatpush3.bf16.msra.mxu1 %v6936_v46  ;;  %v8223_v46 = vrot.slane %v6491_v41, %v8130_v43 }
 0x18b   : > { %6829 = vmatprep.subr.bf16.mxu1 %v6937_v33  ;;  %11277 = vst [vmem:[#allocation24_spill] sm:$0xff] %v8220_v28 }
 0x18c   : > { %11278 = vst [vmem:[#allocation25_spill] sm:$0xff] %v8223_v46 }
 0x18e   : > { %6830 = vmatpush3.bf16.msra.mxu1 %v6937_v33  ;;  %v8226_v33 = vrot.slane %v1393_v42, %v8130_v43 }
 0x18f   : > { %6831 = vmatprep.subr.bf16.mxu1 %v6938_v34 }
 0x192   : > { %6832 = vmatpush3.bf16.msra.mxu1 %v6938_v34  ;;  %v1800_v34 = vld [vmem:[#allocation2] sm:$0xfe] }
 0x193   : > { %6833 = vmatprep.subr.bf16.mxu1 %v6939_v17 }
 0x196   : > { %6834 = vmatpush3.bf16.msra.mxu1 %v6939_v17  ;;  %v1802_v17 = vld [vmem:[#allocation2 + $0x10] sm:$0x1] }
 0x197   : > { %6835 = vmatprep.subr.bf16.mxu1 %v6940_v32 }
 0x19a   : > { %6836 = vmatpush3.bf16.msra.mxu1 %v6940_v32  ;;  %v8229_v32 = vrot.slane %v1393_v42, %v8220_v28  ;;  %v3183_v42 = vld [vmem:[%s11099_s13 + $0x8] sm:$0xff] }
 0x19b   : > { %6837 = vmatprep.subr.bf16.mxu1 %v6941_v40 }
 0x19e   : > { %6838 = vmatpush3.bf16.msra.mxu1 %v6941_v40  ;;  %v6492_v40 = vld [vmem:[%s11097_s11 + $0x2] ss:$8 sm:$0x3] }
 0x19f   : > { %3544 = vmatprep.subr.bf16.mxu1 %v11128_v61 }
 0x25c   : > { %v1229_v47 = vpop.f32.mrb[0].mxu1 }
 0x25d   : > { %v1230_v54 = vadd.f32 %v1229_v47, %v1052_v51  ;;  %v6826_v52 = vpop.f32.mrb[1].mxu1  ;;  %v1756_v47 = vld [vmem:[%s11097_s11] ss:$8 sm:$0x3] }
 0x25e   : > { %v1847_v52 = vmul.f32 %v8223_v46, %v1802_v17 }
 0x25f   : > { %v1233_v14 = vsub.f32 0.0, %v1230_v54  ;;  %v1845_v54 = vmul.f32 %v8223_v46, %v1800_v34  ;;  %v3184_v34 = vld [vmem:[%s11099_s13 + $0x10] sm:$0xff] }
 0x261   : > { %v1234_v15 = vmul.f32 1.442695, %v1233_v14 }
 0x263   : > { %7097 = vpow2.f32 %v1234_v15 }
 0x26d   : > { %v7098_v22 = vpop.eup %7097 }
 0x26e   : > { %v1236_v53 = vadd.f32 1.0, %v7098_v22  ;;  %v8243_v22 = vrot.slane %v6492_v40, %v8130_v43 }
 0x270   : > { %7099 = vrcp.f32 %v1236_v53  ;;  %11279 = vst [vmem:[#allocation26_spill] sm:$0xff] %v8243_v22 }
 0x27a   : > { %v7100_v44 = vpop.eup %7099 }
 0x27b   : > { %v1241_v48 = vrot.slane %v7100_v44, %v8130_v43 }
 0x27d   : > { %v1242_v50 = vmul.f32 %v1241_v48, %v8061_v39  ;;  %v1243_v55 = vmul.f32 %v1241_v48, %v8063_v45  ;;  %v1244_v59 = vmul.f32 %v1241_v48, %v8065_v49  ;;  %v1245_v60 = vmul.f32 %v1241_v48, %v8070_v58  ;;  %v6944_v58 = vld [vmem:[%s11095_s9 + $0x4] ss:$8 sps:$4 sm:$0xff]  }
 0x27e   : > { %v1246_v63 = vmul.f32 %v1241_v48, %v8075_v62  ;;  %v1247_v13 = vmul.f32 %v1241_v48, %v8080_v6  ;;  %v1248_v39 = vmul.f32 %v1241_v48, %v8085_v1  ;;  %v1249_v45 = vmul.f32 %v1241_v48, %v8088_v16  ;;  %v6942_v62 = vld [vmem:[%s11095_s9] ss:$8 sps:$4 sm:$0xff]   ;;  %1439 = vmatprep.subr.bf16.mxu0 %v6944_v58  ;;  %v1392_v6 = vld [vmem:[%s11095_s9 + $0x10] sm:$0xff] }
 0x27f   : > { %v1250_v21 = vpack.c.bf16 %v1243_v55, %v1242_v50  ;;  %v1251_v7 = vpack.c.bf16 %v1245_v60, %v1244_v59  ;;  %1440 = vmatpush1.bf16.msra.mxu0 %v6942_v62  ;;  %v6485_v1 = vcombine.high %v1392_v6, %v1392_v6  ;;  %v6484_v8 = vcombine.low %v1392_v6, %v1392_v6  ;;  %v1990_v55 = vld [vmem:[#allocation2] sm:$0xfc]  ;;  %v1992_v59 = vld [vmem:[#allocation2 + $0x10] sm:$0x3] }
 0x280   : > { %v1252_v0 = vpack.c.bf16 %v1247_v13, %v1246_v63  ;;  %v1253_v49 = vpack.c.bf16 %v1249_v45, %v1248_v39  ;;  %v8250_v48 = vrot.slane %v1756_v47, %v8130_v43  ;;  %v8253_v50 = vrot.slane %v6491_v41, %v8220_v28  ;;  %v1801_v45 = vld [vmem:[#allocation2 + $0x8] sm:$0xfe]  ;;  %v3182_v41 = vld [vmem:[%s11099_s13] sm:$0xff] }
 0x281   : > { %6839 = vmatprep.mubr.msk.bf16.mxu1 %vm1053_vm1, %v1250_v21  ;;  %6486 = vmatprep.subr.msk.bf16.mxu0 %vm1159_vm2, %v6485_v1  ;;  %v1434_v16 = vsel %vm1159_vm2, %v6484_v8, 0  ;;  %v1910_v13 = vrot.slane %v1845_v54, 1  ;;  %v1911_v21 = vrot.slane %v1847_v52, 1  ;;  %v2035_v58 = vmul.f32 %v8243_v22, %v1990_v55  ;;  %v1803_v1 = vld [vmem:[#allocation2 + $0x18] sm:$0x1] }
 0x282   : > { %6840 = vmatmul.mubr.msk.bf16.vlgmr.msra.gmra.mrb[4].mxu1 %vm1053_vm1, %v1251_v7  ;;  %11280 = vst [vmem:[#allocation27_spill] sm:$0xff] %v8250_v48  ;;  %v2037_v62 = vmul.f32 %v8243_v22, %v1992_v59  ;;  %v8310_v55 = vrot.slane %v1756_v47, %v8220_v28  ;;  %v1991_v59 = vld [vmem:[#allocation2 + $0x8] sm:$0xfc] }
 0x283   : > { %6843 = vmatprep.mubr.msk.bf16.mxu1 %vm1053_vm1, %v1252_v0  ;;  %1442 = vmatpush1.bf16.msra.mxu0 %v1434_v16  ;;  %v1768_v16 = vmul.f32 %v7561_v38, %v8250_v48 }
 0x284   : > { %6865 = vmatprep.subr.bf16.mxu0 %v11267_v18 }
 0x28a   : > { %6844 = vmatmul.mubr.msk.bf16.gmra.mrb[8].mxu1 %vm1053_vm1, %v1253_v49 }
 0x355   : > { %v6841_v2 = vpop.f32.mrb[4].mxu1 }
 0x356   : > { %v1355_v4 = vpop.f32.mrb[5].mxu1  ;;  %v8172_v31 = vadd.f32 %v6841_v2, %v6471_v25 }
 0x357   : > { %v6842_v27 = vpop.f32.mrb[6].mxu1  ;;  %v8162_v12 = vadd.f32 %v6471_v25, %v1355_v4  ;;  %v8269_v4 = vmul.f32 %v8253_v50, %v1801_v45 }
 0x358   : > { %v1358_v5 = vpop.f32.mrb[7].mxu1  ;;  %v8170_v29 = vadd.f32 %v6842_v27, %v6471_v25  ;;  %11272 = vst [vmem:[#allocation19_spill] sm:$0xff] %v8172_v31 }
 0x359   : > { %11269 = vst [vmem:[#allocation16_spill] sm:$0xff] %v8162_v12  ;;  %v8164_v19 = vadd.f32 %v6471_v25, %v1358_v5 }
 0x35a   : > { %11271 = vst [vmem:[#allocation18_spill] sm:$0xff] %v8170_v29  ;;  %v1387_v35 = vpack.c.bf16 %v8170_v29, %v8172_v31 }
 0x35b   : > { %11270 = vst [vmem:[#allocation17_spill] sm:$0xff] %v8164_v19  ;;  %v1386_v23 = vpack.c.bf16 %v8164_v19, %v8162_v12 }
 0x35d   : > { %v6845_v20 = vpop.f32.mrb[8].mxu1  ;;  %6487 = vmatmul.mubr.msk.bf16.vlgmr.msra.gmra.mrb[4].mxu0 %vm1420_vm4, %v1386_v23  ;;  %v8274_v23 = vld [vmem:[%s11097_s11 + $0x3] ss:$8 sm:$0x3] }
 0x35e   : > { %v1371_v24 = vpop.f32.mrb[9].mxu1  ;;  %1481 = vmatprep.mubr.bf16.mxu0 %v11128_v61  ;;  %v8188_v10 = vadd.f32 %v6845_v20, %v6471_v25  ;;  %v1848_v20 = vmul.f32 %v8253_v50, %v1803_v1  ;;  %v3186_v1 = vld [vmem:[%s11099_s13 + $0x20] sm:$0xff] }
 0x35f   : > { %v6846_v26 = vpop.f32.mrb[10].mxu1  ;;  %v8180_v3 = vadd.f32 %v6471_v25, %v1371_v24  ;;  %v8278_v24 = vrot.slane %v6492_v40, %v8220_v28  ;;  %v8300_v40 = vld [vmem:[%s11097_s11 + $0x4] ss:$8 sm:$0x3] }
 0x360   : > { %v1374_v30 = vpop.f32.mrb[11].mxu1  ;;  %v8186_v37 = vadd.f32 %v6846_v26, %v6471_v25  ;;  %11276 = vst [vmem:[#allocation23_spill] sm:$0xff] %v8188_v10  ;;  %v1914_v47 = vrot.slane %v1848_v20, 1 }
 0x361   : > { %v8178_v36 = vadd.f32 %v6471_v25, %v1374_v30  ;;  %11274 = vst [vmem:[#allocation21_spill] sm:$0xff] %v8180_v3  ;;  %v1912_v25 = vsel %vm1909_vm7, %v1910_v13, %v1911_v21  ;;  %v1913_v21 = vrot.slane %v8269_v4, 1 }
 0x362   : > { %11275 = vst [vmem:[#allocation22_spill] sm:$0xff] %v8186_v37  ;;  %v1389_v9 = vpack.c.bf16 %v8186_v37, %v8188_v10  ;;  %v8295_v17 = vadd.f32 %v1912_v25, %v1768_v16 }
 0x363   : > { %11273 = vst [vmem:[#allocation20_spill] sm:$0xff] %v8178_v36  ;;  %v1388_v11 = vpack.c.bf16 %v8178_v36, %v8180_v3 }
 0x365   : > { %6488 = vmatmul.mubr.msk.bf16.gmra.mrb[8].mxu0 %vm1420_vm4, %v1387_v35  ;;  %v2100_v35 = vrot.slane %v2035_v58, 2  ;;  %v8320_v58 = vrot.slane %v8274_v23, %v8130_v43 }
 0x366   : > { %1491 = vmatprep.mubr.bf16.mxu0 %v11128_v61 }
 0x36d   : > { %6489 = vmatmul.mubr.msk.bf16.gmra.mrb[12].mxu0 %vm1420_vm4, %v1388_v11  ;;  %v2101_v11 = vrot.slane %v2037_v62, 2 }
 0x36e   : > { %1501 = vmatprep.mubr.bf16.mxu0 %v11128_v61 }
 0x36f   : > { %v2102_v16 = vsel %vm2099_vm8, %v2100_v35, %v2101_v11  ;;  %v3189_v35 = vld [vmem:[%s11099_s13 + $0x38] sm:$0xff] }
 0x375   : > { %6490 = vmatmul.mubr.msk.bf16.gmra.mrb[16].mxu0 %vm1420_vm4, %v1389_v9 }
 0x430   : > { %v1473_v51 = vpop.f32.mrb[4].mxu0 }
 0x431   : > { %v8240_v14 = vadd.f32 %v1473_v51, %v8226_v33  ;;  %v1475_v15 = vpop.f32.mrb[5].mxu0 }
 0x432   : > { %v8246_v53 = vadd.f32 %v1475_v15, %v8229_v32  ;;  %v1477_v56 = vpop.f32.mrb[6].mxu0  ;;  %v6866_v15 = vpack.c.bf16 %v3183_v42, %v3182_v41 }
 0x433   : > { %v1512_v44 = vsub.f32 0.0, %v8240_v14  ;;  %v8256_v60 = vadd.f32 %v1477_v56, %v8226_v33  ;;  %v1479_v63 = vpop.f32.mrb[7].mxu0  ;;  %v3185_v56 = vld [vmem:[%s11099_s13 + $0x18] sm:$0xff] }
 0x434   : > { %v1513_v7 = vsub.f32 0.0, %v8246_v53  ;;  %v8260_v0 = vadd.f32 %v1479_v63, %v8229_v32  ;;  %6867 = vmatpush1.bf16.msra.mxu0 %v6866_v15  ;;  %v1915_v15 = vsel %vm1909_vm7, %v1913_v21, %v1914_v47 }
 0x435   : > { %v1528_v39 = vmul.f32 1.442695, %v1512_v44  ;;  %v1514_v49 = vsub.f32 0.0, %v8256_v60  ;;  %v1741_v44 = vld [vmem:[#allocation2 + $0x8] sm:$0xff]  ;;  %6868 = vmatprep.subr.bf16.mxu0 %v11267_v18 }
 0x436   : > { %v1530_v6 = vmul.f32 1.442695, %v1513_v7  ;;  %v1515_v8 = vsub.f32 0.0, %v8260_v0  ;;  %v1993_v7 = vld [vmem:[#allocation2 + $0x18] sm:$0x3]  ;;  %v1769_v4 = vmul.f32 %v8310_v55, %v1741_v44 }
 0x437   : > { %7101 = vpow2.f32 %v1528_v39  ;;  %v1532_v2 = vmul.f32 1.442695, %v1514_v49  ;;  %v6869_v49 = vpack.c.bf16 %v3185_v56, %v3184_v34 }
 0x438   : > { %7103 = vpow2.f32 %v1530_v6  ;;  %v1534_v27 = vmul.f32 1.442695, %v1515_v8  ;;  %v1483_v5 = vpop.f32.mrb[8].mxu0  ;;  %v3187_v8 = vld [vmem:[%s11099_s13 + $0x28] sm:$0xff] }
 0x439   : > { %7105 = vpow2.f32 %v1532_v2  ;;  %v8281_v26 = vadd.f32 %v1483_v5, %v8226_v33  ;;  %v1485_v30 = vpop.f32.mrb[9].mxu0  ;;  %v8333_v2 = vrot.slane %v8300_v40, %v8130_v43  ;;  %6870 = vmatpush1.bf16.msra.mxu0 %v6869_v49  ;;  %v6872_v34 = vpack.c.bf16 %v3187_v8, %v3186_v1 }
 0x43a   : > { %7107 = vpow2.f32 %v1534_v27  ;;  %v8284_v9 = vadd.f32 %v1485_v30, %v8229_v32  ;;  %v1487_v38 = vpop.f32.mrb[10].mxu0  ;;  %v8337_v27 = vmul.f32 %v8278_v24, %v1991_v59  ;;  %v3188_v30 = vld [vmem:[%s11099_s13 + $0x30] sm:$0xff]  ;;  %6871 = vmatprep.subr.bf16.mxu0 %v11267_v18 }
 0x43b   : > { %v1516_v51 = vsub.f32 0.0, %v8281_v26  ;;  %v8304_v54 = vadd.f32 %v1487_v38, %v8226_v33  ;;  %v1489_v52 = vpop.f32.mrb[11].mxu0  ;;  %11281 = vst [vmem:[#allocation28_spill] sm:$0xff] %v8333_v2  ;;  %v8346_v38 = vmul.f32 %v8278_v24, %v1993_v7  ;;  %v6875_v49 = vpack.c.bf16 %v3189_v35, %v3188_v30 }
 0x43c   : > { %v1517_v63 = vsub.f32 0.0, %v8284_v9  ;;  %v8314_v13 = vadd.f32 %v1489_v52, %v8229_v32 }
 0x43d   : > { %v1536_v39 = vmul.f32 1.442695, %v1516_v51  ;;  %v1518_v45 = vsub.f32 0.0, %v8304_v54  ;;  %6873 = vmatpush1.bf16.msra.mxu0 %v6872_v34  ;;  %v8383_v34 = vadd.f32 %v2102_v16, %v8295_v17 }
 0x43e   : > { %v1538_v62 = vmul.f32 1.442695, %v1517_v63  ;;  %v1519_v6 = vsub.f32 0.0, %v8314_v13  ;;  %v8359_v63 = vld [vmem:[%s11097_s11 + $0x5] ss:$8 sm:$0x3]  ;;  %6874 = vmatprep.subr.bf16.mxu0 %v11267_v18 }
 0x43f   : > { %7109 = vpow2.f32 %v1536_v39  ;;  %v1540_v25 = vmul.f32 1.442695, %v1518_v45 }
 0x440   : > { %7111 = vpow2.f32 %v1538_v62  ;;  %v1542_v5 = vmul.f32 1.442695, %v1519_v6  ;;  %v1493_v20 = vpop.f32.mrb[12].mxu0 }
 0x441   : > { %v7102_v11 = vpop.eup %7101  ;;  %7113 = vpow2.f32 %v1540_v25  ;;  %v8349_v41 = vadd.f32 %v1493_v20, %v8226_v33  ;;  %v1495_v42 = vpop.f32.mrb[13].mxu0  ;;  %v8372_v20 = vrot.slane %v8359_v63, %v8130_v43  ;;  %6876 = vmatpush1.bf16.msra.mxu0 %v6875_v49  ;;  %v3193_v49 = vld [vmem:[%s11099_s13 + $0x58] sm:$0xff] }
 0x442   : > { %v7104_v51 = vpop.eup %7103  ;;  %v1560_v52 = vadd.f32 1.0, %v7102_v11  ;;  %7115 = vpow2.f32 %v1542_v5  ;;  %v8353_v56 = vadd.f32 %v1495_v42, %v8229_v32  ;;  %v1497_v44 = vpop.f32.mrb[14].mxu0  ;;  %v3190_v11 = vld [vmem:[%s11099_s13 + $0x40] sm:$0xff]  ;;  %v3191_v42 = vld [vmem:[%s11099_s13 + $0x48] sm:$0xff]  ;;  %6877 = vmatprep.subr.bf16.mxu0 %v11267_v18 }
 0x443   : > { %v7106_v59 = vpop.eup %7105  ;;  %v1561_v7 = vadd.f32 1.0, %v7104_v51  ;;  %v1520_v39 = vsub.f32 0.0, %v8349_v41  ;;  %v8363_v45 = vadd.f32 %v1497_v44, %v8226_v33  ;;  %v1499_v21 = vpop.f32.mrb[15].mxu0  ;;  %11282 = vst [vmem:[#allocation29_spill] sm:$0xff] %v8372_v20  ;;  %v8385_v51 = vadd.f32 %v1915_v15, %v1769_v4 }
 0x444   : > { %v7108_v47 = vpop.eup %7107  ;;  %7117 = vrcp.f32 %v1560_v52  ;;  %v1562_v62 = vadd.f32 1.0, %v7106_v59  ;;  %v1521_v6 = vsub.f32 0.0, %v8353_v56  ;;  %v8367_v1 = vadd.f32 %v1499_v21, %v8229_v32 }
 0x445   : > { %7119 = vrcp.f32 %v1561_v7  ;;  %v1563_v8 = vadd.f32 1.0, %v7108_v47  ;;  %v1544_v25 = vmul.f32 1.442695, %v1520_v39  ;;  %v1522_v5 = vsub.f32 0.0, %v8363_v45 }
 0x446   : > { %7121 = vrcp.f32 %v1562_v62  ;;  %v1546_v30 = vmul.f32 1.442695, %v1521_v6  ;;  %v1523_v35 = vsub.f32 0.0, %v8367_v1  ;;  %v2103_v44 = vrot.slane %v8337_v27, 2 }
 0x447   : > { %7123 = vrcp.f32 %v1563_v8  ;;  %v1548_v52 = vmul.f32 1.442695, %v1522_v5  ;;  %v2104_v59 = vrot.slane %v8346_v38, 2  ;;  %v8391_v47 = vrot.slane %v8274_v23, %v8220_v28  ;;  %v3192_v23 = vld [vmem:[%s11099_s13 + $0x50] sm:$0xff] }
 0x448   : > { %7125 = vpow2.f32 %v1544_v25  ;;  %v1550_v7 = vmul.f32 1.442695, %v1523_v35  ;;  %v1503_v39 = vpop.f32.mrb[16].mxu0  ;;  %v6878_v4 = vpack.c.bf16 %v3191_v42, %v3190_v11  ;;  %v8398_v38 = vrot.slane %v8300_v40, %v8220_v28  ;;  %v8413_v40 = vld [vmem:[%s11097_s11 + $0x7] ss:$8 sm:$0x3] }
 0x449   : > { %v7110_v21 = vpop.eup %7109  ;;  %7127 = vpow2.f32 %v1546_v30  ;;  %v8394_v17 = vadd.f32 %v1503_v39, %v8226_v33  ;;  %v1505_v16 = vpop.f32.mrb[17].mxu0 }
 0x44a   : > { %v7112_v27 = vpop.eup %7111  ;;  %v1564_v15 = vadd.f32 1.0, %v7110_v21  ;;  %7129 = vpow2.f32 %v1548_v52  ;;  %v8401_v62 = vadd.f32 %v1505_v16, %v8229_v32  ;;  %v1507_v6 = vpop.f32.mrb[18].mxu0  ;;  %6879 = vmatpush1.bf16.msra.mxu0 %v6878_v4  ;;  %v2711_v4 = vld [vmem:[#allocation2 + $0x138] sm:$0x1] }
 0x44b   : > { %11283 = vst [vmem:[#allocation30_spill] sm:$0xff] %v8394_v17  ;;  %v7114_v8 = vpop.eup %7113  ;;  %v1565_v25 = vadd.f32 1.0, %v7112_v27  ;;  %7131 = vpow2.f32 %v1550_v7  ;;  %v1524_v5 = vsub.f32 0.0, %v8394_v17  ;;  %v8417_v30 = vadd.f32 %v1507_v6, %v8226_v33  ;;  %v1509_v35 = vpop.f32.mrb[19].mxu0  ;;  %v3194_v33 = vld [vmem:[%s11099_s13 + $0x60] sm:$0xff]  ;;  %v3195_v27 = vld [vmem:[%s11099_s13 + $0x68] sm:$0xff]  ;;  %6880 = vmatprep.subr.bf16.mxu0 %v11267_v18 }
 0x44c   : > { %11284 = vst [vmem:[#allocation31_spill] sm:$0xff] %v8401_v62  ;;  %v7116_v11 = vpop.eup %7115  ;;  %7133 = vrcp.f32 %v1564_v15  ;;  %v1566_v42 = vadd.f32 1.0, %v7114_v8  ;;  %v1525_v52 = vsub.f32 0.0, %v8401_v62  ;;  %v8421_v39 = vadd.f32 %v1509_v35, %v8229_v32  ;;  %v2709_v15 = vld [vmem:[#allocation2 + $0x128] sm:$0xfe] }
 0x44d   : > { %11285 = vst [vmem:[#allocation32_spill] sm:$0xff] %v8417_v30  ;;  %7135 = vrcp.f32 %v1565_v25  ;;  %v1567_v21 = vadd.f32 1.0, %v7116_v11  ;;  %v1526_v16 = vsub.f32 0.0, %v8417_v30  ;;  %v6881_v7 = vpack.c.bf16 %v3193_v49, %v3192_v23 }
 0x44e   : > { %11286 = vst [vmem:[#allocation33_spill] sm:$0xff] %v8421_v39  ;;  %v7118_v6 = vpop.eup %7117  ;;  %v8432_v32 = vrot.slane %v8413_v40, %v8220_v28  ;;  %7137 = vrcp.f32 %v1566_v42  ;;  %v1552_v8 = vmul.f32 1.442695, %v1524_v5  ;;  %v1527_v25 = vsub.f32 0.0, %v8421_v39 }
 0x44f   : > { %v7120_v23 = vpop.eup %7119  ;;  %v1592_v49 = vmul.f32 %v7118_v6, %v8240_v14  ;;  %v2105_v35 = vsel %vm2099_vm8, %v2103_v44, %v2104_v59  ;;  %7139 = vrcp.f32 %v1567_v21  ;;  %v1554_v11 = vmul.f32 1.442695, %v1525_v52  ;;  %6882 = vmatpush1.bf16.msra.mxu0 %v6881_v7  ;;  %v3196_v14 = vld [vmem:[%s11099_s13 + $0x70] sm:$0xff]  ;;  %v3197_v44 = vld [vmem:[%s11099_s13 + $0x78] sm:$0xff]  ;;  %v8470_v6 = vld [vmem:[%s11099_s13 + $0x80] sm:$0xff] }
 0x450   : > { %v7122_v61 = vpop.eup %7121  ;;  %v1593_v57 = vmul.f32 %v7120_v23, %v8246_v53  ;;  %v1556_v37 = vmul.f32 1.442695, %v1526_v16  ;;  %v6884_v10 = vpack.c.bf16 %v3195_v27, %v3194_v33  ;;  %v8440_v42 = vmul.f32 %v8432_v32, %v2709_v15  ;;  %6883 = vmatprep.subr.bf16.mxu0 %v11267_v18 }
 0x451   : > { %v7124_v5 = vpop.eup %7123  ;;  %v1652_v36 = vrot.slane %v1592_v49, 7  ;;  %v1594_v3 = vmul.f32 %v7122_v61, %v8256_v60  ;;  %v1558_v29 = vmul.f32 1.442695, %v1527_v25  ;;  %v2756_v53 = vmul.f32 %v8432_v32, %v2711_v4  ;;  %v2634_v49 = vld [vmem:[#allocation2 + $0x128] sm:$0xff] }
 0x452   : > { %v7126_v59 = vpop.eup %7125  ;;  %v1653_v52 = vrot.slane %v1593_v57, 7  ;;  %v8452_v21 = vrot.slane %v8359_v63, %v8220_v28  ;;  %v1595_v61 = vmul.f32 %v7124_v5, %v8260_v0  ;;  %7141 = vpow2.f32 %v1552_v8  ;;  %v6496_v57 = vld [vmem:[%s11097_s11 + $0x6] ss:$8 sm:$0x3] }
 0x453   : > { %v7128_v60 = vpop.eup %7127  ;;  %1657 = vst [vmem:[#allocation2 + $0x20] sm:$0xfe] %v1652_v36  ;;  %1660 = vst [vmem:[#allocation2 + $0x30] sm:$0x1] %v1652_v36  ;;  %v8457_v16 = vadd.f32 %v2105_v35, %v8385_v51  ;;  %v1665_v7 = vrot.slane %v1594_v3, 7  ;;  %v1568_v33 = vadd.f32 1.0, %v7126_v59  ;;  %7143 = vpow2.f32 %v1554_v11  ;;  %6885 = vmatpush1.bf16.msra.mxu0 %v6884_v10 }
 0x454   : > { %v7130_v63 = vpop.eup %7129  ;;  %1659 = vst.msk [vmem:[#allocation2 + $0x28] sm:$0xfe] %vm1658_vm9, %v1653_v52  ;;  %v6498_v0 = vld [vmem:[%s11097_s11 + $0x10] ss:$8 sm:$0x3]  ;;  %v1666_v36 = vrot.slane %v1595_v61, 7  ;;  %7145 = vpow2.f32 %v1556_v37  ;;  %v6887_v51 = vpack.c.bf16 %v3197_v44, %v3196_v14  ;;  %v8479_v23 = vrot.slane %v6496_v57, %v8130_v43  ;;  %6886 = vmatprep.subr.bf16.mxu0 %v11267_v18 }
 0x455   : > { %1662 = vst.msk [vmem:[#allocation2 + $0x38] sm:$0x1] %vm1661_vm10, %v1653_v52  ;;  %v1569_v27 = vadd.f32 1.0, %v7128_v60  ;;  %v7132_v3 = vpop.eup %7131  ;;  %1670 = vst [vmem:[#allocation2 + $0x40] sm:$0xfe] %v1665_v7  ;;  %v1570_v15 = vadd.f32 1.0, %v7130_v63  ;;  %7147 = vpow2.f32 %v1558_v29  ;;  %v8483_v29 = vrot.slane %v8413_v40, %v8130_v43 }
 0x456   : > { %1672 = vst [vmem:[#allocation2 + $0x50] sm:$0x1] %v1665_v7  ;;  %v8475_v8 = vld [vmem:[%s11099_s13 + $0x88] sm:$0xff]  ;;  %v2834_v25 = vrot.slane %v8440_v42, 1  ;;  %v2835_v37 = vrot.slane %v2756_v53, 1  ;;  %v7134_v4 = vpop.eup %7133  ;;  %11287 = vst [vmem:[#allocation34_spill] sm:$0xff] %v8479_v23  ;;  %7149 = vrcp.f32 %v1568_v33  ;;  %v8489_v11 = vrot.slane %v6498_v0, %v8130_v43 }
 0x457   : > { %11288 = vst [vmem:[#allocation35_spill] sm:$0xff] %v8483_v29  ;;  %1671 = vst.msk [vmem:[#allocation2 + $0x48] sm:$0xfe] %vm1658_vm9, %v1666_v36  ;;  %v1571_v10 = vadd.f32 1.0, %v7132_v3  ;;  %v7136_v35 = vpop.eup %7135  ;;  %v1596_v42 = vmul.f32 %v7134_v4, %v8281_v26  ;;  %7151 = vrcp.f32 %v1569_v27  ;;  %v8493_v5 = vrot.slane %v6496_v57, %v8220_v28  ;;  %v2898_v40 = vld [vmem:[#allocation2 + $0x128] sm:$0xfc]  ;;  %6888 = vmatpush1.bf16.msra.mxu0 %v6887_v51 }
 0x458   : > { %1673 = vst.msk [vmem:[#allocation2 + $0x58] sm:$0x1] %vm1661_vm10, %v1666_v36  ;;  %11289 = vst [vmem:[#allocation36_spill] sm:$0xff] %v8489_v11  ;;  %v2900_v14 = vld [vmem:[#allocation2 + $0x138] sm:$0x3]  ;;  %v7138_v44 = vpop.eup %7137  ;;  %v1597_v53 = vmul.f32 %v7136_v35, %v8284_v9  ;;  %7153 = vrcp.f32 %v1570_v15  ;;  %v6890_v59 = vpack.c.bf16 %v8475_v8, %v8470_v6  ;;  %v8499_v52 = vrot.slane %v6498_v0, %v8220_v28 }
 0x459   : > { %11290 = vst [vmem:[#allocation37_spill] sm:$0xff] %v8493_v5  ;;  %v7140_v61 = vpop.eup %7139  ;;  %v1676_v60 = vrot.slane %v1596_v42, 7  ;;  %7155 = vrcp.f32 %v1571_v10  ;;  %v8502_v26 = vmul.f32 %v8493_v5, %v2634_v49  ;;  %v8505_v7 = vsel %vm1909_vm7, %v2834_v25, %v2835_v37  ;;  %6889 = vmatprep.subr.bf16.mxu0 %v11267_v18 }
 0x45a   : > { %11291 = vst [vmem:[#allocation38_spill] sm:$0xff] %v8499_v52  ;;  %11293 = vst [vmem:[#allocation40_spill] sm:$0xff] %v8505_v7  ;;  %v1742_v57 = vld [vmem:[#allocation2 + $0x20] sm:$0xff]  ;;  %v1806_v9 = vld [vmem:[#allocation2 + $0x30] sm:$0x1]  ;;  %v1677_v63 = vrot.slane %v1597_v53, 7  ;;  %v8508_v36 = vmul.f32 %v7138_v44, %v8304_v54  ;;  %v8512_v0 = vmul.f32 %v8499_v52, %v2898_v40  ;;  %v8515_v27 = vmul.f32 %v8499_v52, %v2900_v14 }
 0x45b   : > { %11292 = vst [vmem:[#allocation39_spill] sm:$0xff] %v8502_v26  ;;  %v1804_v33 = vld [vmem:[#allocation2 + $0x20] sm:$0xfe]  ;;  %v1851_v3 = vmul.f32 %v8223_v46, %v1806_v9  ;;  %v1996_v6 = vld [vmem:[#allocation2 + $0x30] sm:$0x3]  ;;  %v2209_v8 = vmul.f32 %v8320_v58, %v1742_v57  ;;  %v8521_v54 = vmul.f32 %v7140_v61, %v8314_v13  ;;  %v1770_v37 = vmul.f32 %v8250_v48, %v1742_v57 }
 0x45c   : > { %11294 = vst [vmem:[#allocation41_spill] sm:$0xff] %v8512_v0  ;;  %11295 = vst [vmem:[#allocation42_spill] sm:$0xff] %v8515_v27  ;;  %v1849_v51 = vmul.f32 %v8223_v46, %v1804_v33  ;;  %v1994_v15 = vld [vmem:[#allocation2 + $0x20] sm:$0xfc]  ;;  %v8523_v18 = vpop.eup %7141  ;;  %v8530_v10 = vmul.f32 %v8243_v22, %v1996_v6  ;;  %v2243_v49 = vld [vmem:[#allocation2 + $0x30] sm:$0x1]  ;;  %6891 = vmatpush1.bf16.msra.mxu0 %v6890_v59 }
 0x45d   : > { %v2241_v25 = vld [vmem:[#allocation2 + $0x20] sm:$0xfe]  ;;  %1681 = vst [vmem:[#allocation2 + $0x60] sm:$0xfe] %v1676_v60  ;;  %1683 = vst [vmem:[#allocation2 + $0x70] sm:$0x1] %v1676_v60  ;;  %v8527_v4 = vmul.f32 %v8243_v22, %v1994_v15  ;;  %v8535_v13 = vpop.eup %7143  ;;  %v2225_v53 = vadd.f32 %v2209_v8, %v8383_v34  ;;  %v2288_v61 = vmul.f32 %v8333_v2, %v2243_v49 }
 0x45e   : > { %v2286_v35 = vmul.f32 %v8333_v2, %v2241_v25  ;;  %v2430_v42 = vld [vmem:[#allocation2 + $0x20] sm:$0xfc]  ;;  %v2432_v40 = vld [vmem:[#allocation2 + $0x30] sm:$0x3]  ;;  %1682 = vst.msk [vmem:[#allocation2 + $0x68] sm:$0xfe] %vm1658_vm9, %v1677_v63  ;;  %v8539_v33 = vpop.eup %7145 }
 0x45f   : > { %1684 = vst.msk [vmem:[#allocation2 + $0x78] sm:$0x1] %vm1661_vm10, %v1677_v63  ;;  %v1916_v14 = vrot.slane %v1849_v51, 1  ;;  %v1917_v44 = vrot.slane %v1851_v3, 1  ;;  %v1743_v60 = vld [vmem:[#allocation2 + $0x28] sm:$0xff]  ;;  %v2106_v9 = vrot.slane %v8527_v4, 2  ;;  %v8544_v63 = vmul.f32 %v8372_v20, %v2430_v42  ;;  %v8546_v51 = vpop.eup %7147 }
 0x460   : > { %v1805_v57 = vld [vmem:[#allocation2 + $0x28] sm:$0xfe]  ;;  %v2107_v15 = vrot.slane %v8530_v10, 2  ;;  %v2350_v6 = vrot.slane %v2286_v35, 1  ;;  %v1807_v25 = vld [vmem:[#allocation2 + $0x38] sm:$0x1]  ;;  %v8550_v8 = vmul.f32 %v8372_v20, %v2432_v40  ;;  %v1771_v59 = vmul.f32 %v8310_v55, %v1743_v60  ;;  %v8553_v4 = vpop.eup %7149 }
 0x461   : > { %v1918_v34 = vsel %vm1909_vm7, %v1916_v14, %v1917_v44  ;;  %v2351_v3 = vrot.slane %v2288_v61, 1  ;;  %v1995_v49 = vld [vmem:[#allocation2 + $0x28] sm:$0xfc]  ;;  %v1997_v31 = vld [vmem:[#allocation2 + $0x38] sm:$0x3]  ;;  %v1850_v42 = vmul.f32 %v8253_v50, %v1805_v57  ;;  %v1852_v19 = vmul.f32 %v8253_v50, %v1807_v25  ;;  %v8558_v14 = vpop.eup %7151  ;;  %v1744_v52 = vld [vmem:[#allocation2 + $0x40] sm:$0xff] }
 0x462   : > { %v1976_v10 = vadd.f32 %v1918_v34, %v1770_v37  ;;  %v2242_v12 = vld [vmem:[#allocation2 + $0x28] sm:$0xfe]  ;;  %v2244_v28 = vld [vmem:[#allocation2 + $0x38] sm:$0x1]  ;;  %v2540_v44 = vrot.slane %v8550_v8, 2  ;;  %v8563_v61 = vmul.f32 %v8278_v24, %v1995_v49  ;;  %v8566_v43 = vmul.f32 %v8278_v24, %v1997_v31  ;;  %v8568_v35 = vpop.eup %7153 }
 0x463   : > { %v2352_v40 = vsel %vm1909_vm7, %v2350_v6, %v2351_v3  ;;  %v2431_v37 = vld [vmem:[#allocation2 + $0x28] sm:$0xfc]  ;;  %v2433_v34 = vld [vmem:[#allocation2 + $0x38] sm:$0x3]  ;;  %v1919_v25 = vrot.slane %v1850_v42, 1  ;;  %v1920_v27 = vrot.slane %v1852_v19, 1  ;;  %v2210_v0 = vmul.f32 %v8391_v47, %v1743_v60  ;;  %v8571_v7 = vpop.eup %7155 }
 0x464   : > { %v2414_v57 = vadd.f32 %v2352_v40, %v2225_v53  ;;  %v8576_v8 = vmul.f32 %v8398_v38, %v2242_v12  ;;  %v8579_v31 = vmul.f32 %v8398_v38, %v2244_v28  ;;  %v1808_v49 = vld [vmem:[#allocation2 + $0x40] sm:$0xfe]  ;;  %v1810_v26 = vld [vmem:[#allocation2 + $0x50] sm:$0x1]  ;;  %v8586_v60 = vmul.f32 %v8452_v21, %v2431_v37  ;;  %v8625_v5 = vld [vmem:[#allocation2 + $0x48] sm:$0xff] }
 0x465   : > { %v1921_v53 = vsel %vm1909_vm7, %v1919_v25, %v1920_v27  ;;  %v8583_v19 = vadd.f32 %v2210_v0, %v8457_v16  ;;  %v8589_v42 = vmul.f32 %v8452_v21, %v2433_v34  ;;  %v1998_v40 = vld [vmem:[#allocation2 + $0x40] sm:$0xfc]  ;;  %v2000_v6 = vld [vmem:[#allocation2 + $0x50] sm:$0x3]  ;;  %v1772_v39 = vmul.f32 %v8250_v48, %v1744_v52  ;;  %11300 = vst [vmem:[#allocation46_spill] sm:$0xff] %v8625_v5 }
 0x466   : > { %11297 = vst [vmem:[#allocation44_spill] sm:$0xff] %v8586_v60  ;;  %v8591_v12 = vadd.f32 %v1921_v53, %v1771_v59  ;;  %v2245_v27 = vld [vmem:[#allocation2 + $0x40] sm:$0xfe]  ;;  %v1853_v37 = vmul.f32 %v8223_v46, %v1808_v49  ;;  %v1855_v34 = vmul.f32 %v8223_v46, %v1810_v26  ;;  %v2247_v25 = vld [vmem:[#allocation2 + $0x50] sm:$0x1]  ;;  %v8601_v59 = vmul.f32 %v8243_v22, %v1998_v40 }
 0x467   : > { %11296 = vst [vmem:[#allocation43_spill] sm:$0xff] %v8583_v19  ;;  %11298 = vst [vmem:[#allocation45_spill] sm:$0xff] %v8589_v42  ;;  %v2434_v30 = vld [vmem:[#allocation2 + $0x40] sm:$0xfc]  ;;  %v8604_v53 = vmul.f32 %v8243_v22, %v2000_v6  ;;  %v2108_v28 = vsel %vm2099_vm8, %v2106_v9, %v2107_v15  ;;  %v2211_v3 = vmul.f32 %v8320_v58, %v1744_v52  ;;  %v2436_v62 = vld [vmem:[#allocation2 + $0x50] sm:$0x3] }
 0x468   : > { %v1922_v16 = vrot.slane %v1853_v37, 1  ;;  %v1923_v17 = vrot.slane %v1855_v34, 1  ;;  %v2166_v0 = vadd.f32 %v2108_v28, %v1976_v10  ;;  %v2290_v49 = vmul.f32 %v8333_v2, %v2245_v27  ;;  %v2680_v6 = vld [vmem:[#allocation2 + $0x40] sm:$0xfe]  ;;  %v2682_v42 = vld [vmem:[#allocation2 + $0x50] sm:$0x1] }
 0x469   : > { %v2292_v40 = vmul.f32 %v8333_v2, %v2247_v25  ;;  %v8613_v60 = vmul.f32 %v8372_v20, %v2434_v30  ;;  %v8617_v37 = vmul.f32 %v8372_v20, %v2436_v62  ;;  %v2869_v10 = vld [vmem:[#allocation2 + $0x40] sm:$0xfc]  ;;  %v2871_v28 = vld [vmem:[#allocation2 + $0x50] sm:$0x3]  ;;  %v11299_v26 = vrot.slane %v8544_v63, 2 }
 0x46a   : > { %v1924_v9 = vsel %vm1909_vm7, %v1922_v16, %v1923_v17  ;;  %v2227_v15 = vadd.f32 %v2211_v3, %v2166_v0  ;;  %v2356_v19 = vrot.slane %v2290_v49, 1  ;;  %v2648_v16 = vmul.f32 %v8479_v23, %v1744_v52  ;;  %v1809_v0 = vld [vmem:[#allocation2 + $0x48] sm:$0xfe]  ;;  %v2248_v30 = vld [vmem:[#allocation2 + $0x58] sm:$0x1] }
 0x46b   : > { %v8619_v27 = vadd.f32 %v1924_v9, %v1772_v39  ;;  %v2357_v34 = vrot.slane %v2292_v40, 1  ;;  %v2541_v25 = vsel %vm2099_vm8, %v11299_v26, %v2540_v44  ;;  %v8630_v62 = vmul.f32 %v8483_v29, %v2680_v6  ;;  %v1811_v26 = vld [vmem:[#allocation2 + $0x58] sm:$0x1]  ;;  %v1999_v40 = vld [vmem:[#allocation2 + $0x48] sm:$0xfc] }
 0x46c   : > { %v2603_v3 = vadd.f32 %v2541_v25, %v2414_v57  ;;  %v8634_v49 = vmul.f32 %v8483_v29, %v2682_v42  ;;  %v8637_v63 = vmul.f32 %v8489_v11, %v2869_v10  ;;  %v8640_v44 = vmul.f32 %v8489_v11, %v2871_v28  ;;  %v2001_v57 = vld [vmem:[#allocation2 + $0x58] sm:$0x3]  ;;  %v2246_v42 = vld [vmem:[#allocation2 + $0x48] sm:$0xfe] }
 0x46d   : > { %11301 = vst [vmem:[#allocation47_spill] sm:$0xff] %v8630_v62  ;;  %v2358_v39 = vsel %vm1909_vm7, %v2356_v19, %v2357_v34  ;;  %v1773_v19 = vmul.f32 %v8310_v55, %v8625_v5  ;;  %v1854_v25 = vmul.f32 %v8253_v50, %v1809_v0  ;;  %v11307_v6 = vrot.slane %v8563_v61, 2  ;;  %v2435_v10 = vld [vmem:[#allocation2 + $0x48] sm:$0xfc]  ;;  %v2437_v17 = vld [vmem:[#allocation2 + $0x58] sm:$0x3] }
 0x46e   : > { %11302 = vst [vmem:[#allocation48_spill] sm:$0xff] %v8634_v49  ;;  %11303 = vst [vmem:[#allocation49_spill] sm:$0xff] %v8637_v63  ;;  %v8642_v9 = vadd.f32 %v2358_v39, %v2227_v15  ;;  %v8644_v52 = vadd.f32 %v2648_v16, %v2603_v3  ;;  %v1856_v15 = vmul.f32 %v8253_v50, %v1811_v26  ;;  %v11306_v39 = vrot.slane %v8566_v43, 2  ;;  %v2681_v28 = vld [vmem:[#allocation2 + $0x48] sm:$0xfe] }
 0x46f   : > { %11304 = vst [vmem:[#allocation50_spill] sm:$0xff] %v8640_v44  ;;  %v8655_v3 = vmul.f32 %v8278_v24, %v1999_v40  ;;  %v8658_v16 = vmul.f32 %v8278_v24, %v2001_v57  ;;  %v1925_v63 = vrot.slane %v1854_v25, 1  ;;  %v2212_v26 = vmul.f32 %v8391_v47, %v8625_v5  ;;  %v2683_v57 = vld [vmem:[#allocation2 + $0x58] sm:$0x1]  ;;  %v1812_v44 = vld [vmem:[#allocation2 + $0x60] sm:$0xfe] }
 0x470   : > { %11305 = vst [vmem:[#allocation51_spill] sm:$0xff] %v8644_v52  ;;  %v2111_v34 = vsel %vm2099_vm8, %v11307_v6, %v11306_v39  ;;  %v8669_v40 = vmul.f32 %v8398_v38, %v2246_v42  ;;  %v1926_v52 = vrot.slane %v1856_v15, 1  ;;  %v8674_v6 = vmul.f32 %v8398_v38, %v2248_v30  ;;  %v1746_v39 = vld [vmem:[#allocation2 + $0x60] sm:$0xff]  ;;  %v1814_v25 = vld [vmem:[#allocation2 + $0x70] sm:$0x1] }
 0x471   : > { %v2167_v0 = vadd.f32 %v2111_v34, %v8591_v12  ;;  %v8680_v34 = vmul.f32 %v8452_v21, %v2435_v10  ;;  %v8683_v42 = vmul.f32 %v8452_v21, %v2437_v17  ;;  %v2002_v15 = vld [vmem:[#allocation2 + $0x60] sm:$0xfc]  ;;  %v2004_v49 = vld [vmem:[#allocation2 + $0x70] sm:$0x3]  ;;  %v8688_v30 = vmul.f32 %v8432_v32, %v2681_v28 }
 0x472   : > { %v1927_v43 = vsel %vm1909_vm7, %v1925_v63, %v1926_v52  ;;  %v2251_v12 = vld [vmem:[#allocation2 + $0x70] sm:$0x1]  ;;  %v1857_v63 = vmul.f32 %v8223_v46, %v1812_v44  ;;  %v1859_v52 = vmul.f32 %v8223_v46, %v1814_v25  ;;  %v8701_v28 = vmul.f32 %v8243_v22, %v2002_v15  ;;  %v2438_v61 = vld [vmem:[#allocation2 + $0x60] sm:$0xfc] }
 0x473   : > { %v8676_v62 = vadd.f32 %v2212_v26, %v2167_v0  ;;  %11309 = vst [vmem:[#allocation53_spill] sm:$0xff] %v8688_v30  ;;  %v8691_v0 = vmul.f32 %v8432_v32, %v2683_v57  ;;  %v2249_v26 = vld [vmem:[#allocation2 + $0x60] sm:$0xfe]  ;;  %v8693_v5 = vadd.f32 %v1927_v43, %v1773_v19  ;;  %v8704_v57 = vmul.f32 %v8243_v22, %v2004_v49  ;;  %v2440_v25 = vld [vmem:[#allocation2 + $0x70] sm:$0x3] }
 0x474   : > { %v11311_v19 = vrot.slane %v8604_v53, 2  ;;  %v11312_v43 = vrot.slane %v8601_v59, 2  ;;  %v2213_v17 = vmul.f32 %v8320_v58, %v1746_v39  ;;  %v2296_v44 = vmul.f32 %v8333_v2, %v2251_v12 }
 0x475   : > { %11308 = vst [vmem:[#allocation52_spill] sm:$0xff] %v8676_v62  ;;  %11310 = vst [vmem:[#allocation54_spill] sm:$0xff] %v8691_v0  ;;  %v1774_v62 = vmul.f32 %v8250_v48, %v1746_v39  ;;  %v2294_v0 = vmul.f32 %v8333_v2, %v2249_v26  ;;  %v1928_v30 = vrot.slane %v1857_v63, 1  ;;  %v1929_v15 = vrot.slane %v1859_v52, 1 }
 0x476   : > { %v2114_v10 = vsel %vm2099_vm8, %v11312_v43, %v11311_v19  ;;  %v2363_v48 = vrot.slane %v2296_v44, 1  ;;  %v8718_v59 = vmul.f32 %v8372_v20, %v2438_v61  ;;  %v2684_v19 = vld [vmem:[#allocation2 + $0x60] sm:$0xfe]  ;;  %v2686_v43 = vld [vmem:[#allocation2 + $0x70] sm:$0x1]  ;;  %v8722_v12 = vmul.f32 %v8372_v20, %v2440_v25  ;;  %v8730_v44 = vld [vmem:[#allocation2 + $0x68] sm:$0xff] }
 0x477   : > { %v2168_v22 = vadd.f32 %v2114_v10, %v8619_v27  ;;  %v2362_v53 = vrot.slane %v2294_v0, 1  ;;  %v1930_v26 = vsel %vm1909_vm7, %v1928_v30, %v1929_v15  ;;  %v11315_v63 = vrot.slane %v8617_v37, 2  ;;  %v2873_v0 = vld [vmem:[#allocation2 + $0x60] sm:$0xfc]  ;;  %v2875_v10 = vld [vmem:[#allocation2 + $0x70] sm:$0x3] }
 0x478   : > { %11313 = vst [vmem:[#allocation55_spill] sm:$0xff] %v8718_v59  ;;  %11314 = vst [vmem:[#allocation56_spill] sm:$0xff] %v8722_v12  ;;  %v11316_v52 = vrot.slane %v8613_v60, 2  ;;  %v2650_v27 = vmul.f32 %v8479_v23, %v1746_v39  ;;  %v1980_v61 = vadd.f32 %v1930_v26, %v1774_v62  ;;  %v1813_v25 = vld [vmem:[#allocation2 + $0x68] sm:$0xfe]  ;;  %v8737_v60 = vmul.f32 %v8483_v29, %v2684_v19 }
 0x479   : > { %v2229_v49 = vadd.f32 %v2213_v17, %v2168_v22  ;;  %v2364_v2 = vsel %vm1909_vm7, %v2362_v53, %v2363_v48  ;;  %v8740_v39 = vmul.f32 %v8483_v29, %v2686_v43  ;;  %v8745_v22 = vmul.f32 %v8489_v11, %v2873_v0  ;;  %v2439_v43 = vld [vmem:[#allocation2 + $0x68] sm:$0xfc]  ;;  %v2441_v15 = vld [vmem:[#allocation2 + $0x78] sm:$0x3] }
 0x47a   : > { %v2547_v46 = vsel %vm2099_vm8, %v11316_v52, %v11315_v63  ;;  %11317 = vst [vmem:[#allocation57_spill] sm:$0xff] %v8737_v60  ;;  %v1815_v63 = vld [vmem:[#allocation2 + $0x78] sm:$0x1]  ;;  %v2003_v52 = vld [vmem:[#allocation2 + $0x68] sm:$0xfc]  ;;  %v8748_v48 = vmul.f32 %v8489_v11, %v2875_v10  ;;  %v1775_v62 = vmul.f32 %v8310_v55, %v8730_v44  ;;  %v2214_v53 = vmul.f32 %v8391_v47, %v8730_v44 }
 0x47b   : > { %v2605_v37 = vadd.f32 %v2547_v46, %v8642_v9  ;;  %11318 = vst [vmem:[#allocation58_spill] sm:$0xff] %v8740_v39  ;;  %v8742_v20 = vadd.f32 %v2364_v2, %v2229_v49  ;;  %11320 = vst [vmem:[#allocation60_spill] sm:$0xff] %v8745_v22  ;;  %v2005_v46 = vld [vmem:[#allocation2 + $0x78] sm:$0x3]  ;;  %v2250_v9 = vld [vmem:[#allocation2 + $0x68] sm:$0xfe]  ;;  %v1858_v2 = vmul.f32 %v8253_v50, %v1813_v25 }
 0x47c   : > { %11321 = vst [vmem:[#allocation61_spill] sm:$0xff] %v8748_v48  ;;  %v2252_v49 = vld [vmem:[#allocation2 + $0x78] sm:$0x1]  ;;  %v1860_v10 = vmul.f32 %v8253_v50, %v1815_v63  ;;  %v2048_v30 = vmul.f32 %v8278_v24, %v2003_v52  ;;  %v2295_v25 = vmul.f32 %v8398_v38, %v2250_v9  ;;  %v2484_v0 = vmul.f32 %v8452_v21, %v2439_v43 }
 0x47d   : > { %11319 = vst [vmem:[#allocation59_spill] sm:$0xff] %v8742_v20  ;;  %v8752_v17 = vadd.f32 %v2650_v27, %v2605_v37  ;;  %v2685_v20 = vld [vmem:[#allocation2 + $0x68] sm:$0xfe]  ;;  %v1931_v27 = vrot.slane %v1858_v2, 1  ;;  %v2050_v37 = vmul.f32 %v8278_v24, %v2005_v46  ;;  %v2687_v19 = vld [vmem:[#allocation2 + $0x78] sm:$0x1]  ;;  %v2297_v26 = vmul.f32 %v8398_v38, %v2252_v49 }
 0x47e   : > { %v2121_v60 = vrot.slane %v2048_v30, 2  ;;  %v2365_v22 = vrot.slane %v2295_v25, 1  ;;  %v2486_v52 = vmul.f32 %v8452_v21, %v2441_v15  ;;  %v8769_v2 = vmul.f32 %v8432_v32, %v2685_v20 }
 0x47f   : > { %11322 = vst [vmem:[#allocation62_spill] sm:$0xff] %v8752_v17  ;;  %v1932_v17 = vrot.slane %v1860_v10, 1  ;;  %v2122_v63 = vrot.slane %v2050_v37, 2  ;;  %v2366_v48 = vrot.slane %v2297_v26, 1  ;;  %v2554_v39 = vrot.slane %v2484_v0, 2  ;;  %v11333_v26 = vld [vmem:[#allocation43_spill] sm:$0xff] }
 0x480   : > { %11323 = vst [vmem:[#allocation63_spill] sm:$0xff] %v8769_v2  ;;  %v8773_v9 = vmul.f32 %v8432_v32, %v2687_v19  ;;  %v2555_v30 = vrot.slane %v2486_v52, 2  ;;  %v1687_v49 = vrot.slane %v8508_v36, 7  ;;  %v11325_v43 = vrot.slane %v8704_v57, 2  ;;  %v11335_v52 = vld [vmem:[#allocation45_spill] sm:$0xff] }
 0x481   : > { %v1933_v46 = vsel %vm1909_vm7, %v1931_v27, %v1932_v17  ;;  %v11326_v37 = vrot.slane %v8701_v28, 2  ;;  %v1688_v20 = vrot.slane %v8521_v54, 7  ;;  %v1600_v17 = vmul.f32 %v8553_v4, %v8349_v41  ;;  %v11334_v27 = vld [vmem:[#allocation52_spill] sm:$0xff] }
 0x482   : > { %11324 = vst [vmem:[#allocation64_spill] sm:$0xff] %v8773_v9  ;;  %v1981_v10 = vadd.f32 %v1933_v46, %v1775_v62  ;;  %v1601_v19 = vmul.f32 %v8558_v14, %v8353_v56  ;;  %1692 = vst [vmem:[#allocation2 + $0x80] sm:$0xfe] %v1687_v49  ;;  %v1602_v36 = vmul.f32 %v8568_v35, %v8363_v45  ;;  %v1572_v57 = vadd.f32 1.0, %v8523_v18 }
 0x483   : > { %v2120_v15 = vsel %vm2099_vm8, %v11326_v37, %v11325_v43  ;;  %1694 = vst [vmem:[#allocation2 + $0x90] sm:$0x1] %v1687_v49  ;;  %v1603_v28 = vmul.f32 %v8571_v7, %v8367_v1  ;;  %1693 = vst.msk [vmem:[#allocation2 + $0x88] sm:$0xfe] %vm1658_vm9, %v1688_v20  ;;  %v1698_v41 = vrot.slane %v1600_v17, 7  ;;  %v1574_v56 = vadd.f32 1.0, %v8539_v33 }
 0x484   : > { %v8781_v25 = vadd.f32 %v2120_v15, %v1980_v61  ;;  %v1573_v61 = vadd.f32 1.0, %v8535_v13  ;;  %1695 = vst.msk [vmem:[#allocation2 + $0x98] sm:$0x1] %vm1661_vm10, %v1688_v20  ;;  %v1699_v54 = vrot.slane %v1601_v19, 7  ;;  %v1575_v4 = vadd.f32 1.0, %v8546_v51  ;;  %v11337_v49 = vld [vmem:[#allocation44_spill] sm:$0xff] }
 0x485   : > { %v1709_v14 = vrot.slane %v1602_v36, 7  ;;  %v1710_v62 = vrot.slane %v1603_v28, 7  ;;  %7157 = vrcp.f32 %v1572_v57  ;;  %v11327_v45 = vrot.slane %v8658_v16, 2  ;;  %1703 = vst [vmem:[#allocation2 + $0xa0] sm:$0xfe] %v1698_v41 }
 0x486   : > { %v11328_v1 = vrot.slane %v8655_v3, 2  ;;  %1705 = vst [vmem:[#allocation2 + $0xb0] sm:$0x1] %v1698_v41  ;;  %1704 = vst.msk [vmem:[#allocation2 + $0xa8] sm:$0xfe] %vm1658_vm9, %v1699_v54  ;;  %7159 = vrcp.f32 %v1573_v61  ;;  %v2123_v18 = vsel %vm2099_vm8, %v2121_v60, %v2122_v63  ;;  %v11329_v33 = vrot.slane %v8579_v31, 1 }
 0x487   : > { %1706 = vst.msk [vmem:[#allocation2 + $0xb8] sm:$0x1] %vm1661_vm10, %v1699_v54  ;;  %v11330_v51 = vrot.slane %v8576_v8, 1  ;;  %1714 = vst [vmem:[#allocation2 + $0xc0] sm:$0xfe] %v1709_v14  ;;  %7161 = vrcp.f32 %v1574_v56  ;;  %v8814_v3 = vadd.f32 %v2123_v18, %v1981_v10  ;;  %v11331_v16 = vrot.slane %v8674_v6, 1 }
 0x488   : > { %v2117_v7 = vsel %vm2099_vm8, %v11328_v1, %v11327_v45  ;;  %1716 = vst [vmem:[#allocation2 + $0xd0] sm:$0x1] %v1709_v14  ;;  %1715 = vst.msk [vmem:[#allocation2 + $0xc8] sm:$0xfe] %vm1658_vm9, %v1710_v62  ;;  %v11332_v60 = vrot.slane %v8669_v40, 1  ;;  %v2367_v31 = vsel %vm1909_vm7, %v2365_v22, %v2366_v48  ;;  %7163 = vrcp.f32 %v1575_v4  ;;  %v11341_v48 = vld [vmem:[#allocation46_spill] sm:$0xff] }
 0x489   : > { %v2169_v13 = vadd.f32 %v2117_v7, %v8693_v5  ;;  %v2355_v35 = vsel %vm1909_vm7, %v11330_v51, %v11329_v33  ;;  %1717 = vst.msk [vmem:[#allocation2 + $0xd8] sm:$0x1] %vm1661_vm10, %v1710_v62  ;;  %v11336_v46 = vrot.slane %v11335_v52, 2  ;;  %v11338_v43 = vrot.slane %v11337_v49, 2  ;;  %v1748_v20 = vld [vmem:[#allocation2 + $0x80] sm:$0xff] }
 0x48a   : > { %v2361_v5 = vsel %vm1909_vm7, %v11332_v60, %v11331_v16  ;;  %v2415_v0 = vadd.f32 %v2355_v35, %v11333_v26  ;;  %v11339_v6 = vrot.slane %v8683_v42, 2  ;;  %v11340_v40 = vrot.slane %v8680_v34, 2  ;;  %v1816_v17 = vld [vmem:[#allocation2 + $0x80] sm:$0xfe]  ;;  %v1818_v19 = vld [vmem:[#allocation2 + $0x90] sm:$0x1] }
 0x48b   : > { %v2230_v8 = vadd.f32 %v2214_v53, %v2169_v13  ;;  %v2417_v63 = vadd.f32 %v2361_v5, %v11334_v27  ;;  %v2544_v10 = vsel %vm2099_vm8, %v11338_v43, %v11336_v46  ;;  %v8835_v22 = vsel %vm2099_vm8, %v2554_v39, %v2555_v30  ;;  %v11342_v53 = vld [vmem:[#allocation37_spill] sm:$0xff]  ;;  %v11343_v42 = vld [vmem:[#allocation27_spill] sm:$0xff]  ;;  %v2006_v54 = vld [vmem:[#allocation2 + $0x80] sm:$0xfc] }
 0x48c   : > { %v2550_v37 = vsel %vm2099_vm8, %v11340_v40, %v11339_v6  ;;  %v8839_v15 = vmul.f32 %v11342_v53, %v11341_v48  ;;  %v8843_v28 = vadd.f32 %v2544_v10, %v2415_v0  ;;  %v8849_v34 = vmul.f32 %v11342_v53, %v8730_v44  ;;  %v11344_v30 = vld [vmem:[#allocation25_spill] sm:$0xff]  ;;  %v2008_v56 = vld [vmem:[#allocation2 + $0x90] sm:$0x3]  ;;  %v11345_v62 = vld [vmem:[#allocation26_spill] sm:$0xff] }
 0x48d   : > { %v8841_v36 = vadd.f32 %v2367_v31, %v2230_v8  ;;  %v8845_v57 = vadd.f32 %v2550_v37, %v2417_v63  ;;  %v1776_v39 = vmul.f32 %v11343_v42, %v1748_v20  ;;  %v1861_v61 = vmul.f32 %v11344_v30, %v1816_v17  ;;  %v2253_v14 = vld [vmem:[#allocation2 + $0x80] sm:$0xfe]  ;;  %v2255_v7 = vld [vmem:[#allocation2 + $0x90] sm:$0x1]  ;;  %v11346_v44 = vld [vmem:[#allocation28_spill] sm:$0xff] }
 0x48e   : > { %v1863_v41 = vmul.f32 %v11344_v30, %v1818_v19  ;;  %v2215_v4 = vmul.f32 %v8320_v58, %v1748_v20  ;;  %v8856_v45 = vmul.f32 %v11345_v62, %v2006_v54  ;;  %v8859_v1 = vmul.f32 %v11345_v62, %v2008_v56  ;;  %v2442_v13 = vld [vmem:[#allocation2 + $0x80] sm:$0xfc]  ;;  %v2444_v33 = vld [vmem:[#allocation2 + $0x90] sm:$0x3]  ;;  %v11351_v63 = vld [vmem:[#allocation29_spill] sm:$0xff] }
 0x48f   : > { %v8862_v18 = vmul.f32 %v11346_v44, %v2253_v14  ;;  %v8865_v51 = vmul.f32 %v8479_v23, %v1748_v20  ;;  %v1934_v35 = vrot.slane %v1861_v61, 1  ;;  %v8871_v5 = vmul.f32 %v11346_v44, %v2255_v7  ;;  %v2688_v31 = vld [vmem:[#allocation2 + $0x80] sm:$0xfe]  ;;  %v2690_v8 = vld [vmem:[#allocation2 + $0x90] sm:$0x1]  ;;  %v8879_v49 = vld [vmem:[#allocation2 + $0x88] sm:$0xff]  ;;  %v8881_v43 = vpop.eup %7157 }
 0x490   : > { %v1935_v16 = vrot.slane %v1863_v41, 1  ;;  %v8868_v60 = vadd.f32 %v2215_v4, %v8781_v25  ;;  %v2124_v26 = vrot.slane %v8856_v45, 2  ;;  %v2125_v0 = vrot.slane %v8859_v1, 2  ;;  %v2877_v46 = vld [vmem:[#allocation2 + $0x80] sm:$0xfc]  ;;  %v8891_v20 = vpop.eup %7159 }
 0x491   : > { %11347 = vst [vmem:[#allocation43_spill] sm:$0xff] %v8862_v18  ;;  %11348 = vst [vmem:[#allocation52_spill] sm:$0xff] %v8865_v51  ;;  %v8877_v52 = vmul.f32 %v11351_v63, %v2442_v13  ;;  %v8886_v6 = vmul.f32 %v11351_v63, %v2444_v33  ;;  %v8889_v40 = vmul.f32 %v8483_v29, %v2688_v31  ;;  %v2879_v37 = vld [vmem:[#allocation2 + $0x90] sm:$0x3]  ;;  %v1817_v48 = vld [vmem:[#allocation2 + $0x88] sm:$0xfe]  ;;  %v8900_v4 = vpop.eup %7161 }
 0x492   : > { %11349 = vst [vmem:[#allocation45_spill] sm:$0xff] %v8868_v60  ;;  %11350 = vst [vmem:[#allocation44_spill] sm:$0xff] %v8871_v5  ;;  %v1936_v25 = vsel %vm1909_vm7, %v1934_v35, %v1935_v16  ;;  %v8895_v61 = vmul.f32 %v8483_v29, %v2690_v8  ;;  %v8898_v41 = vmul.f32 %v8489_v11, %v2877_v46  ;;  %v1819_v54 = vld [vmem:[#allocation2 + $0x98] sm:$0x1]  ;;  %v2007_v56 = vld [vmem:[#allocation2 + $0x88] sm:$0xfc]  ;;  %v8911_v33 = vpop.eup %7163 }
 0x493   : > { %11352 = vst [vmem:[#allocation46_spill] sm:$0xff] %v8877_v52  ;;  %11353 = vst [vmem:[#allocation37_spill] sm:$0xff] %v8886_v6  ;;  %v1982_v17 = vadd.f32 %v1936_v25, %v1776_v39  ;;  %v8905_v1 = vmul.f32 %v8489_v11, %v2879_v37  ;;  %v8909_v39 = vmul.f32 %v8310_v55, %v8879_v49  ;;  %v2009_v7 = vld [vmem:[#allocation2 + $0x98] sm:$0x3]  ;;  %v2254_v13 = vld [vmem:[#allocation2 + $0x88] sm:$0xfe] }
 0x494   : > { %11354 = vst [vmem:[#allocation27_spill] sm:$0xff] %v8889_v40  ;;  %11355 = vst [vmem:[#allocation25_spill] sm:$0xff] %v8895_v61  ;;  %v8916_v31 = vmul.f32 %v8253_v50, %v1817_v48  ;;  %v8919_v8 = vmul.f32 %v8253_v50, %v1819_v54  ;;  %v2256_v46 = vld [vmem:[#allocation2 + $0x98] sm:$0x1]  ;;  %v2443_v25 = vld [vmem:[#allocation2 + $0x88] sm:$0xfc]  ;;  %v8923_v45 = vmul.f32 %v8278_v24, %v2007_v56 }
 0x495   : > { %11356 = vst [vmem:[#allocation26_spill] sm:$0xff] %v8898_v41  ;;  %11357 = vst [vmem:[#allocation28_spill] sm:$0xff] %v8905_v1  ;;  %v8926_v19 = vmul.f32 %v8278_v24, %v2009_v7  ;;  %v8930_v35 = vmul.f32 %v8391_v47, %v8879_v49  ;;  %v2445_v16 = vld [vmem:[#allocation2 + $0x98] sm:$0x3]  ;;  %v1750_v48 = vld [vmem:[#allocation2 + $0xa0] sm:$0xff]  ;;  %v8935_v27 = vmul.f32 %v8398_v38, %v2254_v13 }
 0x496   : > { %v8938_v37 = vmul.f32 %v8398_v38, %v2256_v46  ;;  %v1820_v56 = vld [vmem:[#allocation2 + $0xa0] sm:$0xfe]  ;;  %v8943_v41 = vmul.f32 %v8452_v21, %v2443_v25  ;;  %v8946_v1 = vmul.f32 %v8452_v21, %v2445_v16  ;;  %v1822_v14 = vld [vmem:[#allocation2 + $0xb0] sm:$0x1]  ;;  %v1778_v46 = vmul.f32 %v11343_v42, %v1750_v48 }
 0x497   : > { %v2010_v40 = vld [vmem:[#allocation2 + $0xa0] sm:$0xfc]  ;;  %v1865_v61 = vmul.f32 %v11344_v30, %v1820_v56  ;;  %v2012_v51 = vld [vmem:[#allocation2 + $0xb0] sm:$0x3]  ;;  %v1867_v10 = vmul.f32 %v11344_v30, %v1822_v14  ;;  %v2126_v52 = vsel %vm2099_vm8, %v2124_v26, %v2125_v0  ;;  %v2217_v60 = vmul.f32 %v8320_v58, %v1750_v48 }
 0x498   : > { %v2257_v7 = vld [vmem:[#allocation2 + $0xa0] sm:$0xfe]  ;;  %v8954_v25 = vmul.f32 %v11345_v62, %v2010_v40  ;;  %v8957_v16 = vmul.f32 %v11345_v62, %v2012_v51  ;;  %v2259_v6 = vld [vmem:[#allocation2 + $0xb0] sm:$0x1]  ;;  %v2172_v12 = vadd.f32 %v2126_v52, %v1982_v17  ;;  %v1821_v40 = vld [vmem:[#allocation2 + $0xa8] sm:$0xfe] }
 0x499   : > { %v2446_v54 = vld [vmem:[#allocation2 + $0xa0] sm:$0xfc]  ;;  %v2448_v59 = vld [vmem:[#allocation2 + $0xb0] sm:$0x3]  ;;  %v1940_v13 = vrot.slane %v1865_v61, 1  ;;  %v8962_v56 = vmul.f32 %v11346_v44, %v2257_v7  ;;  %v1941_v5 = vrot.slane %v1867_v10, 1  ;;  %v8967_v9 = vmul.f32 %v11346_v44, %v2259_v6 }
 0x49a   : > { %11358 = vst [vmem:[#allocation65_spill] sm:$0xff] %v8954_v25  ;;  %11359 = vst [vmem:[#allocation66_spill] sm:$0xff] %v8957_v16  ;;  %v2692_v18 = vld [vmem:[#allocation2 + $0xa0] sm:$0xfe]  ;;  %v2694_v14 = vld [vmem:[#allocation2 + $0xb0] sm:$0x1]  ;;  %v8969_v0 = vadd.f32 %v2217_v60, %v2172_v12  ;;  %v8973_v17 = vmul.f32 %v11351_v63, %v2446_v54  ;;  %v8976_v61 = vmul.f32 %v11351_v63, %v2448_v59 }
 0x49b   : > { %11360 = vst [vmem:[#allocation67_spill] sm:$0xff] %v8962_v56  ;;  %11361 = vst [vmem:[#allocation68_spill] sm:$0xff] %v8967_v9  ;;  %v2881_v26 = vld [vmem:[#allocation2 + $0xa0] sm:$0xfc]  ;;  %v2883_v7 = vld [vmem:[#allocation2 + $0xb0] sm:$0x3]  ;;  %v1942_v51 = vsel %vm1909_vm7, %v1940_v13, %v1941_v5  ;;  %v8983_v25 = vmul.f32 %v8479_v23, %v1750_v48  ;;  %v8986_v12 = vmul.f32 %v8483_v29, %v2692_v18 }
 0x49c   : > { %11362 = vst [vmem:[#allocation69_spill] sm:$0xff] %v8969_v0  ;;  %11363 = vst [vmem:[#allocation70_spill] sm:$0xff] %v8973_v17  ;;  %v8978_v10 = vld [vmem:[#allocation2 + $0xa8] sm:$0xff]  ;;  %v1823_v60 = vld [vmem:[#allocation2 + $0xb8] sm:$0x1]  ;;  %v8990_v59 = vadd.f32 %v1942_v51, %v1778_v46  ;;  %v8995_v5 = vmul.f32 %v8483_v29, %v2694_v14  ;;  %v8999_v18 = vmul.f32 %v8489_v11, %v2881_v26 }
 0x49d   : > { %11364 = vst [vmem:[#allocation71_spill] sm:$0xff] %v8976_v61  ;;  %11365 = vst [vmem:[#allocation72_spill] sm:$0xff] %v8983_v25  ;;  %v2011_v54 = vld [vmem:[#allocation2 + $0xa8] sm:$0xfc]  ;;  %v8988_v52 = vld [vmem:[#allocation2 + $0xc0] sm:$0xff]  ;;  %v9002_v25 = vmul.f32 %v8489_v11, %v2883_v7  ;;  %v9006_v46 = vmul.f32 %v8310_v55, %v8978_v10  ;;  %v9010_v14 = vmul.f32 %v8253_v50, %v1821_v40 }
 0x49e   : > { %11366 = vst [vmem:[#allocation73_spill] sm:$0xff] %v8986_v12  ;;  %11367 = vst [vmem:[#allocation74_spill] sm:$0xff] %v8988_v52  ;;  %v2013_v13 = vld [vmem:[#allocation2 + $0xb8] sm:$0x3]  ;;  %v2258_v6 = vld [vmem:[#allocation2 + $0xa8] sm:$0xfe]  ;;  %v9013_v56 = vmul.f32 %v8253_v50, %v1823_v60  ;;  %v9016_v48 = vmul.f32 %v8278_v24, %v2011_v54  ;;  %v1780_v40 = vmul.f32 %v11343_v42, %v8988_v52 }
 0x49f   : > { %11368 = vst [vmem:[#allocation75_spill] sm:$0xff] %v8990_v59  ;;  %11369 = vst [vmem:[#allocation76_spill] sm:$0xff] %v8995_v5  ;;  %v2260_v51 = vld [vmem:[#allocation2 + $0xb8] sm:$0x1]  ;;  %v1824_v26 = vld [vmem:[#allocation2 + $0xc0] sm:$0xfe]  ;;  %v9019_v7 = vmul.f32 %v8278_v24, %v2013_v13 }
 0x4a0   : > { %11370 = vst [vmem:[#allocation77_spill] sm:$0xff] %v8999_v18  ;;  %11371 = vst [vmem:[#allocation78_spill] sm:$0xff] %v9002_v25  ;;  %v9022_v25 = vmul.f32 %v8398_v38, %v2258_v6  ;;  %v9025_v18 = vmul.f32 %v8398_v38, %v2260_v51  ;;  %v1826_v0 = vld [vmem:[#allocation2 + $0xd0] sm:$0x1]  ;;  %v2014_v11 = vld [vmem:[#allocation2 + $0xc0] sm:$0xfc]  ;;  %v1869_v13 = vmul.f32 %v11344_v30, %v1824_v26 }
 0x4a1   : > { %v2016_v60 = vld [vmem:[#allocation2 + $0xd0] sm:$0x3]  ;;  %v1943_v12 = vrot.slane %v9010_v14, 1  ;;  %v1944_v54 = vrot.slane %v9013_v56, 1  ;;  %v2261_v23 = vld [vmem:[#allocation2 + $0xc0] sm:$0xfe]  ;;  %v1871_v51 = vmul.f32 %v11344_v30, %v1826_v0  ;;  %v9036_v17 = vmul.f32 %v11345_v62, %v2014_v11 }
 0x4a2   : > { %v2134_v6 = vrot.slane %v9019_v7, 2  ;;  %v9039_v61 = vmul.f32 %v11345_v62, %v2016_v60  ;;  %v2263_v9 = vld [vmem:[#allocation2 + $0xd0] sm:$0x1]  ;;  %v2450_v59 = vld [vmem:[#allocation2 + $0xc0] sm:$0xfc]  ;;  %v1946_v14 = vrot.slane %v1869_v13, 1  ;;  %v9043_v56 = vmul.f32 %v8320_v58, %v8988_v52 }
 0x4a3   : > { %11372 = vst [vmem:[#allocation79_spill] sm:$0xff] %v9036_v17  ;;  %v9046_v26 = vmul.f32 %v11346_v44, %v2261_v23  ;;  %v9049_v7 = vmul.f32 %v11346_v44, %v2263_v9  ;;  %v2452_v0 = vld [vmem:[#allocation2 + $0xd0] sm:$0x3]  ;;  %v2696_v5 = vld [vmem:[#allocation2 + $0xc0] sm:$0xfe]  ;;  %v1947_v11 = vrot.slane %v1871_v51, 1  ;;  %v9054_v2 = vmul.f32 %v11351_v63, %v2450_v59 }
 0x4a4   : > { %11373 = vst [vmem:[#allocation80_spill] sm:$0xff] %v9039_v61  ;;  %11374 = vst [vmem:[#allocation81_spill] sm:$0xff] %v9043_v56  ;;  %v2698_v13 = vld [vmem:[#allocation2 + $0xd0] sm:$0x1]  ;;  %v9059_v23 = vmul.f32 %v11351_v63, %v2452_v0  ;;  %v9062_v9 = vmul.f32 %v8483_v29, %v2696_v5  ;;  %v1825_v59 = vld [vmem:[#allocation2 + $0xc8] sm:$0xfe] }
 0x4a5   : > { %11375 = vst [vmem:[#allocation82_spill] sm:$0xff] %v9046_v26  ;;  %11376 = vst [vmem:[#allocation83_spill] sm:$0xff] %v9054_v2  ;;  %v1948_v51 = vsel %vm1909_vm7, %v1946_v14, %v1947_v11  ;;  %v9067_v60 = vmul.f32 %v8483_v29, %v2698_v13  ;;  %v1827_v17 = vld [vmem:[#allocation2 + $0xd8] sm:$0x1]  ;;  %v11380_v61 = vld [vmem:[#allocation30_spill] sm:$0xff]  ;;  %v1870_v5 = vmul.f32 %v8253_v50, %v1825_v59 }
 0x4a6   : > { %11377 = vst [vmem:[#allocation84_spill] sm:$0xff] %v9059_v23  ;;  %11378 = vst [vmem:[#allocation85_spill] sm:$0xff] %v9062_v9  ;;  %v1604_v52 = vmul.f32 %v8881_v43, %v11380_v61  ;;  %v9071_v26 = vadd.f32 %v1948_v51, %v1780_v40  ;;  %v9074_v56 = vld [vmem:[#allocation2 + $0xc8] sm:$0xff]  ;;  %v1872_v14 = vmul.f32 %v8253_v50, %v1827_v17  ;;  %v2017_v16 = vld [vmem:[#allocation2 + $0xd8] sm:$0x3] }
 0x4a7   : > { %11379 = vst [vmem:[#allocation86_spill] sm:$0xff] %v9067_v60  ;;  %v2015_v11 = vld [vmem:[#allocation2 + $0xc8] sm:$0xfc]  ;;  %v2062_v60 = vmul.f32 %v8278_v24, %v2017_v16  ;;  %v1949_v61 = vrot.slane %v1870_v5, 1  ;;  %v11382_v51 = vld [vmem:[#allocation32_spill] sm:$0xff]  ;;  %v11383_v2 = vld [vmem:[#allocation33_spill] sm:$0xff] }
 0x4a8   : > { %v2060_v13 = vmul.f32 %v8278_v24, %v2015_v11  ;;  %v1720_v9 = vrot.slane %v1604_v52, 7  ;;  %v11381_v29 = vld [vmem:[#allocation31_spill] sm:$0xff]  ;;  %v1950_v40 = vrot.slane %v1872_v14, 1  ;;  %v1606_v0 = vmul.f32 %v8900_v4, %v11382_v51 }
 0x4a9   : > { %v1605_v43 = vmul.f32 %v8891_v20, %v11381_v29  ;;  %v1607_v59 = vmul.f32 %v8911_v33, %v11383_v2  ;;  %v1781_v11 = vmul.f32 %v8310_v55, %v9074_v56  ;;  %v11384_v16 = vrot.slane %v8919_v8, 1  ;;  %v2262_v5 = vld [vmem:[#allocation2 + $0xc8] sm:$0xfe]  ;;  %v2264_v33 = vld [vmem:[#allocation2 + $0xd8] sm:$0x1] }
 0x4aa   : > { %1725 = vst [vmem:[#allocation2 + $0xe0] sm:$0xfe] %v1720_v9  ;;  %1727 = vst [vmem:[#allocation2 + $0xf0] sm:$0x1] %v1720_v9  ;;  %v11385_v52 = vrot.slane %v8916_v31, 1  ;;  %v1945_v20 = vsel %vm1909_vm7, %v1943_v12, %v1944_v54  ;;  %v1731_v14 = vrot.slane %v1606_v0, 7  ;;  %v1951_v51 = vsel %vm1909_vm7, %v1949_v61, %v1950_v40 }
 0x4ab   : > { %v1721_v17 = vrot.slane %v1605_v43, 7  ;;  %v1732_v4 = vrot.slane %v1607_v59, 7  ;;  %v1985_v8 = vadd.f32 %v1945_v20, %v9006_v46  ;;  %v1987_v9 = vadd.f32 %v1951_v51, %v1781_v11  ;;  %v2447_v40 = vld [vmem:[#allocation2 + $0xa8] sm:$0xfc] }
 0x4ac   : > { %v1939_v29 = vsel %vm1909_vm7, %v11385_v52, %v11384_v16  ;;  %v11386_v31 = vrot.slane %v8926_v19, 2  ;;  %v11387_v43 = vrot.slane %v8923_v45, 2  ;;  %v11388_v54 = vrot.slane %v9016_v48, 2  ;;  %1736 = vst [vmem:[#allocation2 + $0x100] sm:$0xfe] %v1731_v14 }
 0x4ad   : > { %v1983_v2 = vadd.f32 %v1939_v29, %v8909_v39  ;;  %1726 = vst.msk [vmem:[#allocation2 + $0xe8] sm:$0xfe] %vm1658_vm9, %v1721_v17  ;;  %1738 = vst [vmem:[#allocation2 + $0x110] sm:$0x1] %v1731_v14  ;;  %v2139_v39 = vrot.slane %v2060_v13, 2  ;;  %v2140_v61 = vrot.slane %v2062_v60, 2  ;;  %v2218_v19 = vmul.f32 %v8391_v47, %v8978_v10 }
 0x4ae   : > { %1728 = vst.msk [vmem:[#allocation2 + $0xf8] sm:$0x1] %vm1661_vm10, %v1721_v17  ;;  %v2129_v12 = vsel %vm2099_vm8, %v11387_v43, %v11386_v31  ;;  %v2135_v0 = vsel %vm2099_vm8, %v11388_v54, %v2134_v6  ;;  %1739 = vst.msk [vmem:[#allocation2 + $0x118] sm:$0x1] %vm1661_vm10, %v1732_v4  ;;  %v2449_v45 = vld [vmem:[#allocation2 + $0xb8] sm:$0x3]  ;;  %v2220_v48 = vmul.f32 %v8391_v47, %v9074_v56 }
 0x4af   : > { %1737 = vst.msk [vmem:[#allocation2 + $0x108] sm:$0xfe] %vm1658_vm9, %v1732_v4  ;;  %v2173_v46 = vadd.f32 %v2129_v12, %v1983_v2  ;;  %v2175_v59 = vadd.f32 %v2135_v0, %v1985_v8  ;;  %v2232_v6 = vadd.f32 %v8930_v35, %v8814_v3  ;;  %v9116_v17 = vmul.f32 %v8398_v38, %v2262_v5 }
 0x4b0   : > { %v2141_v11 = vsel %vm2099_vm8, %v2139_v39, %v2140_v61  ;;  %v9120_v60 = vmul.f32 %v8398_v38, %v2264_v33  ;;  %v11389_v16 = vrot.slane %v8938_v37, 1  ;;  %v11390_v52 = vrot.slane %v8935_v27, 1  ;;  %v2451_v37 = vld [vmem:[#allocation2 + $0xc8] sm:$0xfc] }
 0x4b1   : > { %v2234_v13 = vadd.f32 %v2218_v19, %v2173_v46  ;;  %v2177_v20 = vadd.f32 %v2141_v11, %v1987_v9  ;;  %v9127_v14 = vadd.f32 %v2220_v48, %v2175_v59  ;;  %v2377_v3 = vrot.slane %v9022_v25, 1  ;;  %v9131_v5 = vld [vmem:[#allocation2 + $0xe0] sm:$0xff]  ;;  %v1830_v51 = vld [vmem:[#allocation2 + $0xf0] sm:$0x1] }
 0x4b2   : > { %v2373_v29 = vsel %vm1909_vm7, %v11390_v52, %v11389_v16  ;;  %v2378_v35 = vrot.slane %v9025_v18, 1  ;;  %11391 = vst [vmem:[#allocation30_spill] sm:$0xff] %v9131_v5  ;;  %v1828_v4 = vld [vmem:[#allocation2 + $0xe0] sm:$0xfe]  ;;  %v9137_v27 = vmul.f32 %v8452_v21, %v2447_v40  ;;  %v9140_v8 = vmul.f32 %v8452_v21, %v2449_v45  ;;  %v2020_v43 = vld [vmem:[#allocation2 + $0xf0] sm:$0x3] }
 0x4b3   : > { %v9134_v33 = vadd.f32 %v2373_v29, %v2232_v6  ;;  %v9144_v25 = vmul.f32 %v11343_v42, %v9131_v5  ;;  %v9147_v18 = vmul.f32 %v11344_v30, %v1828_v4  ;;  %v9150_v9 = vmul.f32 %v11344_v30, %v1830_v51  ;;  %v2018_v31 = vld [vmem:[#allocation2 + $0xe0] sm:$0xfc]  ;;  %v2267_v42 = vld [vmem:[#allocation2 + $0xf0] sm:$0x1] }
 0x4b4   : > { %v9154_v12 = vmul.f32 %v8320_v58, %v9131_v5  ;;  %v2265_v54 = vld [vmem:[#allocation2 + $0xe0] sm:$0xfe]  ;;  %v9157_v0 = vmul.f32 %v11345_v62, %v2018_v31  ;;  %v9160_v39 = vmul.f32 %v11345_v62, %v2020_v43  ;;  %v2456_v30 = vld [vmem:[#allocation2 + $0xf0] sm:$0x3]  ;;  %v2379_v19 = vsel %vm1909_vm7, %v2377_v3, %v2378_v35  ;;  %v1829_v52 = vld [vmem:[#allocation2 + $0xe8] sm:$0xfe] }
 0x4b5   : > { %v9163_v61 = vmul.f32 %v11346_v44, %v2265_v54  ;;  %v2454_v46 = vld [vmem:[#allocation2 + $0xe0] sm:$0xfc]  ;;  %v9169_v59 = vmul.f32 %v11346_v44, %v2267_v42  ;;  %v9178_v16 = vmul.f32 %v11351_v63, %v2456_v30  ;;  %v1831_v3 = vld [vmem:[#allocation2 + $0xf8] sm:$0x1]  ;;  %v1874_v35 = vmul.f32 %v8253_v50, %v1829_v52  ;;  %v2019_v4 = vld [vmem:[#allocation2 + $0xe8] sm:$0xfc] }
 0x4b6   : > { %v9172_v48 = vmul.f32 %v11351_v63, %v2454_v46  ;;  %v9182_v51 = vld [vmem:[#allocation2 + $0xe8] sm:$0xff]  ;;  %v9184_v31 = vadd.f32 %v2379_v19, %v2234_v13  ;;  %v9187_v43 = vmul.f32 %v8452_v21, %v2451_v37  ;;  %v1876_v54 = vmul.f32 %v8253_v50, %v1831_v3  ;;  %v2021_v42 = vld [vmem:[#allocation2 + $0xf8] sm:$0x3]  ;;  %v2269_v46 = vld [vmem:[#allocation2 + $0x100] sm:$0xfe] }
 0x4b7   : > { %11393 = vst [vmem:[#allocation32_spill] sm:$0xff] %v9178_v16  ;;  %v2271_v30 = vld [vmem:[#allocation2 + $0x110] sm:$0x1]  ;;  %v1783_v11 = vmul.f32 %v8310_v55, %v9182_v51  ;;  %v2064_v29 = vmul.f32 %v8278_v24, %v2019_v4  ;;  %v2222_v52 = vmul.f32 %v8391_v47, %v9182_v51  ;;  %v9196_v62 = vmul.f32 %v11346_v44, %v2269_v46  ;;  %v9202_v19 = vld [vmem:[#allocation2 + $0x108] sm:$0xff]  ;;  %v2453_v3 = vld [vmem:[#allocation2 + $0xd8] sm:$0x3] }
 0x4b8   : > { %11392 = vst [vmem:[#allocation31_spill] sm:$0xff] %v9172_v48  ;;  %v9199_v13 = vmul.f32 %v11346_v44, %v2271_v30  ;;  %v1955_v37 = vrot.slane %v1874_v35, 1  ;;  %v2066_v50 = vmul.f32 %v8278_v24, %v2021_v42  ;;  %v1956_v6 = vrot.slane %v1876_v54, 1  ;;  %v2266_v45 = vld [vmem:[#allocation2 + $0xe8] sm:$0xfe] }
 0x4b9   : > { %v2145_v40 = vrot.slane %v2064_v29, 2  ;;  %v2224_v55 = vmul.f32 %v8391_v47, %v9202_v19  ;;  %v2238_v4 = vadd.f32 %v2222_v52, %v2177_v20  ;;  %v2268_v2 = vld [vmem:[#allocation2 + $0xf8] sm:$0x1]  ;;  %v2270_v46 = vld [vmem:[#allocation2 + $0x108] sm:$0xfe]  ;;  %v2311_v44 = vmul.f32 %v8398_v38, %v2266_v45 }
 0x4ba   : > { %11394 = vst [vmem:[#allocation33_spill] sm:$0xff] %v9199_v13  ;;  %v2146_v5 = vrot.slane %v2066_v50, 2  ;;  %v2272_v16 = vld [vmem:[#allocation2 + $0x118] sm:$0x1]  ;;  %v2313_v35 = vmul.f32 %v8398_v38, %v2268_v2  ;;  %v2384_v24 = vrot.slane %v9120_v60, 1  ;;  %v1957_v42 = vsel %vm1909_vm7, %v1955_v37, %v1956_v6 }
 0x4bb   : > { %v2315_v54 = vmul.f32 %v8398_v38, %v2270_v46  ;;  %v2317_v29 = vmul.f32 %v8398_v38, %v2272_v16  ;;  %v2455_v30 = vld [vmem:[#allocation2 + $0xe8] sm:$0xfc]  ;;  %v2457_v47 = vld [vmem:[#allocation2 + $0xf8] sm:$0x3]  ;;  %v2498_v52 = vmul.f32 %v8452_v21, %v2453_v3  ;;  %v1989_v50 = vadd.f32 %v1957_v42, %v1783_v11 }
 0x4bc   : > { %v2459_v20 = vld [vmem:[#allocation2 + $0x108] sm:$0xfc]  ;;  %v2147_v48 = vsel %vm2099_vm8, %v2145_v40, %v2146_v5  ;;  %v11395_v45 = vrot.slane %v9116_v17, 1  ;;  %v2389_v23 = vrot.slane %v2311_v44, 1  ;;  %v2461_v60 = vld [vmem:[#allocation2 + $0x118] sm:$0x3]  ;;  %v2500_v16 = vmul.f32 %v8452_v21, %v2455_v30 }
 0x4bd   : > { %v2390_v63 = vrot.slane %v2313_v35, 1  ;;  %v2395_v6 = vrot.slane %v2315_v54, 1  ;;  %v2396_v37 = vrot.slane %v2317_v29, 1  ;;  %v2179_v38 = vadd.f32 %v2147_v48, %v1989_v50 }
 0x4be   : > { %v2385_v2 = vsel %vm1909_vm7, %v11395_v45, %v2384_v24  ;;  %v2502_v13 = vmul.f32 %v8452_v21, %v2457_v47  ;;  %v2504_v11 = vmul.f32 %v8452_v21, %v2459_v20  ;;  %v2506_v40 = vmul.f32 %v8452_v21, %v2461_v60  ;;  %v2689_v20 = vld [vmem:[#allocation2 + $0x88] sm:$0xfe] }
 0x4bf   : > { %v2425_v46 = vadd.f32 %v2385_v2, %v9127_v14  ;;  %v2391_v5 = vsel %vm1909_vm7, %v2389_v23, %v2390_v63  ;;  %v2397_v17 = vsel %vm1909_vm7, %v2395_v6, %v2396_v37  ;;  %v2560_v3 = vrot.slane %v8943_v41, 2  ;;  %v2695_v6 = vld [vmem:[#allocation2 + $0xb8] sm:$0x1]  ;;  %v2697_v37 = vld [vmem:[#allocation2 + $0xc8] sm:$0xfe] }
 0x4c0   : > { %v2240_v44 = vadd.f32 %v2224_v55, %v2179_v38  ;;  %v2427_v35 = vadd.f32 %v2391_v5, %v2238_v4  ;;  %v2561_v24 = vrot.slane %v8946_v1, 2  ;;  %v2566_v14 = vrot.slane %v9137_v27, 2 }
 0x4c1   : > { %v2567_v48 = vrot.slane %v9140_v8, 2  ;;  %v2572_v42 = vrot.slane %v9187_v43, 2  ;;  %v2573_v54 = vrot.slane %v2498_v52, 2  ;;  %v2578_v29 = vrot.slane %v2500_v16, 2  ;;  %v2691_v52 = vld [vmem:[#allocation2 + $0x98] sm:$0x1] }
 0x4c2   : > { %v2429_v30 = vadd.f32 %v2397_v17, %v2240_v44  ;;  %v2562_v63 = vsel %vm2099_vm8, %v2560_v3, %v2561_v24  ;;  %v2579_v23 = vrot.slane %v2502_v13, 2  ;;  %v2584_v47 = vrot.slane %v2504_v11, 2  ;;  %v2699_v16 = vld [vmem:[#allocation2 + $0xd8] sm:$0x1]  ;;  %v2701_v11 = vld [vmem:[#allocation2 + $0xe8] sm:$0xfe] }
 0x4c3   : > { %v2568_v21 = vsel %vm2099_vm8, %v2566_v14, %v2567_v48  ;;  %v2574_v41 = vsel %vm2099_vm8, %v2572_v42, %v2573_v54  ;;  %v2585_v55 = vrot.slane %v2506_v40, 2  ;;  %v2608_v1 = vadd.f32 %v8835_v22, %v8841_v36  ;;  %v11396_v40 = vld [vmem:[#allocation39_spill] sm:$0xff]  ;;  %v11397_v54 = vld [vmem:[#allocation53_spill] sm:$0xff] }
 0x4c4   : > { %v2580_v27 = vsel %vm2099_vm8, %v2578_v29, %v2579_v23  ;;  %v2610_v8 = vadd.f32 %v2562_v63, %v9134_v33  ;;  %v2612_v43 = vadd.f32 %v2568_v21, %v9184_v31  ;;  %v2614_v4 = vadd.f32 %v2574_v41, %v2425_v46  ;;  %v2693_v31 = vld [vmem:[#allocation2 + $0xa8] sm:$0xfe]  ;;  %v11400_v21 = vld [vmem:[#allocation64_spill] sm:$0xff] }
 0x4c5   : > { %v2586_v13 = vsel %vm2099_vm8, %v2584_v47, %v2585_v55  ;;  %v2616_v50 = vadd.f32 %v2580_v27, %v2427_v35  ;;  %v2653_v45 = vmul.f32 %v11342_v53, %v8879_v49  ;;  %v2655_v2 = vmul.f32 %v11342_v53, %v8978_v10  ;;  %v11399_v23 = vld [vmem:[#allocation63_spill] sm:$0xff] }
 0x4c6   : > { %v2618_v60 = vadd.f32 %v2586_v13, %v2429_v30  ;;  %v2657_v22 = vmul.f32 %v11342_v53, %v9074_v56  ;;  %v2659_v36 = vmul.f32 %v11342_v53, %v9182_v51  ;;  %v2661_v33 = vmul.f32 %v11342_v53, %v9202_v19  ;;  %v2703_v56 = vld [vmem:[#allocation2 + $0xf8] sm:$0x1]  ;;  %v2705_v53 = vld [vmem:[#allocation2 + $0x108] sm:$0xfe] }
 0x4c7   : > { %v2665_v46 = vadd.f32 %v8839_v15, %v8843_v28  ;;  %v2667_v49 = vadd.f32 %v8849_v34, %v8845_v57  ;;  %v2669_v10 = vadd.f32 %v2653_v45, %v2608_v1  ;;  %v2671_v38 = vadd.f32 %v2655_v2, %v2610_v8  ;;  %v2707_v19 = vld [vmem:[#allocation2 + $0x118] sm:$0x1]  ;;  %v11398_v30 = vld [vmem:[#allocation54_spill] sm:$0xff]  ;;  %v2870_v27 = vld [vmem:[#allocation2 + $0x48] sm:$0xfc] }
 0x4c8   : > { %v2673_v5 = vadd.f32 %v2657_v22, %v2612_v43  ;;  %v2675_v17 = vadd.f32 %v2659_v36, %v2614_v4  ;;  %v2677_v51 = vadd.f32 %v2661_v33, %v2616_v50  ;;  %v2679_v3 = vadd.f32 %v11396_v40, %v2618_v60  ;;  %v2874_v13 = vld [vmem:[#allocation2 + $0x68] sm:$0xfc]  ;;  %v2876_v60 = vld [vmem:[#allocation2 + $0x78] sm:$0x3] }
 0x4c9   : > { %v2734_v44 = vmul.f32 %v8432_v32, %v2689_v20  ;;  %v2736_v35 = vmul.f32 %v8432_v32, %v2691_v52  ;;  %v2738_v15 = vmul.f32 %v8432_v32, %v2693_v31  ;;  %v2740_v28 = vmul.f32 %v8432_v32, %v2695_v6  ;;  %v2872_v52 = vld [vmem:[#allocation2 + $0x58] sm:$0x3] }
 0x4ca   : > { %v2742_v57 = vmul.f32 %v8432_v32, %v2697_v37  ;;  %v2744_v34 = vmul.f32 %v8432_v32, %v2699_v16  ;;  %v2746_v24 = vmul.f32 %v8432_v32, %v2701_v11  ;;  %v2748_v14 = vmul.f32 %v8432_v32, %v2703_v56  ;;  %v2878_v56 = vld [vmem:[#allocation2 + $0x88] sm:$0xfc]  ;;  %v2880_v40 = vld [vmem:[#allocation2 + $0x98] sm:$0x3] }
 0x4cb   : > { %v2750_v48 = vmul.f32 %v8432_v32, %v2705_v53  ;;  %v2752_v42 = vmul.f32 %v8432_v32, %v2707_v19  ;;  %v2792_v29 = vrot.slane %v11397_v54, 1  ;;  %v2793_v63 = vrot.slane %v11398_v30, 1  ;;  %v2882_v53 = vld [vmem:[#allocation2 + $0xa8] sm:$0xfc]  ;;  %v2896_v30 = vld [vmem:[#allocation2 + $0x118] sm:$0x3] }
 0x4cc   : > { %v2798_v47 = vrot.slane %v11399_v23, 1  ;;  %v2799_v41 = vrot.slane %v11400_v21, 1  ;;  %v2804_v55 = vrot.slane %v2734_v44, 1  ;;  %v2805_v1 = vrot.slane %v2736_v35, 1  ;;  %v2890_v54 = vld [vmem:[#allocation2 + $0xe8] sm:$0xfc] }
 0x4cd   : > { %v2794_v8 = vsel %vm1909_vm7, %v2792_v29, %v2793_v63  ;;  %v2810_v43 = vrot.slane %v2738_v15, 1  ;;  %v2811_v4 = vrot.slane %v2740_v28, 1  ;;  %v2816_v20 = vrot.slane %v2742_v57, 1  ;;  %v2884_v28 = vld [vmem:[#allocation2 + $0xb8] sm:$0x3] }
 0x4ce   : > { %v2800_v32 = vsel %vm1909_vm7, %v2798_v47, %v2799_v41  ;;  %v2806_v50 = vsel %vm1909_vm7, %v2804_v55, %v2805_v1  ;;  %v2817_v45 = vrot.slane %v2744_v34, 1  ;;  %v2822_v2 = vrot.slane %v2746_v24, 1  ;;  %v2886_v57 = vld [vmem:[#allocation2 + $0xc8] sm:$0xfc]  ;;  %v2888_v34 = vld [vmem:[#allocation2 + $0xd8] sm:$0x3] }
 0x4cf   : > { %v2812_v22 = vsel %vm1909_vm7, %v2810_v43, %v2811_v4  ;;  %v2823_v36 = vrot.slane %v2748_v14, 1  ;;  %v2828_v33 = vrot.slane %v2750_v48, 1  ;;  %v2829_v31 = vrot.slane %v2752_v42, 1  ;;  %v11401_v48 = vld [vmem:[#allocation40_spill] sm:$0xff] }
 0x4d0   : > { %v2818_v6 = vsel %vm1909_vm7, %v2816_v20, %v2817_v45  ;;  %v2854_v37 = vadd.f32 %v2794_v8, %v2665_v46  ;;  %v2856_v16 = vadd.f32 %v2800_v32, %v2667_v49  ;;  %v2858_v11 = vadd.f32 %v2806_v50, %v2669_v10  ;;  %v2892_v46 = vld [vmem:[#allocation2 + $0xf8] sm:$0x3]  ;;  %v2894_v49 = vld [vmem:[#allocation2 + $0x108] sm:$0xfc]  ;;  %v11402_v10 = vld [vmem:[#allocation38_spill] sm:$0xff] }
 0x4d1   : > { %v2824_v19 = vsel %vm1909_vm7, %v2822_v2, %v2823_v36  ;;  %v2830_v44 = vsel %vm1909_vm7, %v2828_v33, %v2829_v31  ;;  %v2860_v35 = vadd.f32 %v2812_v22, %v2671_v38  ;;  %v2862_v15 = vadd.f32 %v2818_v6, %v2673_v5 }
 0x4d2   : > { %v2864_v24 = vadd.f32 %v2824_v19, %v2675_v17  ;;  %v2866_v14 = vadd.f32 %v2830_v44, %v2677_v51  ;;  %v2868_v42 = vadd.f32 %v11401_v48, %v2679_v3  ;;  %v2915_v29 = vmul.f32 %v11402_v10, %v2870_v27  ;;  %v11403_v44 = vld [vmem:[#allocation41_spill] sm:$0xff] }
 0x4d3   : > { %v2917_v63 = vmul.f32 %v11402_v10, %v2872_v52  ;;  %v2919_v23 = vmul.f32 %v11402_v10, %v2874_v13  ;;  %v2921_v38 = vmul.f32 %v11402_v10, %v2876_v60  ;;  %v2923_v5 = vmul.f32 %v11402_v10, %v2878_v56 }
 0x4d4   : > { %v2925_v47 = vmul.f32 %v11402_v10, %v2880_v40  ;;  %v2927_v17 = vmul.f32 %v11402_v10, %v2882_v53  ;;  %v2929_v51 = vmul.f32 %v11402_v10, %v2884_v28  ;;  %v2931_v3 = vmul.f32 %v11402_v10, %v2886_v57  ;;  %v11404_v57 = vld [vmem:[#allocation42_spill] sm:$0xff] }
 0x4d5   : > { %v2933_v21 = vmul.f32 %v11402_v10, %v2888_v34  ;;  %v2935_v41 = vmul.f32 %v11402_v10, %v2890_v54  ;;  %v2937_v55 = vmul.f32 %v11402_v10, %v2892_v46  ;;  %v2939_v1 = vmul.f32 %v11402_v10, %v2894_v49  ;;  %v3058_v54 = vld [vmem:[%s11098_s12] sm:$0x3] }
 0x4d6   : > { %v2941_v27 = vmul.f32 %v11402_v10, %v2896_v30  ;;  %v2981_v8 = vrot.slane %v2915_v29, 2  ;;  %v2982_v43 = vrot.slane %v2917_v63, 2  ;;  %v2987_v4 = vrot.slane %v2919_v23, 2 }
 0x4d7   : > { %v2988_v20 = vrot.slane %v2921_v38, 2  ;;  %v2993_v52 = vrot.slane %v2923_v5, 2  ;;  %v2994_v13 = vrot.slane %v2925_v47, 2  ;;  %v2999_v32 = vrot.slane %v2927_v17, 2  ;;  %v11405_v47 = vld [vmem:[#allocation15_spill] sm:$0xff] }
 0x4d8   : > { %v2983_v50 = vsel %vm2099_vm8, %v2981_v8, %v2982_v43  ;;  %v3000_v45 = vrot.slane %v2929_v51, 2  ;;  %v3005_v2 = vrot.slane %v2931_v3, 2  ;;  %v3006_v60 = vrot.slane %v2933_v21, 2  ;;  %v11406_v51 = vld [vmem:[#allocation24_spill] sm:$0xff] }
 0x4d9   : > { %v2989_v22 = vsel %vm2099_vm8, %v2987_v4, %v2988_v20  ;;  %v2995_v36 = vsel %vm2099_vm8, %v2993_v52, %v2994_v13  ;;  %v3011_v33 = vrot.slane %v2935_v41, 2  ;;  %v3012_v31 = vrot.slane %v2937_v55, 2  ;;  %v11411_v55 = vld [vmem:[#allocation65_spill] sm:$0xff] }
 0x4da   : > { %v3001_v6 = vsel %vm2099_vm8, %v2999_v32, %v3000_v45  ;;  %v3007_v56 = vsel %vm2099_vm8, %v3005_v2, %v3006_v60  ;;  %v3017_v40 = vrot.slane %v2939_v1, 2  ;;  %v3018_v53 = vrot.slane %v2941_v27, 2  ;;  %v11415_v1 = vld [vmem:[#allocation79_spill] sm:$0xff] }
 0x4db   : > { %v3013_v19 = vsel %vm2099_vm8, %v3011_v33, %v3012_v31  ;;  %v3023_v28 = vrot.slane %v11403_v44, 2  ;;  %v3024_v34 = vrot.slane %v11404_v57, 2  ;;  %v3043_v48 = vadd.f32 %v2983_v50, %v2854_v37 }
 0x4dc   : > { %v3019_v46 = vsel %vm2099_vm8, %v3017_v40, %v3018_v53  ;;  %v3045_v49 = vadd.f32 %v2989_v22, %v2856_v16  ;;  %v3047_v10 = vadd.f32 %v2995_v36, %v2858_v11  ;;  %v3049_v29 = vadd.f32 %v3001_v6, %v2860_v35  ;;  %v11409_v11 = vld [vmem:[#allocation66_spill] sm:$0xff] }
 0x4dd   : > { %v3025_v30 = vsel %vm2099_vm8, %v3023_v28, %v3024_v34  ;;  %v3051_v63 = vadd.f32 %v3007_v56, %v2862_v15  ;;  %v3053_v23 = vadd.f32 %v3013_v19, %v2864_v24  ;;  %v3055_v38 = vadd.f32 %v3019_v46, %v2866_v14  ;;  %v11413_v14 = vld [vmem:[#allocation80_spill] sm:$0xff]  ;;  %v9347_v22 = vld [vmem:[#allocation2 + $0x100] sm:$0xff]  ;;  %v11419_v19 = vld [vmem:[#allocation75_spill] sm:$0xff] }
 0x4de   : > { %v3057_v5 = vadd.f32 %v3025_v30, %v2868_v42  ;;  %v9303_v17 = vrot.slane %v3058_v54, %v11405_v47  ;;  %v3067_v37 = vrot.slane %v3058_v54, %v11406_v51  ;;  %v11407_v3 = vrot.slane %v9150_v9, 1 }
 0x4df   : > { %v11408_v21 = vrot.slane %v9147_v18, 1  ;;  %v11410_v35 = vrot.slane %v11409_v11, 2  ;;  %v11412_v15 = vrot.slane %v11411_v55, 2  ;;  %v11414_v42 = vrot.slane %v11413_v14, 2  ;;  %v11427_v11 = vld [vmem:[#allocation67_spill] sm:$0xff]  ;;  %v11430_v55 = vld [vmem:[#allocation82_spill] sm:$0xff] }
 0x4e0   : > { %v11416_v27 = vrot.slane %v11415_v1, 2  ;;  %v11417_v9 = vrot.slane %v9160_v39, 2  ;;  %v11418_v18 = vrot.slane %v9157_v0, 2  ;;  %v9327_v4 = vadd.f32 %v3067_v37, %v3043_v48 }
 0x4e1   : > { %v1954_v41 = vsel %vm1909_vm7, %v11408_v21, %v11407_v3  ;;  %v2132_v24 = vsel %vm2099_vm8, %v11412_v15, %v11410_v35  ;;  %v9331_v20 = vadd.f32 %v3067_v37, %v3047_v10  ;;  %v9333_v52 = vadd.f32 %v3067_v37, %v3049_v29  ;;  %v11420_v29 = vld [vmem:[#allocation81_spill] sm:$0xff]  ;;  %v11425_v21 = vld [vmem:[#allocation68_spill] sm:$0xff] }
 0x4e2   : > { %v1988_v16 = vadd.f32 %v1954_v41, %v9144_v25  ;;  %v2138_v8 = vsel %vm2099_vm8, %v11416_v27, %v11414_v42  ;;  %v2144_v43 = vsel %vm2099_vm8, %v11418_v18, %v11417_v9  ;;  %v9329_v25 = vadd.f32 %v3067_v37, %v3045_v49  ;;  %v11434_v9 = vld [vmem:[#allocation33_spill] sm:$0xff] }
 0x4e3   : > { %v9335_v13 = vadd.f32 %v3067_v37, %v3051_v63  ;;  %v9337_v32 = vadd.f32 %v3067_v37, %v3053_v23  ;;  %v9339_v50 = vadd.f32 %v3067_v37, %v3055_v38  ;;  %v9341_v45 = vadd.f32 %v3067_v37, %v3057_v5  ;;  %v2458_v23 = vld [vmem:[#allocation2 + $0x100] sm:$0xfc]  ;;  %v11421_v38 = vld [vmem:[#allocation44_spill] sm:$0xff]  ;;  %v11423_v37 = vld [vmem:[#allocation43_spill] sm:$0xff] }
 0x4e4   : > { %v3087_v0 = vsub.f32 0.0, %v9327_v4  ;;  %v3089_v39 = vsub.f32 0.0, %v9329_v25  ;;  %v3091_v2 = vsub.f32 0.0, %v9331_v20  ;;  %v3093_v60 = vsub.f32 0.0, %v9333_v52 }
 0x4e5   : > { %v3095_v36 = vsub.f32 0.0, %v9335_v13  ;;  %v3097_v33 = vsub.f32 0.0, %v9337_v32  ;;  %v3099_v31 = vsub.f32 0.0, %v9339_v50  ;;  %v3101_v6 = vsub.f32 0.0, %v9341_v45 }
 0x4e6   : > { %v3104_v56 = vmul.f32 1.442695, %v3087_v0  ;;  %v3108_v40 = vmul.f32 1.442695, %v3089_v39  ;;  %v3112_v53 = vmul.f32 1.442695, %v3091_v2  ;;  %v2174_v44 = vadd.f32 %v2132_v24, %v11419_v19 }
 0x4e7   : > { %v3116_v28 = vmul.f32 1.442695, %v3093_v60  ;;  %v3120_v57 = vmul.f32 1.442695, %v3095_v36  ;;  %v3124_v34 = vmul.f32 1.442695, %v3097_v33  ;;  %v2176_v48 = vadd.f32 %v2138_v8, %v9071_v26 }
 0x4e8   : > { %7165 = vpow2.f32 %v3104_v56  ;;  %v3128_v54 = vmul.f32 1.442695, %v3099_v31  ;;  %v3132_v46 = vmul.f32 1.442695, %v3101_v6  ;;  %v2178_v49 = vadd.f32 %v2144_v43, %v1988_v16  ;;  %v2460_v24 = vld [vmem:[#allocation2 + $0x110] sm:$0x3] }
 0x4e9   : > { %7167 = vpow2.f32 %v3108_v40  ;;  %v2223_v10 = vmul.f32 %v8320_v58, %v9347_v22  ;;  %v2235_v30 = vadd.f32 %v11420_v29, %v2174_v44  ;;  %v2237_v63 = vadd.f32 %v9154_v12, %v2176_v48  ;;  %v11435_v43 = vld [vmem:[#allocation45_spill] sm:$0xff]  ;;  %v11438_v31 = vld [vmem:[#allocation56_spill] sm:$0xff]  ;;  %v11446_v48 = vld [vmem:[#allocation71_spill] sm:$0xff] }
 0x4ea   : > { %7169 = vpow2.f32 %v3112_v53  ;;  %v11422_v5 = vrot.slane %v11421_v38, 1  ;;  %v11424_v3 = vrot.slane %v11423_v37, 1  ;;  %v11426_v41 = vrot.slane %v11425_v21, 1  ;;  %v11436_v0 = vld [vmem:[#allocation69_spill] sm:$0xff] }
 0x4eb   : > { %v11428_v16 = vrot.slane %v11427_v11, 1  ;;  %v11429_v58 = vrot.slane %v9049_v7, 1  ;;  %v11431_v15 = vrot.slane %v11430_v55, 1  ;;  %7171 = vpow2.f32 %v3116_v28  ;;  %v11437_v36 = vld [vmem:[#allocation29_spill] sm:$0xff]  ;;  %v11444_v28 = vld [vmem:[#allocation46_spill] sm:$0xff]  ;;  %v11456_v11 = vld [vmem:[#allocation59_spill] sm:$0xff] }
 0x4ec   : > { %v2370_v26 = vsel %vm1909_vm7, %v11424_v3, %v11422_v5  ;;  %v2239_v14 = vadd.f32 %v2223_v10, %v2178_v49  ;;  %v11432_v42 = vrot.slane %v9169_v59, 1  ;;  %v11433_v1 = vrot.slane %v9163_v61, 1  ;;  %v11442_v19 = vld [vmem:[#allocation37_spill] sm:$0xff]  ;;  %v11448_v49 = vld [vmem:[#allocation70_spill] sm:$0xff]  ;;  %v11455_v3 = vld [vmem:[#allocation32_spill] sm:$0xff] }
 0x4ed   : > { %v2376_v35 = vsel %vm1909_vm7, %v11428_v16, %v11426_v41  ;;  %v2382_v12 = vsel %vm1909_vm7, %v11431_v15, %v11429_v58  ;;  %v2392_v8 = vrot.slane %v9196_v62, 1  ;;  %7173 = vpow2.f32 %v3120_v57  ;;  %v11440_v62 = vld [vmem:[#allocation55_spill] sm:$0xff] }
 0x4ee   : > { %v2388_v27 = vsel %vm1909_vm7, %v11433_v1, %v11432_v42  ;;  %v2393_v18 = vrot.slane %v11434_v9, 1  ;;  %v2420_v7 = vadd.f32 %v2370_v26, %v11435_v43  ;;  %v2422_v39 = vadd.f32 %v2376_v35, %v11436_v0  ;;  %v11459_v1 = vld [vmem:[#allocation30_spill] sm:$0xff] }
 0x4ef   : > { %7175 = vpow2.f32 %v3124_v34  ;;  %v2424_v2 = vadd.f32 %v2382_v12, %v2235_v30  ;;  %v2426_v60 = vadd.f32 %v2388_v27, %v2237_v63  ;;  %v2503_v33 = vmul.f32 %v11437_v36, %v2458_v23  ;;  %v11450_v30 = vld [vmem:[#allocation84_spill] sm:$0xff]  ;;  %v11452_v23 = vld [vmem:[#allocation83_spill] sm:$0xff] }
 0x4f0   : > { %7177 = vpow2.f32 %v3128_v54  ;;  %v2394_v59 = vsel %vm1909_vm7, %v2392_v8, %v2393_v18  ;;  %v2505_v61 = vmul.f32 %v11437_v36, %v2460_v24  ;;  %v11439_v6 = vrot.slane %v11438_v31, 2  ;;  %v11457_v24 = vld [vmem:[#allocation74_spill] sm:$0xff] }
 0x4f1   : > { %v11441_v56 = vrot.slane %v11440_v62, 2  ;;  %7179 = vpow2.f32 %v3132_v46  ;;  %v2428_v53 = vadd.f32 %v2394_v59, %v2239_v14  ;;  %v11443_v44 = vrot.slane %v11442_v19, 2  ;;  %v11454_v46 = vld [vmem:[#allocation31_spill] sm:$0xff]  ;;  %v11458_v14 = vld [vmem:[#allocation34_spill] sm:$0xff] }
 0x4f2   : > { %v11445_v57 = vrot.slane %v11444_v28, 2  ;;  %v11447_v54 = vrot.slane %v11446_v48, 2  ;;  %v11449_v10 = vrot.slane %v11448_v49, 2  ;;  %v11451_v63 = vrot.slane %v11450_v30, 2  ;;  %v7166_v55 = vpop.eup %7165  ;;  %v9417_v59 = vld [vmem:[#allocation2] sm:$0xff]  ;;  %v11462_v30 = vld [vmem:[#allocation35_spill] sm:$0xff] }
 0x4f3   : > { %v2553_v40 = vsel %vm2099_vm8, %v11441_v56, %v11439_v6  ;;  %v11453_v38 = vrot.slane %v11452_v23, 2  ;;  %v2575_v37 = vrot.slane %v11454_v46, 2  ;;  %v2576_v26 = vrot.slane %v11455_v3, 2  ;;  %v7168_v8 = vpop.eup %7167  ;;  %v2702_v62 = vld [vmem:[#allocation2 + $0xf0] sm:$0x1] }
 0x4f4   : > { %v2559_v34 = vsel %vm2099_vm8, %v11445_v57, %v11443_v44  ;;  %v2565_v29 = vsel %vm2099_vm8, %v11449_v10, %v11447_v54  ;;  %v2581_v21 = vrot.slane %v2503_v33, 2  ;;  %v2582_v41 = vrot.slane %v2505_v61, 2  ;;  %v11460_v61 = vld [vmem:[#allocation52_spill] sm:$0xff]  ;;  %v2704_v44 = vld [vmem:[#allocation2 + $0x100] sm:$0xfe] }
 0x4f5   : > { %v2571_v5 = vsel %vm2099_vm8, %v11453_v38, %v11451_v63  ;;  %v2607_v16 = vadd.f32 %v2553_v40, %v11456_v11  ;;  %v2609_v35 = vadd.f32 %v2559_v34, %v2420_v7  ;;  %v2611_v58 = vadd.f32 %v2565_v29, %v2422_v39  ;;  %v7170_v7 = vpop.eup %7169  ;;  %v2700_v39 = vld [vmem:[#allocation2 + $0xe0] sm:$0xfe]  ;;  %v11461_v40 = vld [vmem:[#allocation72_spill] sm:$0xff]  ;;  %v2706_v34 = vld [vmem:[#allocation2 + $0x110] sm:$0x1] }
 0x4f6   : > { %v2577_v15 = vsel %vm2099_vm8, %v2575_v37, %v2576_v26  ;;  %v2613_v12 = vadd.f32 %v2571_v5, %v2424_v2  ;;  %v2656_v42 = vmul.f32 %v11458_v14, %v11457_v24  ;;  %v2658_v27 = vmul.f32 %v11458_v14, %v11459_v1  ;;  %v7172_v6 = vpop.eup %7171  ;;  %v2708_v48 = vld [vmem:[#allocation2 + $0x120] sm:$0xfe]  ;;  %v2710_v29 = vld [vmem:[#allocation2 + $0x130] sm:$0x1] }
 0x4f7   : > { %v3135_v9 = vadd.f32 1.0, %v7166_v55  ;;  %v2583_v18 = vsel %vm2099_vm8, %v2581_v21, %v2582_v41  ;;  %v2615_v43 = vadd.f32 %v2577_v15, %v2426_v60  ;;  %v2660_v0 = vmul.f32 %v11458_v14, %v9347_v22  ;;  %v7174_v22 = vpop.eup %7173 }
 0x4f8   : > { %v3137_v36 = vadd.f32 1.0, %v7168_v8  ;;  %v2617_v33 = vadd.f32 %v2583_v18, %v2428_v53  ;;  %v2662_v2 = vmul.f32 %v9417_v59, %v11458_v14  ;;  %v2668_v31 = vadd.f32 %v11460_v61, %v2607_v16  ;;  %v11463_v16 = vld [vmem:[#allocation48_spill] sm:$0xff]  ;;  %v11469_v14 = vld [vmem:[#allocation57_spill] sm:$0xff] }
 0x4f9   : > { %v3139_v56 = vadd.f32 1.0, %v7170_v7  ;;  %7181 = vrcp.f32 %v3135_v9  ;;  %v2670_v60 = vadd.f32 %v11461_v40, %v2609_v35  ;;  %v2672_v19 = vadd.f32 %v2656_v42, %v2611_v58  ;;  %v7176_v54 = vpop.eup %7175  ;;  %v11465_v58 = vld [vmem:[#allocation47_spill] sm:$0xff] }
 0x4fa   : > { %v3141_v28 = vadd.f32 1.0, %v7172_v6  ;;  %7183 = vrcp.f32 %v3137_v36  ;;  %v2674_v57 = vadd.f32 %v2658_v27, %v2613_v12  ;;  %v2676_v53 = vadd.f32 %v2660_v0, %v2615_v43  ;;  %v7178_v23 = vpop.eup %7177  ;;  %v11467_v12 = vld [vmem:[#allocation58_spill] sm:$0xff]  ;;  %v11471_v27 = vld [vmem:[#allocation25_spill] sm:$0xff]  ;;  %v11473_v9 = vld [vmem:[#allocation27_spill] sm:$0xff] }
 0x4fb   : > { %v3143_v49 = vadd.f32 1.0, %v7174_v22  ;;  %7185 = vrcp.f32 %v3139_v56  ;;  %v2678_v10 = vadd.f32 %v2662_v2, %v2617_v33  ;;  %v2745_v63 = vmul.f32 %v11462_v30, %v2700_v39  ;;  %v7180_v37 = vpop.eup %7179  ;;  %v11475_v0 = vld [vmem:[#allocation76_spill] sm:$0xff]  ;;  %v11477_v39 = vld [vmem:[#allocation73_spill] sm:$0xff]  ;;  %v11480_v6 = vld [vmem:[#allocation86_spill] sm:$0xff] }
 0x4fc   : > { %v3145_v38 = vadd.f32 1.0, %v7176_v54  ;;  %7187 = vrcp.f32 %v3141_v28  ;;  %v2747_v5 = vmul.f32 %v11462_v30, %v2702_v62  ;;  %v2749_v46 = vmul.f32 %v11462_v30, %v2704_v44  ;;  %v11479_v2 = vld [vmem:[#allocation85_spill] sm:$0xff] }
 0x4fd   : > { %v3147_v3 = vadd.f32 1.0, %v7178_v23  ;;  %7189 = vrcp.f32 %v3143_v49  ;;  %v2751_v26 = vmul.f32 %v11462_v30, %v2706_v34  ;;  %v2753_v21 = vmul.f32 %v11462_v30, %v2708_v48  ;;  %v2885_v34 = vld [vmem:[#allocation2 + $0xc0] sm:$0xfc]  ;;  %v11481_v49 = vld [vmem:[#allocation51_spill] sm:$0xff] }
 0x4fe   : > { %v3149_v41 = vadd.f32 1.0, %v7180_v37  ;;  %7191 = vrcp.f32 %v3145_v38  ;;  %v2755_v11 = vmul.f32 %v11462_v30, %v2710_v29  ;;  %v11464_v35 = vrot.slane %v11463_v16, 1  ;;  %v11482_v30 = vld [vmem:[#allocation62_spill] sm:$0xff]  ;;  %v2887_v37 = vld [vmem:[#allocation2 + $0xd0] sm:$0x3] }
 0x4ff   : > { %v11466_v55 = vrot.slane %v11465_v58, 1  ;;  %7193 = vrcp.f32 %v3147_v3  ;;  %v11468_v24 = vrot.slane %v11467_v12, 1  ;;  %v11470_v42 = vrot.slane %v11469_v14, 1  ;;  %v2891_v58 = vld [vmem:[#allocation2 + $0xf0] sm:$0x3]  ;;  %v11483_v14 = vld [vmem:[#allocation36_spill] sm:$0xff] }
 0x500   : > { %v11472_v8 = vrot.slane %v11471_v27, 1  ;;  %v11474_v18 = vrot.slane %v11473_v9, 1  ;;  %v11476_v7 = vrot.slane %v11475_v0, 1  ;;  %v11478_v36 = vrot.slane %v11477_v39, 1  ;;  %v2899_v27 = vld [vmem:[#allocation2 + $0x130] sm:$0x3] }
 0x501   : > { %v2791_v15 = vsel %vm1909_vm7, %v11466_v55, %v11464_v35  ;;  %v2797_v1 = vsel %vm1909_vm7, %v11470_v42, %v11468_v24  ;;  %7195 = vrcp.f32 %v3149_v41  ;;  %v2813_v61 = vrot.slane %v11479_v2, 1  ;;  %v2893_v55 = vld [vmem:[#allocation2 + $0x100] sm:$0xfc]  ;;  %v2895_v24 = vld [vmem:[#allocation2 + $0x110] sm:$0x3] }
 0x502   : > { %v2803_v43 = vsel %vm1909_vm7, %v11474_v18, %v11472_v8  ;;  %v2809_v33 = vsel %vm1909_vm7, %v11478_v36, %v11476_v7  ;;  %v2814_v62 = vrot.slane %v11480_v6, 1  ;;  %v2819_v56 = vrot.slane %v2745_v63, 1 }
 0x503   : > { %v2820_v40 = vrot.slane %v2747_v5, 1  ;;  %v2825_v44 = vrot.slane %v2749_v46, 1  ;;  %v2826_v22 = vrot.slane %v2751_v26, 1  ;;  %v2831_v28 = vrot.slane %v2753_v21, 1  ;;  %v7182_v38 = vpop.eup %7181  ;;  %v2889_v26 = vld [vmem:[#allocation2 + $0xe0] sm:$0xfc] }
 0x504   : > { %v2815_v48 = vsel %vm1909_vm7, %v2813_v61, %v2814_v62  ;;  %v2832_v54 = vrot.slane %v2755_v11, 1  ;;  %v9453_v29 = vadd.f32 %v2791_v15, %v11481_v49  ;;  %v9456_v23 = vadd.f32 %v2797_v1, %v11482_v30  ;;  %v7184_v21 = vpop.eup %7183  ;;  %v11488_v49 = vld [vmem:[#allocation61_spill] sm:$0xff] }
 0x505   : > { %v2821_v3 = vsel %vm1909_vm7, %v2819_v56, %v2820_v40  ;;  %v2827_v63 = vsel %vm1909_vm7, %v2825_v44, %v2826_v22  ;;  %v9460_v5 = vadd.f32 %v2803_v43, %v2668_v31  ;;  %v9462_v46 = vadd.f32 %v2809_v33, %v2670_v60  ;;  %v7186_v15 = vpop.eup %7185  ;;  %v11484_v44 = vld [vmem:[#allocation50_spill] sm:$0xff] }
 0x506   : > { %v9465_v41 = vmul.f32 %v7182_v38, %v9327_v4  ;;  %v2833_v11 = vsel %vm1909_vm7, %v2831_v28, %v2832_v54  ;;  %v9468_v16 = vadd.f32 %v2815_v48, %v2672_v19  ;;  %v9470_v35 = vadd.f32 %v2821_v3, %v2674_v57  ;;  %v7188_v1 = vpop.eup %7187  ;;  %v2897_v57 = vld [vmem:[#allocation2 + $0x120] sm:$0xfc]  ;;  %v11486_v28 = vld [vmem:[#allocation49_spill] sm:$0xff]  ;;  %v11492_v3 = vld [vmem:[#allocation28_spill] sm:$0xff] }
 0x507   : > { %v9473_v12 = vmul.f32 %v7184_v21, %v9329_v25  ;;  %v2865_v31 = vadd.f32 %v2827_v63, %v2676_v53  ;;  %v2867_v60 = vadd.f32 %v2833_v11, %v2678_v10  ;;  %v2930_v42 = vmul.f32 %v11483_v14, %v2885_v34  ;;  %v7190_v25 = vpop.eup %7189 }
 0x508   : > { %v9477_v4 = vmul.f32 %v7186_v15, %v9331_v20  ;;  %v3217_v19 = vsel %vm1609_vm5, %v9465_v41, 0.0  ;;  %v2932_v8 = vmul.f32 %v11483_v14, %v2887_v37  ;;  %v2934_v9 = vmul.f32 %v11483_v14, %v2889_v26  ;;  %v7192_v43 = vpop.eup %7191  ;;  %v11494_v26 = vld [vmem:[#allocation26_spill] sm:$0xff] }
 0x509   : > { %v9484_v53 = vmul.f32 %v7188_v1, %v9333_v52  ;;  %v3218_v10 = vsel %vm1609_vm5, %v9473_v12, 0.0  ;;  %v2936_v18 = vmul.f32 %v11483_v14, %v2891_v58  ;;  %v2938_v20 = vmul.f32 %v11483_v14, %v2893_v55  ;;  %v7194_v33 = vpop.eup %7193  ;;  %v11496_v55 = vld [vmem:[#allocation77_spill] sm:$0xff] }
 0x50a   : > { %v9491_v0 = vmul.f32 %v7190_v25, %v9335_v13  ;;  %v3219_v7 = vadd.f32 %v3218_v10, %v3217_v19  ;;  %v3220_v39 = vsel %vm1609_vm5, %v9477_v4, 0.0  ;;  %v2940_v36 = vmul.f32 %v11483_v14, %v2895_v24  ;;  %v11497_v24 = vld [vmem:[#allocation78_spill] sm:$0xff] }
 0x50b   : > { %v9497_v52 = vmul.f32 %v7192_v43, %v9337_v32  ;;  %v3222_v2 = vsel %vm1609_vm5, %v9484_v53, 0.0  ;;  %v2942_v61 = vmul.f32 %v11483_v14, %v2897_v57  ;;  %v2944_v6 = vmul.f32 %v11483_v14, %v2899_v27  ;;  %v7196_v62 = vpop.eup %7195 }
 0x50c   : > { %v9504_v13 = vmul.f32 %v7194_v33, %v9339_v50  ;;  %v3221_v56 = vadd.f32 %v3220_v39, %v3219_v7  ;;  %v3224_v40 = vsel %vm1609_vm5, %v9491_v0, 0.0  ;;  %v11485_v22 = vrot.slane %v11484_v44, 2  ;;  %v11490_v50 = vld [vmem:[#allocation60_spill] sm:$0xff] }
 0x50d   : > { %v11487_v32 = vrot.slane %v11486_v28, 2  ;;  %v9514_v48 = vmul.f32 %v7196_v62, %v9341_v45  ;;  %v3226_v54 = vsel %vm1609_vm5, %v9497_v52, 0.0  ;;  %v11489_v30 = vrot.slane %v11488_v49, 2 }
 0x50e   : > { %v11491_v38 = vrot.slane %v11490_v50, 2  ;;  %v11493_v63 = vrot.slane %v11492_v3, 2  ;;  %v11495_v21 = vrot.slane %v11494_v26, 2  ;;  %v3223_v58 = vadd.f32 %v3222_v2, %v3221_v56 }
 0x50f   : > { %v2980_v34 = vsel %vm2099_vm8, %v11487_v32, %v11485_v22  ;;  %v3228_v45 = vsel %vm1609_vm5, %v9504_v13, 0.0  ;;  %v2996_v15 = vrot.slane %v11496_v55, 2  ;;  %v2997_v14 = vrot.slane %v11497_v24, 2 }
 0x510   : > { %v2986_v37 = vsel %vm2099_vm8, %v11491_v38, %v11489_v30  ;;  %v2992_v11 = vsel %vm2099_vm8, %v11495_v21, %v11493_v63  ;;  %v3230_v1 = vsel %vm1609_vm5, %v9514_v48, 0.0  ;;  %v3002_v19 = vrot.slane %v2930_v42, 2 }
 0x511   : > { %v3003_v57 = vrot.slane %v2932_v8, 2  ;;  %v3008_v27 = vrot.slane %v2934_v9, 2  ;;  %v3225_v25 = vadd.f32 %v3224_v40, %v3223_v58  ;;  %v2998_v10 = vsel %vm2099_vm8, %v2996_v15, %v2997_v14 }
 0x512   : > { %v3009_v43 = vrot.slane %v2936_v18, 2  ;;  %v3014_v7 = vrot.slane %v2938_v20, 2  ;;  %v3015_v33 = vrot.slane %v2940_v36, 2  ;;  %v3020_v2 = vrot.slane %v2942_v61, 2 }
 0x513   : > { %v3004_v39 = vsel %vm2099_vm8, %v3002_v19, %v3003_v57  ;;  %v3021_v62 = vrot.slane %v2944_v6, 2  ;;  %v3227_v56 = vadd.f32 %v3226_v54, %v3225_v25  ;;  %v3042_v22 = vadd.f32 %v2980_v34, %v9453_v29 }
 0x514   : > { %v3010_v44 = vsel %vm2099_vm8, %v3008_v27, %v3009_v43  ;;  %v3044_v28 = vadd.f32 %v2986_v37, %v9456_v23  ;;  %v3016_v42 = vsel %vm2099_vm8, %v3014_v7, %v3015_v33  ;;  %v3046_v9 = vadd.f32 %v2992_v11, %v9460_v5 }
 0x515   : > { %v3022_v8 = vsel %vm2099_vm8, %v3020_v2, %v3021_v62  ;;  %v3048_v18 = vadd.f32 %v2998_v10, %v9462_v46  ;;  %v3229_v20 = vadd.f32 %v3228_v45, %v3227_v56  ;;  %v3050_v36 = vadd.f32 %v3004_v39, %v9468_v16 }
 0x516   : > { %v3052_v61 = vadd.f32 %v3010_v44, %v9470_v35  ;;  %v3054_v6 = vadd.f32 %v3016_v42, %v2865_v31  ;;  %v3056_v40 = vadd.f32 %v3022_v8, %v2867_v60  ;;  %v9546_v32 = vadd.f32 %v9303_v17, %v3042_v22 }
 0x517   : > { %v9549_v29 = vadd.f32 %v9303_v17, %v3044_v28  ;;  %v9552_v23 = vadd.f32 %v9303_v17, %v3046_v9  ;;  %v3231_v34 = vadd.f32 %v3230_v1, %v3229_v20  ;;  %v9555_v5 = vadd.f32 %v9303_v17, %v3048_v18 }
 0x518   : > { %v9558_v46 = vadd.f32 %v9303_v17, %v3050_v36  ;;  %v9561_v16 = vadd.f32 %v9303_v17, %v3052_v61  ;;  %v9564_v35 = vadd.f32 %v9303_v17, %v3054_v6  ;;  %v9567_v31 = vadd.f32 %v9303_v17, %v3056_v40 }
 0x519   : > { %v3086_v60 = vsub.f32 0.0, %v9546_v32  ;;  %v3088_v54 = vsub.f32 0.0, %v9549_v29  ;;  %v3232_v49 = vrot.slane %v3231_v34, 4  ;;  %v3090_v30 = vsub.f32 0.0, %v9552_v23 }
 0x51a   : > { %v3092_v50 = vsub.f32 0.0, %v9555_v5  ;;  %v3094_v38 = vsub.f32 0.0, %v9558_v46  ;;  %v3096_v37 = vsub.f32 0.0, %v9561_v16  ;;  %v3098_v3 = vsub.f32 0.0, %v9564_v35 }
 0x51b   : > { %v3100_v63 = vsub.f32 0.0, %v9567_v31  ;;  %v3102_v26 = vmul.f32 1.442695, %v3086_v60  ;;  %v3233_v17 = vadd.f32 %v3232_v49, %v3231_v34  ;;  %v3106_v21 = vmul.f32 1.442695, %v3088_v54 }
 0x51c   : > { %v3110_v11 = vmul.f32 1.442695, %v3090_v30  ;;  %v3114_v58 = vmul.f32 1.442695, %v3092_v50  ;;  %v3118_v45 = vmul.f32 1.442695, %v3094_v38 }
 0x51d   : > { %7197 = vpow2.f32 %v3102_v26  ;;  %v3234_v55 = vrot.slane %v3233_v17, 2  ;;  %v3122_v15 = vmul.f32 1.442695, %v3096_v37  ;;  %v3126_v24 = vmul.f32 1.442695, %v3098_v3 }
 0x51e   : > { %7199 = vpow2.f32 %v3106_v21  ;;  %v3130_v1 = vmul.f32 1.442695, %v3100_v63 }
 0x51f   : > { %7201 = vpow2.f32 %v3110_v11  ;;  %v3235_v14 = vadd.f32 %v3234_v55, %v3233_v17 }
 0x520   : > { %7203 = vpow2.f32 %v3114_v58 }
 0x521   : > { %7205 = vpow2.f32 %v3118_v45  ;;  %v3236_v19 = vrot.slane %v3235_v14, 1 }
 0x522   : > { %7207 = vpow2.f32 %v3122_v15 }
 0x523   : > { %7209 = vpow2.f32 %v3126_v24  ;;  %v3237_v57 = vadd.f32 %v3236_v19, %v3235_v14  ;;  %v3200_v14 = vld [vmem:[%s11100_s14] sm:$0x1] }
 0x524   : > { %7211 = vpow2.f32 %v3130_v1 }
 0x525   : > { %v3239_v27 = vmul.f32 0.015625, %v3237_v57 }
 0x527   : > { %v7198_v25 = vpop.eup %7197  ;;  %6499 = vmatprep.mubr.msk.f32.mxu0 %vm1609_vm5, %v3239_v27 }
 0x528   : > { %v7200_v10 = vpop.eup %7199  ;;  %v3134_v43 = vadd.f32 1.0, %v7198_v25 }
 0x529   : > { %v7202_v7 = vpop.eup %7201  ;;  %v3136_v39 = vadd.f32 1.0, %v7200_v10 }
 0x52a   : > { %v7204_v33 = vpop.eup %7203  ;;  %v3138_v2 = vadd.f32 1.0, %v7202_v7  ;;  %7213 = vrcp.f32 %v3134_v43 }
 0x52b   : > { %v7206_v62 = vpop.eup %7205  ;;  %v3140_v56 = vadd.f32 1.0, %v7204_v33  ;;  %7215 = vrcp.f32 %v3136_v39  ;;  %v11498_v39 = vmov 0   ;;  %v6947_v33 = vld [vmem:[%s11103_s17] sm:$0xff]  }
 0x52c   : > { %v7208_v44 = vpop.eup %7207  ;;  %v3142_v22 = vadd.f32 1.0, %v7206_v62  ;;  %7217 = vrcp.f32 %v3138_v2  ;;  %3545 = vmatpush1.bf16.msra.mxu1 %v6947_v33  ;;  %v6948_v2 = vld [vmem:[%s11103_s17 + $0x8] sm:$0xff]   ;;  %v6949_v62 = vld [vmem:[%s11103_s17 + $0x10] sm:$0xff]  }
 0x52d   : > { %v7210_v28 = vpop.eup %7209  ;;  %v3144_v42 = vadd.f32 1.0, %v7208_v44  ;;  %7219 = vrcp.f32 %v3140_v56  ;;  %3546 = vmatprep.subr.bf16.mxu1 %v11498_v39  ;;  %v6950_v56 = vld [vmem:[%s11103_s17 + $0x18] sm:$0xff]   ;;  %v6951_v44 = vld [vmem:[%s11103_s17 + $0x20] sm:$0xff]  }
 0x52e   : > { %v7212_v8 = vpop.eup %7211  ;;  %v3146_v9 = vadd.f32 1.0, %v7210_v28  ;;  %7221 = vrcp.f32 %v3142_v22  ;;  %v6952_v22 = vld [vmem:[%s11103_s17 + $0x28] sm:$0xff]   ;;  %v6953_v28 = vld [vmem:[%s11103_s17 + $0x30] sm:$0xff]  }
 0x52f   : > { %v3148_v18 = vadd.f32 1.0, %v7212_v8  ;;  %7223 = vrcp.f32 %v3144_v42  ;;  %v6954_v42 = vld [vmem:[%s11103_s17 + $0x38] sm:$0xff]   ;;  %v6955_v8 = vld [vmem:[%s11103_s17 + $0x40] sm:$0xff]  }
 0x530   : > { %7225 = vrcp.f32 %v3146_v9  ;;  %3547 = vmatpush1.bf16.msra.mxu1 %v6948_v2  ;;  %v3203_v9 = vld [vmem:[%s11102_s16] sm:$0x3] }
 0x531   : > { %7227 = vrcp.f32 %v3148_v18  ;;  %3548 = vmatprep.subr.bf16.mxu1 %v11498_v39  ;;  %v3323_v18 = vrot.slane %v3203_v9, %v11405_v47 }
 0x534   : > { %v7214_v20 = vpop.eup %7213  ;;  %3549 = vmatpush1.bf16.msra.mxu1 %v6949_v62 }
 0x535   : > { %v7216_v36 = vpop.eup %7215  ;;  %v9579_v6 = vmul.f32 %v7214_v20, %v9546_v32  ;;  %3550 = vmatprep.subr.bf16.mxu1 %v11498_v39  ;;  %v3327_v20 = vrot.slane %v3203_v9, %v11406_v51 }
 0x536   : > { %v7218_v61 = vpop.eup %7217  ;;  %v9582_v40 = vmul.f32 %v7216_v36, %v9549_v29 }
 0x537   : > { %v7220_v34 = vpop.eup %7219  ;;  %v9585_v60 = vmul.f32 %v7218_v61, %v9552_v23 }
 0x538   : > { %v7222_v54 = vpop.eup %7221  ;;  %v9588_v49 = vmul.f32 %v7220_v34, %v9555_v5  ;;  %v3204_v30 = vadd.f32 %v9582_v40, %v9579_v6  ;;  %3551 = vmatpush1.bf16.msra.mxu1 %v6950_v56  ;;  %v9734_v56 = vld [vmem:[%s11105_s19 + $0x14] ss:$40 sps:$4 sm:$0xff]  }
 0x539   : > { %v7224_v50 = vpop.eup %7223  ;;  %v9593_v38 = vmul.f32 %v7222_v54, %v9558_v46  ;;  %3552 = vmatprep.subr.bf16.mxu1 %v11498_v39 }
 0x53a   : > { %v3205_v32 = vadd.f32 %v3204_v30, %v9585_v60  ;;  %v7226_v37 = vpop.eup %7225  ;;  %v9597_v29 = vmul.f32 %v7224_v50, %v9561_v16 }
 0x53b   : > { %v7228_v3 = vpop.eup %7227  ;;  %v9601_v63 = vmul.f32 %v7226_v37, %v9564_v35  ;;  %v3202_v35 = vld [vmem:[%s11101_s15 + $0x8] sm:$0x3f] }
 0x53c   : > { %v3206_v23 = vadd.f32 %v3205_v32, %v9588_v49  ;;  %v9605_v26 = vmul.f32 %v7228_v3, %v9567_v31  ;;  %v3201_v31 = vld [vmem:[%s11101_s15] sm:$0x3f]  ;;  %6500 = vmatprep.subr.msk.mxu0 %vm2099_vm8, %v3202_v35  ;;  %3553 = vmatpush1.bf16.msra.mxu1 %v6951_v44 }
 0x53d   : > { %3554 = vmatprep.subr.bf16.mxu1 %v11498_v39  ;;  %v9739_v44 = vld [vmem:[%s11105_s19 + $0x1c] ss:$40 sps:$4 sm:$0xff]  }
 0x53e   : > { %v3207_v5 = vadd.f32 %v3206_v23, %v9593_v38 }
 0x540   : > { %v3208_v46 = vadd.f32 %v3207_v5, %v9597_v29  ;;  %3555 = vmatpush1.bf16.msra.mxu1 %v6952_v22  ;;  %v9747_v22 = vld [vmem:[%s11104_s18] ss:$0 sm:$0xff] }
 0x541   : > { %3556 = vmatprep.subr.bf16.mxu1 %v11498_v39 }
 0x542   : > { %v3209_v17 = vadd.f32 %v3208_v46, %v9601_v63 }
 0x544   : > { %v3210_v21 = vadd.f32 %v3209_v17, %v9605_v26  ;;  %3557 = vmatpush1.bf16.msra.mxu1 %v6953_v28 }
 0x545   : > { %3558 = vmatprep.subr.bf16.mxu1 %v11498_v39 }
 0x546   : > { %v3211_v11 = vrot.slane %v3210_v21, 4 }
 0x548   : > { %v3212_v16 = vadd.f32 %v3211_v11, %v3210_v21  ;;  %3559 = vmatpush1.bf16.msra.mxu1 %v6954_v42 }
 0x549   : > { %3560 = vmatprep.subr.bf16.mxu1 %v11498_v39 }
 0x54a   : > { %v3213_v58 = vrot.slane %v3212_v16, 2 }
 0x54c   : > { %v3214_v45 = vadd.f32 %v3213_v58, %v3212_v16  ;;  %3561 = vmatpush1.bf16.msra.mxu1 %v6955_v8 }
 0x54e   : > { %v3215_v55 = vrot.slane %v3214_v45, 1 }
 0x550   : > { %v3216_v15 = vadd.f32 %v3215_v55, %v3214_v45 }
 0x552   : > { %v3238_v24 = vmul.f32 0.015625, %v3216_v15 }
 0x554   : > { %3308 = vmatmul.mubr.f32.vlgmr.msra.gmra.mrb[2].mxu0 %v3238_v24 }
 0x555   : > { %3404 = vmatprep.mubr.f32.mxu0 %v9417_v59  ;;  %6501 = vmatpush1.msk.msra.mxu0 %vm2099_vm8, %v3201_v31 }
 0x627   : > { %v3309_v1 = vpop.f32.mrb[2].mxu0 }
 0x628   : > { %v3310_v19 = vadd.f32 %v3309_v1, %v3200_v14  ;;  %v3311_v57 = vpop.f32.mrb[3].mxu0 }
 0x62a   : > { %v3313_v59 = vsub.f32 0.0, %v3310_v19 }
 0x62c   : > { %v3314_v27 = vmul.f32 1.442695, %v3313_v59 }
 0x62e   : > { %7229 = vpow2.f32 %v3314_v27 }
 0x638   : > { %v7230_v25 = vpop.eup %7229 }
 0x639   : > { %v3316_v10 = vadd.f32 1.0, %v7230_v25 }
 0x63b   : > { %7231 = vrcp.f32 %v3316_v10 }
 0x645   : > { %v7232_v43 = vpop.eup %7231 }
 0x646   : > { %v3318_v7 = vmul.f32 %v7232_v43, %v3310_v19 }
 0x648   : > { %6502 = vmatmul.mubr.msk.f32.vlgmr.msra.gmra.mrb[20].mxu0 %vm3330_vm11, %v3318_v7 }
 0x649   : > { %3870 = vmatprep.mubr.bf16.mxu0 %v11498_v39 }
 0x71b   : > { %v3406_v36 = vpop.f32.mrb[20].mxu0 }
 0x71c   : > { %v3407_v61 = vadd.f32 %v3406_v36, %v3323_v18  ;;  %v3408_v34 = vpop.f32.mrb[21].mxu0  ;;  %v3630_v36 = vld [vmem:[%s11105_s19 + $0x60] sm:$0xff] }
 0x71d   : > { %v3409_v54 = vadd.f32 %v3408_v34, %v3327_v20  ;;  %v11499_v34 = vld [vmem:[#allocation16_spill] sm:$0xff] }
 0x71e   : > { %v3411_v30 = vsub.f32 0.0, %v3407_v61  ;;  %v3631_v61 = vld [vmem:[%s11105_s19 + $0x68] sm:$0xff] }
 0x71f   : > { %v3412_v50 = vsub.f32 0.0, %v3409_v54 }
 0x720   : > { %v3413_v32 = vmul.f32 1.442695, %v3411_v30  ;;  %v11500_v30 = vld [vmem:[#allocation17_spill] sm:$0xff] }
 0x721   : > { %v3415_v37 = vmul.f32 1.442695, %v3412_v50 }
 0x722   : > { %7233 = vpow2.f32 %v3413_v32  ;;  %v9762_v32 = vld [vmem:[%s11105_s19 + $0x10] ss:$40 sps:$4 sm:$0xff]  }
 0x723   : > { %7235 = vpow2.f32 %v3415_v37  ;;  %v9767_v37 = vld [vmem:[%s11105_s19 + $0x18] ss:$40 sps:$4 sm:$0xff]  }
 0x72c   : > { %v7234_v23 = vpop.eup %7233 }
 0x72d   : > { %v7236_v3 = vpop.eup %7235  ;;  %v3417_v5 = vadd.f32 1.0, %v7234_v23  ;;  %v9769_v23 = vcombine.high %v3630_v36, %v3630_v36 }
 0x72e   : > { %v3418_v46 = vadd.f32 1.0, %v7236_v3 }
 0x72f   : > { %7237 = vrcp.f32 %v3417_v5  ;;  %v6531_v5 = vcombine.low %v3630_v36, %v3630_v36 }
 0x730   : > { %7239 = vrcp.f32 %v3418_v46  ;;  %v9773_v46 = vcombine.high %v3631_v61, %v3631_v61 }
 0x739   : > { %v7238_v17 = vpop.eup %7237 }
 0x73a   : > { %v7240_v21 = vpop.eup %7239  ;;  %v3424_v11 = vrot.slane %v7238_v17, %v11405_v47  ;;  %v6533_v17 = vcombine.low %v3631_v61, %v3631_v61  ;;  %v11506_v61 = vld [vmem:[#allocation22_spill] sm:$0xff] }
 0x73b   : > { %v3428_v16 = vrot.slane %v7240_v21, %v11405_v47 }
 0x73c   : > { %v3429_v58 = vmul.f32 %v3424_v11, %v9579_v6  ;;  %v3431_v45 = vmul.f32 %v3424_v11, %v9582_v40  ;;  %v3433_v6 = vmul.f32 %v3424_v11, %v9585_v60  ;;  %v3435_v40 = vmul.f32 %v3424_v11, %v9588_v49 }
 0x73d   : > { %v3430_v55 = vmul.f32 %v3428_v16, %v9465_v41  ;;  %v3432_v15 = vmul.f32 %v3428_v16, %v9473_v12  ;;  %v3434_v24 = vmul.f32 %v3428_v16, %v9477_v4  ;;  %v3436_v35 = vmul.f32 %v3428_v16, %v9484_v53 }
 0x73e   : > { %v3445_v14 = vpack.c.bf16 %v3431_v45, %v3429_v58  ;;  %v3438_v41 = vmul.f32 %v3428_v16, %v9491_v0  ;;  %v3440_v12 = vmul.f32 %v3428_v16, %v9497_v52  ;;  %v3447_v19 = vpack.c.bf16 %v3435_v40, %v3433_v6 }
 0x73f   : > { %v3446_v31 = vpack.c.bf16 %v3432_v15, %v3430_v55  ;;  %v3448_v1 = vpack.c.bf16 %v3436_v35, %v3434_v24  ;;  %v3437_v53 = vmul.f32 %v3424_v11, %v9593_v38  ;;  %v3439_v57 = vmul.f32 %v3424_v11, %v9597_v29  ;;  %v9689_v38 = vld [vmem:[%s11105_s19 + $0xc] ss:$40 sps:$4 sm:$0xff]   ;;  %v9707_v29 = vld [vmem:[%s11105_s19] ss:$40 sps:$4 sm:$0xff]  }
 0x740   : > { %v3450_v4 = vpack.c.bf16 %v3440_v12, %v3438_v41  ;;  %v3442_v59 = vmul.f32 %v3428_v16, %v9504_v13  ;;  %v3444_v27 = vmul.f32 %v3428_v16, %v9514_v48  ;;  %v3441_v0 = vmul.f32 %v3424_v11, %v9601_v63  ;;  %v9694_v13 = vld [vmem:[%s11105_s19 + $0x4] ss:$40 sps:$4 sm:$0xff]   ;;  %v9699_v48 = vld [vmem:[%s11105_s19 + $0x8] ss:$40 sps:$4 sm:$0xff]   ;;  %3838 = vmatprep.subr.bf16.mxu0 %v9689_v38  ;;  %v3629_v63 = vld [vmem:[%s11105_s19 + $0x58] sm:$0xff] }
 0x741   : > { %6513 = vmatprep.mubr.msk.bf16.mxu1 %vm1609_vm5, %v3446_v31  ;;  %v3449_v60 = vpack.c.bf16 %v3439_v57, %v3437_v53  ;;  %v3443_v52 = vmul.f32 %v3424_v11, %v9605_v26  ;;  %3795 = vmatprep.subr.bf16.mxu1 %v9694_v13  ;;  %v3628_v26 = vld [vmem:[%s11105_s19 + $0x50] sm:$0xff]  ;;  %v9715_v10 = vcombine.high %v3629_v63, %v3629_v63  ;;  %v9786_v15 = vsel %vm1159_vm2, %v6531_v5, 0  ;;  %v9818_v57 = vld [vmem:[%s11105_s19 + $0x24] ss:$40 sps:$4 sm:$0xff]  }
 0x742   : > { %3577 = vmatmul.mubr.bf16.vlgmr.msra.gmra.mrb[12].mxu1 %v3445_v14  ;;  %v3452_v25 = vpack.c.bf16 %v3444_v27, %v3442_v59  ;;  %3839 = vmatpush1.bf16.msra.mxu0 %v9699_v48  ;;  %v9717_v43 = vcombine.high %v3628_v26, %v3628_v26  ;;  %v6529_v7 = vcombine.low %v3629_v63, %v3629_v63  ;;  %v9791_v24 = vsel %vm1159_vm2, %v6533_v17, 0  ;;  %v11501_v35 = vld [vmem:[#allocation19_spill] sm:$0xff]  ;;  %v11502_v14 = vld [vmem:[#allocation18_spill] sm:$0xff]  ;;  %v11503_v27 = vld [vmem:[#allocation21_spill] sm:$0xff] }
 0x743   : > { %6514 = vmatprep.mubr.msk.bf16.mxu1 %vm1609_vm5, %v3448_v1  ;;  %v3451_v49 = vpack.c.bf16 %v3443_v52, %v3441_v0  ;;  %v6527_v33 = vcombine.low %v3628_v26, %v3628_v26  ;;  %3796 = vmatpush1.bf16.msra.mxu1 %v9707_v29  ;;  %v3632_v59 = vld [vmem:[%s11105_s19 + $0x70] sm:$0xff]  ;;  %v9832_v52 = vld [vmem:[%s11105_s19 + $0x20] ss:$40 sps:$4 sm:$0xff]  }
 0x744   : > { %6539 = vmatprep.subr.msk.bf16.mxu0 %vm1159_vm2, %v9715_v10  ;;  %6537 = vmatprep.subr.msk.bf16.mxu1 %vm1159_vm2, %v9717_v43  ;;  %v9725_v2 = vsel %vm1159_vm2, %v6529_v7, 0  ;;  %v9838_v63 = vcombine.high %v3632_v59, %v3632_v59  ;;  %v6535_v26 = vcombine.low %v3632_v59, %v3632_v59 }
 0x745   : > { %v9728_v62 = vsel %vm1159_vm2, %v6527_v33, 0 }
 0x746   : > { %3841 = vmatpush1.bf16.msra.mxu0 %v9725_v2 }
 0x747   : > { %3798 = vmatpush1.bf16.msra.mxu1 %v9728_v62  ;;  %3881 = vmatprep.subr.bf16.mxu0 %v9734_v56 }
 0x748   : > { %4343 = vmatprep.subr.bf16.mxu1 %v9739_v44 }
 0x74a   : > { %3585 = vmatmul.mubr.bf16.gmra.mrb[16].mxu1 %v3447_v19 }
 0x74b   : > { %6515 = vmatprep.mubr.msk.bf16.mxu1 %vm1609_vm5, %v3450_v4 }
 0x752   : > { %3593 = vmatmul.mubr.bf16.gmra.mrb[20].mxu1 %v3449_v60 }
 0x753   : > { %6516 = vmatprep.mubr.msk.bf16.mxu1 %vm1609_vm5, %v3452_v25  ;;  %v11504_v25 = vld [vmem:[#allocation20_spill] sm:$0xff] }
 0x75a   : > { %3601 = vmatmul.mubr.bf16.gmra.mrb[24].mxu1 %v3451_v49 }
 0x75b   : > { %3827 = vmatprep.mubr.bf16.mxu1 %v11498_v39 }
 0x815   : > { %v3578_v28 = vpop.f32.mrb[12].mxu1 }
 0x816   : > { %v3579_v42 = vadd.f32 %v9747_v22, %v3578_v28  ;;  %v3580_v8 = vpop.f32.mrb[13].mxu1 }
 0x817   : > { %v3581_v9 = vpop.f32.mrb[14].mxu1 }
 0x818   : > { %v3582_v18 = vadd.f32 %v9747_v22, %v3581_v9  ;;  %v3583_v20 = vpop.f32.mrb[15].mxu1  ;;  %v3609_v54 = vadd.f32 %v3579_v42, %v11499_v34 }
 0x819   : > { %v11505_v20 = vld [vmem:[#allocation23_spill] sm:$0xff] }
 0x81a   : > { %v3610_v50 = vadd.f32 %v3582_v18, %v11500_v30  ;;  %v9851_v18 = vsel %vm1159_vm2, %v6535_v26, 0 }
 0x81c   : > { %v9771_v3 = vpack.c.bf16 %v3610_v50, %v3609_v54 }
 0x81d   : > { %v3586_v21 = vpop.f32.mrb[16].mxu1 }
 0x81e   : > { %v3587_v11 = vadd.f32 %v9747_v22, %v3586_v21  ;;  %v3588_v16 = vpop.f32.mrb[17].mxu1  ;;  %6538 = vmatmul.mubr.msk.bf16.vlgmr.msra.gmra.mrb[28].mxu1 %vm1420_vm4, %v9771_v3  ;;  %6540 = vmatmul.mubr.msk.bf16.vlgmr.msra.gmra.mrb[24].mxu0 %vm1420_vm4, %v9771_v3 }
 0x81f   : > { %3882 = vmatpush1.bf16.msra.mxu0 %v9762_v32  ;;  %v3589_v58 = vpop.f32.mrb[18].mxu1  ;;  %4344 = vmatpush1.bf16.msra.mxu1 %v9767_v37 }
 0x820   : > { %v3590_v45 = vadd.f32 %v9747_v22, %v3589_v58  ;;  %v3591_v55 = vpop.f32.mrb[19].mxu1  ;;  %6541 = vmatprep.subr.msk.bf16.mxu0 %vm1159_vm2, %v9769_v23  ;;  %6553 = vmatprep.subr.msk.bf16.mxu1 %vm1159_vm2, %v9773_v46  ;;  %v3611_v31 = vadd.f32 %v3587_v11, %v11501_v35 }
 0x821   : > { %3913 = vmatprep.mubr.bf16.mxu0 %v11498_v39  ;;  %4375 = vmatprep.mubr.bf16.mxu1 %v11498_v39 }
 0x822   : > { %v3612_v1 = vadd.f32 %v3590_v45, %v11502_v14 }
 0x823   : > { %3884 = vmatpush1.bf16.msra.mxu0 %v9786_v15  ;;  %4346 = vmatpush1.bf16.msra.mxu1 %v9791_v24 }
 0x824   : > { %v9799_v6 = vpack.c.bf16 %v3612_v1, %v3611_v31  ;;  %3924 = vmatprep.subr.bf16.mxu0 %v9739_v44  ;;  %4633 = vmatprep.subr.bf16.mxu1 %v9694_v13 }
 0x825   : > { %v3594_v40 = vpop.f32.mrb[20].mxu1 }
 0x826   : > { %v3595_v41 = vadd.f32 %v9747_v22, %v3594_v40  ;;  %v3596_v12 = vpop.f32.mrb[21].mxu1  ;;  %6542 = vmatmul.mubr.msk.bf16.vlgmr.msra.gmra.mrb[28].mxu0 %vm1420_vm4, %v9771_v3  ;;  %6554 = vmatmul.mubr.msk.bf16.vlgmr.msra.gmra.mrb[32].mxu1 %vm1420_vm4, %v9799_v6 }
 0x827   : > { %3925 = vmatpush1.bf16.msra.mxu0 %v9767_v37  ;;  %v3597_v19 = vpop.f32.mrb[22].mxu1  ;;  %4634 = vmatpush1.bf16.msra.mxu1 %v9707_v29 }
 0x828   : > { %v3598_v4 = vadd.f32 %v9747_v22, %v3597_v19  ;;  %v3599_v53 = vpop.f32.mrb[23].mxu1  ;;  %6543 = vmatprep.subr.msk.bf16.mxu0 %vm1159_vm2, %v9773_v46  ;;  %6557 = vmatprep.subr.msk.bf16.mxu1 %vm1159_vm2, %v9717_v43  ;;  %v3613_v60 = vadd.f32 %v3595_v41, %v11503_v27 }
 0x829   : > { %3956 = vmatprep.mubr.bf16.mxu0 %v11498_v39  ;;  %4665 = vmatprep.mubr.bf16.mxu1 %v11498_v39 }
 0x82a   : > { %v3614_v0 = vadd.f32 %v3598_v4, %v11504_v25 }
 0x82b   : > { %3927 = vmatpush1.bf16.msra.mxu0 %v9791_v24  ;;  %4636 = vmatpush1.bf16.msra.mxu1 %v9728_v62 }
 0x82c   : > { %v9834_v49 = vpack.c.bf16 %v3614_v0, %v3613_v60  ;;  %3967 = vmatprep.subr.bf16.mxu0 %v9818_v57  ;;  %4719 = vmatprep.subr.bf16.mxu1 %v9734_v56 }
 0x82d   : > { %v3602_v7 = vpop.f32.mrb[24].mxu1 }
 0x82e   : > { %v3603_v33 = vadd.f32 %v9747_v22, %v3602_v7  ;;  %v3604_v28 = vpop.f32.mrb[25].mxu1  ;;  %6544 = vmatmul.mubr.msk.bf16.vlgmr.msra.gmra.mrb[32].mxu0 %vm1420_vm4, %v9771_v3  ;;  %6558 = vmatmul.mubr.msk.bf16.vlgmr.msra.gmra.mrb[36].mxu1 %vm1420_vm4, %v9834_v49 }
 0x82f   : > { %3968 = vmatpush1.bf16.msra.mxu0 %v9832_v52  ;;  %v3605_v42 = vpop.f32.mrb[26].mxu1  ;;  %4720 = vmatpush1.bf16.msra.mxu1 %v9762_v32 }
 0x830   : > { %v3606_v8 = vadd.f32 %v9747_v22, %v3605_v42  ;;  %v3607_v9 = vpop.f32.mrb[27].mxu1  ;;  %6545 = vmatprep.subr.msk.bf16.mxu0 %vm1159_vm2, %v9838_v63  ;;  %6561 = vmatprep.subr.msk.bf16.mxu1 %vm1159_vm2, %v9769_v23  ;;  %v3615_v36 = vadd.f32 %v3603_v33, %v11505_v20 }
 0x831   : > { %3999 = vmatprep.mubr.bf16.mxu0 %v11498_v39  ;;  %4751 = vmatprep.mubr.bf16.mxu1 %v11498_v39 }
 0x832   : > { %v3616_v34 = vadd.f32 %v3606_v8, %v11506_v61 }
 0x833   : > { %3970 = vmatpush1.bf16.msra.mxu0 %v9851_v18  ;;  %4722 = vmatpush1.bf16.msra.mxu1 %v9786_v15 }
 0x834   : > { %v9861_v22 = vpack.c.bf16 %v3616_v34, %v3615_v36  ;;  %4214 = vmatprep.subr.bf16.mxu0 %v9694_v13  ;;  %4805 = vmatprep.subr.bf16.mxu1 %v9818_v57 }
 0x836   : > { %6546 = vmatmul.mubr.msk.bf16.vlgmr.msra.gmra.mrb[36].mxu0 %vm1420_vm4, %v9771_v3  ;;  %6562 = vmatmul.mubr.msk.bf16.vlgmr.msra.gmra.mrb[40].mxu1 %vm1420_vm4, %v9834_v49 }
 0x837   : > { %4215 = vmatpush1.bf16.msra.mxu0 %v9707_v29  ;;  %4806 = vmatpush1.bf16.msra.mxu1 %v9832_v52 }
 0x838   : > { %6547 = vmatprep.subr.msk.bf16.mxu0 %vm1159_vm2, %v9717_v43  ;;  %6565 = vmatprep.subr.msk.bf16.mxu1 %vm1159_vm2, %v9838_v63 }
 0x839   : > { %4246 = vmatprep.mubr.bf16.mxu0 %v11498_v39  ;;  %4837 = vmatprep.mubr.bf16.mxu1 %v11498_v39 }
 0x83b   : > { %4217 = vmatpush1.bf16.msra.mxu0 %v9728_v62  ;;  %4808 = vmatpush1.bf16.msra.mxu1 %v9851_v18 }
 0x83c   : > { %4257 = vmatprep.subr.bf16.mxu0 %v9689_v38  ;;  %5095 = vmatprep.subr.bf16.mxu1 %v9689_v38 }
 0x83e   : > { %6548 = vmatmul.mubr.msk.bf16.vlgmr.msra.gmra.mrb[40].mxu0 %vm1420_vm4, %v9799_v6  ;;  %6566 = vmatmul.mubr.msk.bf16.vlgmr.msra.gmra.mrb[44].mxu1 %vm1420_vm4, %v9834_v49 }
 0x83f   : > { %4258 = vmatpush1.bf16.msra.mxu0 %v9699_v48  ;;  %5096 = vmatpush1.bf16.msra.mxu1 %v9699_v48 }
 0x840   : > { %6549 = vmatprep.subr.msk.bf16.mxu0 %vm1159_vm2, %v9715_v10  ;;  %6569 = vmatprep.subr.msk.bf16.mxu1 %vm1159_vm2, %v9715_v10 }
 0x841   : > { %4289 = vmatprep.mubr.bf16.mxu0 %v11498_v39  ;;  %5127 = vmatprep.mubr.bf16.mxu1 %v11498_v39 }
 0x843   : > { %4260 = vmatpush1.bf16.msra.mxu0 %v9725_v2  ;;  %5098 = vmatpush1.bf16.msra.mxu1 %v9725_v2 }
 0x844   : > { %4300 = vmatprep.subr.bf16.mxu0 %v9734_v56  ;;  %5181 = vmatprep.subr.bf16.mxu1 %v9739_v44 }
 0x846   : > { %6550 = vmatmul.mubr.msk.bf16.vlgmr.msra.gmra.mrb[44].mxu0 %vm1420_vm4, %v9799_v6  ;;  %6570 = vmatmul.mubr.msk.bf16.vlgmr.msra.gmra.mrb[48].mxu1 %vm1420_vm4, %v9861_v22 }
 0x847   : > { %4301 = vmatpush1.bf16.msra.mxu0 %v9762_v32  ;;  %5182 = vmatpush1.bf16.msra.mxu1 %v9767_v37 }
 0x848   : > { %6551 = vmatprep.subr.msk.bf16.mxu0 %vm1159_vm2, %v9769_v23  ;;  %6573 = vmatprep.subr.msk.bf16.mxu1 %vm1159_vm2, %v9773_v46 }
 0x849   : > { %4332 = vmatprep.mubr.bf16.mxu0 %v11498_v39  ;;  %5213 = vmatprep.mubr.bf16.mxu1 %v11498_v39 }
 0x84b   : > { %4303 = vmatpush1.bf16.msra.mxu0 %v9786_v15  ;;  %5184 = vmatpush1.bf16.msra.mxu1 %v9791_v24 }
 0x84c   : > { %4386 = vmatprep.subr.bf16.mxu0 %v9818_v57 }
 0x84e   : > { %6552 = vmatmul.mubr.msk.bf16.vlgmr.msra.gmra.mrb[48].mxu0 %vm1420_vm4, %v9799_v6  ;;  %6574 = vmatmul.mubr.msk.bf16.vlgmr.msra.gmra.mrb[52].mxu1 %vm1420_vm4, %v9861_v22 }
 0x84f   : > { %4387 = vmatpush1.bf16.msra.mxu0 %v9832_v52  ;;  %4418 = vmatprep.mubr.bf16.mxu0 %v11498_v39 }
 0x850   : > { %6555 = vmatprep.subr.msk.bf16.mxu0 %vm1159_vm2, %v9838_v63 }
 0x853   : > { %4389 = vmatpush1.bf16.msra.mxu0 %v9851_v18 }
 0x854   : > { %4676 = vmatprep.subr.bf16.mxu0 %v9689_v38  ;;  %v11507_v38 = vld [vmem:[#allocation14_spill] sm:$0xff] }
 0x855   : > { %v3667_v54 = vsub.s32 7, %v11507_v38 }
 0x856   : > { %6556 = vmatmul.mubr.msk.bf16.vlgmr.msra.gmra.mrb[52].mxu0 %vm1420_vm4, %v9799_v6 }
 0x857   : > { %4677 = vmatpush1.bf16.msra.mxu0 %v9699_v48  ;;  %4708 = vmatprep.mubr.bf16.mxu0 %v11498_v39  ;;  %v3633_v48 = vld [vmem:[%s11106_s20] sm:$0xff] }
 0x858   : > { %6559 = vmatprep.subr.msk.bf16.mxu0 %vm1159_vm2, %v9715_v10  ;;  %v9969_v10 = vrot.slane %v3633_v48, %v11405_v47  ;;  %v10000_v45 = vrot.slane %v3633_v48, %v3667_v54 }
 0x85a   : > { %11508 = vst [vmem:[#allocation39_spill] sm:$0xff] %v9969_v10  ;;  %11514 = vst [vmem:[#allocation38_spill] sm:$0xff] %v10000_v45 }
 0x85b   : > { %4679 = vmatpush1.bf16.msra.mxu0 %v9725_v2  ;;  %v3663_v2 = vsub.s32 6, %v11507_v38 }
 0x85c   : > { %4762 = vmatprep.subr.bf16.mxu0 %v9739_v44  ;;  %v3659_v44 = vsub.s32 5, %v11507_v38 }
 0x85e   : > { %6560 = vmatmul.mubr.msk.bf16.vlgmr.msra.gmra.mrb[56].mxu0 %vm1420_vm4, %v9834_v49  ;;  %v9998_v58 = vrot.slane %v3633_v48, %v3659_v44 }
 0x85f   : > { %4763 = vmatpush1.bf16.msra.mxu0 %v9767_v37  ;;  %4794 = vmatprep.mubr.bf16.mxu0 %v11498_v39 }
 0x860   : > { %6563 = vmatprep.subr.msk.bf16.mxu0 %vm1159_vm2, %v9773_v46  ;;  %v9990_v46 = vrot.slane %v3633_v48, %v3663_v2 }
 0x862   : > { %11513 = vst [vmem:[#allocation40_spill] sm:$0xff] %v9990_v46 }
 0x863   : > { %4765 = vmatpush1.bf16.msra.mxu0 %v9791_v24 }
 0x864   : > { %5052 = vmatprep.subr.bf16.mxu0 %v9694_v13  ;;  %v3647_v13 = vsub.s32 2, %v11507_v38 }
 0x866   : > { %6564 = vmatmul.mubr.msk.bf16.vlgmr.msra.gmra.mrb[60].mxu0 %vm1420_vm4, %v9834_v49 }
 0x867   : > { %5053 = vmatpush1.bf16.msra.mxu0 %v9707_v29  ;;  %5084 = vmatprep.mubr.bf16.mxu0 %v11498_v39  ;;  %v3651_v29 = vsub.s32 3, %v11507_v38 }
 0x868   : > { %6567 = vmatprep.subr.msk.bf16.mxu0 %vm1159_vm2, %v9717_v43  ;;  %v3655_v43 = vsub.s32 4, %v11507_v38 }
 0x86a   : > { %v9988_v5 = vrot.slane %v3633_v48, %v3655_v43 }
 0x86b   : > { %5055 = vmatpush1.bf16.msra.mxu0 %v9728_v62  ;;  %v9976_v62 = vrot.slane %v3633_v48, %v11406_v51 }
 0x86c   : > { %5138 = vmatprep.subr.bf16.mxu0 %v9734_v56  ;;  %v9978_v56 = vrot.slane %v3633_v48, %v3651_v29  ;;  %11512 = vst [vmem:[#allocation64_spill] sm:$0xff] %v9988_v5 }
 0x86d   : > { %11510 = vst [vmem:[#allocation54_spill] sm:$0xff] %v9976_v62 }
 0x86e   : > { %6568 = vmatmul.mubr.msk.bf16.vlgmr.msra.gmra.mrb[64].mxu0 %vm1420_vm4, %v9861_v22  ;;  %11511 = vst [vmem:[#allocation63_spill] sm:$0xff] %v9978_v56 }
 0x86f   : > { %5139 = vmatpush1.bf16.msra.mxu0 %v9762_v32  ;;  %5170 = vmatprep.mubr.bf16.mxu0 %v11498_v39 }
 0x870   : > { %6571 = vmatprep.subr.msk.bf16.mxu0 %vm1159_vm2, %v9769_v23 }
 0x873   : > { %5141 = vmatpush1.bf16.msra.mxu0 %v9786_v15 }
 0x874   : > { %5224 = vmatprep.subr.bf16.mxu0 %v9818_v57 }
 0x876   : > { %6572 = vmatmul.mubr.msk.bf16.vlgmr.msra.gmra.mrb[68].mxu0 %vm1420_vm4, %v9861_v22 }
 0x877   : > { %5225 = vmatpush1.bf16.msra.mxu0 %v9832_v52  ;;  %5256 = vmatprep.mubr.bf16.mxu0 %v11498_v39  ;;  %v9971_v39 = vrot.slane %v3633_v48, %v3647_v13 }
 0x878   : > { %6575 = vmatprep.subr.msk.bf16.mxu0 %vm1159_vm2, %v9838_v63 }
 0x879   : > { %11509 = vst [vmem:[#allocation53_spill] sm:$0xff] %v9971_v39 }
 0x87b   : > { %5227 = vmatpush1.bf16.msra.mxu0 %v9851_v18 }
 0x87e   : > { %6576 = vmatmul.mubr.msk.bf16.vlgmr.msra.gmra.mrb[72].mxu0 %vm1420_vm4, %v9861_v22 }
 0x8f1   : > { %v3829_v30 = vpop.f32.mrb[28].mxu1  ;;  %v3872_v50 = vpop.f32.mrb[24].mxu0 }
 0x8f2   : > { %v9983_v32 = vadd.f32 %v3829_v30, %v9969_v10  ;;  %v9986_v37 = vadd.f32 %v3872_v50, %v9971_v39  ;;  %v3831_v23 = vpop.f32.mrb[29].mxu1  ;;  %v3874_v3 = vpop.f32.mrb[25].mxu0  ;;  %v3634_v50 = vld [vmem:[%s11106_s20 + $0x8] sm:$0x3] }
 0x8f3   : > { %v9993_v17 = vadd.f32 %v3831_v23, %v9976_v62  ;;  %v9996_v21 = vadd.f32 %v3874_v3, %v9978_v56  ;;  %v3833_v11 = vpop.f32.mrb[30].mxu1  ;;  %v3876_v16 = vpop.f32.mrb[26].mxu0 }
 0x8f4   : > { %v4010_v55 = vsub.f32 0.0, %v9983_v32  ;;  %v4012_v15 = vsub.f32 0.0, %v9986_v37  ;;  %v10005_v24 = vadd.f32 %v3833_v11, %v9969_v10  ;;  %v10008_v35 = vadd.f32 %v3876_v16, %v9971_v39  ;;  %v3835_v31 = vpop.f32.mrb[31].mxu1  ;;  %v3878_v14 = vpop.f32.mrb[27].mxu0 }
 0x8f5   : > { %v4011_v1 = vsub.f32 0.0, %v9993_v17  ;;  %v4013_v6 = vsub.f32 0.0, %v9996_v21  ;;  %v10013_v40 = vadd.f32 %v3835_v31, %v9976_v62  ;;  %v10016_v41 = vadd.f32 %v3878_v14, %v9978_v56 }
 0x8f6   : > { %v4030_v12 = vmul.f32 1.442695, %v4010_v55  ;;  %v4034_v19 = vmul.f32 1.442695, %v4012_v15  ;;  %v4020_v4 = vsub.f32 0.0, %v10005_v24  ;;  %v4022_v53 = vsub.f32 0.0, %v10008_v35 }
 0x8f7   : > { %v4032_v57 = vmul.f32 1.442695, %v4011_v1  ;;  %v4036_v59 = vmul.f32 1.442695, %v4013_v6  ;;  %v4021_v27 = vsub.f32 0.0, %v10013_v40  ;;  %v4023_v60 = vsub.f32 0.0, %v10016_v41 }
 0x8f8   : > { %7241 = vpow2.f32 %v4030_v12  ;;  %v4050_v25 = vmul.f32 1.442695, %v4020_v4  ;;  %v4054_v0 = vmul.f32 1.442695, %v4022_v53 }
 0x8f9   : > { %7243 = vpow2.f32 %v4034_v19  ;;  %v3915_v52 = vpop.f32.mrb[28].mxu0  ;;  %v4377_v49 = vpop.f32.mrb[32].mxu1  ;;  %v4052_v63 = vmul.f32 1.442695, %v4021_v27  ;;  %v4056_v42 = vmul.f32 1.442695, %v4023_v60  ;;  %v10060_v19 = vrot.slane %v3634_v50, %v11405_v47 }
 0x8fa   : > { %7245 = vpow2.f32 %v4032_v57  ;;  %v10023_v26 = vadd.f32 %v3915_v52, %v9988_v5  ;;  %v10026_v7 = vadd.f32 %v4377_v49, %v9990_v46  ;;  %v3917_v33 = vpop.f32.mrb[29].mxu0  ;;  %v4379_v28 = vpop.f32.mrb[33].mxu1  ;;  %v10070_v47 = vrot.slane %v3634_v50, %v11406_v51 }
 0x8fb   : > { %7247 = vpow2.f32 %v4036_v59  ;;  %v10029_v8 = vadd.f32 %v3917_v33, %v9998_v58  ;;  %v10032_v9 = vadd.f32 %v4379_v28, %v10000_v45  ;;  %v3919_v18 = vpop.f32.mrb[30].mxu0  ;;  %v4381_v20 = vpop.f32.mrb[34].mxu1 }
 0x8fc   : > { %7249 = vpow2.f32 %v4050_v25  ;;  %v4014_v36 = vsub.f32 0.0, %v10023_v26  ;;  %v4435_v61 = vsub.f32 0.0, %v10026_v7  ;;  %v10037_v34 = vadd.f32 %v3919_v18, %v9988_v5  ;;  %v3921_v22 = vpop.f32.mrb[31].mxu0  ;;  %v4383_v38 = vpop.f32.mrb[35].mxu1 }
 0x8fd   : > { %7251 = vpow2.f32 %v4054_v0  ;;  %v4015_v13 = vsub.f32 0.0, %v10029_v8  ;;  %v4436_v48 = vsub.f32 0.0, %v10032_v9  ;;  %v10042_v29 = vadd.f32 %v4381_v20, %v9990_v46 }
 0x8fe   : > { %7253 = vpow2.f32 %v4052_v63  ;;  %v4038_v43 = vmul.f32 1.442695, %v4014_v36  ;;  %v4461_v2 = vmul.f32 1.442695, %v4435_v61  ;;  %v4024_v44 = vsub.f32 0.0, %v10037_v34 }
 0x8ff   : > { %7255 = vpow2.f32 %v4056_v42  ;;  %v4040_v54 = vmul.f32 1.442695, %v4015_v13  ;;  %v4463_v30 = vmul.f32 1.442695, %v4436_v48  ;;  %v10049_v3 = vadd.f32 %v3921_v22, %v9998_v58 }
 0x900   : > { %7257 = vpow2.f32 %v4038_v43  ;;  %v4058_v23 = vmul.f32 1.442695, %v4024_v44  ;;  %v10052_v11 = vadd.f32 %v4383_v38, %v10000_v45  ;;  %v4445_v16 = vsub.f32 0.0, %v10042_v29 }
 0x901   : > { %7259 = vpow2.f32 %v4461_v2  ;;  %v3958_v55 = vpop.f32.mrb[32].mxu0  ;;  %v4667_v15 = vpop.f32.mrb[36].mxu1  ;;  %v4025_v14 = vsub.f32 0.0, %v10049_v3 }
 0x902   : > { %v7242_v31 = vpop.eup %7241  ;;  %7261 = vpow2.f32 %v4040_v54  ;;  %v10057_v1 = vadd.f32 %v3958_v55, %v9990_v46  ;;  %v3960_v6 = vpop.f32.mrb[33].mxu0  ;;  %v4446_v57 = vsub.f32 0.0, %v10052_v11  ;;  %v10064_v59 = vadd.f32 %v4667_v15, %v9969_v10 }
 0x903   : > { %v4669_v12 = vpop.f32.mrb[37].mxu1  ;;  %v7244_v4 = vpop.eup %7243  ;;  %v4070_v53 = vadd.f32 1.0, %v7242_v31  ;;  %7263 = vpow2.f32 %v4463_v30  ;;  %v10067_v52 = vadd.f32 %v3960_v6, %v10000_v45  ;;  %v10072_v28 = vmul.f32 1.442695, %v4445_v16 }
 0x904   : > { %v3962_v27 = vpop.f32.mrb[34].mxu0  ;;  %v4671_v60 = vpop.f32.mrb[38].mxu1  ;;  %v4072_v0 = vadd.f32 1.0, %v7244_v4  ;;  %7265 = vpow2.f32 %v4058_v23  ;;  %v4016_v42 = vsub.f32 0.0, %v10057_v1  ;;  %v10075_v61 = vmul.f32 1.442695, %v4025_v14 }
 0x905   : > { %v7246_v25 = vpop.eup %7245  ;;  %v3964_v49 = vpop.f32.mrb[35].mxu0  ;;  %7267 = vrcp.f32 %v4070_v53  ;;  %v10078_v22 = vadd.f32 %v4669_v12, %v9976_v62  ;;  %v10080_v13 = vmul.f32 1.442695, %v4446_v57  ;;  %v4848_v48 = vsub.f32 0.0, %v10064_v59 }
 0x906   : > { %v7248_v63 = vpop.eup %7247  ;;  %v4071_v33 = vadd.f32 1.0, %v7246_v25  ;;  %v4673_v18 = vpop.f32.mrb[39].mxu1  ;;  %7269 = vrcp.f32 %v4072_v0  ;;  %v10083_v44 = vmul.f32 1.442695, %v4016_v42  ;;  %v4017_v54 = vsub.f32 0.0, %v10067_v52 }
 0x907   : > { %v7250_v20 = vpop.eup %7249  ;;  %v4073_v36 = vadd.f32 1.0, %v7248_v63  ;;  %v10087_v23 = vadd.f32 %v3962_v27, %v9990_v46  ;;  %v10090_v16 = vadd.f32 %v4671_v60, %v9969_v10  ;;  %v4849_v6 = vsub.f32 0.0, %v10078_v22 }
 0x908   : > { %v7252_v38 = vpop.eup %7251  ;;  %7271 = vrcp.f32 %v4071_v33  ;;  %v4080_v51 = vadd.f32 1.0, %v7250_v20  ;;  %v10094_v12 = vadd.f32 %v3964_v49, %v10000_v45  ;;  %v10096_v27 = vmul.f32 1.442695, %v4848_v48 }
 0x909   : > { %v7254_v43 = vpop.eup %7253  ;;  %7273 = vrcp.f32 %v4073_v36  ;;  %v4082_v2 = vadd.f32 1.0, %v7252_v38  ;;  %v4001_v55 = vpop.f32.mrb[36].mxu0  ;;  %v4026_v60 = vsub.f32 0.0, %v10087_v23  ;;  %v4858_v20 = vsub.f32 0.0, %v10090_v16 }
 0x90a   : > { %v7256_v30 = vpop.eup %7255  ;;  %7275 = vrcp.f32 %v4080_v51  ;;  %v4081_v50 = vadd.f32 1.0, %v7254_v43  ;;  %v4753_v15 = vpop.f32.mrb[40].mxu1  ;;  %v10105_v49 = vadd.f32 %v4673_v18, %v9976_v62  ;;  %v4044_v43 = vmul.f32 1.442695, %v4017_v54 }
 0x90b   : > { %v7258_v31 = vpop.eup %7257  ;;  %7277 = vrcp.f32 %v4082_v2  ;;  %v4083_v14 = vadd.f32 1.0, %v7256_v30  ;;  %v4003_v4 = vpop.f32.mrb[37].mxu0  ;;  %v4027_v2 = vsub.f32 0.0, %v10094_v12  ;;  %v10114_v45 = vadd.f32 %v4001_v55, %v10060_v19 }
 0x90c   : > { %v4755_v53 = vpop.f32.mrb[41].mxu1  ;;  %v7260_v57 = vpop.eup %7259  ;;  %7279 = vrcp.f32 %v4081_v50  ;;  %v4074_v25 = vadd.f32 1.0, %v7258_v31  ;;  %v4870_v31 = vmul.f32 1.442695, %v4849_v6  ;;  %v10117_v46 = vadd.f32 %v4753_v15, %v9988_v5 }
 0x90d   : > { %v10099_v0 = vpop.f32.mrb[38].mxu0  ;;  %v10101_v63 = vpop.f32.mrb[42].mxu1  ;;  %7281 = vrcp.f32 %v4083_v14  ;;  %v4495_v42 = vadd.f32 1.0, %v7260_v57  ;;  %v4859_v14 = vsub.f32 0.0, %v10105_v49  ;;  %11515 = vst [vmem:[#allocation41_spill] sm:$0xff] %v10114_v45  ;;  %v10120_v56 = vadd.f32 %v4003_v4, %v10070_v47 }
 0x90e   : > { %v7262_v33 = vpop.eup %7261  ;;  %v10107_v36 = vpop.f32.mrb[39].mxu0  ;;  %7283 = vrcp.f32 %v4074_v25  ;;  %11516 = vst [vmem:[#allocation42_spill] sm:$0xff] %v10117_v46  ;;  %v4062_v54 = vmul.f32 1.442695, %v4026_v60  ;;  %v10122_v6 = vmul.f32 1.442695, %v4027_v2  ;;  %v10135_v4 = vadd.f32 %v4755_v53, %v9998_v58 }
 0x90f   : > { %v10109_v38 = vpop.f32.mrb[43].mxu1  ;;  %v7264_v51 = vpop.eup %7263  ;;  %v4075_v48 = vadd.f32 1.0, %v7262_v33  ;;  %7285 = vrcp.f32 %v4495_v42  ;;  %v4888_v33 = vmul.f32 1.442695, %v4858_v20  ;;  %11517 = vst [vmem:[#allocation15_spill] sm:$0xff] %v10120_v56 }
 0x910   : > { %v7266_v30 = vpop.eup %7265  ;;  %v4496_v50 = vadd.f32 1.0, %v7264_v51  ;;  %v4018_v51 = vsub.f32 0.0, %v10114_v45  ;;  %v10132_v60 = vmul.f32 1.442695, %v4859_v14  ;;  %11518 = vst [vmem:[#allocation24_spill] sm:$0xff] %v10135_v4 }
 0x911   : > { %v7268_v57 = vpop.eup %7267  ;;  %7287 = vrcp.f32 %v4075_v48  ;;  %v4084_v18 = vadd.f32 1.0, %v7266_v30  ;;  %v4852_v48 = vsub.f32 0.0, %v10117_v46  ;;  %v10126_v55 = vpop.f32.mrb[40].mxu0 }
 0x912   : > { %v7270_v25 = vpop.eup %7269  ;;  %7289 = vrcp.f32 %v4496_v50  ;;  %v10128_v30 = vpop.f32.mrb[44].mxu1  ;;  %v4110_v50 = vmul.f32 %v7268_v57, %v9983_v32  ;;  %v4019_v32 = vsub.f32 0.0, %v10120_v56 }
 0x913   : > { %v7272_v42 = vpop.eup %7271  ;;  %7291 = vrcp.f32 %v4084_v18  ;;  %v10137_v20 = vpop.f32.mrb[41].mxu0  ;;  %v4112_v46 = vmul.f32 %v7270_v25, %v9986_v37  ;;  %v10158_v25 = vmul.f32 1.442695, %v4852_v48 }
 0x914   : > { %v7274_v15 = vpop.eup %7273  ;;  %7293 = vpow2.f32 %v10072_v28  ;;  %11519 = vst [vmem:[#allocation66_spill] sm:$0xff] %v10137_v20  ;;  %v10139_v2 = vpop.f32.mrb[45].mxu1  ;;  %v4111_v39 = vmul.f32 %v7272_v42, %v9993_v17  ;;  %v4853_v42 = vsub.f32 0.0, %v10135_v4 }
 0x915   : > { %11520 = vst [vmem:[#allocation65_spill] sm:$0xff] %v10139_v2  ;;  %v7276_v18 = vpop.eup %7275  ;;  %7295 = vpow2.f32 %v10075_v61  ;;  %v10145_v57 = vpop.f32.mrb[42].mxu0  ;;  %v4113_v53 = vmul.f32 %v7274_v15, %v9996_v21  ;;  %v4046_v2 = vmul.f32 1.442695, %v4018_v51 }
 0x916   : > { %v10147_v28 = vpop.f32.mrb[46].mxu1  ;;  %v7278_v14 = vpop.eup %7277  ;;  %v4120_v45 = vmul.f32 %v7276_v18, %v10005_v24  ;;  %7297 = vpow2.f32 %v10080_v13  ;;  %v10165_v13 = vadd.f32 %v10099_v0, %v10060_v19  ;;  %v10174_v0 = vmul.f32 1.442695, %v4853_v42 }
 0x917   : > { %v10152_v20 = vpop.f32.mrb[43].mxu0  ;;  %v10154_v37 = vpop.f32.mrb[47].mxu1  ;;  %v4122_v61 = vmul.f32 %v7278_v14, %v10008_v35  ;;  %7299 = vpow2.f32 %v10083_v44  ;;  %v10168_v44 = vmul.f32 1.442695, %v4019_v32 }
 0x918   : > { %v7280_v17 = vpop.eup %7279  ;;  %v4130_v21 = vadd.f32 %v4120_v45, %v4110_v50  ;;  %7301 = vpow2.f32 %v10096_v27  ;;  %v10172_v45 = vadd.f32 %v10101_v63, %v9988_v5 }
 0x919   : > { %v7282_v56 = vpop.eup %7281  ;;  %v4121_v24 = vmul.f32 %v7280_v17, %v10013_v40  ;;  %v4144_v15 = vadd.f32 %v4122_v61, %v4112_v46  ;;  %7303 = vpow2.f32 %v4044_v43  ;;  %v10176_v46 = vpop.f32.mrb[44].mxu0 }
 0x91a   : > { %v7284_v51 = vpop.eup %7283  ;;  %v4123_v35 = vmul.f32 %v7282_v56, %v10016_v41  ;;  %v4131_v18 = vrot.slane %v4130_v21, 4  ;;  %7305 = vpow2.f32 %v4870_v31  ;;  %v10178_v56 = vpop.f32.mrb[48].mxu1 }
 0x91b   : > { %v7286_v48 = vpop.eup %7285  ;;  %v4137_v14 = vadd.f32 %v4121_v24, %v4111_v39  ;;  %v4145_v27 = vrot.slane %v4144_v15, 4  ;;  %7307 = vpow2.f32 %v4062_v54  ;;  %11521 = vst [vmem:[#allocation80_spill] sm:$0xff] %v10178_v56  ;;  %v10181_v31 = vpop.f32.mrb[45].mxu0  ;;  %v4114_v54 = vmul.f32 %v7284_v51, %v10023_v26 }
 0x91c   : > { %v7288_v40 = vpop.eup %7287  ;;  %v4151_v50 = vadd.f32 %v4123_v35, %v4113_v53  ;;  %v4132_v43 = vadd.f32 %v4131_v18, %v4130_v21  ;;  %7309 = vpow2.f32 %v4888_v33  ;;  %11522 = vst [vmem:[#allocation79_spill] sm:$0xff] %v10181_v31  ;;  %v10183_v63 = vpop.f32.mrb[49].mxu1 }
 0x91d   : > { %v7290_v41 = vpop.eup %7289  ;;  %v4138_v32 = vrot.slane %v4137_v14, 4  ;;  %11523 = vst [vmem:[#allocation75_spill] sm:$0xff] %v10183_v63  ;;  %v4146_v61 = vadd.f32 %v4145_v27, %v4144_v15  ;;  %7311 = vpow2.f32 %v10122_v6  ;;  %v10187_v42 = vpop.f32.mrb[46].mxu0 }
 0x91e   : > { %v7292_v17 = vpop.eup %7291  ;;  %v4152_v53 = vrot.slane %v4151_v50, 4  ;;  %11524 = vst [vmem:[#allocation81_spill] sm:$0xff] %v10187_v42  ;;  %v10189_v24 = vpop.f32.mrb[50].mxu1  ;;  %v4133_v35 = vrot.slane %v4132_v43, 2  ;;  %7313 = vpow2.f32 %v10132_v60 }
 0x91f   : > { %11525 = vst [vmem:[#allocation44_spill] sm:$0xff] %v10189_v24  ;;  %v7294_v21 = vpop.eup %7293  ;;  %v4139_v33 = vadd.f32 %v4138_v32, %v4137_v14  ;;  %v4124_v18 = vmul.f32 %v7292_v17, %v10037_v34  ;;  %v10193_v39 = vpop.f32.mrb[47].mxu0  ;;  %v4147_v27 = vrot.slane %v4146_v61, 2  ;;  %7315 = vpow2.f32 %v4046_v2 }
 0x920   : > { %11526 = vst [vmem:[#allocation43_spill] sm:$0xff] %v10193_v39  ;;  %v10195_v5 = vpop.f32.mrb[51].mxu1  ;;  %v7296_v15 = vpop.eup %7295  ;;  %v4153_v26 = vadd.f32 %v4152_v53, %v4151_v50  ;;  %v4505_v51 = vadd.f32 1.0, %v7294_v21  ;;  %v4134_v42 = vadd.f32 %v4133_v35, %v4132_v43  ;;  %v6981_v50 = vld [vmem:[%s11107_s21 + $0xc0] sm:$0xff]   ;;  %v10201_v43 = vmul.f32 %v7286_v48, %v10026_v7 }
 0x921   : > { %v7298_v6 = vpop.eup %7297  ;;  %v4140_v63 = vrot.slane %v4139_v33, 2  ;;  %v4158_v24 = vadd.f32 %v4124_v18, %v4114_v54  ;;  %v4085_v31 = vadd.f32 1.0, %v7296_v15  ;;  %v4148_v14 = vadd.f32 %v4147_v27, %v4146_v61  ;;  %v10203_v61 = vpop.f32.mrb[48].mxu0  ;;  %6707 = vmatprep.subr.bf16.mxu0 %v6981_v50  ;;  %v6982_v7 = vld [vmem:[%s11107_s21 + $0x80] sm:$0xff]   ;;  %v6983_v50 = vld [vmem:[%s11107_s21 + $0xc8] sm:$0xff]  }
 0x922   : > { %v7300_v4 = vpop.eup %7299  ;;  %v4154_v32 = vrot.slane %v4153_v26, 2  ;;  %7317 = vrcp.f32 %v4505_v51  ;;  %v4506_v34 = vadd.f32 1.0, %v7298_v6  ;;  %v4135_v17 = vrot.slane %v4134_v42, 1  ;;  %v10205_v21 = vpop.f32.mrb[52].mxu1  ;;  %6708 = vmatpush3.bf16.msra.mxu0 %v6982_v7  ;;  %v6984_v7 = vld [vmem:[%s11107_s21 + $0x88] sm:$0xff]  }
 0x923   : > { %v7302_v60 = vpop.eup %7301  ;;  %v4141_v39 = vadd.f32 %v4140_v63, %v4139_v33  ;;  %v4159_v56 = vrot.slane %v4158_v24, 4  ;;  %7319 = vrcp.f32 %v4085_v31  ;;  %v4149_v53 = vrot.slane %v4148_v14, 1  ;;  %v10212_v15 = vpop.f32.mrb[49].mxu0  ;;  %6709 = vmatprep.subr.bf16.mxu0 %v6983_v50 }
 0x924   : > { %v7304_v2 = vpop.eup %7303  ;;  %7321 = vrcp.f32 %v4506_v34  ;;  %v4076_v54 = vadd.f32 1.0, %v7300_v4  ;;  %v10207_v18 = vadd.f32 %v4154_v32, %v4153_v26  ;;  %v10210_v31 = vmul.f32 %v7288_v40, %v10029_v8  ;;  %v10214_v27 = vpop.f32.mrb[53].mxu1 }
 0x925   : > { %v7306_v35 = vpop.eup %7305  ;;  %v4160_v63 = vadd.f32 %v4159_v56, %v4158_v24  ;;  %v4908_v33 = vadd.f32 1.0, %v7302_v60  ;;  %v10219_v48 = vadd.f32 %v4135_v17, %v4134_v42  ;;  %v10222_v26 = vmul.f32 %v7290_v41, %v10032_v9  ;;  %v10224_v40 = vpop.f32.mrb[50].mxu0 }
 0x926   : > { %v7308_v4 = vpop.eup %7307  ;;  %7323 = vrcp.f32 %v4076_v54  ;;  %v4077_v8 = vadd.f32 1.0, %v7304_v2  ;;  %v10226_v56 = vpop.f32.mrb[54].mxu1  ;;  %v4142_v51 = vrot.slane %v4141_v39, 1  ;;  %v4909_v32 = vadd.f32 1.0, %v7306_v35  ;;  %6710 = vmatpush3.bf16.msra.mxu0 %v6984_v7 }
 0x927   : > { %11527 = vst [vmem:[#allocation68_spill] sm:$0xff] %v10219_v48  ;;  %v7310_v24 = vpop.eup %7309  ;;  %v4161_v6 = vrot.slane %v4160_v63, 2  ;;  %7325 = vrcp.f32 %v4908_v33  ;;  %v10228_v34 = vpop.f32.mrb[51].mxu0  ;;  %v10232_v17 = vadd.f32 %v4149_v53, %v4148_v14  ;;  %v4086_v9 = vadd.f32 1.0, %v7308_v4 }
 0x928   : > { %v10230_v60 = vpop.f32.mrb[55].mxu1  ;;  %v7312_v42 = vpop.eup %7311  ;;  %7327 = vrcp.f32 %v4077_v8  ;;  %v4918_v41 = vadd.f32 1.0, %v7310_v24  ;;  %v4862_v4 = vsub.f32 0.0, %v10172_v45  ;;  %v10246_v8 = vadd.f32 %v10107_v36, %v10070_v47 }
 0x929   : > { %11528 = vst [vmem:[#allocation67_spill] sm:$0xff] %v10232_v17  ;;  %v7314_v2 = vpop.eup %7313  ;;  %v10238_v33 = vadd.f32 %v4161_v6, %v4160_v63  ;;  %7329 = vrcp.f32 %v4909_v32  ;;  %v4087_v35 = vadd.f32 1.0, %v7312_v42  ;;  %v10248_v24 = vadd.f32 %v4142_v51, %v4141_v39  ;;  %v10261_v39 = vpop.f32.mrb[52].mxu0  ;;  %v6985_v51 = vld [vmem:[%s11107_s21 + $0xd0] sm:$0xff]  }
 0x92a   : > { %v7316_v14 = vpop.eup %7315  ;;  %7331 = vrcp.f32 %v4086_v9  ;;  %v4919_v53 = vadd.f32 1.0, %v7314_v2  ;;  %v10252_v6 = vadd.f32 %v10109_v38, %v9998_v58  ;;  %v11530_v42 = vsub.f32 0.0, %v10165_v13  ;;  %v10269_v7 = vpop.f32.mrb[53].mxu0  ;;  %6711 = vmatprep.subr.bf16.mxu0 %v6985_v51 }
 0x92b   : > { %11529 = vst [vmem:[#allocation82_spill] sm:$0xff] %v10248_v24  ;;  %7333 = vrcp.f32 %v4918_v41  ;;  %v4078_v63 = vadd.f32 1.0, %v7316_v14  ;;  %v4029_v2 = vsub.f32 0.0, %v10246_v8  ;;  %v10259_v36 = vadd.f32 %v10126_v55, %v9969_v10  ;;  %v6986_v55 = vld [vmem:[%s11107_s21 + $0x90] sm:$0xff]   ;;  %v10276_v24 = vpop.f32.mrb[54].mxu0 }
 0x92c   : > { %v7318_v32 = vpop.eup %7317  ;;  %7335 = vrcp.f32 %v4087_v35  ;;  %v4066_v9 = vmul.f32 1.442695, %v11530_v42  ;;  %v4863_v35 = vsub.f32 0.0, %v10252_v6  ;;  %v4896_v54 = vmul.f32 1.442695, %v4862_v4  ;;  %v10281_v41 = vpop.f32.mrb[55].mxu0  ;;  %6712 = vmatpush3.bf16.msra.mxu0 %v6986_v55 }
 0x92d   : > { %v7320_v38 = vpop.eup %7319  ;;  %v4545_v50 = vmul.f32 %v7318_v32, %v10042_v29  ;;  %7337 = vrcp.f32 %v4919_v53  ;;  %v4429_v48 = vsub.f32 0.0, %v10259_v36  ;;  %v4068_v32 = vmul.f32 1.442695, %v4029_v2 }
 0x92e   : > { %v7322_v14 = vpop.eup %7321  ;;  %v4125_v42 = vmul.f32 %v7320_v38, %v10049_v3  ;;  %7339 = vrcp.f32 %v4078_v63  ;;  %v4898_v4 = vmul.f32 1.442695, %v4863_v35  ;;  %v10287_v63 = vadd.f32 %v10128_v30, %v10060_v19  ;;  %v6989_v35 = vld [vmem:[%s11107_s21 + $0x40] sm:$0xff]  }
 0x92f   : > { %v4591_v29 = vadd.f32 %v4545_v50, %v10201_v43  ;;  %v4546_v53 = vmul.f32 %v7322_v14, %v10052_v11  ;;  %7341 = vpow2.f32 %v10158_v25  ;;  %v6987_v11 = vld [vmem:[%s11107_s21 + $0xd8] sm:$0xff]   ;;  %v4449_v51 = vmul.f32 1.442695, %v4429_v48  ;;  %v6990_v14 = vld [vmem:[%s11107_s21] sm:$0xff]   ;;  %6685 = vmatprep.subr.bf16.mxu1 %v6989_v35 }
 0x930   : > { %v7324_v17 = vpop.eup %7323  ;;  %v4165_v3 = vadd.f32 %v4125_v42, %v10210_v31  ;;  %7343 = vpow2.f32 %v10168_v44  ;;  %v6988_v44 = vld [vmem:[%s11107_s21 + $0x98] sm:$0xff]   ;;  %v4856_v50 = vsub.f32 0.0, %v10287_v63  ;;  %6713 = vmatprep.subr.bf16.mxu0 %v6987_v11  ;;  %6686 = vmatpush3.bf16.msra.mxu1 %v6990_v14 }
 0x931   : > { %v7326_v43 = vpop.eup %7325  ;;  %v4592_v25 = vrot.slane %v4591_v29, 4  ;;  %v4598_v2 = vadd.f32 %v4546_v53, %v10222_v26  ;;  %7345 = vpow2.f32 %v10174_v0  ;;  %v4116_v30 = vmul.f32 %v7324_v17, %v10057_v1  ;;  %6714 = vmatpush3.bf16.msra.mxu0 %v6988_v44  ;;  %v10307_v53 = vpop.f32.mrb[56].mxu0 }
 0x932   : > { %v7328_v31 = vpop.eup %7327  ;;  %v4166_v38 = vrot.slane %v4165_v3, 4  ;;  %7347 = vpow2.f32 %v4066_v9  ;;  %v4948_v48 = vmul.f32 %v7326_v43, %v10064_v59  ;;  %v4884_v42 = vmul.f32 1.442695, %v4856_v50 }
 0x933   : > { %v7330_v26 = vpop.eup %7329  ;;  %v4593_v55 = vadd.f32 %v4592_v25, %v4591_v29  ;;  %v4599_v0 = vrot.slane %v4598_v2, 4  ;;  %7349 = vpow2.f32 %v4896_v54  ;;  %v4117_v9 = vmul.f32 %v7328_v31, %v10067_v52  ;;  %v6991_v29 = vld [vmem:[%s11107_s21 + $0xe0] sm:$0xff]   ;;  %v10313_v25 = vpop.f32.mrb[57].mxu0 }
 0x934   : > { %v7332_v1 = vpop.eup %7331  ;;  %v4167_v17 = vadd.f32 %v4166_v38, %v4165_v3  ;;  %7351 = vpow2.f32 %v4068_v32  ;;  %v6992_v52 = vld [vmem:[%s11107_s21 + $0xa0] sm:$0xff]   ;;  %v4949_v44 = vmul.f32 %v7330_v26, %v10078_v22  ;;  %v10320_v38 = vpop.f32.mrb[58].mxu0  ;;  %6715 = vmatprep.subr.bf16.mxu0 %v6991_v29  ;;  %v6994_v22 = vld [vmem:[%s11107_s21 + $0x8] sm:$0xff]  }
 0x935   : > { %v7334_v59 = vpop.eup %7333  ;;  %v4594_v54 = vrot.slane %v4593_v55, 2  ;;  %v4600_v11 = vadd.f32 %v4599_v0, %v4598_v2  ;;  %v4126_v43 = vmul.f32 %v7332_v1, %v10087_v23  ;;  %7353 = vpow2.f32 %v4898_v4  ;;  %v6993_v23 = vld [vmem:[%s11107_s21 + $0x48] sm:$0xff]   ;;  %v10328_v14 = vpop.f32.mrb[59].mxu0  ;;  %6716 = vmatpush3.bf16.msra.mxu0 %v6992_v52 }
 0x936   : > { %v7336_v32 = vpop.eup %7335  ;;  %v4168_v3 = vrot.slane %v4167_v17, 2  ;;  %v4958_v31 = vmul.f32 %v7334_v59, %v10090_v16  ;;  %7355 = vpow2.f32 %v4449_v51  ;;  %11531 = vst [vmem:[#allocation33_spill] sm:$0xff] %v10328_v14  ;;  %6687 = vmatprep.subr.bf16.mxu1 %v6993_v23 }
 0x937   : > { %v7338_v4 = vpop.eup %7337  ;;  %v10325_v2 = vadd.f32 %v4594_v54, %v4593_v55  ;;  %v4601_v50 = vrot.slane %v4600_v11, 2  ;;  %v4172_v35 = vadd.f32 %v4126_v43, %v4116_v30  ;;  %v4127_v0 = vmul.f32 %v7336_v32, %v10094_v12  ;;  %v6995_v30 = vld [vmem:[%s11107_s21 + $0xe8] sm:$0xff]   ;;  %6688 = vmatpush3.bf16.msra.mxu1 %v6994_v22 }
 0x938   : > { %v7340_v16 = vpop.eup %7339  ;;  %v10333_v51 = vadd.f32 %v4168_v3, %v4167_v17  ;;  %v4968_v26 = vadd.f32 %v4958_v31, %v4948_v48  ;;  %v4959_v1 = vmul.f32 %v7338_v4, %v10105_v49  ;;  %7357 = vpow2.f32 %v4884_v42  ;;  %v6996_v49 = vld [vmem:[%s11107_s21 + $0xa8] sm:$0xff]   ;;  %6717 = vmatprep.subr.bf16.mxu0 %v6995_v30 }
 0x939   : > { %v7342_v12 = vpop.eup %7341  ;;  %v11532_v55 = vrot.slane %v10207_v18, 1  ;;  %v10344_v59 = vadd.f32 %v4601_v50, %v4600_v11  ;;  %v4173_v54 = vrot.slane %v4172_v35, 4  ;;  %v4179_v17 = vadd.f32 %v4127_v0, %v4117_v9  ;;  %v6997_v9 = vld [vmem:[%s11107_s21 + $0x50] sm:$0xff]   ;;  %6718 = vmatpush3.bf16.msra.mxu0 %v6996_v49 }
 0x93a   : > { %v7344_v48 = vpop.eup %7343  ;;  %v11534_v42 = vrot.slane %v10238_v33, 1  ;;  %v4969_v52 = vrot.slane %v4968_v26, 4  ;;  %v4975_v32 = vadd.f32 %v4959_v1, %v4949_v44  ;;  %v4596_v31 = vrot.slane %v10325_v2, 1  ;;  %v11537_v1 = vld [vmem:[#allocation41_spill] sm:$0xff]  ;;  %6689 = vmatprep.subr.bf16.mxu1 %v6997_v9 }
 0x93b   : > { %v10342_v29 = vadd.f32 %v11532_v55, %v10207_v18  ;;  %v11536_v18 = vld [vmem:[#allocation66_spill] sm:$0xff]  ;;  %v7346_v11 = vpop.eup %7345  ;;  %v4170_v23 = vrot.slane %v10333_v51, 1  ;;  %v4174_v4 = vadd.f32 %v4173_v54, %v4172_v35  ;;  %v4180_v50 = vrot.slane %v4179_v17, 4  ;;  %v6999_v35 = vld [vmem:[%s11107_s21 + $0xf0] sm:$0xff]  }
 0x93c   : > { %v10352_v43 = vadd.f32 %v11534_v42, %v10238_v33  ;;  %v10356_v3 = vadd.f32 %v11536_v18, %v9976_v62  ;;  %v6998_v33 = vld [vmem:[%s11107_s21 + $0x10] sm:$0xff]   ;;  %v7348_v44 = vpop.eup %7347  ;;  %v4970_v0 = vadd.f32 %v4969_v52, %v4968_v26  ;;  %v4976_v22 = vrot.slane %v4975_v32, 4  ;;  %v10369_v42 = vpop.f32.mrb[60].mxu0  ;;  %6719 = vmatprep.subr.bf16.mxu0 %v6999_v35 }
 0x93d   : > { %11533 = vst [vmem:[#allocation45_spill] sm:$0xff] %v10342_v29  ;;  %v10367_v30 = vmul.f32 %v7340_v16, %v11537_v1  ;;  %v4912_v55 = vadd.f32 1.0, %v7342_v12  ;;  %11538 = vst [vmem:[#allocation29_spill] sm:$0xff] %v10369_v42  ;;  %v7350_v54 = vpop.eup %7349  ;;  %v4603_v49 = vrot.slane %v10344_v59, 1  ;;  %v4175_v18 = vrot.slane %v4174_v4, 2  ;;  %v10375_v14 = vpop.f32.mrb[61].mxu0  ;;  %6690 = vmatpush3.bf16.msra.mxu1 %v6998_v33 }
 0x93e   : > { %11535 = vst [vmem:[#allocation69_spill] sm:$0xff] %v10352_v43  ;;  %v4181_v43 = vadd.f32 %v4180_v50, %v4179_v17  ;;  %v4079_v29 = vadd.f32 1.0, %v7344_v48  ;;  %11539 = vst [vmem:[#allocation56_spill] sm:$0xff] %v10375_v14  ;;  %v7000_v16 = vld [vmem:[%s11107_s21 + $0xb0] sm:$0xff]   ;;  %v7352_v26 = vpop.eup %7351  ;;  %v4971_v12 = vrot.slane %v4970_v0, 2  ;;  %v4977_v52 = vadd.f32 %v4976_v22, %v4975_v32  ;;  %v10380_v1 = vpop.f32.mrb[62].mxu0 }
 0x93f   : > { %7359 = vrcp.f32 %v4912_v55  ;;  %v4913_v9 = vadd.f32 1.0, %v7346_v11  ;;  %v7001_v17 = vld [vmem:[%s11107_s21 + $0x58] sm:$0xff]   ;;  %v7354_v48 = vpop.eup %7353  ;;  %v4176_v50 = vadd.f32 %v4175_v18, %v4174_v4  ;;  %v4088_v33 = vadd.f32 1.0, %v7348_v44  ;;  %v10385_v42 = vpop.f32.mrb[63].mxu0  ;;  %6720 = vmatpush3.bf16.msra.mxu0 %v7000_v16 }
 0x940   : > { %v4182_v14 = vrot.slane %v4181_v43, 2  ;;  %7361 = vrcp.f32 %v4079_v29  ;;  %11540 = vst [vmem:[#allocation55_spill] sm:$0xff] %v10385_v42  ;;  %v7002_v32 = vld [vmem:[%s11107_s21 + $0x18] sm:$0xff]   ;;  %v7356_v11 = vpop.eup %7355  ;;  %v10390_v22 = vadd.f32 %v4971_v12, %v4970_v0  ;;  %v4978_v55 = vrot.slane %v4977_v52, 2  ;;  %6691 = vmatprep.subr.bf16.mxu1 %v7001_v17 }
 0x941   : > { %7363 = vrcp.f32 %v4913_v9  ;;  %v4922_v35 = vadd.f32 1.0, %v7350_v54  ;;  %v7003_v4 = vld [vmem:[%s11107_s21 + $0xf8] sm:$0xff]   ;;  %v4177_v29 = vrot.slane %v4176_v50, 1  ;;  %v4089_v18 = vadd.f32 1.0, %v7352_v26  ;;  %6692 = vmatpush3.bf16.msra.mxu1 %v7002_v32  ;;  %v11554_v26 = vld [vmem:[#allocation15_spill] sm:$0xff] }
 0x942   : > { %v10395_v44 = vadd.f32 %v4182_v14, %v4181_v43  ;;  %7365 = vrcp.f32 %v4088_v33  ;;  %v7004_v16 = vld [vmem:[%s11107_s21 + $0xb8] sm:$0xff]   ;;  %v7358_v0 = vpop.eup %7357  ;;  %v10401_v12 = vadd.f32 %v4596_v31, %v10325_v2  ;;  %v10404_v54 = vadd.f32 %v4170_v23, %v10333_v51  ;;  %6721 = vmatprep.subr.bf16.mxu0 %v7003_v4  ;;  %v7005_v14 = vld [vmem:[%s11107_s21 + $0x60] sm:$0xff]  }
 0x943   : > { %7367 = vrcp.f32 %v4922_v35  ;;  %v4923_v9 = vadd.f32 1.0, %v7354_v48  ;;  %v10410_v43 = vadd.f32 %v4603_v49, %v10344_v59  ;;  %v4489_v17 = vadd.f32 1.0, %v7356_v11  ;;  %6722 = vmatpush3.bf16.msra.mxu0 %v7004_v16  ;;  %v7006_v2 = vld [vmem:[%s11107_s21 + $0x20] sm:$0xff]   ;;  %v10420_v48 = vpop.f32.mrb[64].mxu0  ;;  %6693 = vmatprep.subr.bf16.mxu1 %v7005_v14 }
 0x944   : > { %11541 = vst [vmem:[#allocation37_spill] sm:$0xff] %v10401_v12  ;;  %11542 = vst [vmem:[#allocation46_spill] sm:$0xff] %v10404_v54  ;;  %7369 = vrcp.f32 %v4089_v18  ;;  %v10416_v51 = vadd.f32 %v4177_v29, %v4176_v50  ;;  %v10418_v31 = vadd.f32 %v4978_v55, %v4977_v52  ;;  %v4916_v23 = vadd.f32 1.0, %v7358_v0  ;;  %v11547_v33 = vld [vmem:[#allocation65_spill] sm:$0xff]  ;;  %v10428_v11 = vpop.f32.mrb[65].mxu0 }
 0x945   : > { %11543 = vst [vmem:[#allocation71_spill] sm:$0xff] %v10410_v43  ;;  %7371 = vrcp.f32 %v4923_v9  ;;  %11546 = vst [vmem:[#allocation83_spill] sm:$0xff] %v10420_v48  ;;  %v4430_v49 = vsub.f32 0.0, %v10356_v3  ;;  %v10426_v32 = vadd.f32 %v11547_v33, %v10070_v47  ;;  %6694 = vmatpush3.bf16.msra.mxu1 %v7006_v2  ;;  %v10432_v52 = vadd.f32 %v10145_v57, %v9969_v10  ;;  %v10442_v35 = vpop.f32.mrb[66].mxu0  ;;  %v11550_v16 = vld [vmem:[#allocation53_spill] sm:$0xff] }
 0x946   : > { %11544 = vst [vmem:[#allocation70_spill] sm:$0xff] %v10416_v51  ;;  %11545 = vst [vmem:[#allocation84_spill] sm:$0xff] %v10418_v31  ;;  %7373 = vrcp.f32 %v4489_v17  ;;  %v10436_v50 = vadd.f32 %v10147_v28, %v10060_v19  ;;  %v10440_v55 = vadd.f32 %v10152_v20, %v9976_v62  ;;  %v10447_v18 = vadd.f32 %v10154_v37, %v10070_v47  ;;  %v10453_v0 = vpop.f32.mrb[67].mxu0  ;;  %v11552_v17 = vld [vmem:[#allocation80_spill] sm:$0xff]  ;;  %v11553_v37 = vld [vmem:[#allocation42_spill] sm:$0xff] }
 0x947   : > { %11548 = vst [vmem:[#allocation31_spill] sm:$0xff] %v10428_v11  ;;  %7375 = vrcp.f32 %v4916_v23  ;;  %11549 = vst [vmem:[#allocation32_spill] sm:$0xff] %v10442_v35  ;;  %v4451_v4 = vmul.f32 1.442695, %v4430_v49  ;;  %v4857_v29 = vsub.f32 0.0, %v10426_v32  ;;  %v10451_v57 = vadd.f32 %v10176_v46, %v11550_v16  ;;  %v11555_v35 = vld [vmem:[#allocation24_spill] sm:$0xff] }
 0x948   : > { %11551 = vst [vmem:[#allocation59_spill] sm:$0xff] %v10453_v0  ;;  %v4439_v9 = vsub.f32 0.0, %v10432_v52  ;;  %v4866_v20 = vsub.f32 0.0, %v10436_v50  ;;  %v4440_v14 = vsub.f32 0.0, %v10440_v55  ;;  %v10460_v2 = vadd.f32 %v11552_v17, %v11550_v16 }
 0x949   : > { %v7360_v28 = vpop.eup %7359  ;;  %7377 = vpow2.f32 %v4451_v4  ;;  %v4886_v33 = vmul.f32 1.442695, %v4857_v29  ;;  %v4867_v46 = vsub.f32 0.0, %v10447_v18  ;;  %v4431_v17 = vsub.f32 0.0, %v10451_v57  ;;  %v11556_v29 = vld [vmem:[#allocation63_spill] sm:$0xff] }
 0x94a   : > { %v7362_v23 = vpop.eup %7361  ;;  %v4952_v49 = vmul.f32 %v7360_v28, %v11553_v37  ;;  %v4469_v51 = vmul.f32 1.442695, %v4439_v9  ;;  %v4904_v54 = vmul.f32 1.442695, %v4866_v20  ;;  %v4471_v43 = vmul.f32 1.442695, %v4440_v14 }
 0x94b   : > { %v7364_v59 = vpop.eup %7363  ;;  %v4119_v12 = vmul.f32 %v7362_v23, %v11554_v26  ;;  %7379 = vpow2.f32 %v4886_v33  ;;  %v4906_v62 = vmul.f32 1.442695, %v4867_v46  ;;  %v5269_v4 = vsub.f32 0.0, %v10460_v2  ;;  %v11557_v37 = vld [vmem:[#allocation79_spill] sm:$0xff]  ;;  %v10473_v26 = vpop.f32.mrb[68].mxu0 }
 0x94c   : > { %v7366_v0 = vpop.eup %7365  ;;  %v4953_v11 = vmul.f32 %v7364_v59, %v11555_v35  ;;  %7381 = vpow2.f32 %v4469_v51  ;;  %v10471_v10 = vadd.f32 %v11557_v37, %v11556_v29  ;;  %11558 = vst [vmem:[#allocation74_spill] sm:$0xff] %v10473_v26  ;;  %v4453_v59 = vmul.f32 1.442695, %v4431_v17  ;;  %v11559_v35 = vld [vmem:[#allocation75_spill] sm:$0xff]  ;;  %v10480_v23 = vpop.f32.mrb[69].mxu0 }
 0x94d   : > { %v7368_v48 = vpop.eup %7367  ;;  %v4128_v28 = vmul.f32 %v7366_v0, %v10165_v13  ;;  %7383 = vpow2.f32 %v4904_v54  ;;  %v10478_v14 = vadd.f32 %v11559_v35, %v11556_v29  ;;  %11560 = vst [vmem:[#allocation34_spill] sm:$0xff] %v10480_v23  ;;  %v5291_v33 = vmul.f32 1.442695, %v5269_v4  ;;  %v10484_v46 = vpop.f32.mrb[70].mxu0 }
 0x94e   : > { %v7370_v9 = vpop.eup %7369  ;;  %v4962_v20 = vmul.f32 %v7368_v48, %v10172_v45  ;;  %7385 = vpow2.f32 %v4471_v43  ;;  %11561 = vst [vmem:[#allocation30_spill] sm:$0xff] %v10484_v46  ;;  %v4432_v54 = vsub.f32 0.0, %v10471_v10  ;;  %v10488_v48 = vpop.f32.mrb[71].mxu0  ;;  %v11563_v35 = vrot.slane %v10390_v22, 1 }
 0x94f   : > { %v7372_v13 = vpop.eup %7371  ;;  %v4186_v51 = vadd.f32 %v4128_v28, %v10367_v30  ;;  %v4129_v0 = vmul.f32 %v7370_v9, %v10246_v8  ;;  %7387 = vpow2.f32 %v4906_v62  ;;  %11562 = vst [vmem:[#allocation52_spill] sm:$0xff] %v10488_v48  ;;  %v11565_v48 = vrot.slane %v10395_v44, 1 }
 0x950   : > { %v7374_v37 = vpop.eup %7373  ;;  %v4996_v26 = vadd.f32 %v4962_v20, %v4952_v49  ;;  %v4963_v45 = vmul.f32 %v7372_v13, %v10252_v6  ;;  %v10493_v30 = vadd.f32 %v11563_v35, %v10390_v22  ;;  %7389 = vpow2.f32 %v4453_v59 }
 0x951   : > { %v7376_v17 = vpop.eup %7375  ;;  %v4187_v8 = vrot.slane %v4186_v51, 4  ;;  %v4193_v43 = vadd.f32 %v4129_v0, %v4119_v12  ;;  %7391 = vpow2.f32 %v5291_v33  ;;  %v4455_v9 = vmul.f32 1.442695, %v4432_v54  ;;  %v11567_v12 = vld [vmem:[#allocation81_spill] sm:$0xff] }
 0x952   : > { %11564 = vst [vmem:[#allocation72_spill] sm:$0xff] %v10493_v30  ;;  %v4997_v4 = vrot.slane %v4996_v26, 4  ;;  %v5003_v49 = vadd.f32 %v4963_v45, %v4953_v11  ;;  %v5270_v20 = vsub.f32 0.0, %v10478_v14  ;;  %v10500_v46 = vadd.f32 %v11565_v48, %v10395_v44 }
 0x953   : > { %v4188_v6 = vadd.f32 %v4187_v8, %v4186_v51  ;;  %v4194_v62 = vrot.slane %v4193_v43, 4  ;;  %v7378_v13 = vpop.eup %7377  ;;  %v10504_v59 = vadd.f32 %v11567_v12, %v11550_v16  ;;  %7393 = vpow2.f32 %v4455_v9  ;;  %v10506_v51 = vpop.f32.mrb[72].mxu0 }
 0x954   : > { %11566 = vst [vmem:[#allocation35_spill] sm:$0xff] %v10500_v46  ;;  %v4998_v22 = vadd.f32 %v4997_v4, %v4996_v26  ;;  %v5004_v35 = vrot.slane %v5003_v49, 4  ;;  %v4490_v33 = vadd.f32 1.0, %v7378_v13  ;;  %11568 = vst [vmem:[#allocation48_spill] sm:$0xff] %v10506_v51  ;;  %v10509_v28 = vmul.f32 %v7374_v37, %v10259_v36  ;;  %v10511_v48 = vpop.f32.mrb[73].mxu0  ;;  %v7007_v26 = vld [vmem:[%s11107_s21 + $0x1c0] sm:$0xff]  }
 0x955   : > { %v4189_v0 = vrot.slane %v4188_v6, 2  ;;  %v4195_v11 = vadd.f32 %v4194_v62, %v4193_v43  ;;  %v7380_v45 = vpop.eup %7379  ;;  %v5293_v44 = vmul.f32 1.442695, %v5270_v20  ;;  %11569 = vst [vmem:[#allocation47_spill] sm:$0xff] %v10511_v48  ;;  %v10518_v9 = vpop.f32.mrb[74].mxu0  ;;  %v7009_v36 = vld [vmem:[%s11107_s21 + $0x68] sm:$0xff]   ;;  %6751 = vmatprep.subr.bf16.mxu0 %v7007_v26 }
 0x956   : > { %v4999_v54 = vrot.slane %v4998_v22, 2  ;;  %v5005_v8 = vadd.f32 %v5004_v35, %v5003_v49  ;;  %v7382_v4 = vpop.eup %7381  ;;  %7395 = vrcp.f32 %v4490_v33  ;;  %v4917_v62 = vadd.f32 1.0, %v7380_v45  ;;  %11571 = vst [vmem:[#allocation57_spill] sm:$0xff] %v10518_v9  ;;  %v7010_v37 = vld [vmem:[%s11107_s21 + $0x28] sm:$0xff]   ;;  %6695 = vmatprep.subr.bf16.mxu1 %v7009_v36  ;;  %v7014_v26 = vld [vmem:[%s11107_s21 + $0x30] sm:$0xff]  }
 0x957   : > { %v10516_v12 = vadd.f32 %v4189_v0, %v4188_v6  ;;  %v4196_v43 = vrot.slane %v4195_v11, 2  ;;  %v7384_v49 = vpop.eup %7383  ;;  %v4499_v35 = vadd.f32 1.0, %v7382_v4  ;;  %7397 = vpow2.f32 %v5293_v44  ;;  %v10526_v6 = vpop.f32.mrb[75].mxu0  ;;  %v7013_v0 = vld [vmem:[%s11107_s21 + $0x70] sm:$0xff]   ;;  %6696 = vmatpush3.bf16.msra.mxu1 %v7010_v37 }
 0x958   : > { %v5000_v20 = vadd.f32 %v4999_v54, %v4998_v22  ;;  %v5006_v13 = vrot.slane %v5005_v8, 2  ;;  %11572 = vst [vmem:[#allocation25_spill] sm:$0xff] %v10526_v6  ;;  %v7386_v33 = vpop.eup %7385  ;;  %7399 = vrcp.f32 %v4917_v62  ;;  %v4926_v30 = vadd.f32 1.0, %v7384_v49  ;;  %v11573_v44 = vld [vmem:[#allocation44_spill] sm:$0xff]  ;;  %6697 = vmatprep.subr.bf16.mxu1 %v7013_v0 }
 0x959   : > { %11570 = vst [vmem:[#allocation58_spill] sm:$0xff] %v10516_v12  ;;  %v10531_v45 = vadd.f32 %v4196_v43, %v4195_v11  ;;  %v4441_v31 = vsub.f32 0.0, %v10504_v59  ;;  %v7388_v46 = vpop.eup %7387  ;;  %7401 = vrcp.f32 %v4499_v35  ;;  %v4500_v54 = vadd.f32 1.0, %v7386_v33  ;;  %v7017_v49 = vld [vmem:[%s11107_s21 + $0x78] sm:$0xff]   ;;  %v11578_v12 = vld [vmem:[#allocation38_spill] sm:$0xff] }
 0x95a   : > { %v5001_v22 = vrot.slane %v5000_v20, 1  ;;  %v10536_v4 = vadd.f32 %v11573_v44, %v11550_v16  ;;  %v7390_v11 = vpop.eup %7389  ;;  %v10543_v62 = vmul.f32 %v7376_v17, %v10287_v63  ;;  %7403 = vrcp.f32 %v4926_v30  ;;  %v11575_v17 = vld [vmem:[#allocation43_spill] sm:$0xff] }
 0x95b   : > { %v4927_v36 = vadd.f32 1.0, %v7388_v46  ;;  %v7392_v35 = vpop.eup %7391  ;;  %v10549_v33 = vadd.f32 %v5006_v13, %v5005_v8  ;;  %7405 = vrcp.f32 %v4500_v54  ;;  %v4491_v44 = vadd.f32 1.0, %v7390_v11  ;;  %6698 = vmatpush3.bf16.msra.mxu1 %v7014_v26  ;;  %v7018_v8 = vld [vmem:[%s11107_s21 + $0x38] sm:$0xff]  }
 0x95c   : > { %v10551_v6 = vadd.f32 %v5001_v22, %v5000_v20  ;;  %v5329_v43 = vadd.f32 1.0, %v7392_v35  ;;  %v4473_v63 = vmul.f32 1.442695, %v4441_v31  ;;  %v5279_v46 = vsub.f32 0.0, %v10536_v4  ;;  %v11576_v13 = vld [vmem:[#allocation64_spill] sm:$0xff]  ;;  %6699 = vmatprep.subr.bf16.mxu1 %v7017_v49 }
 0x95d   : > { %7407 = vrcp.f32 %v4927_v36  ;;  %v10556_v30 = vadd.f32 %v11575_v17, %v11556_v29  ;;  %v10560_v0 = vadd.f32 %v10195_v5, %v11556_v29  ;;  %v7394_v20 = vpop.eup %7393  ;;  %v10567_v31 = vadd.f32 %v10203_v61, %v11576_v13  ;;  %v11577_v22 = vld [vmem:[#allocation40_spill] sm:$0xff]  ;;  %v7021_v5 = vld [vmem:[%s11107_s21 + $0x140] sm:$0xff]  }
 0x95e   : > { %11574 = vst [vmem:[#allocation27_spill] sm:$0xff] %v10551_v6  ;;  %7409 = vrcp.f32 %v4491_v44  ;;  %v10571_v54 = vadd.f32 %v10205_v21, %v11577_v22  ;;  %v10575_v11 = vadd.f32 %v10212_v15, %v9998_v58  ;;  %v4492_v26 = vadd.f32 1.0, %v7394_v20 }
 0x95f   : > { %7411 = vrcp.f32 %v5329_v43  ;;  %v5311_v43 = vmul.f32 1.442695, %v5279_v46  ;;  %v4442_v36 = vsub.f32 0.0, %v10556_v30  ;;  %v5280_v35 = vsub.f32 0.0, %v10560_v0  ;;  %6700 = vmatpush3.bf16.msra.mxu1 %v7018_v8 }
 0x960   : > { %7413 = vpow2.f32 %v4473_v63  ;;  %v7396_v61 = vpop.eup %7395  ;;  %v4433_v21 = vsub.f32 0.0, %v10567_v31  ;;  %v5273_v44 = vsub.f32 0.0, %v10571_v54  ;;  %v4434_v15 = vsub.f32 0.0, %v10575_v11  ;;  %6729 = vmatprep.subr.bf16.mxu1 %v7021_v5 }
 0x961   : > { %v7398_v17 = vpop.eup %7397  ;;  %7415 = vrcp.f32 %v4492_v26  ;;  %v4475_v37 = vmul.f32 1.442695, %v4442_v36  ;;  %v10588_v63 = vadd.f32 %v10214_v27, %v11578_v12  ;;  %v5313_v6 = vmul.f32 1.442695, %v5280_v35 }
 0x962   : > { %v7400_v46 = vpop.eup %7399  ;;  %v5330_v20 = vadd.f32 1.0, %v7398_v17  ;;  %7417 = vpow2.f32 %v5311_v43  ;;  %v4457_v9 = vmul.f32 1.442695, %v4433_v21  ;;  %v4530_v51 = vmul.f32 %v7396_v61, %v10356_v3 }
 0x963   : > { %v7402_v48 = vpop.eup %7401  ;;  %7419 = vpow2.f32 %v4475_v37  ;;  %v5299_v23 = vmul.f32 1.442695, %v5273_v44  ;;  %v4459_v42 = vmul.f32 1.442695, %v4434_v15  ;;  %v5274_v27 = vsub.f32 0.0, %v10588_v63 }
 0x964   : > { %v7404_v49 = vpop.eup %7403  ;;  %v4539_v26 = vmul.f32 %v7402_v48, %v10432_v52  ;;  %7421 = vrcp.f32 %v5330_v20  ;;  %v10595_v8 = vadd.f32 %v10224_v40, %v11576_v13  ;;  %v4957_v36 = vmul.f32 %v7400_v46, %v10426_v32 }
 0x965   : > { %v7406_v43 = vpop.eup %7405  ;;  %v4966_v5 = vmul.f32 %v7404_v49, %v10436_v50  ;;  %7423 = vpow2.f32 %v5313_v6  ;;  %v10601_v3 = vadd.f32 %v10226_v56, %v11577_v22  ;;  %v5301_v61 = vmul.f32 1.442695, %v5274_v27 }
 0x966   : > { %v4549_v52 = vadd.f32 %v4539_v26, %v10509_v28  ;;  %v4540_v48 = vmul.f32 %v7406_v43, %v10440_v55  ;;  %7425 = vpow2.f32 %v4457_v9  ;;  %v4443_v32 = vsub.f32 0.0, %v10595_v8 }
 0x967   : > { %v7408_v37 = vpop.eup %7407  ;;  %v5024_v40 = vadd.f32 %v4966_v5, %v10543_v62  ;;  %7427 = vpow2.f32 %v5299_v23  ;;  %v11579_v56 = vrot.slane %v10531_v45, 1  ;;  %v10615_v62 = vadd.f32 %v10228_v34, %v9998_v58 }
 0x968   : > { %v7410_v35 = vpop.eup %7409  ;;  %v4967_v21 = vmul.f32 %v7408_v37, %v10447_v18  ;;  %v4550_v44 = vrot.slane %v4549_v52, 4  ;;  %v4556_v28 = vadd.f32 %v4540_v48, %v4530_v51  ;;  %7429 = vpow2.f32 %v4459_v42 }
 0x969   : > { %v7412_v50 = vpop.eup %7411  ;;  %v10611_v6 = vadd.f32 %v11579_v56, %v10531_v45  ;;  %v5025_v9 = vrot.slane %v5024_v40, 4  ;;  %7431 = vpow2.f32 %v5301_v61  ;;  %v4477_v49 = vmul.f32 1.442695, %v4443_v32 }
 0x96a   : > { %v7414_v55 = vpop.eup %7413  ;;  %v5031_v15 = vadd.f32 %v4967_v21, %v4957_v36  ;;  %v4551_v18 = vadd.f32 %v4550_v44, %v4549_v52  ;;  %v4557_v23 = vrot.slane %v4556_v28, 4  ;;  %v10618_v45 = vmul.f32 %v7410_v35, %v10451_v57 }
 0x96b   : > { %v4501_v17 = vadd.f32 1.0, %v7414_v55  ;;  %v7416_v46 = vpop.eup %7415  ;;  %v5026_v20 = vadd.f32 %v5025_v9, %v5024_v40  ;;  %v5283_v42 = vsub.f32 0.0, %v10601_v3  ;;  %v10622_v36 = vmul.f32 %v7412_v50, %v10460_v2 }
 0x96c   : > { %v5032_v26 = vrot.slane %v5031_v15, 4  ;;  %v7418_v51 = vpop.eup %7417  ;;  %v4552_v27 = vrot.slane %v4551_v18, 2  ;;  %v4558_v43 = vadd.f32 %v4557_v23, %v4556_v28  ;;  %v4444_v44 = vsub.f32 0.0, %v10615_v62 }
 0x96d   : > { %7433 = vrcp.f32 %v4501_v17  ;;  %v7420_v34 = vpop.eup %7419  ;;  %v5027_v5 = vrot.slane %v5026_v20, 2  ;;  %v5339_v52 = vadd.f32 1.0, %v7418_v51  ;;  %v5319_v57 = vmul.f32 1.442695, %v5283_v42 }
 0x96e   : > { %v5033_v37 = vadd.f32 %v5032_v26, %v5031_v15  ;;  %7435 = vpow2.f32 %v4477_v49  ;;  %v7422_v48 = vpop.eup %7421  ;;  %v4553_v61 = vadd.f32 %v4552_v27, %v4551_v18  ;;  %v4559_v40 = vrot.slane %v4558_v43, 2 }
 0x96f   : > { %v4502_v21 = vadd.f32 1.0, %v7420_v34  ;;  %v7424_v35 = vpop.eup %7423  ;;  %v10624_v32 = vadd.f32 %v5027_v5, %v5026_v20  ;;  %7437 = vrcp.f32 %v5339_v52  ;;  %v4532_v18 = vmul.f32 %v7416_v46, %v10471_v10 }
 0x970   : > { %v5034_v56 = vrot.slane %v5033_v37, 2  ;;  %v7426_v2 = vpop.eup %7425  ;;  %v4554_v50 = vrot.slane %v4553_v61, 1  ;;  %v4560_v28 = vadd.f32 %v4559_v40, %v4558_v43  ;;  %v5340_v55 = vadd.f32 1.0, %v7424_v35 }
 0x971   : > { %7439 = vrcp.f32 %v4502_v21  ;;  %v7428_v9 = vpop.eup %7427  ;;  %v4493_v23 = vadd.f32 1.0, %v7426_v2  ;;  %v5029_v49 = vrot.slane %v10624_v32, 1  ;;  %v10632_v20 = vmul.f32 %v7422_v48, %v10478_v14 }
 0x972   : > { %v10627_v15 = vadd.f32 %v5034_v56, %v5033_v37  ;;  %7441 = vpow2.f32 %v5319_v57  ;;  %v7430_v17 = vpop.eup %7429  ;;  %v5333_v26 = vadd.f32 1.0, %v7428_v9  ;;  %v10634_v51 = vadd.f32 %v4554_v50, %v4553_v61 }
 0x973   : > { %7443 = vrcp.f32 %v5340_v55  ;;  %v7432_v42 = vpop.eup %7431  ;;  %v4561_v27 = vrot.slane %v4560_v28, 1  ;;  %v4494_v43 = vadd.f32 1.0, %v7430_v17  ;;  %v4479_v46 = vmul.f32 1.442695, %v4444_v44 }
 0x974   : > { %7445 = vrcp.f32 %v4493_v23  ;;  %v5036_v34 = vrot.slane %v10627_v15, 1  ;;  %v5334_v10 = vadd.f32 1.0, %v7432_v42  ;;  %v10639_v5 = vadd.f32 %v10230_v60, %v11578_v12 }
 0x975   : > { %7447 = vrcp.f32 %v5333_v26  ;;  %v10643_v14 = vadd.f32 %v10261_v39, %v10060_v19  ;;  %v10647_v37 = vadd.f32 %v10269_v7, %v10070_v47  ;;  %v10651_v48 = vadd.f32 %v10276_v24, %v10060_v19 }
 0x976   : > { %7449 = vrcp.f32 %v4494_v43  ;;  %v10655_v61 = vadd.f32 %v10281_v41, %v10070_v47  ;;  %v10659_v60 = vadd.f32 %v10307_v53, %v11550_v16  ;;  %v5284_v7 = vsub.f32 0.0, %v10639_v5 }
 0x977   : > { %v7434_v52 = vpop.eup %7433  ;;  %7451 = vrcp.f32 %v5334_v10  ;;  %v4437_v21 = vsub.f32 0.0, %v10643_v14  ;;  %v4438_v24 = vsub.f32 0.0, %v10647_v37  ;;  %v4447_v35 = vsub.f32 0.0, %v10651_v48 }
 0x978   : > { %v7436_v39 = vpop.eup %7435  ;;  %v4541_v40 = vmul.f32 %v7434_v52, %v10504_v59  ;;  %7453 = vpow2.f32 %v4479_v46  ;;  %v4448_v41 = vsub.f32 0.0, %v10655_v61  ;;  %v10667_v44 = vadd.f32 %v4561_v27, %v4560_v28 }
 0x979   : > { %v4503_v57 = vadd.f32 1.0, %v7436_v39  ;;  %v7438_v56 = vpop.eup %7437  ;;  %v5321_v2 = vmul.f32 1.442695, %v5284_v7  ;;  %v4465_v50 = vmul.f32 1.442695, %v4437_v21  ;;  %v4850_v23 = vsub.f32 0.0, %v10659_v60 }
 0x97a   : > { %v4563_v53 = vadd.f32 %v4541_v40, %v10618_v45  ;;  %v5379_v55 = vmul.f32 %v7438_v56, %v10536_v4  ;;  %v4467_v9 = vmul.f32 1.442695, %v4438_v24  ;;  %v4485_v43 = vmul.f32 1.442695, %v4447_v35 }
 0x97b   : > { %v7440_v59 = vpop.eup %7439  ;;  %7455 = vrcp.f32 %v4503_v57  ;;  %v4487_v45 = vmul.f32 1.442695, %v4448_v41  ;;  %v4872_v21 = vmul.f32 1.442695, %v4850_v23 }
 0x97c   : > { %v7442_v17 = vpop.eup %7441  ;;  %v4564_v26 = vrot.slane %v4563_v53, 4  ;;  %v4542_v42 = vmul.f32 %v7440_v59, %v10556_v30  ;;  %7457 = vpow2.f32 %v5321_v2  ;;  %v5401_v28 = vadd.f32 %v5379_v55, %v10622_v36 }
 0x97d   : > { %v7444_v10 = vpop.eup %7443  ;;  %v5343_v27 = vadd.f32 1.0, %v7442_v17  ;;  %7459 = vpow2.f32 %v4465_v50  ;;  %v10677_v30 = vadd.f32 %v10313_v25, %v11556_v29 }
 0x97e   : > { %v7446_v46 = vpop.eup %7445  ;;  %v4565_v52 = vadd.f32 %v4564_v26, %v4563_v53  ;;  %v4570_v39 = vadd.f32 %v4542_v42, %v4532_v18  ;;  %v5380_v4 = vmul.f32 %v7444_v10, %v10560_v0  ;;  %7461 = vpow2.f32 %v4467_v9  ;;  %v11580_v10 = vld [vmem:[#allocation33_spill] sm:$0xff] }
 0x97f   : > { %v7448_v40 = vpop.eup %7447  ;;  %v5402_v7 = vrot.slane %v5401_v28, 4  ;;  %7463 = vrcp.f32 %v5343_v27  ;;  %v4533_v41 = vmul.f32 %v7446_v46, %v10567_v31  ;;  %v4851_v53 = vsub.f32 0.0, %v10677_v30 }
 0x980   : > { %v7450_v57 = vpop.eup %7449  ;;  %v4566_v24 = vrot.slane %v4565_v52, 2  ;;  %v4571_v36 = vrot.slane %v4570_v39, 4  ;;  %v5408_v35 = vadd.f32 %v5380_v4, %v10632_v20  ;;  %v5373_v0 = vmul.f32 %v7448_v40, %v10571_v54 }
 0x981   : > { %v7452_v56 = vpop.eup %7451  ;;  %v5403_v18 = vadd.f32 %v5402_v7, %v5401_v28  ;;  %7465 = vpow2.f32 %v4485_v43  ;;  %v10684_v25 = vmul.f32 %v7450_v57, %v10575_v11  ;;  %v4874_v20 = vmul.f32 1.442695, %v4851_v53 }
 0x982   : > { %v7454_v2 = vpop.eup %7453  ;;  %v4567_v50 = vadd.f32 %v4566_v24, %v4565_v52  ;;  %v4572_v59 = vadd.f32 %v4571_v36, %v4570_v39  ;;  %v5409_v55 = vrot.slane %v5408_v35, 4  ;;  %7467 = vpow2.f32 %v4487_v45 }
 0x983   : > { %v5404_v9 = vrot.slane %v5403_v18, 2  ;;  %v4504_v23 = vadd.f32 1.0, %v7454_v2  ;;  %7469 = vpow2.f32 %v4872_v21  ;;  %v10690_v43 = vadd.f32 %v10320_v38, %v11550_v16 }
 0x984   : > { %v4568_v17 = vrot.slane %v4567_v50, 1  ;;  %v4573_v31 = vrot.slane %v4572_v59, 2  ;;  %v5410_v26 = vadd.f32 %v5409_v55, %v5408_v35  ;;  %v10694_v11 = vadd.f32 %v11580_v10, %v11556_v29 }
 0x985   : > { %v7456_v42 = vpop.eup %7455  ;;  %v10686_v54 = vadd.f32 %v5404_v9, %v5403_v18  ;;  %7471 = vrcp.f32 %v4504_v23  ;;  %v10697_v46 = vmul.f32 %v7452_v56, %v10588_v63  ;;  %v4860_v38 = vsub.f32 0.0, %v10690_v43 }
 0x986   : > { %v7458_v28 = vpop.eup %7457  ;;  %v4574_v27 = vadd.f32 %v4573_v31, %v4572_v59  ;;  %v5411_v45 = vrot.slane %v5410_v26, 2  ;;  %v4543_v52 = vmul.f32 %v7456_v42, %v10595_v8  ;;  %v10700_v4 = vadd.f32 %v4568_v17, %v4567_v50  ;;  %v11581_v50 = vld [vmem:[#allocation29_spill] sm:$0xff] }
 0x987   : > { %v7460_v39 = vpop.eup %7459  ;;  %v5344_v40 = vadd.f32 1.0, %v7458_v28  ;;  %7473 = vpow2.f32 %v4874_v20  ;;  %v5406_v7 = vrot.slane %v10686_v54, 1  ;;  %v4892_v63 = vmul.f32 1.442695, %v4860_v38 }
 0x988   : > { %v7462_v16 = vpop.eup %7461  ;;  %v4575_v29 = vrot.slane %v4574_v27, 1  ;;  %v4577_v21 = vadd.f32 %v4543_v52, %v4533_v41  ;;  %v4497_v57 = vadd.f32 1.0, %v7460_v39  ;;  %v4861_v35 = vsub.f32 0.0, %v10694_v11  ;;  %v11582_v41 = vld [vmem:[#allocation56_spill] sm:$0xff] }
 0x989   : > { %v7464_v24 = vpop.eup %7463  ;;  %7475 = vrcp.f32 %v5344_v40  ;;  %v4498_v36 = vadd.f32 1.0, %v7462_v16  ;;  %v10705_v8 = vadd.f32 %v5411_v45, %v5410_v26  ;;  %v10710_v59 = vadd.f32 %v11581_v50, %v11577_v22 }
 0x98a   : > { %v4578_v56 = vrot.slane %v4577_v21, 4  ;;  %v5383_v18 = vmul.f32 %v7464_v24, %v10601_v3  ;;  %7477 = vrcp.f32 %v4497_v57  ;;  %v4894_v2 = vmul.f32 1.442695, %v4861_v35  ;;  %v11585_v35 = vld [vmem:[#allocation83_spill] sm:$0xff] }
 0x98b   : > { %v7466_v53 = vpop.eup %7465  ;;  %7479 = vrcp.f32 %v4498_v36  ;;  %v10714_v55 = vadd.f32 %v11582_v41, %v11578_v12  ;;  %v4854_v3 = vsub.f32 0.0, %v10710_v59  ;;  %v10720_v26 = vadd.f32 %v10380_v1, %v11577_v22  ;;  %v11583_v22 = vld [vmem:[#allocation55_spill] sm:$0xff]  ;;  %v11586_v41 = vld [vmem:[#allocation54_spill] sm:$0xff] }
 0x98c   : > { %v4579_v9 = vadd.f32 %v4578_v56, %v4577_v21  ;;  %v5429_v23 = vadd.f32 %v5383_v18, %v5373_v0  ;;  %v4507_v20 = vadd.f32 1.0, %v7466_v53  ;;  %7481 = vpow2.f32 %v4892_v63  ;;  %v7468_v17 = vpop.eup %7467  ;;  %v11584_v63 = vld [vmem:[#allocation39_spill] sm:$0xff] }
 0x98d   : > { %7483 = vpow2.f32 %v4894_v2  ;;  %v4855_v31 = vsub.f32 0.0, %v10714_v55  ;;  %v7470_v42 = vpop.eup %7469  ;;  %v4508_v45 = vadd.f32 1.0, %v7468_v17  ;;  %v10722_v39 = vadd.f32 %v4575_v29, %v4574_v27 }
 0x98e   : > { %v4580_v10 = vrot.slane %v4579_v9, 2  ;;  %v5430_v28 = vrot.slane %v5429_v23, 4  ;;  %7485 = vrcp.f32 %v4507_v20  ;;  %v4910_v0 = vadd.f32 1.0, %v7470_v42 }
 0x98f   : > { %v7472_v52 = vpop.eup %7471  ;;  %v4880_v40 = vmul.f32 1.442695, %v4854_v3  ;;  %v4864_v38 = vsub.f32 0.0, %v10720_v26  ;;  %7487 = vrcp.f32 %v4508_v45  ;;  %v4882_v1 = vmul.f32 1.442695, %v4855_v31 }
 0x990   : > { %v4581_v16 = vadd.f32 %v4580_v10, %v4579_v9  ;;  %v5431_v21 = vadd.f32 %v5430_v28, %v5429_v23  ;;  %v4544_v57 = vmul.f32 %v7472_v52, %v10615_v62  ;;  %7489 = vrcp.f32 %v4910_v0  ;;  %v11587_v9 = vld [vmem:[#allocation31_spill] sm:$0xff] }
 0x991   : > { %v7474_v24 = vpop.eup %7473  ;;  %v10728_v36 = vadd.f32 %v11583_v22, %v11578_v12  ;;  %v10732_v27 = vadd.f32 %v11585_v35, %v11584_v63  ;;  %7491 = vpow2.f32 %v4880_v40  ;;  %v10739_v23 = vadd.f32 %v11587_v9, %v11586_v41 }
 0x992   : > { %v4582_v29 = vrot.slane %v4581_v16, 1  ;;  %v5432_v56 = vrot.slane %v5431_v21, 2  ;;  %v4584_v18 = vadd.f32 %v4544_v57, %v10684_v25  ;;  %v4911_v53 = vadd.f32 1.0, %v7474_v24 }
 0x993   : > { %v7476_v2 = vpop.eup %7475  ;;  %v4865_v62 = vsub.f32 0.0, %v10728_v36  ;;  %v5267_v50 = vsub.f32 0.0, %v10732_v27  ;;  %v4900_v31 = vmul.f32 1.442695, %v4864_v38  ;;  %v11588_v38 = vld [vmem:[#allocation32_spill] sm:$0xff] }
 0x994   : > { %v7478_v12 = vpop.eup %7477  ;;  %v10741_v20 = vadd.f32 %v4582_v29, %v4581_v16  ;;  %v4585_v17 = vrot.slane %v4584_v18, 4  ;;  %v5384_v3 = vmul.f32 %v7476_v2, %v10639_v5  ;;  %v10744_v25 = vadd.f32 %v5432_v56, %v5431_v21  ;;  %v11589_v2 = vld [vmem:[#allocation59_spill] sm:$0xff] }
 0x995   : > { %v7480_v42 = vpop.eup %7479  ;;  %v4537_v10 = vmul.f32 %v7478_v12, %v10643_v14  ;;  %7493 = vrcp.f32 %v4911_v53  ;;  %v4902_v28 = vmul.f32 1.442695, %v4865_v62  ;;  %v5287_v57 = vmul.f32 1.442695, %v5267_v50 }
 0x996   : > { %v7482_v45 = vpop.eup %7481  ;;  %v4586_v52 = vadd.f32 %v4585_v17, %v4584_v18  ;;  %v5436_v0 = vadd.f32 %v5384_v3, %v10697_v46  ;;  %v4538_v40 = vmul.f32 %v7480_v42, %v10647_v37  ;;  %7495 = vpow2.f32 %v4882_v1 }
 0x997   : > { %v7484_v16 = vpop.eup %7483  ;;  %v4920_v24 = vadd.f32 1.0, %v7482_v45  ;;  %v5268_v5 = vsub.f32 0.0, %v10739_v23  ;;  %v10752_v21 = vadd.f32 %v11588_v38, %v11584_v63  ;;  %7497 = vpow2.f32 %v4900_v31 }
 0x998   : > { %v7486_v22 = vpop.eup %7485  ;;  %v4587_v14 = vrot.slane %v4586_v52, 2  ;;  %v5437_v35 = vrot.slane %v5436_v0, 4  ;;  %v4921_v29 = vadd.f32 1.0, %v7484_v16  ;;  %v10758_v62 = vadd.f32 %v11589_v2, %v11586_v41  ;;  %v11593_v2 = vld [vmem:[#allocation52_spill] sm:$0xff] }
 0x999   : > { %v4547_v56 = vmul.f32 %v7486_v22, %v10651_v48  ;;  %7499 = vrcp.f32 %v4920_v24  ;;  %v5289_v46 = vmul.f32 1.442695, %v5268_v5  ;;  %v5277_v37 = vsub.f32 0.0, %v10752_v21  ;;  %v7488_v18 = vpop.eup %7487  ;;  %v11590_v5 = vld [vmem:[#allocation74_spill] sm:$0xff] }
 0x99a   : > { %v4588_v53 = vadd.f32 %v4587_v14, %v4586_v52  ;;  %v5438_v1 = vadd.f32 %v5437_v35, %v5436_v0  ;;  %7501 = vrcp.f32 %v4921_v29  ;;  %v7490_v63 = vpop.eup %7489  ;;  %v4548_v9 = vmul.f32 %v7488_v18, %v10655_v61  ;;  %v11592_v14 = vld [vmem:[#allocation30_spill] sm:$0xff] }
 0x99b   : > { %v4605_v50 = vadd.f32 %v4547_v56, %v4537_v10  ;;  %7503 = vpow2.f32 %v4902_v28  ;;  %v5307_v12 = vmul.f32 1.442695, %v5277_v37  ;;  %v5434_v48 = vrot.slane %v10744_v25, 1  ;;  %v7492_v31 = vpop.eup %7491 }
 0x99c   : > { %v4589_v17 = vrot.slane %v4588_v53, 1  ;;  %v5439_v3 = vrot.slane %v5438_v1, 2  ;;  %7505 = vpow2.f32 %v5287_v57  ;;  %v4612_v45 = vadd.f32 %v4548_v9, %v4538_v40  ;;  %v11591_v40 = vld [vmem:[#allocation34_spill] sm:$0xff] }
 0x99d   : > { %v4606_v42 = vrot.slane %v4605_v50, 4  ;;  %7507 = vpow2.f32 %v5289_v46  ;;  %v5278_v52 = vsub.f32 0.0, %v10758_v62  ;;  %v4950_v41 = vmul.f32 %v7490_v63, %v10659_v60 }
 0x99e   : > { %v10763_v0 = vadd.f32 %v4589_v17, %v4588_v53  ;;  %v4914_v10 = vadd.f32 1.0, %v7492_v31  ;;  %7509 = vpow2.f32 %v5307_v12  ;;  %v4613_v16 = vrot.slane %v4612_v45, 4 }
 0x99f   : > { %v7494_v61 = vpop.eup %7493  ;;  %v4607_v28 = vadd.f32 %v4606_v42, %v4605_v50  ;;  %v5309_v24 = vmul.f32 1.442695, %v5278_v52  ;;  %v10768_v38 = vadd.f32 %v11590_v5, %v11576_v13  ;;  %v10770_v57 = vadd.f32 %v5439_v3, %v5438_v1 }
 0x9a0   : > { %7511 = vrcp.f32 %v4914_v10  ;;  %v10774_v22 = vadd.f32 %v11591_v40, %v9998_v58  ;;  %v10778_v60 = vadd.f32 %v11592_v14, %v11576_v13  ;;  %v7496_v35 = vpop.eup %7495  ;;  %v4614_v56 = vadd.f32 %v4613_v16, %v4612_v45 }
 0x9a1   : > { %v4608_v29 = vrot.slane %v4607_v28, 2  ;;  %7513 = vpow2.f32 %v5309_v24  ;;  %v5271_v46 = vsub.f32 0.0, %v10768_v38  ;;  %v7498_v37 = vpop.eup %7497  ;;  %v4915_v18 = vadd.f32 1.0, %v7496_v35 }
 0x9a2   : > { %v5272_v53 = vsub.f32 0.0, %v10774_v22  ;;  %v5281_v1 = vsub.f32 0.0, %v10778_v60  ;;  %v10785_v63 = vadd.f32 %v11593_v2, %v9998_v58  ;;  %v4615_v13 = vrot.slane %v4614_v56, 2 }
 0x9a3   : > { %v7500_v50 = vpop.eup %7499  ;;  %v4609_v9 = vadd.f32 %v4608_v29, %v4607_v28  ;;  %v4924_v12 = vadd.f32 1.0, %v7498_v37  ;;  %v5295_v17 = vmul.f32 1.442695, %v5271_v46  ;;  %v4951_v31 = vmul.f32 %v7494_v61, %v10677_v30 }
 0x9a4   : > { %v7502_v3 = vpop.eup %7501  ;;  %v4960_v42 = vmul.f32 %v7500_v50, %v10690_v43  ;;  %7515 = vrcp.f32 %v4915_v18  ;;  %v5297_v45 = vmul.f32 1.442695, %v5272_v53  ;;  %v10789_v16 = vadd.f32 %v4615_v13, %v4614_v56  ;;  %v11594_v50 = vld [vmem:[#allocation48_spill] sm:$0xff]  ;;  %v11595_v13 = vld [vmem:[#allocation47_spill] sm:$0xff] }
 0x9a5   : > { %v7504_v52 = vpop.eup %7503  ;;  %v4610_v10 = vrot.slane %v4609_v9, 1  ;;  %v4961_v24 = vmul.f32 %v7502_v3, %v10694_v11  ;;  %7517 = vrcp.f32 %v4924_v12  ;;  %v5282_v40 = vsub.f32 0.0, %v10785_v63 }
 0x9a6   : > { %v7506_v58 = vpop.eup %7505  ;;  %v4982_v5 = vadd.f32 %v4960_v42, %v4950_v41  ;;  %v4925_v28 = vadd.f32 1.0, %v7504_v52  ;;  %7519 = vpow2.f32 %v5295_v17  ;;  %v5315_v61 = vmul.f32 1.442695, %v5281_v1 }
 0x9a7   : > { %v7508_v14 = vpop.eup %7507  ;;  %v10793_v35 = vadd.f32 %v4610_v10, %v4609_v9  ;;  %v4989_v30 = vadd.f32 %v4961_v24, %v4951_v31  ;;  %v5327_v43 = vadd.f32 1.0, %v7506_v58  ;;  %v4617_v46 = vrot.slane %v10789_v16, 1  ;;  %v11596_v31 = vld [vmem:[#allocation57_spill] sm:$0xff] }
 0x9a8   : > { %v7510_v29 = vpop.eup %7509  ;;  %v4983_v56 = vrot.slane %v4982_v5, 4  ;;  %7521 = vrcp.f32 %v4925_v28  ;;  %v5328_v37 = vadd.f32 1.0, %v7508_v14  ;;  %v5317_v41 = vmul.f32 1.442695, %v5282_v40 }
 0x9a9   : > { %v4990_v11 = vrot.slane %v4989_v30, 4  ;;  %7523 = vrcp.f32 %v5327_v43  ;;  %v5337_v18 = vadd.f32 1.0, %v7510_v29  ;;  %v10798_v9 = vadd.f32 %v11594_v50, %v10060_v19 }
 0x9aa   : > { %v7512_v53 = vpop.eup %7511  ;;  %v4984_v2 = vadd.f32 %v4983_v56, %v4982_v5  ;;  %7525 = vrcp.f32 %v5328_v37  ;;  %v10802_v1 = vadd.f32 %v11595_v13, %v10070_v47  ;;  %v10807_v42 = vadd.f32 %v11596_v31, %v10060_v19 }
 0x9ab   : > { %v7514_v12 = vpop.eup %7513  ;;  %v4991_v17 = vadd.f32 %v4990_v11, %v4989_v30  ;;  %v4954_v3 = vmul.f32 %v7512_v53, %v10710_v59  ;;  %7527 = vrcp.f32 %v5337_v18  ;;  %v5275_v24 = vsub.f32 0.0, %v10798_v9  ;;  %v11597_v30 = vld [vmem:[#allocation25_spill] sm:$0xff] }
 0x9ac   : > { %v4985_v52 = vrot.slane %v4984_v2, 2  ;;  %v5338_v10 = vadd.f32 1.0, %v7514_v12  ;;  %7529 = vpow2.f32 %v5297_v45  ;;  %v5276_v5 = vsub.f32 0.0, %v10802_v1 }
 0x9ad   : > { %v4992_v58 = vrot.slane %v4991_v17, 2  ;;  %7531 = vpow2.f32 %v5315_v61  ;;  %v5285_v28 = vsub.f32 0.0, %v10807_v42  ;;  %v5303_v59 = vmul.f32 1.442695, %v5275_v24 }
 0x9ae   : > { %v7516_v40 = vpop.eup %7515  ;;  %v4986_v14 = vadd.f32 %v4985_v52, %v4984_v2  ;;  %7533 = vrcp.f32 %v5338_v10  ;;  %v10814_v43 = vadd.f32 %v11597_v30, %v10070_v47  ;;  %v5305_v56 = vmul.f32 1.442695, %v5276_v5 }
 0x9af   : > { %v7518_v19 = vpop.eup %7517  ;;  %v4993_v29 = vadd.f32 %v4992_v58, %v4991_v17  ;;  %v4955_v45 = vmul.f32 %v7516_v40, %v10714_v55  ;;  %7535 = vpow2.f32 %v5317_v41  ;;  %v5323_v18 = vmul.f32 1.442695, %v5285_v28  ;;  %v11598_v17 = vld [vmem:[#allocation45_spill] sm:$0xff]  ;;  %v11599_v28 = vld [vmem:[#allocation67_spill] sm:$0xff] }
 0x9b0   : > { %v7520_v37 = vpop.eup %7519  ;;  %v4987_v61 = vrot.slane %v4986_v14, 1  ;;  %v4964_v11 = vmul.f32 %v7518_v19, %v10720_v26  ;;  %7537 = vpow2.f32 %v5303_v59  ;;  %v5286_v50 = vsub.f32 0.0, %v10814_v43 }
 0x9b1   : > { %v4994_v53 = vrot.slane %v4993_v29, 1  ;;  %v5331_v2 = vadd.f32 1.0, %v7520_v37  ;;  %7539 = vpow2.f32 %v5305_v56  ;;  %v4622_v55 = vadd.f32 %v10722_v39, %v11598_v17 }
 0x9b2   : > { %v7522_v13 = vpop.eup %7521  ;;  %v4988_v47 = vadd.f32 %v4987_v61, %v4986_v14  ;;  %v5010_v12 = vadd.f32 %v4964_v11, %v4954_v3  ;;  %7541 = vpow2.f32 %v5323_v18  ;;  %v5325_v52 = vmul.f32 1.442695, %v5286_v50  ;;  %v11600_v11 = vld [vmem:[#allocation35_spill] sm:$0xff] }
 0x9b3   : > { %v7524_v41 = vpop.eup %7523  ;;  %v4965_v31 = vmul.f32 %v7522_v13, %v10728_v36  ;;  %7543 = vrcp.f32 %v5331_v2  ;;  %v4995_v26 = vadd.f32 %v4994_v53, %v4993_v29  ;;  %v5413_v5 = vrot.slane %v10705_v8, 1 }
 0x9b4   : > { %v7526_v10 = vpop.eup %7525  ;;  %v5011_v24 = vrot.slane %v5010_v12, 4  ;;  %v5367_v58 = vmul.f32 %v7524_v41, %v10732_v27  ;;  %v4621_v40 = vadd.f32 %v10700_v4, %v11599_v28  ;;  %7545 = vpow2.f32 %v5325_v52 }
 0x9b5   : > { %v7528_v3 = vpop.eup %7527  ;;  %v5017_v14 = vadd.f32 %v4965_v31, %v4955_v45  ;;  %v5368_v59 = vmul.f32 %v7526_v10, %v10739_v23  ;;  %v5041_v39 = vadd.f32 %v4995_v26, %v4622_v55  ;;  %v5414_v29 = vadd.f32 %v5413_v5, %v10705_v8  ;;  %v11601_v45 = vld [vmem:[#allocation71_spill] sm:$0xff] }
 0x9b6   : > { %v7530_v30 = vpop.eup %7529  ;;  %v5012_v36 = vadd.f32 %v5011_v24, %v5010_v12  ;;  %v5377_v19 = vmul.f32 %v7528_v3, %v10752_v21  ;;  %v5040_v56 = vadd.f32 %v4988_v47, %v4621_v40  ;;  %v5407_v4 = vadd.f32 %v5406_v7, %v10686_v54 }
 0x9b7   : > { %v7532_v37 = vpop.eup %7531  ;;  %v5018_v27 = vrot.slane %v5017_v14, 4  ;;  %v5332_v61 = vadd.f32 1.0, %v7530_v30  ;;  %v4626_v18 = vadd.f32 %v11601_v45, %v11600_v11  ;;  %v5460_v13 = vadd.f32 %v5414_v29, %v5041_v39  ;;  %v11602_v45 = vld [vmem:[#allocation82_spill] sm:$0xff] }
 0x9b8   : > { %v7534_v23 = vpop.eup %7533  ;;  %v5013_v53 = vrot.slane %v5012_v36, 2  ;;  %v5387_v2 = vadd.f32 %v5377_v19, %v5367_v58  ;;  %v5341_v50 = vadd.f32 1.0, %v7532_v37  ;;  %v5459_v47 = vadd.f32 %v5407_v4, %v5040_v56 }
 0x9b9   : > { %v7536_v12 = vpop.eup %7535  ;;  %v5019_v21 = vadd.f32 %v5018_v27, %v5017_v14  ;;  %v5378_v8 = vmul.f32 %v7534_v23, %v10758_v62  ;;  %7547 = vrcp.f32 %v5332_v61  ;;  %v5470_v10 = vmul.f32 0.015625, %v5460_v13 }
 0x9ba   : > { %v7538_v17 = vpop.eup %7537  ;;  %v5014_v55 = vadd.f32 %v5013_v53, %v5012_v36  ;;  %v5388_v41 = vrot.slane %v5387_v2, 4  ;;  %7549 = vrcp.f32 %v5341_v50  ;;  %v5342_v31 = vadd.f32 1.0, %v7536_v12  ;;  %v11603_v53 = vld [vmem:[#allocation84_spill] sm:$0xff] }
 0x9bb   : > { %v7540_v54 = vpop.eup %7539  ;;  %v5020_v7 = vrot.slane %v5019_v21, 2  ;;  %v5394_v52 = vadd.f32 %v5378_v8, %v5368_v59  ;;  %v5335_v26 = vadd.f32 1.0, %v7538_v17  ;;  %v10838_v39 = vadd.f32 %v4617_v46, %v10789_v16  ;;  %v7008_v16 = vld [vmem:[%s11107_s21 + $0x180] sm:$0xff]  }
 0x9bc   : > { %v7542_v24 = vpop.eup %7541  ;;  %v5015_v58 = vrot.slane %v5014_v55, 1  ;;  %v5389_v5 = vadd.f32 %v5388_v41, %v5387_v2  ;;  %7551 = vrcp.f32 %v5342_v31  ;;  %v5336_v28 = vadd.f32 1.0, %v7540_v54  ;;  %v11605_v31 = vld [vmem:[#allocation68_spill] sm:$0xff] }
 0x9bd   : > { %v7544_v40 = vpop.eup %7543  ;;  %v5021_v3 = vadd.f32 %v5020_v7, %v5019_v21  ;;  %v5395_v62 = vrot.slane %v5394_v52, 4  ;;  %7553 = vrcp.f32 %v5335_v26  ;;  %v5345_v14 = vadd.f32 1.0, %v7542_v24  ;;  %v7011_v21 = vld [vmem:[%s11107_s21 + $0x1c8] sm:$0xff]  }
 0x9be   : > { %v5016_v30 = vadd.f32 %v5015_v58, %v5014_v55  ;;  %v5390_v36 = vrot.slane %v5389_v5, 2  ;;  %7555 = vrcp.f32 %v5336_v28  ;;  %v7546_v59 = vpop.eup %7545  ;;  %v5480_v56 = vpack.c.bf16 %v5470_v10, %v5470_v10  ;;  %v11606_v26 = vld [vmem:[#allocation46_spill] sm:$0xff]  ;;  %v11608_v28 = vld [vmem:[#allocation72_spill] sm:$0xff] }
 0x9bf   : > { %v5022_v19 = vrot.slane %v5021_v3, 1  ;;  %v5396_v29 = vadd.f32 %v5395_v62, %v5394_v52  ;;  %7557 = vrcp.f32 %v5345_v14  ;;  %v5346_v27 = vadd.f32 1.0, %v7546_v59  ;;  %v11610_v62 = vld [vmem:[#allocation37_spill] sm:$0xff] }
 0x9c0   : > { %v5391_v37 = vadd.f32 %v5390_v36, %v5389_v5  ;;  %v5469_v61 = vmul.f32 0.015625, %v5459_v47  ;;  %v5441_v4 = vrot.slane %v10770_v57, 1  ;;  %6200 = vmatprep.mubr.bf16.mxu0 %v5480_v56  ;;  %v4620_v23 = vadd.f32 %v10667_v44, %v11602_v45  ;;  %v11611_v36 = vld [vmem:[#allocation69_spill] sm:$0xff] }
 0x9c1   : > { %v5397_v11 = vrot.slane %v5396_v29, 2  ;;  %v5023_v46 = vadd.f32 %v5022_v19, %v5021_v3  ;;  %v11604_v2 = vrot.slane %v11603_v53, 1  ;;  %7559 = vrcp.f32 %v5346_v27 }
 0x9c2   : > { %v5392_v13 = vrot.slane %v5391_v37, 1  ;;  %v5479_v12 = vpack.c.bf16 %v5469_v61, %v5469_v61  ;;  %v5442_v8 = vadd.f32 %v5441_v4, %v10770_v57  ;;  %v4619_v44 = vadd.f32 %v10634_v51, %v11605_v31 }
 0x9c3   : > { %v4981_v50 = vadd.f32 %v11604_v2, %v11603_v53  ;;  %v7548_v47 = vpop.eup %7547  ;;  %v5398_v17 = vadd.f32 %v5397_v11, %v5396_v29  ;;  %v5045_v55 = vadd.f32 %v5023_v46, %v4626_v18  ;;  %v5371_v7 = vmul.f32 %v7544_v40, %v10768_v38  ;;  %v7012_v18 = vld [vmem:[%s11107_s21 + $0x188] sm:$0xff]  }
 0x9c4   : > { %v7550_v54 = vpop.eup %7549  ;;  %6201 = vmatmul.mubr.bf16.vlgmr.msra.gmra.mrb[76].mxu0 %v5479_v12  ;;  %v5393_v52 = vadd.f32 %v5392_v13, %v5391_v37  ;;  %v4624_v10 = vadd.f32 %v10763_v0, %v11606_v26  ;;  %v11607_v24 = vrot.slane %v10549_v33, 1  ;;  %v5038_v38 = vadd.f32 %v11608_v28, %v4619_v44  ;;  %v7015_v0 = vld [vmem:[%s11107_s21 + $0x1d0] sm:$0xff]   ;;  %v7022_v26 = vld [vmem:[%s11107_s21 + $0x100] sm:$0xff]  }
 0x9c5   : > { %v5039_v41 = vadd.f32 %v4981_v50, %v4620_v23  ;;  %v5381_v57 = vmul.f32 %v7550_v54, %v10778_v60  ;;  %6752 = vmatpush3.bf16.msra.mxu0 %v7008_v16  ;;  %v5464_v51 = vadd.f32 %v5442_v8, %v5045_v55  ;;  %v5399_v5 = vrot.slane %v5398_v17, 1  ;;  %v11609_v60 = vld [vmem:[#allocation70_spill] sm:$0xff]  ;;  %v11612_v16 = vld [vmem:[#allocation27_spill] sm:$0xff] }
 0x9c6   : > { %v5009_v58 = vadd.f32 %v11607_v24, %v10549_v33  ;;  %v7552_v40 = vpop.eup %7551  ;;  %v5372_v3 = vmul.f32 %v7548_v47, %v10774_v22  ;;  %6753 = vmatprep.subr.bf16.mxu0 %v7011_v21  ;;  %v4625_v14 = vadd.f32 %v11610_v62, %v11609_v60  ;;  %v4623_v59 = vadd.f32 %v10741_v20, %v11611_v36  ;;  %v11613_v47 = vld [vmem:[#allocation58_spill] sm:$0xff]  ;;  %v7029_v62 = vld [vmem:[%s11107_s21 + $0x150] sm:$0xff]  }
 0x9c7   : > { %v7554_v19 = vpop.eup %7553  ;;  %v5415_v29 = vadd.f32 %v5381_v57, %v5371_v7  ;;  %v5382_v56 = vmul.f32 %v7552_v40, %v10785_v63  ;;  %v5474_v37 = vmul.f32 0.015625, %v5464_v51  ;;  %v5400_v27 = vadd.f32 %v5399_v5, %v5398_v17  ;;  %v7016_v63 = vld [vmem:[%s11107_s21 + $0x190] sm:$0xff]  }
 0x9c8   : > { %v10870_v33 = vadd.f32 %v5009_v58, %v4624_v10  ;;  %v7556_v22 = vpop.eup %7555  ;;  %v5457_v61 = vadd.f32 %v5393_v52, %v5038_v38  ;;  %v5044_v4 = vadd.f32 %v5016_v30, %v4625_v14  ;;  %v5435_v11 = vadd.f32 %v5434_v48, %v10744_v25  ;;  %v7019_v25 = vld [vmem:[%s11107_s21 + $0x1d8] sm:$0xff]  }
 0x9c9   : > { %v10881_v46 = vadd.f32 %v11612_v16, %v4623_v59  ;;  %v7558_v45 = vpop.eup %7557  ;;  %v5416_v23 = vrot.slane %v5415_v29, 4  ;;  %v5422_v53 = vadd.f32 %v5382_v56, %v5372_v3  ;;  %v5375_v20 = vmul.f32 %v7554_v19, %v10798_v9  ;;  %6754 = vmatpush3.bf16.msra.mxu0 %v7012_v18  ;;  %v7026_v3 = vld [vmem:[%s11107_s21 + $0x108] sm:$0xff]   ;;  %v7033_v16 = vld [vmem:[%s11107_s21 + $0x158] sm:$0xff]  }
 0x9ca   : > { %v5484_v2 = vpack.c.bf16 %v5474_v37, %v5474_v37  ;;  %v5385_v30 = vmul.f32 %v7558_v45, %v10807_v42  ;;  %6755 = vmatprep.subr.bf16.mxu0 %v7015_v0  ;;  %v5458_v48 = vadd.f32 %v5400_v27, %v5039_v41  ;;  %v5467_v50 = vmul.f32 0.015625, %v5457_v61  ;;  %v7027_v0 = vld [vmem:[%s11107_s21 + $0x1e8] sm:$0xff]   ;;  %v7031_v61 = vld [vmem:[%s11107_s21 + $0x1f0] sm:$0xff]  }
 0x9cb   : > { %v10891_v13 = vadd.f32 %v5435_v11, %v5044_v4  ;;  %v5417_v12 = vadd.f32 %v5416_v23, %v5415_v29  ;;  %v5423_v21 = vrot.slane %v5422_v53, 4  ;;  %v4628_v9 = vadd.f32 %v10838_v39, %v10611_v6  ;;  %v7560_v42 = vpop.eup %7559  ;;  %v7020_v6 = vld [vmem:[%s11107_s21 + $0x198] sm:$0xff]   ;;  %v7028_v29 = vld [vmem:[%s11107_s21 + $0x1a8] sm:$0xff]   ;;  %v7032_v23 = vld [vmem:[%s11107_s21 + $0x1b0] sm:$0xff]  }
 0x9cc   : > { %6280 = vmatprep.mubr.bf16.mxu0 %v5484_v2  ;;  %v5037_v8 = vadd.f32 %v5036_v34, %v10627_v15  ;;  %v11614_v17 = vrot.slane %v11613_v47, 1  ;;  %v5376_v41 = vmul.f32 %v7556_v22, %v10802_v1  ;;  %v5443_v31 = vadd.f32 %v5385_v30, %v5375_v20  ;;  %v7030_v22 = vld [vmem:[%s11107_s21 + $0x110] sm:$0xff]   ;;  %v7034_v20 = vld [vmem:[%s11107_s21 + $0x118] sm:$0xff]   ;;  %v7037_v30 = vld [vmem:[%s11107_s21 + $0x160] sm:$0xff]  }
 0x9cd   : > { %v5468_v44 = vmul.f32 0.015625, %v5458_v48  ;;  %v5418_v54 = vrot.slane %v5417_v12, 2  ;;  %v5424_v7 = vadd.f32 %v5423_v21, %v5422_v53  ;;  %v5386_v52 = vmul.f32 %v7560_v42, %v10814_v43  ;;  %6756 = vmatpush3.bf16.msra.mxu0 %v7016_v63  ;;  %v7023_v43 = vld [vmem:[%s11107_s21 + $0x1e0] sm:$0xff]   ;;  %v7036_v48 = vld [vmem:[%s11107_s21 + $0x1b8] sm:$0xff]   ;;  %v7040_v42 = vld [vmem:[%s11107_s21 + $0x128] sm:$0xff]  }
 0x9ce   : > { %v4192_v55 = vadd.f32 %v11614_v17, %v11613_v47  ;;  %v10906_v39 = vadd.f32 %v5037_v8, %v4628_v9  ;;  %v5030_v15 = vadd.f32 %v5029_v49, %v10624_v32  ;;  %v5444_v34 = vrot.slane %v5443_v31, 4  ;;  %6757 = vmatprep.subr.bf16.mxu0 %v7019_v25  ;;  %v7025_v32 = vld [vmem:[%s11107_s21 + $0x148] sm:$0xff]   ;;  %v7041_v47 = vld [vmem:[%s11107_s21 + $0x170] sm:$0xff]   ;;  %v7043_v17 = vld [vmem:[%s11107_s21 + $0x178] sm:$0xff]  }
 0x9cf   : > { %v5478_v1 = vpack.c.bf16 %v5468_v44, %v5468_v44  ;;  %v5419_v24 = vadd.f32 %v5418_v54, %v5417_v12  ;;  %v5425_v58 = vrot.slane %v5424_v7, 2  ;;  %v5450_v57 = vadd.f32 %v5386_v52, %v5376_v41  ;;  %v7038_v12 = vld [vmem:[%s11107_s21 + $0x120] sm:$0xff]   ;;  %v7039_v9 = vld [vmem:[%s11107_s21 + $0x168] sm:$0xff]  }
 0x9d0   : > { %v4627_v10 = vadd.f32 %v10793_v35, %v4192_v55  ;;  %v5477_v18 = vpack.c.bf16 %v5467_v50, %v5467_v50  ;;  %v5445_v49 = vadd.f32 %v5444_v34, %v5443_v31  ;;  %v7024_v35 = vld [vmem:[%s11107_s21 + $0x1a0] sm:$0xff]   ;;  %v5473_v21 = vmul.f32 0.015625, %v10891_v13  ;;  %v7042_v13 = vld [vmem:[%s11107_s21 + $0x130] sm:$0xff]   ;;  %v7044_v55 = vld [vmem:[%s11107_s21 + $0x138] sm:$0xff]  }
 0x9d1   : > { %6160 = vmatprep.mubr.bf16.mxu1 %v5478_v1  ;;  %v5420_v5 = vrot.slane %v5419_v24, 1  ;;  %v5426_v28 = vadd.f32 %v5425_v58, %v5424_v7  ;;  %v5451_v38 = vrot.slane %v5450_v57, 4  ;;  %6758 = vmatpush3.bf16.msra.mxu0 %v7020_v6  ;;  %v7045_v31 = vld [vmem:[%s11107_s21 + $0x240] sm:$0xff]   ;;  %v7047_v52 = vld [vmem:[%s11107_s21 + $0x248] sm:$0xff]   ;;  %v7050_v34 = vld [vmem:[%s11107_s21 + $0x210] sm:$0xff]  }
 0x9d2   : > { %v5046_v51 = vadd.f32 %v5030_v15, %v4627_v10  ;;  %6161 = vmatmul.mubr.bf16.vlgmr.msra.gmra.mrb[56].mxu1 %v5477_v18  ;;  %v5446_v40 = vrot.slane %v5445_v49, 2  ;;  %6759 = vmatprep.subr.bf16.mxu0 %v7023_v43  ;;  %v5483_v8 = vpack.c.bf16 %v5473_v21, %v5473_v21  ;;  %v7046_v54 = vld [vmem:[%s11107_s21 + $0x200] sm:$0xff]   ;;  %v7049_v15 = vld [vmem:[%s11107_s21 + $0x250] sm:$0xff]   ;;  %v7051_v1 = vld [vmem:[%s11107_s21 + $0x258] sm:$0xff]  }
 0x9d3   : > { %6730 = vmatpush3.bf16.msra.mxu1 %v7022_v26  ;;  %v5452_v60 = vadd.f32 %v5451_v38, %v5450_v57  ;;  %v5427_v14 = vrot.slane %v5426_v28, 1  ;;  %v5421_v36 = vadd.f32 %v5420_v5, %v5419_v24  ;;  %v7052_v26 = vld [vmem:[%s11107_s21 + $0x218] sm:$0xff]   ;;  %v7053_v43 = vld [vmem:[%s11107_s21 + $0x260] sm:$0xff]   ;;  %v7055_v24 = vld [vmem:[%s11107_s21 + $0x268] sm:$0xff]  }
 0x9d4   : > { %6731 = vmatprep.subr.bf16.mxu1 %v7025_v32  ;;  %v5447_v59 = vadd.f32 %v5446_v40, %v5445_v49  ;;  %v7054_v10 = vld [vmem:[%s11107_s21 + $0x220] sm:$0xff]   ;;  %v7056_v58 = vld [vmem:[%s11107_s21 + $0x228] sm:$0xff]   ;;  %v7057_v57 = vld [vmem:[%s11107_s21 + $0x270] sm:$0xff]  }
 0x9d5   : > { %v5453_v19 = vrot.slane %v5452_v60, 2  ;;  %6760 = vmatpush3.bf16.msra.mxu0 %v7024_v35  ;;  %v5428_v56 = vadd.f32 %v5427_v14, %v5426_v28  ;;  %v5461_v37 = vadd.f32 %v5421_v36, %v10881_v46  ;;  %v7058_v18 = vld [vmem:[%s11107_s21 + $0x230] sm:$0xff]   ;;  %v7059_v32 = vld [vmem:[%s11107_s21 + $0x278] sm:$0xff]  }
 0x9d6   : > { %v5448_v27 = vrot.slane %v5447_v59, 1  ;;  %6761 = vmatprep.subr.bf16.mxu0 %v7027_v0  ;;  %v7060_v49 = vld [vmem:[%s11107_s21 + $0x238] sm:$0xff]  }
 0x9d7   : > { %6732 = vmatpush3.bf16.msra.mxu1 %v7026_v3  ;;  %v5454_v4 = vadd.f32 %v5453_v19, %v5452_v60  ;;  %v5462_v11 = vadd.f32 %v5428_v56, %v10870_v33  ;;  %v7035_v33 = vld [vmem:[%s11107_s21 + $0x1f8] sm:$0xff]   ;;  %v5471_v41 = vmul.f32 0.015625, %v5461_v37  ;;  %v5647_v60 = vld [vmem:[%s11108_s22] sm:$0x1] }
 0x9d8   : > { %6733 = vmatprep.subr.bf16.mxu1 %v7029_v62  ;;  %v5449_v46 = vadd.f32 %v5448_v27, %v5447_v59 }
 0x9d9   : > { %6762 = vmatpush3.bf16.msra.mxu0 %v7028_v29  ;;  %v5472_v45 = vmul.f32 0.015625, %v5462_v11  ;;  %v5455_v53 = vrot.slane %v5454_v4, 1  ;;  %v5481_v7 = vpack.c.bf16 %v5471_v41, %v5471_v41 }
 0x9da   : > { %6763 = vmatprep.subr.bf16.mxu0 %v7031_v61  ;;  %v10956_v2 = vadd.f32 %v5449_v46, %v5046_v51 }
 0x9db   : > { %6734 = vmatpush3.bf16.msra.mxu1 %v7030_v22  ;;  %v5482_v63 = vpack.c.bf16 %v5472_v45, %v5472_v45  ;;  %v5456_v25 = vadd.f32 %v5455_v53, %v5454_v4 }
 0x9dc   : > { %6735 = vmatprep.subr.bf16.mxu1 %v7033_v16  ;;  %v5475_v51 = vmul.f32 0.015625, %v10956_v2 }
 0x9dd   : > { %6240 = vmatprep.mubr.bf16.mxu1 %v5482_v63  ;;  %6764 = vmatpush3.bf16.msra.mxu0 %v7032_v23  ;;  %v5466_v50 = vadd.f32 %v5456_v25, %v10906_v39  ;;  %v7048_v39 = vld [vmem:[%s11107_s21 + $0x208] sm:$0xff]  }
 0x9de   : > { %6765 = vmatprep.subr.bf16.mxu0 %v7035_v33  ;;  %v5485_v5 = vpack.c.bf16 %v5475_v51, %v5475_v51 }
 0x9df   : > { %6736 = vmatpush3.bf16.msra.mxu1 %v7034_v20  ;;  %v5476_v44 = vmul.f32 0.015625, %v5466_v50 }
 0x9e0   : > { %6737 = vmatprep.subr.bf16.mxu1 %v7037_v30 }
 0x9e1   : > { %6766 = vmatpush3.bf16.msra.mxu0 %v7036_v48  ;;  %v5486_v6 = vpack.c.bf16 %v5476_v44, %v5476_v44 }
 0x9e3   : > { %6738 = vmatpush3.bf16.msra.mxu1 %v7038_v12 }
 0x9e4   : > { %6739 = vmatprep.subr.bf16.mxu1 %v7039_v9  ;;  %6281 = vmatmul.mubr.bf16.vlgmr.msra.gmra.mrb[80].mxu0 %v5483_v8 }
 0x9e7   : > { %6740 = vmatpush3.bf16.msra.mxu1 %v7040_v42 }
 0x9e8   : > { %6741 = vmatprep.subr.bf16.mxu1 %v7041_v47 }
 0x9eb   : > { %6742 = vmatpush3.bf16.msra.mxu1 %v7042_v13 }
 0x9ec   : > { %6743 = vmatprep.subr.bf16.mxu1 %v7043_v17 }
 0x9ef   : > { %6744 = vmatpush3.bf16.msra.mxu1 %v7044_v55 }
 0x9f0   : > { %6773 = vmatprep.subr.bf16.mxu1 %v7045_v31 }
 0x9f2   : > { %6241 = vmatmul.mubr.bf16.vlgmr.msra.gmra.mrb[60].mxu1 %v5481_v7 }
 0x9f3   : > { %6774 = vmatpush3.bf16.msra.mxu1 %v7046_v54  ;;  %6320 = vmatprep.mubr.bf16.mxu1 %v5486_v6 }
 0x9f4   : > { %6775 = vmatprep.subr.bf16.mxu1 %v7047_v52 }
 0x9f7   : > { %6776 = vmatpush3.bf16.msra.mxu1 %v7048_v39 }
 0x9f8   : > { %6777 = vmatprep.subr.bf16.mxu1 %v7049_v15 }
 0x9fb   : > { %6778 = vmatpush3.bf16.msra.mxu1 %v7050_v34 }
 0x9fc   : > { %6779 = vmatprep.subr.bf16.mxu1 %v7051_v1 }
 0x9ff   : > { %6780 = vmatpush3.bf16.msra.mxu1 %v7052_v26 }
 0xa00   : > { %6781 = vmatprep.subr.bf16.mxu1 %v7053_v43 }
 0xa03   : > { %6782 = vmatpush3.bf16.msra.mxu1 %v7054_v10 }
 0xa04   : > { %6783 = vmatprep.subr.bf16.mxu1 %v7055_v24 }
 0xa07   : > { %6784 = vmatpush3.bf16.msra.mxu1 %v7056_v58 }
 0xa08   : > { %6785 = vmatprep.subr.bf16.mxu1 %v7057_v57 }
 0xa0b   : > { %6786 = vmatpush3.bf16.msra.mxu1 %v7058_v18 }
 0xa0c   : > { %6787 = vmatprep.subr.bf16.mxu1 %v7059_v32 }
 0xa0f   : > { %6788 = vmatpush3.bf16.msra.mxu1 %v7060_v49 }
 0xa12   : > { %6321 = vmatmul.mubr.bf16.vlgmr.msra.gmra.mrb[64].mxu1 %v5485_v5 }
 0xa97   : > { %v6723_v28 = vpop.f32.mrb[76].mxu0 }
 0xa98   : > { %v6724_v38 = vpop.f32.mrb[77].mxu0 }
 0xa99   : > { %v6725_v35 = vadd.f32 %v6724_v38, %v6723_v28  ;;  %v6726_v40 = vpop.f32.mrb[78].mxu0 }
 0xa9a   : > { %v6727_v3 = vpop.f32.mrb[79].mxu0 }
 0xaa5   : > { %v6701_v0 = vpop.f32.mrb[56].mxu1 }
 0xaa6   : > { %v6702_v62 = vpop.f32.mrb[57].mxu1 }
 0xaa7   : > { %v6703_v14 = vadd.f32 %v6702_v62, %v6701_v0  ;;  %v6704_v36 = vpop.f32.mrb[58].mxu1 }
 0xaa8   : > { %v6705_v59 = vpop.f32.mrb[59].mxu1 }
 0xaa9   : > { %v6163_v19 = vadd.f32 %v6703_v14, %v5647_v60 }
 0xaab   : > { %v6203_v29 = vadd.f32 %v6725_v35, %v6163_v19 }
 0xab7   : > { %v6767_v56 = vpop.f32.mrb[80].mxu0 }
 0xab8   : > { %v6768_v37 = vpop.f32.mrb[81].mxu0 }
 0xab9   : > { %v6769_v27 = vadd.f32 %v6768_v37, %v6767_v56  ;;  %v6770_v22 = vpop.f32.mrb[82].mxu0 }
 0xaba   : > { %v6771_v61 = vpop.f32.mrb[83].mxu0 }
 0xac5   : > { %v6745_v4 = vpop.f32.mrb[60].mxu1 }
 0xac6   : > { %v6746_v11 = vpop.f32.mrb[61].mxu1 }
 0xac7   : > { %v6747_v16 = vadd.f32 %v6746_v11, %v6745_v4  ;;  %v6748_v46 = vpop.f32.mrb[62].mxu1 }
 0xac8   : > { %v6749_v45 = vpop.f32.mrb[63].mxu1 }
 0xac9   : > { %v6243_v23 = vadd.f32 %v6747_v16, %v6203_v29 }
 0xacb   : > { %v6283_v53 = vadd.f32 %v6769_v27, %v6243_v23 }
 0xae5   : > { %v6789_v20 = vpop.f32.mrb[64].mxu1 }
 0xae6   : > { %v6790_v33 = vpop.f32.mrb[65].mxu1 }
 0xae7   : > { %v6791_v2 = vadd.f32 %v6790_v33, %v6789_v20  ;;  %v6792_v63 = vpop.f32.mrb[66].mxu1 }
 0xae8   : > { %v6793_v30 = vpop.f32.mrb[67].mxu1 }
 0xae9   : > { %v6323_v25 = vadd.f32 %v6791_v2, %v6283_v53 }
 0xaeb   : > { %6328 = vst [vmem:[%s702_s24] sm:$0x1] %v6323_v25 }
 0xaec   : > { %7576 = shalt.err (!%p7573_p3)
}
 0xaed   : > { %s7577_s28 = scalar_lea.hbm %s11044_s7, 16  ;;  %s7581_s27 = scalar_lea.hbm %s11618_s5, 32 }
 0xaee   : > { %p7578_p4 = scmp.ne.s32.totalorder %s11044_s7, %s7577_s28  ;;  %p7582_p9 = scmp.lt.u32.totalorder %s11044_s7, %s11618_s5 }
 0xaef   : > { %p7583_p10 = scmp.lt.u32.totalorder %s7581_s27, %s7577_s28  ;;  %p7585_p12 = scmp.lt.u32.totalorder %s7577_s28, %s11044_s7 }
 0xaf0   : > { %p7579_p7 = pnand %p7578_p4, %p7790_p5 }
 0xaf1   : > { %p7584_p11 = por %p7583_p10, %p7582_p9 }
 0xaf2   : > { %p7580_p8 = pneg %p7579_p7 }
 0xaf3   : > { %p7586_p13 = por %p7585_p12, %p7584_p11 }
 0xaf5   : > { %p7587_p0 = pnand %p7586_p13, %p7580_p8 }
 0xaf7   : > { %7590 = shalt.err (!%p7587_p0)
}
 0xaf8   : > { %6893 = dma.vmem_to_hbm [thread:$0]  (%p7790_p5), %s11046_s26, 16, %s11044_s7, %s6330_s1  }
 0xaf9 PF: > { %s11619_s8 = sld [smem:[#allocation8_spill]]  ;;  %s11620_s0 = sld [smem:[#allocation6_spill]] }
 0xaff   : > { %p6899_p1 = scmp.ge.s32.totalorder %s11619_s8, 2  ;;  %s6354_s3 = sand.u32 1, %s11620_s0  }
 0xb00   : > { %s6355_s4 = scalar_lea.sflag [#allocation4], %s6354_s3 }
 0xb01   : > { %p6896_p2 = pnand %p6899_p1, %p7794_p6 }
 0xb03   : > { %7608 = dma.done.wait (!%p6896_p2), %s6355_s4, 16  }
 0xb04   : > { %7610 = vsyncadd (!%p6896_p2), %s6355_s4, 4294967280  ;;  %s11622_s25 = sld [smem:[#allocation10_spill]]  ;;  %s11623_s28 = sld [smem:[#allocation7_spill]] }
 0xb05   : > { %s11624_s24 = sld [smem:[#allocation11_spill]]  ;;  %s11625_s4 = smov %s7617_s30 }
 0xb0a   : > { %p33_p3 = scmp.ge.s32.totalorder %s11622_s25, 4   ;;  %s11626_s30 = smov %s11623_s28 }
 0xb0c   :  { %35 = sbr.rel (!%p33_p3) target bundleno = 14 (0xe), region = 168 }
 0xb13   :  { %6359 = vsyncpa [#allocation4], 1 }
 0xb14   :  { %6361 = vsyncpa [#allocation4 + $0x1], 1 }

</bundles_post_ra>
